<compile_context>
chip_gen: v7x
topology: tpu7x:2x2x1
jax: 0.10.0
libtpu: 0.0.40
codegen_flags: <defaults>
</compile_context>

<pallas_src>
import functools

import jax
import jax.numpy as jnp
from jax.experimental import pallas as pl
from jax.experimental.pallas import tpu as pltpu

EPS = 1e-5
VMEM_LIMIT = 48 * 1024 * 1024  # leave headroom vs v7x's 64 MiB physical VMEM


# ----------------------------------------------------------------------------
# Tile-size helpers
# ----------------------------------------------------------------------------
def _largest_divisor(n, cap):
    for d in range(min(n, cap), 0, -1):
        if n % d == 0:
            return d
    return 1


def _pick_conv_row_tile(h, wd, cin, cout, budget=4 * 1024 * 1024, cap=128):
    """Largest divisor of h whose per-step working set fits a VMEM budget."""
    best = 1
    for th in range(1, min(h, cap) + 1):
        if h % th:
            continue
        est = (2 * th * wd * cin * 2             # bf16 input tile, double-buffered
               + (th + 2) * (wd + 2) * cin * 4   # f32 halo scratch
               + th * wd * cout * 4              # f32 accumulator scratch
               + 2 * th * wd * cout * 2)         # bf16 output tile, double-buffered
        if est <= budget:
            best = th
    return best


# ----------------------------------------------------------------------------
# Kernels
# ----------------------------------------------------------------------------
def _conv3x3_kernel(x_mid_ref, x_up_ref, x_dn_ref, w_ref, b_ref,
                    sc_ref, sh_ref, z_ref, stats_ref, xbuf_ref, acc_ref,
                    *, apply_input_act):
    """3x3 conv (pad=1, stride=1) on one (batch, row-tile) block.

    Optionally fuses the *previous* layer's BatchNorm+ReLU (scale/shift) into
    the input prologue.  Emits the pre-BN conv activations (bf16) plus the
    per-tile per-channel [sum; sum-of-squares] partials (f32) needed for this
    layer's training-mode BatchNorm statistics.
    """
    t = pl.program_id(1)
    nt = pl.num_programs(1)
    th, wd, cin = x_mid_ref.shape
    cout = w_ref.shape[-1]

    def inp(v):
        v = v.astype(jnp.float32)
        if apply_input_act:  # previous layer's BN + ReLU, fused
            v = jnp.maximum(v * sc_ref[...] + sh_ref[...], 0.0)
        return v

    # ---- assemble the zero-padded (th+2, wd+2, cin) halo tile in VMEM ----
    zero_col = jnp.zeros((th + 2, 1, cin), jnp.float32)
    xbuf_ref[:, 0:1, :] = zero_col
    xbuf_ref[:, wd + 1:wd + 2, :] = zero_col
    xbuf_ref[1:th + 1, 1:wd + 1, :] = inp(x_mid_ref[...])
    xbuf_ref[0:1, 1:wd + 1, :] = inp(x_up_ref[...])
    xbuf_ref[th + 1:th + 2, 1:wd + 1, :] = inp(x_dn_ref[...])

    zero_row = jnp.zeros((1, wd, cin), jnp.float32)

    @pl.when(t == 0)
    def _():
        xbuf_ref[0:1, 1:wd + 1, :] = zero_row

    @pl.when(t == nt - 1)
    def _():
        xbuf_ref[th + 1:th + 2, 1:wd + 1, :] = zero_row

    # ---- 3x3 conv: 9 shifted (th*wd, cin) x (cin, cout) MXU matmuls,
    #      accumulated into an f32 VMEM scratch ----
    # TODO(synk): an im2col into a (th*wd, 9*cin) buffer + one fat-K matmul
    # would raise MXU utilization further on the small-Cin early layers.
    for k in range(9):
        dy, dx = divmod(k, 3)
        patch = xbuf_ref[dy:dy + th, dx:dx + wd, :].reshape(th * wd, cin)
        contrib = jnp.dot(patch.astype(jnp.bfloat16), w_ref[k],
                          preferred_element_type=jnp.float32)
        if k == 0:
            acc_ref[...] = contrib + b_ref[...]
        else:
            acc_ref[...] += contrib

    z = acc_ref[...]
    stats_ref[0:1, :] = jnp.sum(z, axis=0, keepdims=True)
    stats_ref[1:2, :] = jnp.sum(z * z, axis=0, keepdims=True)
    z_ref[...] = z.astype(z_ref.dtype)


def _bn_relu_pool_kernel(z_ref, sc_ref, sh_ref, o_ref):
    """Fused BatchNorm-affine + ReLU + 2x2/stride-2 max-pool.

    z_ref: (2*tho, W/2, 2*C) -- the conv output bit-reshaped in the wrapper so
           that even/odd W columns sit in the first/second C lanes.
    o_ref: (tho, W/2, C)
    """
    tho, w2, c = o_ref.shape

    def act(v):
        return jnp.maximum(v.astype(jnp.float32) * sc_ref[...] + sh_ref[...], 0.0)

    left = act(z_ref[:, :, :c])    # even W columns  (2*tho, w2, c)
    right = act(z_ref[:, :, c:])   # odd  W columns
    y = jnp.maximum(left, right)   # pooled over W
    y = y.reshape(tho, 2, w2, c)   # leading-dim split only (free layout-wise)
    o_ref[...] = jnp.maximum(y[:, 0], y[:, 1]).astype(o_ref.dtype)  # pool over H


def _linear_kernel(x_ref, w_ref, b_ref, o_ref, acc_ref):
    """K-tiled classifier: o = x @ W + b with a resident f32 accumulator."""
    k = pl.program_id(0)

    @pl.when(k == 0)
    def _():
        acc_ref[...] = jnp.zeros_like(acc_ref)

    acc_ref[...] += jnp.dot(x_ref[...], w_ref[...],
                            preferred_element_type=jnp.float32)

    @pl.when(k == pl.num_programs(0) - 1)
    def _():
        o_ref[...] = acc_ref[...] + b_ref[...]


# ----------------------------------------------------------------------------
# Wrappers
# ----------------------------------------------------------------------------
def conv3x3_with_stats(x, w, b, in_scale=None, in_shift=None):
    """3x3 conv (pad=1).  Returns pre-BN output (N,H,W,Cout) bf16 and the
    per-channel [sum; sumsq] (2, Cout) f32 needed for this layer's BN."""
    n, h, wd, cin = x.shape
    cout = w.shape[-1]
    th = _pick_conv_row_tile(h, wd, cin, cout)
    nt = h // th

    w9 = w.reshape(9, cin, cout).astype(jnp.bfloat16)
    b2 = b.reshape(1, cout).astype(jnp.float32)
    fuse = in_scale is not None
    if not fuse:
        in_scale = jnp.ones((cin,), jnp.float32)
        in_shift = jnp.zeros((cin,), jnp.float32)
    sc = in_scale.reshape(1, 1, cin).astype(jnp.float32)
    sh = in_shift.reshape(1, 1, cin).astype(jnp.float32)

    kernel = functools.partial(_conv3x3_kernel, apply_input_act=fuse)

    z, stats = pl.pallas_call(
        kernel,
        grid=(n, nt),
        in_specs=[
            # main rows of the tile
            pl.BlockSpec((None, th, wd, cin), lambda i, t: (i, t, 0, 0)),
            # halo row above (clamped; zeroed in-kernel for the first tile)
            pl.BlockSpec((None, 1, wd, cin),
                         lambda i, t: (i, jnp.maximum(t * th - 1, 0), 0, 0)),
            # halo row below (clamped; zeroed in-kernel for the last tile)
            pl.BlockSpec((None, 1, wd, cin),
                         lambda i, t: (i, jnp.minimum((t + 1) * th, h - 1), 0, 0)),
            pl.BlockSpec((9, cin, cout), lambda i, t: (0, 0, 0)),   # weights
            pl.BlockSpec((1, cout), lambda i, t: (0, 0)),           # conv bias
            pl.BlockSpec((1, 1, cin), lambda i, t: (0, 0, 0)),      # fused in-scale
            pl.BlockSpec((1, 1, cin), lambda i, t: (0, 0, 0)),      # fused in-shift
        ],
        out_specs=(
            pl.BlockSpec((None, None, th * wd, cout), lambda i, t: (i, t, 0, 0)),
            pl.BlockSpec((None, None, 2, cout), lambda i, t: (i, t, 0, 0)),
        ),
        out_shape=(
            jax.ShapeDtypeStruct((n, nt, th * wd, cout), jnp.bfloat16),
            jax.ShapeDtypeStruct((n, nt, 2, cout), jnp.float32),
        ),
        scratch_shapes=[
            pltpu.VMEM((th + 2, wd + 2, cin), jnp.float32),  # halo tile
            pltpu.VMEM((th * wd, cout), jnp.float32),        # f32 accumulator
        ],
        compiler_params=pltpu.CompilerParams(
            dimension_semantics=("parallel", "parallel"),
            vmem_limit_bytes=VMEM_LIMIT),
        cost_estimate=pl.CostEstimate(
            flops=2 * 9 * n * h * wd * cin * cout,
            transcendentals=0,
            bytes_accessed=n * h * wd * (cin + cout) * 2 + 9 * cin * cout * 2),
    )(x, x, x, w9, b2, sc, sh)

    z = z.reshape(n, h, wd, cout)        # free bitcast back to NHWC
    sums = stats.sum(axis=(0, 1))        # tiny (2, Cout) cross-tile reduction
    return z, sums


def bn_affine_from_stats(sums, count, gamma, beta, eps=EPS):
    """Fold training-mode BN batch stats into per-channel (scale, shift)."""
    mean = sums[0] / count
    var = jnp.maximum(sums[1] / count - mean * mean, 0.0)  # biased variance
    scale = gamma * jax.lax.rsqrt(var + eps)
    shift = beta - mean * scale
    return scale, shift


def bn_relu_maxpool(z, scale, shift):
    """Fused BN-affine + ReLU + 2x2/stride-2 max-pool of a pre-BN conv output."""
    n, h, wd, c = z.shape
    assert h % 2 == 0 and wd % 2 == 0
    h2, w2 = h // 2, wd // 2
    tho = _largest_divisor(h2, 64)
    nt = h2 // tho

    # Free bitcast: pack (even W col, odd W col) channel pairs onto the lane
    # axis so the W-pool becomes a lane-window max inside the kernel.
    z2 = z.reshape(n, h, w2, 2 * c)
    sc = scale.reshape(1, 1, c).astype(jnp.float32)
    sh = shift.reshape(1, 1, c).astype(jnp.float32)

    return pl.pallas_call(
        _bn_relu_pool_kernel,
        grid=(n, nt),
        in_specs=[
            pl.BlockSpec((None, 2 * tho, w2, 2 * c), lambda i, t: (i, t, 0, 0)),
            pl.BlockSpec((1, 1, c), lambda i, t: (0, 0, 0)),
            pl.BlockSpec((1, 1, c), lambda i, t: (0, 0, 0)),
        ],
        out_specs=pl.BlockSpec((None, tho, w2, c), lambda i, t: (i, t, 0, 0)),
        out_shape=jax.ShapeDtypeStruct((n, h2, w2, c), jnp.bfloat16),
        compiler_params=pltpu.CompilerParams(
            dimension_semantics=("parallel", "parallel"),
            vmem_limit_bytes=VMEM_LIMIT),
    )(z2, sc, sh)


def _pick_k_tile(f, target=512):
    if f % 128 == 0:
        for cand in (target, 384, 256, 128):
            if f % cand == 0:
                return cand
    return f


def linear(x, w, b):
    n, f = x.shape
    ncls = w.shape[-1]
    tk = _pick_k_tile(f)
    nk = f // tk

    return pl.pallas_call(
        _linear_kernel,
        grid=(nk,),
        in_specs=[
            pl.BlockSpec((n, tk), lambda k: (0, k)),
            pl.BlockSpec((tk, ncls), lambda k: (k, 0)),
            pl.BlockSpec((1, ncls), lambda k: (0, 0)),
        ],
        out_specs=pl.BlockSpec((n, ncls), lambda k: (0, 0)),
        out_shape=jax.ShapeDtypeStruct((n, ncls), jnp.float32),
        scratch_shapes=[pltpu.VMEM((n, ncls), jnp.float32)],
        compiler_params=pltpu.CompilerParams(
            dimension_semantics=("arbitrary",),
            vmem_limit_bytes=VMEM_LIMIT),
        cost_estimate=pl.CostEstimate(
            flops=2 * n * f * ncls,
            transcendentals=0,
            bytes_accessed=(n * f + f * ncls) * 2 + n * ncls * 4),
    )(x.astype(jnp.bfloat16), w.astype(jnp.bfloat16),
      b.reshape(1, ncls).astype(jnp.float32))


# ----------------------------------------------------------------------------
# VGG model
# ----------------------------------------------------------------------------
def make_vgg_params(cfg, image_size, num_classes, img_in_channels, key):
    """Deterministic synthetic parameters matching the nn.Module's shapes."""
    feat_params = []
    in_c = img_in_channels
    spatial = image_size
    for v in cfg:
        if v == 'M':
            spatial //= 2
            feat_params.append(('M', None))
        else:
            key, k1, k2 = jax.random.split(key, 3)
            w = jax.random.normal(k1, (3, 3, in_c, v), jnp.float32) * 0.05
            b = jax.random.normal(k2, (v,), jnp.float32) * 0.05
            gamma = jnp.ones((v,), jnp.float32)   # BN weight init (PyTorch default)
            beta = jnp.zeros((v,), jnp.float32)   # BN bias init (PyTorch default)
            feat_params.append(('C', (w, b, gamma, beta)))
            in_c = v
    # TODO(synk): the reference hardcodes nn.Linear(256*512, num_classes), which
    # only matches the flatten size for specific input sizes; here in_features
    # is derived from the actual flatten size so the small test shapes run.
    flat = in_c * spatial * spatial
    key, k1, k2 = jax.random.split(key, 3)
    lw = jax.random.normal(k1, (flat, num_classes), jnp.float32) * 0.05
    lb = jax.random.normal(k2, (num_classes,), jnp.float32) * 0.05
    return feat_params, (lw, lb)


def vgg_forward(x_nchw, feat_params, cls_params):
    # PyTorch conv input is NCHW -> NHWC (channels on the lane axis), bf16.
    x = jnp.transpose(x_nchw, (0, 2, 3, 1)).astype(jnp.bfloat16)
    pending = None  # (scale, shift) of a BN+ReLU not yet applied to `x`
    for kind, p in feat_params:
        if kind == 'C':
            w, b, gamma, beta = p
            n, h, wd, _ = x.shape
            if pending is None:
                z, sums = conv3x3_with_stats(x, w, b)
            else:
                # previous layer's BN+ReLU fused into this conv's prologue
                z, sums = conv3x3_with_stats(x, w, b, pending[0], pending[1])
            pending = bn_affine_from_stats(sums, n * h * wd, gamma, beta)
            x = z
        else:  # 'M'
            assert pending is not None, "cfg must not start with 'M'"
            x = bn_relu_maxpool(x, pending[0], pending[1])
            pending = None
    if pending is not None:
        # Only reached for cfgs that end with a conv block (standard VGG cfgs
        # end with 'M'): apply the leftover BN+ReLU as a cheap XLA epilogue.
        x = jnp.maximum(x.astype(jnp.float32) * pending[0] + pending[1],
                        0.0).astype(jnp.bfloat16)
    # Final nn.AvgPool2d(kernel_size=1, stride=1) is an identity op.
    # Flatten in NCHW order to match `out.view(out.size(0), -1)`.
    n = x.shape[0]
    x = jnp.transpose(x, (0, 3, 1, 2)).reshape(n, -1)
    lw, lb = cls_params
    return linear(x, lw, lb)


if __name__ == "__main__":
    # Small, module-consistent shapes: batch=2, img_in_channels=4, 16x16 image,
    # scaled-down cfg (three maxpools, one conv->conv pair) -> final map (32,2,2).
    cfg_small = [8, 'M', 16, 16, 'M', 32, 32, 'M']
    batch, in_ch, image_size, num_classes = 2, 4, 16, 10

    key = jax.random.PRNGKey(0)
    key, kx, kp = jax.random.split(key, 3)
    x = jax.random.normal(kx, (batch, in_ch, image_size, image_size), jnp.float32)

    feat_params, cls_params = make_vgg_params(
        cfg_small, image_size, num_classes, in_ch, kp)

    fwd = jax.jit(lambda inp: vgg_forward(inp, feat_params, cls_params))
    logits = fwd(x)
    jax.block_until_ready(logits)
    assert logits.shape == (batch, num_classes)
    assert bool(jnp.all(jnp.isfinite(logits)))
    print("KERNEL_OK")
</pallas_src>

<mosaic_0001>
module attributes {stable_mosaic.version = 11 : i64} {
  func.func @_conv3x3_kernel(%arg0: i32, %arg1: i32, %arg2: memref<1x16x16x4xbf16, #tpu.memory_space<vmem>>, %arg3: memref<1x1x16x4xbf16, #tpu.memory_space<vmem>>, %arg4: memref<1x1x16x4xbf16, #tpu.memory_space<vmem>>, %arg5: memref<9x4x8xbf16, #tpu.memory_space<vmem>>, %arg6: memref<1x8xf32, #tpu.memory_space<vmem>>, %arg7: memref<1x1x4xf32, #tpu.memory_space<vmem>>, %arg8: memref<1x1x4xf32, #tpu.memory_space<vmem>>, %arg9: memref<1x1x256x8xbf16, #tpu.memory_space<vmem>>, %arg10: memref<1x1x2x8xf32, #tpu.memory_space<vmem>>, %arg11: memref<18x18x4xf32, #tpu.memory_space<vmem>>, %arg12: memref<256x8xf32, #tpu.memory_space<vmem>>) attributes {dimension_semantics = [#tpu.dimension_semantics<parallel>, #tpu.dimension_semantics<parallel>], iteration_bounds = array<i64: 2, 1>, scalar_prefetch = 0 : i64, scratch_operands = 2 : i64, tpu.core_type = #tpu.core_type<tc>, window_params = [{transform_indices = @transform_0, window_bounds = array<i64: 1, 16, 16, 4>}, {transform_indices = @transform_1, window_bounds = array<i64: 1, 1, 16, 4>}, {transform_indices = @transform_2, window_bounds = array<i64: 1, 1, 16, 4>}, {pipeline_mode = #tpu.pipeline_mode<synchronous>, transform_indices = @transform_3, window_bounds = array<i64: 9, 4, 8>}, {pipeline_mode = #tpu.pipeline_mode<synchronous>, transform_indices = @transform_4, window_bounds = array<i64: 1, 8>}, {pipeline_mode = #tpu.pipeline_mode<synchronous>, transform_indices = @transform_5, window_bounds = array<i64: 1, 1, 4>}, {pipeline_mode = #tpu.pipeline_mode<synchronous>, transform_indices = @transform_6, window_bounds = array<i64: 1, 1, 4>}, {transform_indices = @transform_7, window_bounds = array<i64: 1, 1, 256, 8>}, {transform_indices = @transform_8, window_bounds = array<i64: 1, 1, 2, 8>}]} {
    %cst = arith.constant 0.000000e+00 : f32
    %0 = vector.broadcast %cst : f32 to vector<18x1x4xf32>
    %c0 = arith.constant 0 : index
    %c0_0 = arith.constant 0 : index
    %c0_1 = arith.constant 0 : index
    %1 = vector.load %arg11[%c0, %c0_0, %c0_1] : memref<18x18x4xf32, #tpu.memory_space<vmem>>, vector<18x1x4xf32>
    tpu.vector_store %arg11[%c0, %c0_0, %c0_1], %0 {strides = array<i32>} : memref<18x18x4xf32, #tpu.memory_space<vmem>>, vector<18x1x4xf32>,
    %c0_2 = arith.constant 0 : index
    %c17 = arith.constant 17 : index
    %c0_3 = arith.constant 0 : index
    %2 = vector.load %arg11[%c0_2, %c17, %c0_3] : memref<18x18x4xf32, #tpu.memory_space<vmem>>, vector<18x1x4xf32>
    tpu.vector_store %arg11[%c0_2, %c17, %c0_3], %0 {strides = array<i32>} : memref<18x18x4xf32, #tpu.memory_space<vmem>>, vector<18x1x4xf32>,
    %c0_4 = arith.constant 0 : index
    %c0_5 = arith.constant 0 : index
    %c0_6 = arith.constant 0 : index
    %c0_7 = arith.constant 0 : index
    %3 = vector.load %arg2[%c0_4, %c0_5, %c0_6, %c0_7] : memref<1x16x16x4xbf16, #tpu.memory_space<vmem>>, vector<1x16x16x4xbf16>
    %4 = vector.shape_cast %3 : vector<1x16x16x4xbf16> to vector<16x16x4xbf16>
    %5 = arith.extf %4 : vector<16x16x4xbf16> to vector<16x16x4xf32>
    %c1 = arith.constant 1 : index
    %c1_8 = arith.constant 1 : index
    %c0_9 = arith.constant 0 : index
    %6 = vector.load %arg11[%c1, %c1_8, %c0_9] : memref<18x18x4xf32, #tpu.memory_space<vmem>>, vector<16x16x4xf32>
    tpu.vector_store %arg11[%c1, %c1_8, %c0_9], %5 {strides = array<i32>} : memref<18x18x4xf32, #tpu.memory_space<vmem>>, vector<16x16x4xf32>,
    %c0_10 = arith.constant 0 : index
    %c0_11 = arith.constant 0 : index
    %c0_12 = arith.constant 0 : index
    %c0_13 = arith.constant 0 : index
    %7 = vector.load %arg3[%c0_10, %c0_11, %c0_12, %c0_13] : memref<1x1x16x4xbf16, #tpu.memory_space<vmem>>, vector<1x1x16x4xbf16>
    %8 = vector.shape_cast %7 : vector<1x1x16x4xbf16> to vector<1x16x4xbf16>
    %9 = arith.extf %8 : vector<1x16x4xbf16> to vector<1x16x4xf32>
    %c0_14 = arith.constant 0 : index
    %c1_15 = arith.constant 1 : index
    %c0_16 = arith.constant 0 : index
    %10 = vector.load %arg11[%c0_14, %c1_15, %c0_16] : memref<18x18x4xf32, #tpu.memory_space<vmem>>, vector<1x16x4xf32>
    tpu.vector_store %arg11[%c0_14, %c1_15, %c0_16], %9 {strides = array<i32>} : memref<18x18x4xf32, #tpu.memory_space<vmem>>, vector<1x16x4xf32>,
    %c0_17 = arith.constant 0 : index
    %c0_18 = arith.constant 0 : index
    %c0_19 = arith.constant 0 : index
    %c0_20 = arith.constant 0 : index
    %11 = vector.load %arg4[%c0_17, %c0_18, %c0_19, %c0_20] : memref<1x1x16x4xbf16, #tpu.memory_space<vmem>>, vector<1x1x16x4xbf16>
    %12 = vector.shape_cast %11 : vector<1x1x16x4xbf16> to vector<1x16x4xbf16>
    %13 = arith.extf %12 : vector<1x16x4xbf16> to vector<1x16x4xf32>
    %c17_21 = arith.constant 17 : index
    %c1_22 = arith.constant 1 : index
    %c0_23 = arith.constant 0 : index
    %14 = vector.load %arg11[%c17_21, %c1_22, %c0_23] : memref<18x18x4xf32, #tpu.memory_space<vmem>>, vector<1x16x4xf32>
    tpu.vector_store %arg11[%c17_21, %c1_22, %c0_23], %13 {strides = array<i32>} : memref<18x18x4xf32, #tpu.memory_space<vmem>>, vector<1x16x4xf32>,
    %cst_24 = arith.constant 0.000000e+00 : f32
    %15 = vector.broadcast %cst_24 : f32 to vector<1x16x4xf32>
    %c0_i32 = arith.constant 0 : i32
    %16 = arith.cmpi eq, %arg1, %c0_i32 : i32
    %17 = arith.extui %16 : i1 to i32
    %c0_i32_25 = arith.constant 0 : i32
    %18 = arith.cmpi ne, %17, %c0_i32_25 : i32
    scf.if %18 {
      %c0_136 = arith.constant 0 : index
      %c1_137 = arith.constant 1 : index
      %c0_138 = arith.constant 0 : index
      %120 = vector.load %arg11[%c0_136, %c1_137, %c0_138] : memref<18x18x4xf32, #tpu.memory_space<vmem>>, vector<1x16x4xf32>
      tpu.vector_store %arg11[%c0_136, %c1_137, %c0_138], %15 {strides = array<i32>} : memref<18x18x4xf32, #tpu.memory_space<vmem>>, vector<1x16x4xf32>,
    } else {
    }
    %c0_i32_26 = arith.constant 0 : i32
    %19 = arith.cmpi eq, %arg1, %c0_i32_26 : i32
    %20 = arith.extui %19 : i1 to i32
    %c0_i32_27 = arith.constant 0 : i32
    %21 = arith.cmpi ne, %20, %c0_i32_27 : i32
    scf.if %21 {
      %c17_136 = arith.constant 17 : index
      %c1_137 = arith.constant 1 : index
      %c0_138 = arith.constant 0 : index
      %120 = vector.load %arg11[%c17_136, %c1_137, %c0_138] : memref<18x18x4xf32, #tpu.memory_space<vmem>>, vector<1x16x4xf32>
      tpu.vector_store %arg11[%c17_136, %c1_137, %c0_138], %15 {strides = array<i32>} : memref<18x18x4xf32, #tpu.memory_space<vmem>>, vector<1x16x4xf32>,
    } else {
    }
    %c0_28 = arith.constant 0 : index
    %c0_29 = arith.constant 0 : index
    %c0_30 = arith.constant 0 : index
    %22 = vector.load %arg11[%c0_28, %c0_29, %c0_30] : memref<18x18x4xf32, #tpu.memory_space<vmem>>, vector<16x16x4xf32>
    %23 = vector.shape_cast %22 : vector<16x16x4xf32> to vector<256x4xf32>
    %24 = arith.truncf %23 : vector<256x4xf32> to vector<256x4xbf16>
    %c0_31 = arith.constant 0 : index
    %c0_32 = arith.constant 0 : index
    %c0_33 = arith.constant 0 : index
    %25 = vector.load %arg5[%c0_31, %c0_32, %c0_33] : memref<9x4x8xbf16, #tpu.memory_space<vmem>>, vector<1x4x8xbf16>
    %26 = vector.shape_cast %25 : vector<1x4x8xbf16> to vector<4x8xbf16>
    %cst_34 = arith.constant dense<0.000000e+00> : vector<256x8xf32>
    %27 = tpu.matmul %24, %26, %cst_34 {dimension_numbers = #tpu.dot_dimension_numbers<[1], [0], [0], [1], [0, 0, 1, 1], [], []>} : vector<256x4xbf16>, vector<4x8xbf16>, vector<256x8xf32> -> vector<256x8xf32>
    %c0_35 = arith.constant 0 : index
    %c0_36 = arith.constant 0 : index
    %28 = vector.load %arg6[%c0_35, %c0_36] : memref<1x8xf32, #tpu.memory_space<vmem>>, vector<1x8xf32>
    %29 = vector.broadcast %28 : vector<1x8xf32> to vector<256x8xf32>
    %30 = arith.addf %27, %29 : vector<256x8xf32>
    %c0_37 = arith.constant 0 : index
    %c0_38 = arith.constant 0 : index
    %31 = vector.load %arg12[%c0_37, %c0_38] : memref<256x8xf32, #tpu.memory_space<vmem>>, vector<256x8xf32>
    tpu.vector_store %arg12[%c0_37, %c0_38], %30 {strides = array<i32>} : memref<256x8xf32, #tpu.memory_space<vmem>>, vector<256x8xf32>,
    %c0_39 = arith.constant 0 : index
    %c1_40 = arith.constant 1 : index
    %c0_41 = arith.constant 0 : index
    %32 = vector.load %arg11[%c0_39, %c1_40, %c0_41] : memref<18x18x4xf32, #tpu.memory_space<vmem>>, vector<16x16x4xf32>
    %33 = vector.shape_cast %32 : vector<16x16x4xf32> to vector<256x4xf32>
    %34 = arith.truncf %33 : vector<256x4xf32> to vector<256x4xbf16>
    %c1_42 = arith.constant 1 : index
    %c0_43 = arith.constant 0 : index
    %c0_44 = arith.constant 0 : index
    %35 = vector.load %arg5[%c1_42, %c0_43, %c0_44] : memref<9x4x8xbf16, #tpu.memory_space<vmem>>, vector<1x4x8xbf16>
    %36 = vector.shape_cast %35 : vector<1x4x8xbf16> to vector<4x8xbf16>
    %cst_45 = arith.constant dense<0.000000e+00> : vector<256x8xf32>
    %37 = tpu.matmul %34, %36, %cst_45 {dimension_numbers = #tpu.dot_dimension_numbers<[1], [0], [0], [1], [0, 0, 1, 1], [], []>} : vector<256x4xbf16>, vector<4x8xbf16>, vector<256x8xf32> -> vector<256x8xf32>
    %c0_46 = arith.constant 0 : index
    %c0_47 = arith.constant 0 : index
    %38 = vector.load %arg12[%c0_46, %c0_47] : memref<256x8xf32, #tpu.memory_space<vmem>>, vector<256x8xf32>
    %39 = arith.addf %38, %37 : vector<256x8xf32>
    %c0_48 = arith.constant 0 : index
    %c0_49 = arith.constant 0 : index
    %40 = vector.load %arg12[%c0_48, %c0_49] : memref<256x8xf32, #tpu.memory_space<vmem>>, vector<256x8xf32>
    tpu.vector_store %arg12[%c0_48, %c0_49], %39 {strides = array<i32>} : memref<256x8xf32, #tpu.memory_space<vmem>>, vector<256x8xf32>,
    %c0_50 = arith.constant 0 : index
    %c2 = arith.constant 2 : index
    %c0_51 = arith.constant 0 : index
    %41 = vector.load %arg11[%c0_50, %c2, %c0_51] : memref<18x18x4xf32, #tpu.memory_space<vmem>>, vector<16x16x4xf32>
    %42 = vector.shape_cast %41 : vector<16x16x4xf32> to vector<256x4xf32>
    %43 = arith.truncf %42 : vector<256x4xf32> to vector<256x4xbf16>
    %c2_52 = arith.constant 2 : index
    %c0_53 = arith.constant 0 : index
    %c0_54 = arith.constant 0 : index
    %44 = vector.load %arg5[%c2_52, %c0_53, %c0_54] : memref<9x4x8xbf16, #tpu.memory_space<vmem>>, vector<1x4x8xbf16>
    %45 = vector.shape_cast %44 : vector<1x4x8xbf16> to vector<4x8xbf16>
    %cst_55 = arith.constant dense<0.000000e+00> : vector<256x8xf32>
    %46 = tpu.matmul %43, %45, %cst_55 {dimension_numbers = #tpu.dot_dimension_numbers<[1], [0], [0], [1], [0, 0, 1, 1], [], []>} : vector<256x4xbf16>, vector<4x8xbf16>, vector<256x8xf32> -> vector<256x8xf32>
    %c0_56 = arith.constant 0 : index
    %c0_57 = arith.constant 0 : index
    %47 = vector.load %arg12[%c0_56, %c0_57] : memref<256x8xf32, #tpu.memory_space<vmem>>, vector<256x8xf32>
    %48 = arith.addf %47, %46 : vector<256x8xf32>
    %c0_58 = arith.constant 0 : index
    %c0_59 = arith.constant 0 : index
    %49 = vector.load %arg12[%c0_58, %c0_59] : memref<256x8xf32, #tpu.memory_space<vmem>>, vector<256x8xf32>
    tpu.vector_store %arg12[%c0_58, %c0_59], %48 {strides = array<i32>} : memref<256x8xf32, #tpu.memory_space<vmem>>, vector<256x8xf32>,
    %c1_60 = arith.constant 1 : index
    %c0_61 = arith.constant 0 : index
    %c0_62 = arith.constant 0 : index
    %50 = vector.load %arg11[%c1_60, %c0_61, %c0_62] : memref<18x18x4xf32, #tpu.memory_space<vmem>>, vector<16x16x4xf32>
    %51 = vector.shape_cast %50 : vector<16x16x4xf32> to vector<256x4xf32>
    %52 = arith.truncf %51 : vector<256x4xf32> to vector<256x4xbf16>
    %c3 = arith.constant 3 : index
    %c0_63 = arith.constant 0 : index
    %c0_64 = arith.constant 0 : index
    %53 = vector.load %arg5[%c3, %c0_63, %c0_64] : memref<9x4x8xbf16, #tpu.memory_space<vmem>>, vector<1x4x8xbf16>
    %54 = vector.shape_cast %53 : vector<1x4x8xbf16> to vector<4x8xbf16>
    %cst_65 = arith.constant dense<0.000000e+00> : vector<256x8xf32>
    %55 = tpu.matmul %52, %54, %cst_65 {dimension_numbers = #tpu.dot_dimension_numbers<[1], [0], [0], [1], [0, 0, 1, 1], [], []>} : vector<256x4xbf16>, vector<4x8xbf16>, vector<256x8xf32> -> vector<256x8xf32>
    %c0_66 = arith.constant 0 : index
    %c0_67 = arith.constant 0 : index
    %56 = vector.load %arg12[%c0_66, %c0_67] : memref<256x8xf32, #tpu.memory_space<vmem>>, vector<256x8xf32>
    %57 = arith.addf %56, %55 : vector<256x8xf32>
    %c0_68 = arith.constant 0 : index
    %c0_69 = arith.constant 0 : index
    %58 = vector.load %arg12[%c0_68, %c0_69] : memref<256x8xf32, #tpu.memory_space<vmem>>, vector<256x8xf32>
    tpu.vector_store %arg12[%c0_68, %c0_69], %57 {strides = array<i32>} : memref<256x8xf32, #tpu.memory_space<vmem>>, vector<256x8xf32>,
    %c1_70 = arith.constant 1 : index
    %c1_71 = arith.constant 1 : index
    %c0_72 = arith.constant 0 : index
    %59 = vector.load %arg11[%c1_70, %c1_71, %c0_72] : memref<18x18x4xf32, #tpu.memory_space<vmem>>, vector<16x16x4xf32>
    %60 = vector.shape_cast %59 : vector<16x16x4xf32> to vector<256x4xf32>
    %61 = arith.truncf %60 : vector<256x4xf32> to vector<256x4xbf16>
    %c4 = arith.constant 4 : index
    %c0_73 = arith.constant 0 : index
    %c0_74 = arith.constant 0 : index
    %62 = vector.load %arg5[%c4, %c0_73, %c0_74] : memref<9x4x8xbf16, #tpu.memory_space<vmem>>, vector<1x4x8xbf16>
    %63 = vector.shape_cast %62 : vector<1x4x8xbf16> to vector<4x8xbf16>
    %cst_75 = arith.constant dense<0.000000e+00> : vector<256x8xf32>
    %64 = tpu.matmul %61, %63, %cst_75 {dimension_numbers = #tpu.dot_dimension_numbers<[1], [0], [0], [1], [0, 0, 1, 1], [], []>} : vector<256x4xbf16>, vector<4x8xbf16>, vector<256x8xf32> -> vector<256x8xf32>
    %c0_76 = arith.constant 0 : index
    %c0_77 = arith.constant 0 : index
    %65 = vector.load %arg12[%c0_76, %c0_77] : memref<256x8xf32, #tpu.memory_space<vmem>>, vector<256x8xf32>
    %66 = arith.addf %65, %64 : vector<256x8xf32>
    %c0_78 = arith.constant 0 : index
    %c0_79 = arith.constant 0 : index
    %67 = vector.load %arg12[%c0_78, %c0_79] : memref<256x8xf32, #tpu.memory_space<vmem>>, vector<256x8xf32>
    tpu.vector_store %arg12[%c0_78, %c0_79], %66 {strides = array<i32>} : memref<256x8xf32, #tpu.memory_space<vmem>>, vector<256x8xf32>,
    %c1_80 = arith.constant 1 : index
    %c2_81 = arith.constant 2 : index
    %c0_82 = arith.constant 0 : index
    %68 = vector.load %arg11[%c1_80, %c2_81, %c0_82] : memref<18x18x4xf32, #tpu.memory_space<vmem>>, vector<16x16x4xf32>
    %69 = vector.shape_cast %68 : vector<16x16x4xf32> to vector<256x4xf32>
    %70 = arith.truncf %69 : vector<256x4xf32> to vector<256x4xbf16>
    %c5 = arith.constant 5 : index
    %c0_83 = arith.constant 0 : index
    %c0_84 = arith.constant 0 : index
    %71 = vector.load %arg5[%c5, %c0_83, %c0_84] : memref<9x4x8xbf16, #tpu.memory_space<vmem>>, vector<1x4x8xbf16>
    %72 = vector.shape_cast %71 : vector<1x4x8xbf16> to vector<4x8xbf16>
    %cst_85 = arith.constant dense<0.000000e+00> : vector<256x8xf32>
    %73 = tpu.matmul %70, %72, %cst_85 {dimension_numbers = #tpu.dot_dimension_numbers<[1], [0], [0], [1], [0, 0, 1, 1], [], []>} : vector<256x4xbf16>, vector<4x8xbf16>, vector<256x8xf32> -> vector<256x8xf32>
    %c0_86 = arith.constant 0 : index
    %c0_87 = arith.constant 0 : index
    %74 = vector.load %arg12[%c0_86, %c0_87] : memref<256x8xf32, #tpu.memory_space<vmem>>, vector<256x8xf32>
    %75 = arith.addf %74, %73 : vector<256x8xf32>
    %c0_88 = arith.constant 0 : index
    %c0_89 = arith.constant 0 : index
    %76 = vector.load %arg12[%c0_88, %c0_89] : memref<256x8xf32, #tpu.memory_space<vmem>>, vector<256x8xf32>
    tpu.vector_store %arg12[%c0_88, %c0_89], %75 {strides = array<i32>} : memref<256x8xf32, #tpu.memory_space<vmem>>, vector<256x8xf32>,
    %c2_90 = arith.constant 2 : index
    %c0_91 = arith.constant 0 : index
    %c0_92 = arith.constant 0 : index
    %77 = vector.load %arg11[%c2_90, %c0_91, %c0_92] : memref<18x18x4xf32, #tpu.memory_space<vmem>>, vector<16x16x4xf32>
    %78 = vector.shape_cast %77 : vector<16x16x4xf32> to vector<256x4xf32>
    %79 = arith.truncf %78 : vector<256x4xf32> to vector<256x4xbf16>
    %c6 = arith.constant 6 : index
    %c0_93 = arith.constant 0 : index
    %c0_94 = arith.constant 0 : index
    %80 = vector.load %arg5[%c6, %c0_93, %c0_94] : memref<9x4x8xbf16, #tpu.memory_space<vmem>>, vector<1x4x8xbf16>
    %81 = vector.shape_cast %80 : vector<1x4x8xbf16> to vector<4x8xbf16>
    %cst_95 = arith.constant dense<0.000000e+00> : vector<256x8xf32>
    %82 = tpu.matmul %79, %81, %cst_95 {dimension_numbers = #tpu.dot_dimension_numbers<[1], [0], [0], [1], [0, 0, 1, 1], [], []>} : vector<256x4xbf16>, vector<4x8xbf16>, vector<256x8xf32> -> vector<256x8xf32>
    %c0_96 = arith.constant 0 : index
    %c0_97 = arith.constant 0 : index
    %83 = vector.load %arg12[%c0_96, %c0_97] : memref<256x8xf32, #tpu.memory_space<vmem>>, vector<256x8xf32>
    %84 = arith.addf %83, %82 : vector<256x8xf32>
    %c0_98 = arith.constant 0 : index
    %c0_99 = arith.constant 0 : index
    %85 = vector.load %arg12[%c0_98, %c0_99] : memref<256x8xf32, #tpu.memory_space<vmem>>, vector<256x8xf32>
    tpu.vector_store %arg12[%c0_98, %c0_99], %84 {strides = array<i32>} : memref<256x8xf32, #tpu.memory_space<vmem>>, vector<256x8xf32>,
    %c2_100 = arith.constant 2 : index
    %c1_101 = arith.constant 1 : index
    %c0_102 = arith.constant 0 : index
    %86 = vector.load %arg11[%c2_100, %c1_101, %c0_102] : memref<18x18x4xf32, #tpu.memory_space<vmem>>, vector<16x16x4xf32>
    %87 = vector.shape_cast %86 : vector<16x16x4xf32> to vector<256x4xf32>
    %88 = arith.truncf %87 : vector<256x4xf32> to vector<256x4xbf16>
    %c7 = arith.constant 7 : index
    %c0_103 = arith.constant 0 : index
    %c0_104 = arith.constant 0 : index
    %89 = vector.load %arg5[%c7, %c0_103, %c0_104] : memref<9x4x8xbf16, #tpu.memory_space<vmem>>, vector<1x4x8xbf16>
    %90 = vector.shape_cast %89 : vector<1x4x8xbf16> to vector<4x8xbf16>
    %cst_105 = arith.constant dense<0.000000e+00> : vector<256x8xf32>
    %91 = tpu.matmul %88, %90, %cst_105 {dimension_numbers = #tpu.dot_dimension_numbers<[1], [0], [0], [1], [0, 0, 1, 1], [], []>} : vector<256x4xbf16>, vector<4x8xbf16>, vector<256x8xf32> -> vector<256x8xf32>
    %c0_106 = arith.constant 0 : index
    %c0_107 = arith.constant 0 : index
    %92 = vector.load %arg12[%c0_106, %c0_107] : memref<256x8xf32, #tpu.memory_space<vmem>>, vector<256x8xf32>
    %93 = arith.addf %92, %91 : vector<256x8xf32>
    %c0_108 = arith.constant 0 : index
    %c0_109 = arith.constant 0 : index
    %94 = vector.load %arg12[%c0_108, %c0_109] : memref<256x8xf32, #tpu.memory_space<vmem>>, vector<256x8xf32>
    tpu.vector_store %arg12[%c0_108, %c0_109], %93 {strides = array<i32>} : memref<256x8xf32, #tpu.memory_space<vmem>>, vector<256x8xf32>,
    %c2_110 = arith.constant 2 : index
    %c2_111 = arith.constant 2 : index
    %c0_112 = arith.constant 0 : index
    %95 = vector.load %arg11[%c2_110, %c2_111, %c0_112] : memref<18x18x4xf32, #tpu.memory_space<vmem>>, vector<16x16x4xf32>
    %96 = vector.shape_cast %95 : vector<16x16x4xf32> to vector<256x4xf32>
    %97 = arith.truncf %96 : vector<256x4xf32> to vector<256x4xbf16>
    %c8 = arith.constant 8 : index
    %c0_113 = arith.constant 0 : index
    %c0_114 = arith.constant 0 : index
    %98 = vector.load %arg5[%c8, %c0_113, %c0_114] : memref<9x4x8xbf16, #tpu.memory_space<vmem>>, vector<1x4x8xbf16>
    %99 = vector.shape_cast %98 : vector<1x4x8xbf16> to vector<4x8xbf16>
    %cst_115 = arith.constant dense<0.000000e+00> : vector<256x8xf32>
    %100 = tpu.matmul %97, %99, %cst_115 {dimension_numbers = #tpu.dot_dimension_numbers<[1], [0], [0], [1], [0, 0, 1, 1], [], []>} : vector<256x4xbf16>, vector<4x8xbf16>, vector<256x8xf32> -> vector<256x8xf32>
    %c0_116 = arith.constant 0 : index
    %c0_117 = arith.constant 0 : index
    %101 = vector.load %arg12[%c0_116, %c0_117] : memref<256x8xf32, #tpu.memory_space<vmem>>, vector<256x8xf32>
    %102 = arith.addf %101, %100 : vector<256x8xf32>
    %c0_118 = arith.constant 0 : index
    %c0_119 = arith.constant 0 : index
    %103 = vector.load %arg12[%c0_118, %c0_119] : memref<256x8xf32, #tpu.memory_space<vmem>>, vector<256x8xf32>
    tpu.vector_store %arg12[%c0_118, %c0_119], %102 {strides = array<i32>} : memref<256x8xf32, #tpu.memory_space<vmem>>, vector<256x8xf32>,
    %c0_120 = arith.constant 0 : index
    %c0_121 = arith.constant 0 : index
    %104 = vector.load %arg12[%c0_120, %c0_121] : memref<256x8xf32, #tpu.memory_space<vmem>>, vector<256x8xf32>
    %cst_122 = arith.constant dense<0.000000e+00> : vector<8xf32>
    %105 = vector.multi_reduction <add>, %104, %cst_122 [0] : vector<256x8xf32> to vector<8xf32>
    %106 = vector.shape_cast %105 : vector<8xf32> to vector<1x8xf32>
    %c0_123 = arith.constant 0 : index
    %c0_124 = arith.constant 0 : index
    %c0_125 = arith.constant 0 : index
    %c0_126 = arith.constant 0 : index
    %107 = vector.load %arg10[%c0_123, %c0_124, %c0_125, %c0_126] : memref<1x1x2x8xf32, #tpu.memory_space<vmem>>, vector<1x1x1x8xf32>
    %108 = vector.shape_cast %107 : vector<1x1x1x8xf32> to vector<1x8xf32>
    %109 = vector.shape_cast %106 : vector<1x8xf32> to vector<1x1x1x8xf32>
    tpu.vector_store %arg10[%c0_123, %c0_124, %c0_125, %c0_126], %109 {strides = array<i32>} : memref<1x1x2x8xf32, #tpu.memory_space<vmem>>, vector<1x1x1x8xf32>,
    %110 = arith.mulf %104, %104 : vector<256x8xf32>
    %cst_127 = arith.constant dense<0.000000e+00> : vector<8xf32>
    %111 = vector.multi_reduction <add>, %110, %cst_127 [0] : vector<256x8xf32> to vector<8xf32>
    %112 = vector.shape_cast %111 : vector<8xf32> to vector<1x8xf32>
    %c0_128 = arith.constant 0 : index
    %c0_129 = arith.constant 0 : index
    %c1_130 = arith.constant 1 : index
    %c0_131 = arith.constant 0 : index
    %113 = vector.load %arg10[%c0_128, %c0_129, %c1_130, %c0_131] : memref<1x1x2x8xf32, #tpu.memory_space<vmem>>, vector<1x1x1x8xf32>
    %114 = vector.shape_cast %113 : vector<1x1x1x8xf32> to vector<1x8xf32>
    %115 = vector.shape_cast %112 : vector<1x8xf32> to vector<1x1x1x8xf32>
    tpu.vector_store %arg10[%c0_128, %c0_129, %c1_130, %c0_131], %115 {strides = array<i32>} : memref<1x1x2x8xf32, #tpu.memory_space<vmem>>, vector<1x1x1x8xf32>,
    %116 = arith.truncf %104 : vector<256x8xf32> to vector<256x8xbf16>
    %c0_132 = arith.constant 0 : index
    %c0_133 = arith.constant 0 : index
    %c0_134 = arith.constant 0 : index
    %c0_135 = arith.constant 0 : index
    %117 = vector.load %arg9[%c0_132, %c0_133, %c0_134, %c0_135] : memref<1x1x256x8xbf16, #tpu.memory_space<vmem>>, vector<1x1x256x8xbf16>
    %118 = vector.shape_cast %117 : vector<1x1x256x8xbf16> to vector<256x8xbf16>
    %119 = vector.shape_cast %116 : vector<256x8xbf16> to vector<1x1x256x8xbf16>
    tpu.vector_store %arg9[%c0_132, %c0_133, %c0_134, %c0_135], %119 {strides = array<i32>} : memref<1x1x256x8xbf16, #tpu.memory_space<vmem>>, vector<1x1x256x8xbf16>,
    return
  }
  func.func @transform_0(%arg0: i32, %arg1: i32) -> (i32, i32, i32, i32) {
    %c0_i32 = arith.constant 0 : i32
    %c0_i32_0 = arith.constant 0 : i32
    %c0_i32_1 = arith.constant 0 : i32
    return %arg0, %arg1, %c0_i32, %c0_i32_0 : i32, i32, i32, i32
  }
  func.func @transform_1(%arg0: i32, %arg1: i32) -> (i32, i32, i32, i32) {
    %c16_i32 = arith.constant 16 : i32
    %0 = arith.muli %arg1, %c16_i32 : i32
    %c1_i32 = arith.constant 1 : i32
    %1 = arith.subi %0, %c1_i32 : i32
    %c0_i32 = arith.constant 0 : i32
    %2 = arith.maxsi %1, %c0_i32 : i32
    %c0_i32_0 = arith.constant 0 : i32
    %c0_i32_1 = arith.constant 0 : i32
    %c0_i32_2 = arith.constant 0 : i32
    return %arg0, %2, %c0_i32_0, %c0_i32_1 : i32, i32, i32, i32
  }
  func.func @transform_2(%arg0: i32, %arg1: i32) -> (i32, i32, i32, i32) {
    %c1_i32 = arith.constant 1 : i32
    %0 = arith.addi %arg1, %c1_i32 : i32
    %c16_i32 = arith.constant 16 : i32
    %1 = arith.muli %0, %c16_i32 : i32
    %c15_i32 = arith.constant 15 : i32
    %2 = arith.minsi %1, %c15_i32 : i32
    %c0_i32 = arith.constant 0 : i32
    %c0_i32_0 = arith.constant 0 : i32
    %c0_i32_1 = arith.constant 0 : i32
    return %arg0, %2, %c0_i32, %c0_i32_0 : i32, i32, i32, i32
  }
  func.func @transform_3(%arg0: i32, %arg1: i32) -> (i32, i32, i32) {
    %c0_i32 = arith.constant 0 : i32
    %c0_i32_0 = arith.constant 0 : i32
    %c0_i32_1 = arith.constant 0 : i32
    %c0_i32_2 = arith.constant 0 : i32
    return %c0_i32, %c0_i32_0, %c0_i32_1 : i32, i32, i32
  }
  func.func @transform_4(%arg0: i32, %arg1: i32) -> (i32, i32) {
    %c0_i32 = arith.constant 0 : i32
    %c0_i32_0 = arith.constant 0 : i32
    %c0_i32_1 = arith.constant 0 : i32
    return %c0_i32, %c0_i32_0 : i32, i32
  }
  func.func @transform_5(%arg0: i32, %arg1: i32) -> (i32, i32, i32) {
    %c0_i32 = arith.constant 0 : i32
    %c0_i32_0 = arith.constant 0 : i32
    %c0_i32_1 = arith.constant 0 : i32
    %c0_i32_2 = arith.constant 0 : i32
    return %c0_i32, %c0_i32_0, %c0_i32_1 : i32, i32, i32
  }
  func.func @transform_6(%arg0: i32, %arg1: i32) -> (i32, i32, i32) {
    %c0_i32 = arith.constant 0 : i32
    %c0_i32_0 = arith.constant 0 : i32
    %c0_i32_1 = arith.constant 0 : i32
    %c0_i32_2 = arith.constant 0 : i32
    return %c0_i32, %c0_i32_0, %c0_i32_1 : i32, i32, i32
  }
  func.func @transform_7(%arg0: i32, %arg1: i32) -> (i32, i32, i32, i32) {
    %c0_i32 = arith.constant 0 : i32
    %c0_i32_0 = arith.constant 0 : i32
    %c0_i32_1 = arith.constant 0 : i32
    return %arg0, %arg1, %c0_i32, %c0_i32_0 : i32, i32, i32, i32
  }
  func.func @transform_8(%arg0: i32, %arg1: i32) -> (i32, i32, i32, i32) {
    %c0_i32 = arith.constant 0 : i32
    %c0_i32_0 = arith.constant 0 : i32
    %c0_i32_1 = arith.constant 0 : i32
    return %arg0, %arg1, %c0_i32, %c0_i32_0 : i32, i32, i32, i32
  }
}

module attributes {stable_mosaic.version = 11 : i64} {
  func.func @_conv3x3_kernel(%arg0: i32, %arg1: i32, %arg2: memref<1x8x8x8xbf16, #tpu.memory_space<vmem>>, %arg3: memref<1x1x8x8xbf16, #tpu.memory_space<vmem>>, %arg4: memref<1x1x8x8xbf16, #tpu.memory_space<vmem>>, %arg5: memref<9x8x16xbf16, #tpu.memory_space<vmem>>, %arg6: memref<1x16xf32, #tpu.memory_space<vmem>>, %arg7: memref<1x1x8xf32, #tpu.memory_space<vmem>>, %arg8: memref<1x1x8xf32, #tpu.memory_space<vmem>>, %arg9: memref<1x1x64x16xbf16, #tpu.memory_space<vmem>>, %arg10: memref<1x1x2x16xf32, #tpu.memory_space<vmem>>, %arg11: memref<10x10x8xf32, #tpu.memory_space<vmem>>, %arg12: memref<64x16xf32, #tpu.memory_space<vmem>>) attributes {dimension_semantics = [#tpu.dimension_semantics<parallel>, #tpu.dimension_semantics<parallel>], iteration_bounds = array<i64: 2, 1>, scalar_prefetch = 0 : i64, scratch_operands = 2 : i64, tpu.core_type = #tpu.core_type<tc>, window_params = [{transform_indices = @transform_0, window_bounds = array<i64: 1, 8, 8, 8>}, {transform_indices = @transform_1, window_bounds = array<i64: 1, 1, 8, 8>}, {transform_indices = @transform_2, window_bounds = array<i64: 1, 1, 8, 8>}, {pipeline_mode = #tpu.pipeline_mode<synchronous>, transform_indices = @transform_3, window_bounds = array<i64: 9, 8, 16>}, {pipeline_mode = #tpu.pipeline_mode<synchronous>, transform_indices = @transform_4, window_bounds = array<i64: 1, 16>}, {pipeline_mode = #tpu.pipeline_mode<synchronous>, transform_indices = @transform_5, window_bounds = array<i64: 1, 1, 8>}, {pipeline_mode = #tpu.pipeline_mode<synchronous>, transform_indices = @transform_6, window_bounds = array<i64: 1, 1, 8>}, {transform_indices = @transform_7, window_bounds = array<i64: 1, 1, 64, 16>}, {transform_indices = @transform_8, window_bounds = array<i64: 1, 1, 2, 16>}]} {
    %cst = arith.constant 0.000000e+00 : f32
    %0 = vector.broadcast %cst : f32 to vector<10x1x8xf32>
    %c0 = arith.constant 0 : index
    %c0_0 = arith.constant 0 : index
    %c0_1 = arith.constant 0 : index
    %1 = vector.load %arg11[%c0, %c0_0, %c0_1] : memref<10x10x8xf32, #tpu.memory_space<vmem>>, vector<10x1x8xf32>
    tpu.vector_store %arg11[%c0, %c0_0, %c0_1], %0 {strides = array<i32>} : memref<10x10x8xf32, #tpu.memory_space<vmem>>, vector<10x1x8xf32>,
    %c0_2 = arith.constant 0 : index
    %c9 = arith.constant 9 : index
    %c0_3 = arith.constant 0 : index
    %2 = vector.load %arg11[%c0_2, %c9, %c0_3] : memref<10x10x8xf32, #tpu.memory_space<vmem>>, vector<10x1x8xf32>
    tpu.vector_store %arg11[%c0_2, %c9, %c0_3], %0 {strides = array<i32>} : memref<10x10x8xf32, #tpu.memory_space<vmem>>, vector<10x1x8xf32>,
    %c0_4 = arith.constant 0 : index
    %c0_5 = arith.constant 0 : index
    %c0_6 = arith.constant 0 : index
    %c0_7 = arith.constant 0 : index
    %3 = vector.load %arg2[%c0_4, %c0_5, %c0_6, %c0_7] : memref<1x8x8x8xbf16, #tpu.memory_space<vmem>>, vector<1x8x8x8xbf16>
    %4 = vector.shape_cast %3 : vector<1x8x8x8xbf16> to vector<8x8x8xbf16>
    %5 = arith.extf %4 : vector<8x8x8xbf16> to vector<8x8x8xf32>
    %c1 = arith.constant 1 : index
    %c1_8 = arith.constant 1 : index
    %c0_9 = arith.constant 0 : index
    %6 = vector.load %arg11[%c1, %c1_8, %c0_9] : memref<10x10x8xf32, #tpu.memory_space<vmem>>, vector<8x8x8xf32>
    tpu.vector_store %arg11[%c1, %c1_8, %c0_9], %5 {strides = array<i32>} : memref<10x10x8xf32, #tpu.memory_space<vmem>>, vector<8x8x8xf32>,
    %c0_10 = arith.constant 0 : index
    %c0_11 = arith.constant 0 : index
    %c0_12 = arith.constant 0 : index
    %c0_13 = arith.constant 0 : index
    %7 = vector.load %arg3[%c0_10, %c0_11, %c0_12, %c0_13] : memref<1x1x8x8xbf16, #tpu.memory_space<vmem>>, vector<1x1x8x8xbf16>
    %8 = vector.shape_cast %7 : vector<1x1x8x8xbf16> to vector<1x8x8xbf16>
    %9 = arith.extf %8 : vector<1x8x8xbf16> to vector<1x8x8xf32>
    %c0_14 = arith.constant 0 : index
    %c1_15 = arith.constant 1 : index
    %c0_16 = arith.constant 0 : index
    %10 = vector.load %arg11[%c0_14, %c1_15, %c0_16] : memref<10x10x8xf32, #tpu.memory_space<vmem>>, vector<1x8x8xf32>
    tpu.vector_store %arg11[%c0_14, %c1_15, %c0_16], %9 {strides = array<i32>} : memref<10x10x8xf32, #tpu.memory_space<vmem>>, vector<1x8x8xf32>,
    %c0_17 = arith.constant 0 : index
    %c0_18 = arith.constant 0 : index
    %c0_19 = arith.constant 0 : index
    %c0_20 = arith.constant 0 : index
    %11 = vector.load %arg4[%c0_17, %c0_18, %c0_19, %c0_20] : memref<1x1x8x8xbf16, #tpu.memory_space<vmem>>, vector<1x1x8x8xbf16>
    %12 = vector.shape_cast %11 : vector<1x1x8x8xbf16> to vector<1x8x8xbf16>
    %13 = arith.extf %12 : vector<1x8x8xbf16> to vector<1x8x8xf32>
    %c9_21 = arith.constant 9 : index
    %c1_22 = arith.constant 1 : index
    %c0_23 = arith.constant 0 : index
    %14 = vector.load %arg11[%c9_21, %c1_22, %c0_23] : memref<10x10x8xf32, #tpu.memory_space<vmem>>, vector<1x8x8xf32>
    tpu.vector_store %arg11[%c9_21, %c1_22, %c0_23], %13 {strides = array<i32>} : memref<10x10x8xf32, #tpu.memory_space<vmem>>, vector<1x8x8xf32>,
    %cst_24 = arith.constant 0.000000e+00 : f32
    %15 = vector.broadcast %cst_24 : f32 to vector<1x8x8xf32>
    %c0_i32 = arith.constant 0 : i32
    %16 = arith.cmpi eq, %arg1, %c0_i32 : i32
    %17 = arith.extui %16 : i1 to i32
    %c0_i32_25 = arith.constant 0 : i32
    %18 = arith.cmpi ne, %17, %c0_i32_25 : i32
    scf.if %18 {
      %c0_136 = arith.constant 0 : index
      %c1_137 = arith.constant 1 : index
      %c0_138 = arith.constant 0 : index
      %120 = vector.load %arg11[%c0_136, %c1_137, %c0_138] : memref<10x10x8xf32, #tpu.memory_space<vmem>>, vector<1x8x8xf32>
      tpu.vector_store %arg11[%c0_136, %c1_137, %c0_138], %15 {strides = array<i32>} : memref<10x10x8xf32, #tpu.memory_space<vmem>>, vector<1x8x8xf32>,
    } else {
    }
    %c0_i32_26 = arith.constant 0 : i32
    %19 = arith.cmpi eq, %arg1, %c0_i32_26 : i32
    %20 = arith.extui %19 : i1 to i32
    %c0_i32_27 = arith.constant 0 : i32
    %21 = arith.cmpi ne, %20, %c0_i32_27 : i32
    scf.if %21 {
      %c9_136 = arith.constant 9 : index
      %c1_137 = arith.constant 1 : index
      %c0_138 = arith.constant 0 : index
      %120 = vector.load %arg11[%c9_136, %c1_137, %c0_138] : memref<10x10x8xf32, #tpu.memory_space<vmem>>, vector<1x8x8xf32>
      tpu.vector_store %arg11[%c9_136, %c1_137, %c0_138], %15 {strides = array<i32>} : memref<10x10x8xf32, #tpu.memory_space<vmem>>, vector<1x8x8xf32>,
    } else {
    }
    %c0_28 = arith.constant 0 : index
    %c0_29 = arith.constant 0 : index
    %c0_30 = arith.constant 0 : index
    %22 = vector.load %arg11[%c0_28, %c0_29, %c0_30] : memref<10x10x8xf32, #tpu.memory_space<vmem>>, vector<8x8x8xf32>
    %23 = vector.shape_cast %22 : vector<8x8x8xf32> to vector<64x8xf32>
    %24 = arith.truncf %23 : vector<64x8xf32> to vector<64x8xbf16>
    %c0_31 = arith.constant 0 : index
    %c0_32 = arith.constant 0 : index
    %c0_33 = arith.constant 0 : index
    %25 = vector.load %arg5[%c0_31, %c0_32, %c0_33] : memref<9x8x16xbf16, #tpu.memory_space<vmem>>, vector<1x8x16xbf16>
    %26 = vector.shape_cast %25 : vector<1x8x16xbf16> to vector<8x16xbf16>
    %cst_34 = arith.constant dense<0.000000e+00> : vector<64x16xf32>
    %27 = tpu.matmul %24, %26, %cst_34 {dimension_numbers = #tpu.dot_dimension_numbers<[1], [0], [0], [1], [0, 0, 1, 1], [], []>} : vector<64x8xbf16>, vector<8x16xbf16>, vector<64x16xf32> -> vector<64x16xf32>
    %c0_35 = arith.constant 0 : index
    %c0_36 = arith.constant 0 : index
    %28 = vector.load %arg6[%c0_35, %c0_36] : memref<1x16xf32, #tpu.memory_space<vmem>>, vector<1x16xf32>
    %29 = vector.broadcast %28 : vector<1x16xf32> to vector<64x16xf32>
    %30 = arith.addf %27, %29 : vector<64x16xf32>
    %c0_37 = arith.constant 0 : index
    %c0_38 = arith.constant 0 : index
    %31 = vector.load %arg12[%c0_37, %c0_38] : memref<64x16xf32, #tpu.memory_space<vmem>>, vector<64x16xf32>
    tpu.vector_store %arg12[%c0_37, %c0_38], %30 {strides = array<i32>} : memref<64x16xf32, #tpu.memory_space<vmem>>, vector<64x16xf32>,
    %c0_39 = arith.constant 0 : index
    %c1_40 = arith.constant 1 : index
    %c0_41 = arith.constant 0 : index
    %32 = vector.load %arg11[%c0_39, %c1_40, %c0_41] : memref<10x10x8xf32, #tpu.memory_space<vmem>>, vector<8x8x8xf32>
    %33 = vector.shape_cast %32 : vector<8x8x8xf32> to vector<64x8xf32>
    %34 = arith.truncf %33 : vector<64x8xf32> to vector<64x8xbf16>
    %c1_42 = arith.constant 1 : index
    %c0_43 = arith.constant 0 : index
    %c0_44 = arith.constant 0 : index
    %35 = vector.load %arg5[%c1_42, %c0_43, %c0_44] : memref<9x8x16xbf16, #tpu.memory_space<vmem>>, vector<1x8x16xbf16>
    %36 = vector.shape_cast %35 : vector<1x8x16xbf16> to vector<8x16xbf16>
    %cst_45 = arith.constant dense<0.000000e+00> : vector<64x16xf32>
    %37 = tpu.matmul %34, %36, %cst_45 {dimension_numbers = #tpu.dot_dimension_numbers<[1], [0], [0], [1], [0, 0, 1, 1], [], []>} : vector<64x8xbf16>, vector<8x16xbf16>, vector<64x16xf32> -> vector<64x16xf32>
    %c0_46 = arith.constant 0 : index
    %c0_47 = arith.constant 0 : index
    %38 = vector.load %arg12[%c0_46, %c0_47] : memref<64x16xf32, #tpu.memory_space<vmem>>, vector<64x16xf32>
    %39 = arith.addf %38, %37 : vector<64x16xf32>
    %c0_48 = arith.constant 0 : index
    %c0_49 = arith.constant 0 : index
    %40 = vector.load %arg12[%c0_48, %c0_49] : memref<64x16xf32, #tpu.memory_space<vmem>>, vector<64x16xf32>
    tpu.vector_store %arg12[%c0_48, %c0_49], %39 {strides = array<i32>} : memref<64x16xf32, #tpu.memory_space<vmem>>, vector<64x16xf32>,
    %c0_50 = arith.constant 0 : index
    %c2 = arith.constant 2 : index
    %c0_51 = arith.constant 0 : index
    %41 = vector.load %arg11[%c0_50, %c2, %c0_51] : memref<10x10x8xf32, #tpu.memory_space<vmem>>, vector<8x8x8xf32>
    %42 = vector.shape_cast %41 : vector<8x8x8xf32> to vector<64x8xf32>
    %43 = arith.truncf %42 : vector<64x8xf32> to vector<64x8xbf16>
    %c2_52 = arith.constant 2 : index
    %c0_53 = arith.constant 0 : index
    %c0_54 = arith.constant 0 : index
    %44 = vector.load %arg5[%c2_52, %c0_53, %c0_54] : memref<9x8x16xbf16, #tpu.memory_space<vmem>>, vector<1x8x16xbf16>
    %45 = vector.shape_cast %44 : vector<1x8x16xbf16> to vector<8x16xbf16>
    %cst_55 = arith.constant dense<0.000000e+00> : vector<64x16xf32>
    %46 = tpu.matmul %43, %45, %cst_55 {dimension_numbers = #tpu.dot_dimension_numbers<[1], [0], [0], [1], [0, 0, 1, 1], [], []>} : vector<64x8xbf16>, vector<8x16xbf16>, vector<64x16xf32> -> vector<64x16xf32>
    %c0_56 = arith.constant 0 : index
    %c0_57 = arith.constant 0 : index
    %47 = vector.load %arg12[%c0_56, %c0_57] : memref<64x16xf32, #tpu.memory_space<vmem>>, vector<64x16xf32>
    %48 = arith.addf %47, %46 : vector<64x16xf32>
    %c0_58 = arith.constant 0 : index
    %c0_59 = arith.constant 0 : index
    %49 = vector.load %arg12[%c0_58, %c0_59] : memref<64x16xf32, #tpu.memory_space<vmem>>, vector<64x16xf32>
    tpu.vector_store %arg12[%c0_58, %c0_59], %48 {strides = array<i32>} : memref<64x16xf32, #tpu.memory_space<vmem>>, vector<64x16xf32>,
    %c1_60 = arith.constant 1 : index
    %c0_61 = arith.constant 0 : index
    %c0_62 = arith.constant 0 : index
    %50 = vector.load %arg11[%c1_60, %c0_61, %c0_62] : memref<10x10x8xf32, #tpu.memory_space<vmem>>, vector<8x8x8xf32>
    %51 = vector.shape_cast %50 : vector<8x8x8xf32> to vector<64x8xf32>
    %52 = arith.truncf %51 : vector<64x8xf32> to vector<64x8xbf16>
    %c3 = arith.constant 3 : index
    %c0_63 = arith.constant 0 : index
    %c0_64 = arith.constant 0 : index
    %53 = vector.load %arg5[%c3, %c0_63, %c0_64] : memref<9x8x16xbf16, #tpu.memory_space<vmem>>, vector<1x8x16xbf16>
    %54 = vector.shape_cast %53 : vector<1x8x16xbf16> to vector<8x16xbf16>
    %cst_65 = arith.constant dense<0.000000e+00> : vector<64x16xf32>
    %55 = tpu.matmul %52, %54, %cst_65 {dimension_numbers = #tpu.dot_dimension_numbers<[1], [0], [0], [1], [0, 0, 1, 1], [], []>} : vector<64x8xbf16>, vector<8x16xbf16>, vector<64x16xf32> -> vector<64x16xf32>
    %c0_66 = arith.constant 0 : index
    %c0_67 = arith.constant 0 : index
    %56 = vector.load %arg12[%c0_66, %c0_67] : memref<64x16xf32, #tpu.memory_space<vmem>>, vector<64x16xf32>
    %57 = arith.addf %56, %55 : vector<64x16xf32>
    %c0_68 = arith.constant 0 : index
    %c0_69 = arith.constant 0 : index
    %58 = vector.load %arg12[%c0_68, %c0_69] : memref<64x16xf32, #tpu.memory_space<vmem>>, vector<64x16xf32>
    tpu.vector_store %arg12[%c0_68, %c0_69], %57 {strides = array<i32>} : memref<64x16xf32, #tpu.memory_space<vmem>>, vector<64x16xf32>,
    %c1_70 = arith.constant 1 : index
    %c1_71 = arith.constant 1 : index
    %c0_72 = arith.constant 0 : index
    %59 = vector.load %arg11[%c1_70, %c1_71, %c0_72] : memref<10x10x8xf32, #tpu.memory_space<vmem>>, vector<8x8x8xf32>
    %60 = vector.shape_cast %59 : vector<8x8x8xf32> to vector<64x8xf32>
    %61 = arith.truncf %60 : vector<64x8xf32> to vector<64x8xbf16>
    %c4 = arith.constant 4 : index
    %c0_73 = arith.constant 0 : index
    %c0_74 = arith.constant 0 : index
    %62 = vector.load %arg5[%c4, %c0_73, %c0_74] : memref<9x8x16xbf16, #tpu.memory_space<vmem>>, vector<1x8x16xbf16>
    %63 = vector.shape_cast %62 : vector<1x8x16xbf16> to vector<8x16xbf16>
    %cst_75 = arith.constant dense<0.000000e+00> : vector<64x16xf32>
    %64 = tpu.matmul %61, %63, %cst_75 {dimension_numbers = #tpu.dot_dimension_numbers<[1], [0], [0], [1], [0, 0, 1, 1], [], []>} : vector<64x8xbf16>, vector<8x16xbf16>, vector<64x16xf32> -> vector<64x16xf32>
    %c0_76 = arith.constant 0 : index
    %c0_77 = arith.constant 0 : index
    %65 = vector.load %arg12[%c0_76, %c0_77] : memref<64x16xf32, #tpu.memory_space<vmem>>, vector<64x16xf32>
    %66 = arith.addf %65, %64 : vector<64x16xf32>
    %c0_78 = arith.constant 0 : index
    %c0_79 = arith.constant 0 : index
    %67 = vector.load %arg12[%c0_78, %c0_79] : memref<64x16xf32, #tpu.memory_space<vmem>>, vector<64x16xf32>
    tpu.vector_store %arg12[%c0_78, %c0_79], %66 {strides = array<i32>} : memref<64x16xf32, #tpu.memory_space<vmem>>, vector<64x16xf32>,
    %c1_80 = arith.constant 1 : index
    %c2_81 = arith.constant 2 : index
    %c0_82 = arith.constant 0 : index
    %68 = vector.load %arg11[%c1_80, %c2_81, %c0_82] : memref<10x10x8xf32, #tpu.memory_space<vmem>>, vector<8x8x8xf32>
    %69 = vector.shape_cast %68 : vector<8x8x8xf32> to vector<64x8xf32>
    %70 = arith.truncf %69 : vector<64x8xf32> to vector<64x8xbf16>
    %c5 = arith.constant 5 : index
    %c0_83 = arith.constant 0 : index
    %c0_84 = arith.constant 0 : index
    %71 = vector.load %arg5[%c5, %c0_83, %c0_84] : memref<9x8x16xbf16, #tpu.memory_space<vmem>>, vector<1x8x16xbf16>
    %72 = vector.shape_cast %71 : vector<1x8x16xbf16> to vector<8x16xbf16>
    %cst_85 = arith.constant dense<0.000000e+00> : vector<64x16xf32>
    %73 = tpu.matmul %70, %72, %cst_85 {dimension_numbers = #tpu.dot_dimension_numbers<[1], [0], [0], [1], [0, 0, 1, 1], [], []>} : vector<64x8xbf16>, vector<8x16xbf16>, vector<64x16xf32> -> vector<64x16xf32>
    %c0_86 = arith.constant 0 : index
    %c0_87 = arith.constant 0 : index
    %74 = vector.load %arg12[%c0_86, %c0_87] : memref<64x16xf32, #tpu.memory_space<vmem>>, vector<64x16xf32>
    %75 = arith.addf %74, %73 : vector<64x16xf32>
    %c0_88 = arith.constant 0 : index
    %c0_89 = arith.constant 0 : index
    %76 = vector.load %arg12[%c0_88, %c0_89] : memref<64x16xf32, #tpu.memory_space<vmem>>, vector<64x16xf32>
    tpu.vector_store %arg12[%c0_88, %c0_89], %75 {strides = array<i32>} : memref<64x16xf32, #tpu.memory_space<vmem>>, vector<64x16xf32>,
    %c2_90 = arith.constant 2 : index
    %c0_91 = arith.constant 0 : index
    %c0_92 = arith.constant 0 : index
    %77 = vector.load %arg11[%c2_90, %c0_91, %c0_92] : memref<10x10x8xf32, #tpu.memory_space<vmem>>, vector<8x8x8xf32>
    %78 = vector.shape_cast %77 : vector<8x8x8xf32> to vector<64x8xf32>
    %79 = arith.truncf %78 : vector<64x8xf32> to vector<64x8xbf16>
    %c6 = arith.constant 6 : index
    %c0_93 = arith.constant 0 : index
    %c0_94 = arith.constant 0 : index
    %80 = vector.load %arg5[%c6, %c0_93, %c0_94] : memref<9x8x16xbf16, #tpu.memory_space<vmem>>, vector<1x8x16xbf16>
    %81 = vector.shape_cast %80 : vector<1x8x16xbf16> to vector<8x16xbf16>
    %cst_95 = arith.constant dense<0.000000e+00> : vector<64x16xf32>
    %82 = tpu.matmul %79, %81, %cst_95 {dimension_numbers = #tpu.dot_dimension_numbers<[1], [0], [0], [1], [0, 0, 1, 1], [], []>} : vector<64x8xbf16>, vector<8x16xbf16>, vector<64x16xf32> -> vector<64x16xf32>
    %c0_96 = arith.constant 0 : index
    %c0_97 = arith.constant 0 : index
    %83 = vector.load %arg12[%c0_96, %c0_97] : memref<64x16xf32, #tpu.memory_space<vmem>>, vector<64x16xf32>
    %84 = arith.addf %83, %82 : vector<64x16xf32>
    %c0_98 = arith.constant 0 : index
    %c0_99 = arith.constant 0 : index
    %85 = vector.load %arg12[%c0_98, %c0_99] : memref<64x16xf32, #tpu.memory_space<vmem>>, vector<64x16xf32>
    tpu.vector_store %arg12[%c0_98, %c0_99], %84 {strides = array<i32>} : memref<64x16xf32, #tpu.memory_space<vmem>>, vector<64x16xf32>,
    %c2_100 = arith.constant 2 : index
    %c1_101 = arith.constant 1 : index
    %c0_102 = arith.constant 0 : index
    %86 = vector.load %arg11[%c2_100, %c1_101, %c0_102] : memref<10x10x8xf32, #tpu.memory_space<vmem>>, vector<8x8x8xf32>
    %87 = vector.shape_cast %86 : vector<8x8x8xf32> to vector<64x8xf32>
    %88 = arith.truncf %87 : vector<64x8xf32> to vector<64x8xbf16>
    %c7 = arith.constant 7 : index
    %c0_103 = arith.constant 0 : index
    %c0_104 = arith.constant 0 : index
    %89 = vector.load %arg5[%c7, %c0_103, %c0_104] : memref<9x8x16xbf16, #tpu.memory_space<vmem>>, vector<1x8x16xbf16>
    %90 = vector.shape_cast %89 : vector<1x8x16xbf16> to vector<8x16xbf16>
    %cst_105 = arith.constant dense<0.000000e+00> : vector<64x16xf32>
    %91 = tpu.matmul %88, %90, %cst_105 {dimension_numbers = #tpu.dot_dimension_numbers<[1], [0], [0], [1], [0, 0, 1, 1], [], []>} : vector<64x8xbf16>, vector<8x16xbf16>, vector<64x16xf32> -> vector<64x16xf32>
    %c0_106 = arith.constant 0 : index
    %c0_107 = arith.constant 0 : index
    %92 = vector.load %arg12[%c0_106, %c0_107] : memref<64x16xf32, #tpu.memory_space<vmem>>, vector<64x16xf32>
    %93 = arith.addf %92, %91 : vector<64x16xf32>
    %c0_108 = arith.constant 0 : index
    %c0_109 = arith.constant 0 : index
    %94 = vector.load %arg12[%c0_108, %c0_109] : memref<64x16xf32, #tpu.memory_space<vmem>>, vector<64x16xf32>
    tpu.vector_store %arg12[%c0_108, %c0_109], %93 {strides = array<i32>} : memref<64x16xf32, #tpu.memory_space<vmem>>, vector<64x16xf32>,
    %c2_110 = arith.constant 2 : index
    %c2_111 = arith.constant 2 : index
    %c0_112 = arith.constant 0 : index
    %95 = vector.load %arg11[%c2_110, %c2_111, %c0_112] : memref<10x10x8xf32, #tpu.memory_space<vmem>>, vector<8x8x8xf32>
    %96 = vector.shape_cast %95 : vector<8x8x8xf32> to vector<64x8xf32>
    %97 = arith.truncf %96 : vector<64x8xf32> to vector<64x8xbf16>
    %c8 = arith.constant 8 : index
    %c0_113 = arith.constant 0 : index
    %c0_114 = arith.constant 0 : index
    %98 = vector.load %arg5[%c8, %c0_113, %c0_114] : memref<9x8x16xbf16, #tpu.memory_space<vmem>>, vector<1x8x16xbf16>
    %99 = vector.shape_cast %98 : vector<1x8x16xbf16> to vector<8x16xbf16>
    %cst_115 = arith.constant dense<0.000000e+00> : vector<64x16xf32>
    %100 = tpu.matmul %97, %99, %cst_115 {dimension_numbers = #tpu.dot_dimension_numbers<[1], [0], [0], [1], [0, 0, 1, 1], [], []>} : vector<64x8xbf16>, vector<8x16xbf16>, vector<64x16xf32> -> vector<64x16xf32>
    %c0_116 = arith.constant 0 : index
    %c0_117 = arith.constant 0 : index
    %101 = vector.load %arg12[%c0_116, %c0_117] : memref<64x16xf32, #tpu.memory_space<vmem>>, vector<64x16xf32>
    %102 = arith.addf %101, %100 : vector<64x16xf32>
    %c0_118 = arith.constant 0 : index
    %c0_119 = arith.constant 0 : index
    %103 = vector.load %arg12[%c0_118, %c0_119] : memref<64x16xf32, #tpu.memory_space<vmem>>, vector<64x16xf32>
    tpu.vector_store %arg12[%c0_118, %c0_119], %102 {strides = array<i32>} : memref<64x16xf32, #tpu.memory_space<vmem>>, vector<64x16xf32>,
    %c0_120 = arith.constant 0 : index
    %c0_121 = arith.constant 0 : index
    %104 = vector.load %arg12[%c0_120, %c0_121] : memref<64x16xf32, #tpu.memory_space<vmem>>, vector<64x16xf32>
    %cst_122 = arith.constant dense<0.000000e+00> : vector<16xf32>
    %105 = vector.multi_reduction <add>, %104, %cst_122 [0] : vector<64x16xf32> to vector<16xf32>
    %106 = vector.shape_cast %105 : vector<16xf32> to vector<1x16xf32>
    %c0_123 = arith.constant 0 : index
    %c0_124 = arith.constant 0 : index
    %c0_125 = arith.constant 0 : index
    %c0_126 = arith.constant 0 : index
    %107 = vector.load %arg10[%c0_123, %c0_124, %c0_125, %c0_126] : memref<1x1x2x16xf32, #tpu.memory_space<vmem>>, vector<1x1x1x16xf32>
    %108 = vector.shape_cast %107 : vector<1x1x1x16xf32> to vector<1x16xf32>
    %109 = vector.shape_cast %106 : vector<1x16xf32> to vector<1x1x1x16xf32>
    tpu.vector_store %arg10[%c0_123, %c0_124, %c0_125, %c0_126], %109 {strides = array<i32>} : memref<1x1x2x16xf32, #tpu.memory_space<vmem>>, vector<1x1x1x16xf32>,
    %110 = arith.mulf %104, %104 : vector<64x16xf32>
    %cst_127 = arith.constant dense<0.000000e+00> : vector<16xf32>
    %111 = vector.multi_reduction <add>, %110, %cst_127 [0] : vector<64x16xf32> to vector<16xf32>
    %112 = vector.shape_cast %111 : vector<16xf32> to vector<1x16xf32>
    %c0_128 = arith.constant 0 : index
    %c0_129 = arith.constant 0 : index
    %c1_130 = arith.constant 1 : index
    %c0_131 = arith.constant 0 : index
    %113 = vector.load %arg10[%c0_128, %c0_129, %c1_130, %c0_131] : memref<1x1x2x16xf32, #tpu.memory_space<vmem>>, vector<1x1x1x16xf32>
    %114 = vector.shape_cast %113 : vector<1x1x1x16xf32> to vector<1x16xf32>
    %115 = vector.shape_cast %112 : vector<1x16xf32> to vector<1x1x1x16xf32>
    tpu.vector_store %arg10[%c0_128, %c0_129, %c1_130, %c0_131], %115 {strides = array<i32>} : memref<1x1x2x16xf32, #tpu.memory_space<vmem>>, vector<1x1x1x16xf32>,
    %116 = arith.truncf %104 : vector<64x16xf32> to vector<64x16xbf16>
    %c0_132 = arith.constant 0 : index
    %c0_133 = arith.constant 0 : index
    %c0_134 = arith.constant 0 : index
    %c0_135 = arith.constant 0 : index
    %117 = vector.load %arg9[%c0_132, %c0_133, %c0_134, %c0_135] : memref<1x1x64x16xbf16, #tpu.memory_space<vmem>>, vector<1x1x64x16xbf16>
    %118 = vector.shape_cast %117 : vector<1x1x64x16xbf16> to vector<64x16xbf16>
    %119 = vector.shape_cast %116 : vector<64x16xbf16> to vector<1x1x64x16xbf16>
    tpu.vector_store %arg9[%c0_132, %c0_133, %c0_134, %c0_135], %119 {strides = array<i32>} : memref<1x1x64x16xbf16, #tpu.memory_space<vmem>>, vector<1x1x64x16xbf16>,
    return
  }
  func.func @transform_0(%arg0: i32, %arg1: i32) -> (i32, i32, i32, i32) {
    %c0_i32 = arith.constant 0 : i32
    %c0_i32_0 = arith.constant 0 : i32
    %c0_i32_1 = arith.constant 0 : i32
    return %arg0, %arg1, %c0_i32, %c0_i32_0 : i32, i32, i32, i32
  }
  func.func @transform_1(%arg0: i32, %arg1: i32) -> (i32, i32, i32, i32) {
    %c8_i32 = arith.constant 8 : i32
    %0 = arith.muli %arg1, %c8_i32 : i32
    %c1_i32 = arith.constant 1 : i32
    %1 = arith.subi %0, %c1_i32 : i32
    %c0_i32 = arith.constant 0 : i32
    %2 = arith.maxsi %1, %c0_i32 : i32
    %c0_i32_0 = arith.constant 0 : i32
    %c0_i32_1 = arith.constant 0 : i32
    %c0_i32_2 = arith.constant 0 : i32
    return %arg0, %2, %c0_i32_0, %c0_i32_1 : i32, i32, i32, i32
  }
  func.func @transform_2(%arg0: i32, %arg1: i32) -> (i32, i32, i32, i32) {
    %c1_i32 = arith.constant 1 : i32
    %0 = arith.addi %arg1, %c1_i32 : i32
    %c8_i32 = arith.constant 8 : i32
    %1 = arith.muli %0, %c8_i32 : i32
    %c7_i32 = arith.constant 7 : i32
    %2 = arith.minsi %1, %c7_i32 : i32
    %c0_i32 = arith.constant 0 : i32
    %c0_i32_0 = arith.constant 0 : i32
    %c0_i32_1 = arith.constant 0 : i32
    return %arg0, %2, %c0_i32, %c0_i32_0 : i32, i32, i32, i32
  }
  func.func @transform_3(%arg0: i32, %arg1: i32) -> (i32, i32, i32) {
    %c0_i32 = arith.constant 0 : i32
    %c0_i32_0 = arith.constant 0 : i32
    %c0_i32_1 = arith.constant 0 : i32
    %c0_i32_2 = arith.constant 0 : i32
    return %c0_i32, %c0_i32_0, %c0_i32_1 : i32, i32, i32
  }
  func.func @transform_4(%arg0: i32, %arg1: i32) -> (i32, i32) {
    %c0_i32 = arith.constant 0 : i32
    %c0_i32_0 = arith.constant 0 : i32
    %c0_i32_1 = arith.constant 0 : i32
    return %c0_i32, %c0_i32_0 : i32, i32
  }
  func.func @transform_5(%arg0: i32, %arg1: i32) -> (i32, i32, i32) {
    %c0_i32 = arith.constant 0 : i32
    %c0_i32_0 = arith.constant 0 : i32
    %c0_i32_1 = arith.constant 0 : i32
    %c0_i32_2 = arith.constant 0 : i32
    return %c0_i32, %c0_i32_0, %c0_i32_1 : i32, i32, i32
  }
  func.func @transform_6(%arg0: i32, %arg1: i32) -> (i32, i32, i32) {
    %c0_i32 = arith.constant 0 : i32
    %c0_i32_0 = arith.constant 0 : i32
    %c0_i32_1 = arith.constant 0 : i32
    %c0_i32_2 = arith.constant 0 : i32
    return %c0_i32, %c0_i32_0, %c0_i32_1 : i32, i32, i32
  }
  func.func @transform_7(%arg0: i32, %arg1: i32) -> (i32, i32, i32, i32) {
    %c0_i32 = arith.constant 0 : i32
    %c0_i32_0 = arith.constant 0 : i32
    %c0_i32_1 = arith.constant 0 : i32
    return %arg0, %arg1, %c0_i32, %c0_i32_0 : i32, i32, i32, i32
  }
  func.func @transform_8(%arg0: i32, %arg1: i32) -> (i32, i32, i32, i32) {
    %c0_i32 = arith.constant 0 : i32
    %c0_i32_0 = arith.constant 0 : i32
    %c0_i32_1 = arith.constant 0 : i32
    return %arg0, %arg1, %c0_i32, %c0_i32_0 : i32, i32, i32, i32
  }
}

module attributes {stable_mosaic.version = 11 : i64} {
  func.func @_bn_relu_pool_kernel(%arg0: i32, %arg1: i32, %arg2: memref<1x16x8x16xbf16, #tpu.memory_space<vmem>>, %arg3: memref<1x1x8xf32, #tpu.memory_space<vmem>>, %arg4: memref<1x1x8xf32, #tpu.memory_space<vmem>>, %arg5: memref<1x8x8x8xbf16, #tpu.memory_space<vmem>>) attributes {dimension_semantics = [#tpu.dimension_semantics<parallel>, #tpu.dimension_semantics<parallel>], iteration_bounds = array<i64: 2, 1>, scalar_prefetch = 0 : i64, scratch_operands = 0 : i64, tpu.core_type = #tpu.core_type<tc>, window_params = [{transform_indices = @transform_0, window_bounds = array<i64: 1, 16, 8, 16>}, {pipeline_mode = #tpu.pipeline_mode<synchronous>, transform_indices = @transform_1, window_bounds = array<i64: 1, 1, 8>}, {pipeline_mode = #tpu.pipeline_mode<synchronous>, transform_indices = @transform_2, window_bounds = array<i64: 1, 1, 8>}, {transform_indices = @transform_3, window_bounds = array<i64: 1, 8, 8, 8>}]} {
    %c0 = arith.constant 0 : index
    %c0_0 = arith.constant 0 : index
    %c0_1 = arith.constant 0 : index
    %c0_2 = arith.constant 0 : index
    %0 = vector.load %arg2[%c0, %c0_0, %c0_1, %c0_2] : memref<1x16x8x16xbf16, #tpu.memory_space<vmem>>, vector<1x16x8x8xbf16>
    %1 = vector.shape_cast %0 : vector<1x16x8x8xbf16> to vector<16x8x8xbf16>
    %2 = arith.extf %1 : vector<16x8x8xbf16> to vector<16x8x8xf32>
    %c0_3 = arith.constant 0 : index
    %c0_4 = arith.constant 0 : index
    %c0_5 = arith.constant 0 : index
    %3 = vector.load %arg3[%c0_3, %c0_4, %c0_5] : memref<1x1x8xf32, #tpu.memory_space<vmem>>, vector<1x1x8xf32>
    %4 = vector.broadcast %3 : vector<1x1x8xf32> to vector<16x8x8xf32>
    %5 = arith.mulf %2, %4 : vector<16x8x8xf32>
    %c0_6 = arith.constant 0 : index
    %c0_7 = arith.constant 0 : index
    %c0_8 = arith.constant 0 : index
    %6 = vector.load %arg4[%c0_6, %c0_7, %c0_8] : memref<1x1x8xf32, #tpu.memory_space<vmem>>, vector<1x1x8xf32>
    %7 = vector.broadcast %6 : vector<1x1x8xf32> to vector<16x8x8xf32>
    %8 = arith.addf %5, %7 : vector<16x8x8xf32>
    %cst = arith.constant 0.000000e+00 : f32
    %9 = vector.broadcast %cst : f32 to vector<16x8x8xf32>
    %10 = arith.maximumf %8, %9 : vector<16x8x8xf32>
    %c0_9 = arith.constant 0 : index
    %c0_10 = arith.constant 0 : index
    %c0_11 = arith.constant 0 : index
    %c8 = arith.constant 8 : index
    %11 = vector.load %arg2[%c0_9, %c0_10, %c0_11, %c8] : memref<1x16x8x16xbf16, #tpu.memory_space<vmem>>, vector<1x16x8x8xbf16>
    %12 = vector.shape_cast %11 : vector<1x16x8x8xbf16> to vector<16x8x8xbf16>
    %13 = arith.extf %12 : vector<16x8x8xbf16> to vector<16x8x8xf32>
    %c0_12 = arith.constant 0 : index
    %c0_13 = arith.constant 0 : index
    %c0_14 = arith.constant 0 : index
    %14 = vector.load %arg3[%c0_12, %c0_13, %c0_14] : memref<1x1x8xf32, #tpu.memory_space<vmem>>, vector<1x1x8xf32>
    %15 = vector.broadcast %14 : vector<1x1x8xf32> to vector<16x8x8xf32>
    %16 = arith.mulf %13, %15 : vector<16x8x8xf32>
    %c0_15 = arith.constant 0 : index
    %c0_16 = arith.constant 0 : index
    %c0_17 = arith.constant 0 : index
    %17 = vector.load %arg4[%c0_15, %c0_16, %c0_17] : memref<1x1x8xf32, #tpu.memory_space<vmem>>, vector<1x1x8xf32>
    %18 = vector.broadcast %17 : vector<1x1x8xf32> to vector<16x8x8xf32>
    %19 = arith.addf %16, %18 : vector<16x8x8xf32>
    %cst_18 = arith.constant 0.000000e+00 : f32
    %20 = vector.broadcast %cst_18 : f32 to vector<16x8x8xf32>
    %21 = arith.maximumf %19, %20 : vector<16x8x8xf32>
    %22 = arith.maximumf %10, %21 : vector<16x8x8xf32>
    %23 = vector.shape_cast %22 : vector<16x8x8xf32> to vector<8x2x8x8xf32>
    %24 = vector.extract_strided_slice %23 {offsets = [0, 0, 0, 0], sizes = [8, 1, 8, 8], strides = [1, 1, 1, 1]} : vector<8x2x8x8xf32> to vector<8x1x8x8xf32>
    %25 = vector.shape_cast %24 : vector<8x1x8x8xf32> to vector<8x8x8xf32>
    %26 = vector.extract_strided_slice %23 {offsets = [0, 1, 0, 0], sizes = [8, 1, 8, 8], strides = [1, 1, 1, 1]} : vector<8x2x8x8xf32> to vector<8x1x8x8xf32>
    %27 = vector.shape_cast %26 : vector<8x1x8x8xf32> to vector<8x8x8xf32>
    %28 = arith.maximumf %25, %27 : vector<8x8x8xf32>
    %29 = arith.truncf %28 : vector<8x8x8xf32> to vector<8x8x8xbf16>
    %c0_19 = arith.constant 0 : index
    %c0_20 = arith.constant 0 : index
    %c0_21 = arith.constant 0 : index
    %c0_22 = arith.constant 0 : index
    %30 = vector.load %arg5[%c0_19, %c0_20, %c0_21, %c0_22] : memref<1x8x8x8xbf16, #tpu.memory_space<vmem>>, vector<1x8x8x8xbf16>
    %31 = vector.shape_cast %30 : vector<1x8x8x8xbf16> to vector<8x8x8xbf16>
    %32 = vector.shape_cast %29 : vector<8x8x8xbf16> to vector<1x8x8x8xbf16>
    tpu.vector_store %arg5[%c0_19, %c0_20, %c0_21, %c0_22], %32 {strides = array<i32>} : memref<1x8x8x8xbf16, #tpu.memory_space<vmem>>, vector<1x8x8x8xbf16>,
    return
  }
  func.func @transform_0(%arg0: i32, %arg1: i32) -> (i32, i32, i32, i32) {
    %c0_i32 = arith.constant 0 : i32
    %c0_i32_0 = arith.constant 0 : i32
    %c0_i32_1 = arith.constant 0 : i32
    return %arg0, %arg1, %c0_i32, %c0_i32_0 : i32, i32, i32, i32
  }
  func.func @transform_1(%arg0: i32, %arg1: i32) -> (i32, i32, i32) {
    %c0_i32 = arith.constant 0 : i32
    %c0_i32_0 = arith.constant 0 : i32
    %c0_i32_1 = arith.constant 0 : i32
    %c0_i32_2 = arith.constant 0 : i32
    return %c0_i32, %c0_i32_0, %c0_i32_1 : i32, i32, i32
  }
  func.func @transform_2(%arg0: i32, %arg1: i32) -> (i32, i32, i32) {
    %c0_i32 = arith.constant 0 : i32
    %c0_i32_0 = arith.constant 0 : i32
    %c0_i32_1 = arith.constant 0 : i32
    %c0_i32_2 = arith.constant 0 : i32
    return %c0_i32, %c0_i32_0, %c0_i32_1 : i32, i32, i32
  }
  func.func @transform_3(%arg0: i32, %arg1: i32) -> (i32, i32, i32, i32) {
    %c0_i32 = arith.constant 0 : i32
    %c0_i32_0 = arith.constant 0 : i32
    %c0_i32_1 = arith.constant 0 : i32
    return %arg0, %arg1, %c0_i32, %c0_i32_0 : i32, i32, i32, i32
  }
}

module attributes {stable_mosaic.version = 11 : i64} {
  func.func @_conv3x3_kernel(%arg0: i32, %arg1: i32, %arg2: memref<1x8x8x16xbf16, #tpu.memory_space<vmem>>, %arg3: memref<1x1x8x16xbf16, #tpu.memory_space<vmem>>, %arg4: memref<1x1x8x16xbf16, #tpu.memory_space<vmem>>, %arg5: memref<9x16x16xbf16, #tpu.memory_space<vmem>>, %arg6: memref<1x16xf32, #tpu.memory_space<vmem>>, %arg7: memref<1x1x16xf32, #tpu.memory_space<vmem>>, %arg8: memref<1x1x16xf32, #tpu.memory_space<vmem>>, %arg9: memref<1x1x64x16xbf16, #tpu.memory_space<vmem>>, %arg10: memref<1x1x2x16xf32, #tpu.memory_space<vmem>>, %arg11: memref<10x10x16xf32, #tpu.memory_space<vmem>>, %arg12: memref<64x16xf32, #tpu.memory_space<vmem>>) attributes {dimension_semantics = [#tpu.dimension_semantics<parallel>, #tpu.dimension_semantics<parallel>], iteration_bounds = array<i64: 2, 1>, scalar_prefetch = 0 : i64, scratch_operands = 2 : i64, tpu.core_type = #tpu.core_type<tc>, window_params = [{transform_indices = @transform_0, window_bounds = array<i64: 1, 8, 8, 16>}, {transform_indices = @transform_1, window_bounds = array<i64: 1, 1, 8, 16>}, {transform_indices = @transform_2, window_bounds = array<i64: 1, 1, 8, 16>}, {pipeline_mode = #tpu.pipeline_mode<synchronous>, transform_indices = @transform_3, window_bounds = array<i64: 9, 16, 16>}, {pipeline_mode = #tpu.pipeline_mode<synchronous>, transform_indices = @transform_4, window_bounds = array<i64: 1, 16>}, {pipeline_mode = #tpu.pipeline_mode<synchronous>, transform_indices = @transform_5, window_bounds = array<i64: 1, 1, 16>}, {pipeline_mode = #tpu.pipeline_mode<synchronous>, transform_indices = @transform_6, window_bounds = array<i64: 1, 1, 16>}, {transform_indices = @transform_7, window_bounds = array<i64: 1, 1, 64, 16>}, {transform_indices = @transform_8, window_bounds = array<i64: 1, 1, 2, 16>}]} {
    %cst = arith.constant 0.000000e+00 : f32
    %0 = vector.broadcast %cst : f32 to vector<10x1x16xf32>
    %c0 = arith.constant 0 : index
    %c0_0 = arith.constant 0 : index
    %c0_1 = arith.constant 0 : index
    %1 = vector.load %arg11[%c0, %c0_0, %c0_1] : memref<10x10x16xf32, #tpu.memory_space<vmem>>, vector<10x1x16xf32>
    tpu.vector_store %arg11[%c0, %c0_0, %c0_1], %0 {strides = array<i32>} : memref<10x10x16xf32, #tpu.memory_space<vmem>>, vector<10x1x16xf32>,
    %c0_2 = arith.constant 0 : index
    %c9 = arith.constant 9 : index
    %c0_3 = arith.constant 0 : index
    %2 = vector.load %arg11[%c0_2, %c9, %c0_3] : memref<10x10x16xf32, #tpu.memory_space<vmem>>, vector<10x1x16xf32>
    tpu.vector_store %arg11[%c0_2, %c9, %c0_3], %0 {strides = array<i32>} : memref<10x10x16xf32, #tpu.memory_space<vmem>>, vector<10x1x16xf32>,
    %c0_4 = arith.constant 0 : index
    %c0_5 = arith.constant 0 : index
    %c0_6 = arith.constant 0 : index
    %c0_7 = arith.constant 0 : index
    %3 = vector.load %arg2[%c0_4, %c0_5, %c0_6, %c0_7] : memref<1x8x8x16xbf16, #tpu.memory_space<vmem>>, vector<1x8x8x16xbf16>
    %4 = vector.shape_cast %3 : vector<1x8x8x16xbf16> to vector<8x8x16xbf16>
    %5 = arith.extf %4 : vector<8x8x16xbf16> to vector<8x8x16xf32>
    %c0_8 = arith.constant 0 : index
    %c0_9 = arith.constant 0 : index
    %c0_10 = arith.constant 0 : index
    %6 = vector.load %arg7[%c0_8, %c0_9, %c0_10] : memref<1x1x16xf32, #tpu.memory_space<vmem>>, vector<1x1x16xf32>
    %7 = vector.broadcast %6 : vector<1x1x16xf32> to vector<8x8x16xf32>
    %8 = arith.mulf %5, %7 : vector<8x8x16xf32>
    %c0_11 = arith.constant 0 : index
    %c0_12 = arith.constant 0 : index
    %c0_13 = arith.constant 0 : index
    %9 = vector.load %arg8[%c0_11, %c0_12, %c0_13] : memref<1x1x16xf32, #tpu.memory_space<vmem>>, vector<1x1x16xf32>
    %10 = vector.broadcast %9 : vector<1x1x16xf32> to vector<8x8x16xf32>
    %11 = arith.addf %8, %10 : vector<8x8x16xf32>
    %cst_14 = arith.constant 0.000000e+00 : f32
    %12 = vector.broadcast %cst_14 : f32 to vector<8x8x16xf32>
    %13 = arith.maximumf %11, %12 : vector<8x8x16xf32>
    %c1 = arith.constant 1 : index
    %c1_15 = arith.constant 1 : index
    %c0_16 = arith.constant 0 : index
    %14 = vector.load %arg11[%c1, %c1_15, %c0_16] : memref<10x10x16xf32, #tpu.memory_space<vmem>>, vector<8x8x16xf32>
    tpu.vector_store %arg11[%c1, %c1_15, %c0_16], %13 {strides = array<i32>} : memref<10x10x16xf32, #tpu.memory_space<vmem>>, vector<8x8x16xf32>,
    %c0_17 = arith.constant 0 : index
    %c0_18 = arith.constant 0 : index
    %c0_19 = arith.constant 0 : index
    %c0_20 = arith.constant 0 : index
    %15 = vector.load %arg3[%c0_17, %c0_18, %c0_19, %c0_20] : memref<1x1x8x16xbf16, #tpu.memory_space<vmem>>, vector<1x1x8x16xbf16>
    %16 = vector.shape_cast %15 : vector<1x1x8x16xbf16> to vector<1x8x16xbf16>
    %17 = arith.extf %16 : vector<1x8x16xbf16> to vector<1x8x16xf32>
    %c0_21 = arith.constant 0 : index
    %c0_22 = arith.constant 0 : index
    %c0_23 = arith.constant 0 : index
    %18 = vector.load %arg7[%c0_21, %c0_22, %c0_23] : memref<1x1x16xf32, #tpu.memory_space<vmem>>, vector<1x1x16xf32>
    %19 = vector.broadcast %18 : vector<1x1x16xf32> to vector<1x8x16xf32>
    %20 = arith.mulf %17, %19 : vector<1x8x16xf32>
    %c0_24 = arith.constant 0 : index
    %c0_25 = arith.constant 0 : index
    %c0_26 = arith.constant 0 : index
    %21 = vector.load %arg8[%c0_24, %c0_25, %c0_26] : memref<1x1x16xf32, #tpu.memory_space<vmem>>, vector<1x1x16xf32>
    %22 = vector.broadcast %21 : vector<1x1x16xf32> to vector<1x8x16xf32>
    %23 = arith.addf %20, %22 : vector<1x8x16xf32>
    %cst_27 = arith.constant 0.000000e+00 : f32
    %24 = vector.broadcast %cst_27 : f32 to vector<1x8x16xf32>
    %25 = arith.maximumf %23, %24 : vector<1x8x16xf32>
    %c0_28 = arith.constant 0 : index
    %c1_29 = arith.constant 1 : index
    %c0_30 = arith.constant 0 : index
    %26 = vector.load %arg11[%c0_28, %c1_29, %c0_30] : memref<10x10x16xf32, #tpu.memory_space<vmem>>, vector<1x8x16xf32>
    tpu.vector_store %arg11[%c0_28, %c1_29, %c0_30], %25 {strides = array<i32>} : memref<10x10x16xf32, #tpu.memory_space<vmem>>, vector<1x8x16xf32>,
    %c0_31 = arith.constant 0 : index
    %c0_32 = arith.constant 0 : index
    %c0_33 = arith.constant 0 : index
    %c0_34 = arith.constant 0 : index
    %27 = vector.load %arg4[%c0_31, %c0_32, %c0_33, %c0_34] : memref<1x1x8x16xbf16, #tpu.memory_space<vmem>>, vector<1x1x8x16xbf16>
    %28 = vector.shape_cast %27 : vector<1x1x8x16xbf16> to vector<1x8x16xbf16>
    %29 = arith.extf %28 : vector<1x8x16xbf16> to vector<1x8x16xf32>
    %c0_35 = arith.constant 0 : index
    %c0_36 = arith.constant 0 : index
    %c0_37 = arith.constant 0 : index
    %30 = vector.load %arg7[%c0_35, %c0_36, %c0_37] : memref<1x1x16xf32, #tpu.memory_space<vmem>>, vector<1x1x16xf32>
    %31 = vector.broadcast %30 : vector<1x1x16xf32> to vector<1x8x16xf32>
    %32 = arith.mulf %29, %31 : vector<1x8x16xf32>
    %c0_38 = arith.constant 0 : index
    %c0_39 = arith.constant 0 : index
    %c0_40 = arith.constant 0 : index
    %33 = vector.load %arg8[%c0_38, %c0_39, %c0_40] : memref<1x1x16xf32, #tpu.memory_space<vmem>>, vector<1x1x16xf32>
    %34 = vector.broadcast %33 : vector<1x1x16xf32> to vector<1x8x16xf32>
    %35 = arith.addf %32, %34 : vector<1x8x16xf32>
    %cst_41 = arith.constant 0.000000e+00 : f32
    %36 = vector.broadcast %cst_41 : f32 to vector<1x8x16xf32>
    %37 = arith.maximumf %35, %36 : vector<1x8x16xf32>
    %c9_42 = arith.constant 9 : index
    %c1_43 = arith.constant 1 : index
    %c0_44 = arith.constant 0 : index
    %38 = vector.load %arg11[%c9_42, %c1_43, %c0_44] : memref<10x10x16xf32, #tpu.memory_space<vmem>>, vector<1x8x16xf32>
    tpu.vector_store %arg11[%c9_42, %c1_43, %c0_44], %37 {strides = array<i32>} : memref<10x10x16xf32, #tpu.memory_space<vmem>>, vector<1x8x16xf32>,
    %cst_45 = arith.constant 0.000000e+00 : f32
    %39 = vector.broadcast %cst_45 : f32 to vector<1x8x16xf32>
    %c0_i32 = arith.constant 0 : i32
    %40 = arith.cmpi eq, %arg1, %c0_i32 : i32
    %41 = arith.extui %40 : i1 to i32
    %c0_i32_46 = arith.constant 0 : i32
    %42 = arith.cmpi ne, %41, %c0_i32_46 : i32
    scf.if %42 {
      %c0_157 = arith.constant 0 : index
      %c1_158 = arith.constant 1 : index
      %c0_159 = arith.constant 0 : index
      %144 = vector.load %arg11[%c0_157, %c1_158, %c0_159] : memref<10x10x16xf32, #tpu.memory_space<vmem>>, vector<1x8x16xf32>
      tpu.vector_store %arg11[%c0_157, %c1_158, %c0_159], %39 {strides = array<i32>} : memref<10x10x16xf32, #tpu.memory_space<vmem>>, vector<1x8x16xf32>,
    } else {
    }
    %c0_i32_47 = arith.constant 0 : i32
    %43 = arith.cmpi eq, %arg1, %c0_i32_47 : i32
    %44 = arith.extui %43 : i1 to i32
    %c0_i32_48 = arith.constant 0 : i32
    %45 = arith.cmpi ne, %44, %c0_i32_48 : i32
    scf.if %45 {
      %c9_157 = arith.constant 9 : index
      %c1_158 = arith.constant 1 : index
      %c0_159 = arith.constant 0 : index
      %144 = vector.load %arg11[%c9_157, %c1_158, %c0_159] : memref<10x10x16xf32, #tpu.memory_space<vmem>>, vector<1x8x16xf32>
      tpu.vector_store %arg11[%c9_157, %c1_158, %c0_159], %39 {strides = array<i32>} : memref<10x10x16xf32, #tpu.memory_space<vmem>>, vector<1x8x16xf32>,
    } else {
    }
    %c0_49 = arith.constant 0 : index
    %c0_50 = arith.constant 0 : index
    %c0_51 = arith.constant 0 : index
    %46 = vector.load %arg11[%c0_49, %c0_50, %c0_51] : memref<10x10x16xf32, #tpu.memory_space<vmem>>, vector<8x8x16xf32>
    %47 = vector.shape_cast %46 : vector<8x8x16xf32> to vector<64x16xf32>
    %48 = arith.truncf %47 : vector<64x16xf32> to vector<64x16xbf16>
    %c0_52 = arith.constant 0 : index
    %c0_53 = arith.constant 0 : index
    %c0_54 = arith.constant 0 : index
    %49 = vector.load %arg5[%c0_52, %c0_53, %c0_54] : memref<9x16x16xbf16, #tpu.memory_space<vmem>>, vector<1x16x16xbf16>
    %50 = vector.shape_cast %49 : vector<1x16x16xbf16> to vector<16x16xbf16>
    %cst_55 = arith.constant dense<0.000000e+00> : vector<64x16xf32>
    %51 = tpu.matmul %48, %50, %cst_55 {dimension_numbers = #tpu.dot_dimension_numbers<[1], [0], [0], [1], [0, 0, 1, 1], [], []>} : vector<64x16xbf16>, vector<16x16xbf16>, vector<64x16xf32> -> vector<64x16xf32>
    %c0_56 = arith.constant 0 : index
    %c0_57 = arith.constant 0 : index
    %52 = vector.load %arg6[%c0_56, %c0_57] : memref<1x16xf32, #tpu.memory_space<vmem>>, vector<1x16xf32>
    %53 = vector.broadcast %52 : vector<1x16xf32> to vector<64x16xf32>
    %54 = arith.addf %51, %53 : vector<64x16xf32>
    %c0_58 = arith.constant 0 : index
    %c0_59 = arith.constant 0 : index
    %55 = vector.load %arg12[%c0_58, %c0_59] : memref<64x16xf32, #tpu.memory_space<vmem>>, vector<64x16xf32>
    tpu.vector_store %arg12[%c0_58, %c0_59], %54 {strides = array<i32>} : memref<64x16xf32, #tpu.memory_space<vmem>>, vector<64x16xf32>,
    %c0_60 = arith.constant 0 : index
    %c1_61 = arith.constant 1 : index
    %c0_62 = arith.constant 0 : index
    %56 = vector.load %arg11[%c0_60, %c1_61, %c0_62] : memref<10x10x16xf32, #tpu.memory_space<vmem>>, vector<8x8x16xf32>
    %57 = vector.shape_cast %56 : vector<8x8x16xf32> to vector<64x16xf32>
    %58 = arith.truncf %57 : vector<64x16xf32> to vector<64x16xbf16>
    %c1_63 = arith.constant 1 : index
    %c0_64 = arith.constant 0 : index
    %c0_65 = arith.constant 0 : index
    %59 = vector.load %arg5[%c1_63, %c0_64, %c0_65] : memref<9x16x16xbf16, #tpu.memory_space<vmem>>, vector<1x16x16xbf16>
    %60 = vector.shape_cast %59 : vector<1x16x16xbf16> to vector<16x16xbf16>
    %cst_66 = arith.constant dense<0.000000e+00> : vector<64x16xf32>
    %61 = tpu.matmul %58, %60, %cst_66 {dimension_numbers = #tpu.dot_dimension_numbers<[1], [0], [0], [1], [0, 0, 1, 1], [], []>} : vector<64x16xbf16>, vector<16x16xbf16>, vector<64x16xf32> -> vector<64x16xf32>
    %c0_67 = arith.constant 0 : index
    %c0_68 = arith.constant 0 : index
    %62 = vector.load %arg12[%c0_67, %c0_68] : memref<64x16xf32, #tpu.memory_space<vmem>>, vector<64x16xf32>
    %63 = arith.addf %62, %61 : vector<64x16xf32>
    %c0_69 = arith.constant 0 : index
    %c0_70 = arith.constant 0 : index
    %64 = vector.load %arg12[%c0_69, %c0_70] : memref<64x16xf32, #tpu.memory_space<vmem>>, vector<64x16xf32>
    tpu.vector_store %arg12[%c0_69, %c0_70], %63 {strides = array<i32>} : memref<64x16xf32, #tpu.memory_space<vmem>>, vector<64x16xf32>,
    %c0_71 = arith.constant 0 : index
    %c2 = arith.constant 2 : index
    %c0_72 = arith.constant 0 : index
    %65 = vector.load %arg11[%c0_71, %c2, %c0_72] : memref<10x10x16xf32, #tpu.memory_space<vmem>>, vector<8x8x16xf32>
    %66 = vector.shape_cast %65 : vector<8x8x16xf32> to vector<64x16xf32>
    %67 = arith.truncf %66 : vector<64x16xf32> to vector<64x16xbf16>
    %c2_73 = arith.constant 2 : index
    %c0_74 = arith.constant 0 : index
    %c0_75 = arith.constant 0 : index
    %68 = vector.load %arg5[%c2_73, %c0_74, %c0_75] : memref<9x16x16xbf16, #tpu.memory_space<vmem>>, vector<1x16x16xbf16>
    %69 = vector.shape_cast %68 : vector<1x16x16xbf16> to vector<16x16xbf16>
    %cst_76 = arith.constant dense<0.000000e+00> : vector<64x16xf32>
    %70 = tpu.matmul %67, %69, %cst_76 {dimension_numbers = #tpu.dot_dimension_numbers<[1], [0], [0], [1], [0, 0, 1, 1], [], []>} : vector<64x16xbf16>, vector<16x16xbf16>, vector<64x16xf32> -> vector<64x16xf32>
    %c0_77 = arith.constant 0 : index
    %c0_78 = arith.constant 0 : index
    %71 = vector.load %arg12[%c0_77, %c0_78] : memref<64x16xf32, #tpu.memory_space<vmem>>, vector<64x16xf32>
    %72 = arith.addf %71, %70 : vector<64x16xf32>
    %c0_79 = arith.constant 0 : index
    %c0_80 = arith.constant 0 : index
    %73 = vector.load %arg12[%c0_79, %c0_80] : memref<64x16xf32, #tpu.memory_space<vmem>>, vector<64x16xf32>
    tpu.vector_store %arg12[%c0_79, %c0_80], %72 {strides = array<i32>} : memref<64x16xf32, #tpu.memory_space<vmem>>, vector<64x16xf32>,
    %c1_81 = arith.constant 1 : index
    %c0_82 = arith.constant 0 : index
    %c0_83 = arith.constant 0 : index
    %74 = vector.load %arg11[%c1_81, %c0_82, %c0_83] : memref<10x10x16xf32, #tpu.memory_space<vmem>>, vector<8x8x16xf32>
    %75 = vector.shape_cast %74 : vector<8x8x16xf32> to vector<64x16xf32>
    %76 = arith.truncf %75 : vector<64x16xf32> to vector<64x16xbf16>
    %c3 = arith.constant 3 : index
    %c0_84 = arith.constant 0 : index
    %c0_85 = arith.constant 0 : index
    %77 = vector.load %arg5[%c3, %c0_84, %c0_85] : memref<9x16x16xbf16, #tpu.memory_space<vmem>>, vector<1x16x16xbf16>
    %78 = vector.shape_cast %77 : vector<1x16x16xbf16> to vector<16x16xbf16>
    %cst_86 = arith.constant dense<0.000000e+00> : vector<64x16xf32>
    %79 = tpu.matmul %76, %78, %cst_86 {dimension_numbers = #tpu.dot_dimension_numbers<[1], [0], [0], [1], [0, 0, 1, 1], [], []>} : vector<64x16xbf16>, vector<16x16xbf16>, vector<64x16xf32> -> vector<64x16xf32>
    %c0_87 = arith.constant 0 : index
    %c0_88 = arith.constant 0 : index
    %80 = vector.load %arg12[%c0_87, %c0_88] : memref<64x16xf32, #tpu.memory_space<vmem>>, vector<64x16xf32>
    %81 = arith.addf %80, %79 : vector<64x16xf32>
    %c0_89 = arith.constant 0 : index
    %c0_90 = arith.constant 0 : index
    %82 = vector.load %arg12[%c0_89, %c0_90] : memref<64x16xf32, #tpu.memory_space<vmem>>, vector<64x16xf32>
    tpu.vector_store %arg12[%c0_89, %c0_90], %81 {strides = array<i32>} : memref<64x16xf32, #tpu.memory_space<vmem>>, vector<64x16xf32>,
    %c1_91 = arith.constant 1 : index
    %c1_92 = arith.constant 1 : index
    %c0_93 = arith.constant 0 : index
    %83 = vector.load %arg11[%c1_91, %c1_92, %c0_93] : memref<10x10x16xf32, #tpu.memory_space<vmem>>, vector<8x8x16xf32>
    %84 = vector.shape_cast %83 : vector<8x8x16xf32> to vector<64x16xf32>
    %85 = arith.truncf %84 : vector<64x16xf32> to vector<64x16xbf16>
    %c4 = arith.constant 4 : index
    %c0_94 = arith.constant 0 : index
    %c0_95 = arith.constant 0 : index
    %86 = vector.load %arg5[%c4, %c0_94, %c0_95] : memref<9x16x16xbf16, #tpu.memory_space<vmem>>, vector<1x16x16xbf16>
    %87 = vector.shape_cast %86 : vector<1x16x16xbf16> to vector<16x16xbf16>
    %cst_96 = arith.constant dense<0.000000e+00> : vector<64x16xf32>
    %88 = tpu.matmul %85, %87, %cst_96 {dimension_numbers = #tpu.dot_dimension_numbers<[1], [0], [0], [1], [0, 0, 1, 1], [], []>} : vector<64x16xbf16>, vector<16x16xbf16>, vector<64x16xf32> -> vector<64x16xf32>
    %c0_97 = arith.constant 0 : index
    %c0_98 = arith.constant 0 : index
    %89 = vector.load %arg12[%c0_97, %c0_98] : memref<64x16xf32, #tpu.memory_space<vmem>>, vector<64x16xf32>
    %90 = arith.addf %89, %88 : vector<64x16xf32>
    %c0_99 = arith.constant 0 : index
    %c0_100 = arith.constant 0 : index
    %91 = vector.load %arg12[%c0_99, %c0_100] : memref<64x16xf32, #tpu.memory_space<vmem>>, vector<64x16xf32>
    tpu.vector_store %arg12[%c0_99, %c0_100], %90 {strides = array<i32>} : memref<64x16xf32, #tpu.memory_space<vmem>>, vector<64x16xf32>,
    %c1_101 = arith.constant 1 : index
    %c2_102 = arith.constant 2 : index
    %c0_103 = arith.constant 0 : index
    %92 = vector.load %arg11[%c1_101, %c2_102, %c0_103] : memref<10x10x16xf32, #tpu.memory_space<vmem>>, vector<8x8x16xf32>
    %93 = vector.shape_cast %92 : vector<8x8x16xf32> to vector<64x16xf32>
    %94 = arith.truncf %93 : vector<64x16xf32> to vector<64x16xbf16>
    %c5 = arith.constant 5 : index
    %c0_104 = arith.constant 0 : index
    %c0_105 = arith.constant 0 : index
    %95 = vector.load %arg5[%c5, %c0_104, %c0_105] : memref<9x16x16xbf16, #tpu.memory_space<vmem>>, vector<1x16x16xbf16>
    %96 = vector.shape_cast %95 : vector<1x16x16xbf16> to vector<16x16xbf16>
    %cst_106 = arith.constant dense<0.000000e+00> : vector<64x16xf32>
    %97 = tpu.matmul %94, %96, %cst_106 {dimension_numbers = #tpu.dot_dimension_numbers<[1], [0], [0], [1], [0, 0, 1, 1], [], []>} : vector<64x16xbf16>, vector<16x16xbf16>, vector<64x16xf32> -> vector<64x16xf32>
    %c0_107 = arith.constant 0 : index
    %c0_108 = arith.constant 0 : index
    %98 = vector.load %arg12[%c0_107, %c0_108] : memref<64x16xf32, #tpu.memory_space<vmem>>, vector<64x16xf32>
    %99 = arith.addf %98, %97 : vector<64x16xf32>
    %c0_109 = arith.constant 0 : index
    %c0_110 = arith.constant 0 : index
    %100 = vector.load %arg12[%c0_109, %c0_110] : memref<64x16xf32, #tpu.memory_space<vmem>>, vector<64x16xf32>
    tpu.vector_store %arg12[%c0_109, %c0_110], %99 {strides = array<i32>} : memref<64x16xf32, #tpu.memory_space<vmem>>, vector<64x16xf32>,
    %c2_111 = arith.constant 2 : index
    %c0_112 = arith.constant 0 : index
    %c0_113 = arith.constant 0 : index
    %101 = vector.load %arg11[%c2_111, %c0_112, %c0_113] : memref<10x10x16xf32, #tpu.memory_space<vmem>>, vector<8x8x16xf32>
    %102 = vector.shape_cast %101 : vector<8x8x16xf32> to vector<64x16xf32>
    %103 = arith.truncf %102 : vector<64x16xf32> to vector<64x16xbf16>
    %c6 = arith.constant 6 : index
    %c0_114 = arith.constant 0 : index
    %c0_115 = arith.constant 0 : index
    %104 = vector.load %arg5[%c6, %c0_114, %c0_115] : memref<9x16x16xbf16, #tpu.memory_space<vmem>>, vector<1x16x16xbf16>
    %105 = vector.shape_cast %104 : vector<1x16x16xbf16> to vector<16x16xbf16>
    %cst_116 = arith.constant dense<0.000000e+00> : vector<64x16xf32>
    %106 = tpu.matmul %103, %105, %cst_116 {dimension_numbers = #tpu.dot_dimension_numbers<[1], [0], [0], [1], [0, 0, 1, 1], [], []>} : vector<64x16xbf16>, vector<16x16xbf16>, vector<64x16xf32> -> vector<64x16xf32>
    %c0_117 = arith.constant 0 : index
    %c0_118 = arith.constant 0 : index
    %107 = vector.load %arg12[%c0_117, %c0_118] : memref<64x16xf32, #tpu.memory_space<vmem>>, vector<64x16xf32>
    %108 = arith.addf %107, %106 : vector<64x16xf32>
    %c0_119 = arith.constant 0 : index
    %c0_120 = arith.constant 0 : index
    %109 = vector.load %arg12[%c0_119, %c0_120] : memref<64x16xf32, #tpu.memory_space<vmem>>, vector<64x16xf32>
    tpu.vector_store %arg12[%c0_119, %c0_120], %108 {strides = array<i32>} : memref<64x16xf32, #tpu.memory_space<vmem>>, vector<64x16xf32>,
    %c2_121 = arith.constant 2 : index
    %c1_122 = arith.constant 1 : index
    %c0_123 = arith.constant 0 : index
    %110 = vector.load %arg11[%c2_121, %c1_122, %c0_123] : memref<10x10x16xf32, #tpu.memory_space<vmem>>, vector<8x8x16xf32>
    %111 = vector.shape_cast %110 : vector<8x8x16xf32> to vector<64x16xf32>
    %112 = arith.truncf %111 : vector<64x16xf32> to vector<64x16xbf16>
    %c7 = arith.constant 7 : index
    %c0_124 = arith.constant 0 : index
    %c0_125 = arith.constant 0 : index
    %113 = vector.load %arg5[%c7, %c0_124, %c0_125] : memref<9x16x16xbf16, #tpu.memory_space<vmem>>, vector<1x16x16xbf16>
    %114 = vector.shape_cast %113 : vector<1x16x16xbf16> to vector<16x16xbf16>
    %cst_126 = arith.constant dense<0.000000e+00> : vector<64x16xf32>
    %115 = tpu.matmul %112, %114, %cst_126 {dimension_numbers = #tpu.dot_dimension_numbers<[1], [0], [0], [1], [0, 0, 1, 1], [], []>} : vector<64x16xbf16>, vector<16x16xbf16>, vector<64x16xf32> -> vector<64x16xf32>
    %c0_127 = arith.constant 0 : index
    %c0_128 = arith.constant 0 : index
    %116 = vector.load %arg12[%c0_127, %c0_128] : memref<64x16xf32, #tpu.memory_space<vmem>>, vector<64x16xf32>
    %117 = arith.addf %116, %115 : vector<64x16xf32>
    %c0_129 = arith.constant 0 : index
    %c0_130 = arith.constant 0 : index
    %118 = vector.load %arg12[%c0_129, %c0_130] : memref<64x16xf32, #tpu.memory_space<vmem>>, vector<64x16xf32>
    tpu.vector_store %arg12[%c0_129, %c0_130], %117 {strides = array<i32>} : memref<64x16xf32, #tpu.memory_space<vmem>>, vector<64x16xf32>,
    %c2_131 = arith.constant 2 : index
    %c2_132 = arith.constant 2 : index
    %c0_133 = arith.constant 0 : index
    %119 = vector.load %arg11[%c2_131, %c2_132, %c0_133] : memref<10x10x16xf32, #tpu.memory_space<vmem>>, vector<8x8x16xf32>
    %120 = vector.shape_cast %119 : vector<8x8x16xf32> to vector<64x16xf32>
    %121 = arith.truncf %120 : vector<64x16xf32> to vector<64x16xbf16>
    %c8 = arith.constant 8 : index
    %c0_134 = arith.constant 0 : index
    %c0_135 = arith.constant 0 : index
    %122 = vector.load %arg5[%c8, %c0_134, %c0_135] : memref<9x16x16xbf16, #tpu.memory_space<vmem>>, vector<1x16x16xbf16>
    %123 = vector.shape_cast %122 : vector<1x16x16xbf16> to vector<16x16xbf16>
    %cst_136 = arith.constant dense<0.000000e+00> : vector<64x16xf32>
    %124 = tpu.matmul %121, %123, %cst_136 {dimension_numbers = #tpu.dot_dimension_numbers<[1], [0], [0], [1], [0, 0, 1, 1], [], []>} : vector<64x16xbf16>, vector<16x16xbf16>, vector<64x16xf32> -> vector<64x16xf32>
    %c0_137 = arith.constant 0 : index
    %c0_138 = arith.constant 0 : index
    %125 = vector.load %arg12[%c0_137, %c0_138] : memref<64x16xf32, #tpu.memory_space<vmem>>, vector<64x16xf32>
    %126 = arith.addf %125, %124 : vector<64x16xf32>
    %c0_139 = arith.constant 0 : index
    %c0_140 = arith.constant 0 : index
    %127 = vector.load %arg12[%c0_139, %c0_140] : memref<64x16xf32, #tpu.memory_space<vmem>>, vector<64x16xf32>
    tpu.vector_store %arg12[%c0_139, %c0_140], %126 {strides = array<i32>} : memref<64x16xf32, #tpu.memory_space<vmem>>, vector<64x16xf32>,
    %c0_141 = arith.constant 0 : index
    %c0_142 = arith.constant 0 : index
    %128 = vector.load %arg12[%c0_141, %c0_142] : memref<64x16xf32, #tpu.memory_space<vmem>>, vector<64x16xf32>
    %cst_143 = arith.constant dense<0.000000e+00> : vector<16xf32>
    %129 = vector.multi_reduction <add>, %128, %cst_143 [0] : vector<64x16xf32> to vector<16xf32>
    %130 = vector.shape_cast %129 : vector<16xf32> to vector<1x16xf32>
    %c0_144 = arith.constant 0 : index
    %c0_145 = arith.constant 0 : index
    %c0_146 = arith.constant 0 : index
    %c0_147 = arith.constant 0 : index
    %131 = vector.load %arg10[%c0_144, %c0_145, %c0_146, %c0_147] : memref<1x1x2x16xf32, #tpu.memory_space<vmem>>, vector<1x1x1x16xf32>
    %132 = vector.shape_cast %131 : vector<1x1x1x16xf32> to vector<1x16xf32>
    %133 = vector.shape_cast %130 : vector<1x16xf32> to vector<1x1x1x16xf32>
    tpu.vector_store %arg10[%c0_144, %c0_145, %c0_146, %c0_147], %133 {strides = array<i32>} : memref<1x1x2x16xf32, #tpu.memory_space<vmem>>, vector<1x1x1x16xf32>,
    %134 = arith.mulf %128, %128 : vector<64x16xf32>
    %cst_148 = arith.constant dense<0.000000e+00> : vector<16xf32>
    %135 = vector.multi_reduction <add>, %134, %cst_148 [0] : vector<64x16xf32> to vector<16xf32>
    %136 = vector.shape_cast %135 : vector<16xf32> to vector<1x16xf32>
    %c0_149 = arith.constant 0 : index
    %c0_150 = arith.constant 0 : index
    %c1_151 = arith.constant 1 : index
    %c0_152 = arith.constant 0 : index
    %137 = vector.load %arg10[%c0_149, %c0_150, %c1_151, %c0_152] : memref<1x1x2x16xf32, #tpu.memory_space<vmem>>, vector<1x1x1x16xf32>
    %138 = vector.shape_cast %137 : vector<1x1x1x16xf32> to vector<1x16xf32>
    %139 = vector.shape_cast %136 : vector<1x16xf32> to vector<1x1x1x16xf32>
    tpu.vector_store %arg10[%c0_149, %c0_150, %c1_151, %c0_152], %139 {strides = array<i32>} : memref<1x1x2x16xf32, #tpu.memory_space<vmem>>, vector<1x1x1x16xf32>,
    %140 = arith.truncf %128 : vector<64x16xf32> to vector<64x16xbf16>
    %c0_153 = arith.constant 0 : index
    %c0_154 = arith.constant 0 : index
    %c0_155 = arith.constant 0 : index
    %c0_156 = arith.constant 0 : index
    %141 = vector.load %arg9[%c0_153, %c0_154, %c0_155, %c0_156] : memref<1x1x64x16xbf16, #tpu.memory_space<vmem>>, vector<1x1x64x16xbf16>
    %142 = vector.shape_cast %141 : vector<1x1x64x16xbf16> to vector<64x16xbf16>
    %143 = vector.shape_cast %140 : vector<64x16xbf16> to vector<1x1x64x16xbf16>
    tpu.vector_store %arg9[%c0_153, %c0_154, %c0_155, %c0_156], %143 {strides = array<i32>} : memref<1x1x64x16xbf16, #tpu.memory_space<vmem>>, vector<1x1x64x16xbf16>,
    return
  }
  func.func @transform_0(%arg0: i32, %arg1: i32) -> (i32, i32, i32, i32) {
    %c0_i32 = arith.constant 0 : i32
    %c0_i32_0 = arith.constant 0 : i32
    %c0_i32_1 = arith.constant 0 : i32
    return %arg0, %arg1, %c0_i32, %c0_i32_0 : i32, i32, i32, i32
  }
  func.func @transform_1(%arg0: i32, %arg1: i32) -> (i32, i32, i32, i32) {
    %c8_i32 = arith.constant 8 : i32
    %0 = arith.muli %arg1, %c8_i32 : i32
    %c1_i32 = arith.constant 1 : i32
    %1 = arith.subi %0, %c1_i32 : i32
    %c0_i32 = arith.constant 0 : i32
    %2 = arith.maxsi %1, %c0_i32 : i32
    %c0_i32_0 = arith.constant 0 : i32
    %c0_i32_1 = arith.constant 0 : i32
    %c0_i32_2 = arith.constant 0 : i32
    return %arg0, %2, %c0_i32_0, %c0_i32_1 : i32, i32, i32, i32
  }
  func.func @transform_2(%arg0: i32, %arg1: i32) -> (i32, i32, i32, i32) {
    %c1_i32 = arith.constant 1 : i32
    %0 = arith.addi %arg1, %c1_i32 : i32
    %c8_i32 = arith.constant 8 : i32
    %1 = arith.muli %0, %c8_i32 : i32
    %c7_i32 = arith.constant 7 : i32
    %2 = arith.minsi %1, %c7_i32 : i32
    %c0_i32 = arith.constant 0 : i32
    %c0_i32_0 = arith.constant 0 : i32
    %c0_i32_1 = arith.constant 0 : i32
    return %arg0, %2, %c0_i32, %c0_i32_0 : i32, i32, i32, i32
  }
  func.func @transform_3(%arg0: i32, %arg1: i32) -> (i32, i32, i32) {
    %c0_i32 = arith.constant 0 : i32
    %c0_i32_0 = arith.constant 0 : i32
    %c0_i32_1 = arith.constant 0 : i32
    %c0_i32_2 = arith.constant 0 : i32
    return %c0_i32, %c0_i32_0, %c0_i32_1 : i32, i32, i32
  }
  func.func @transform_4(%arg0: i32, %arg1: i32) -> (i32, i32) {
    %c0_i32 = arith.constant 0 : i32
    %c0_i32_0 = arith.constant 0 : i32
    %c0_i32_1 = arith.constant 0 : i32
    return %c0_i32, %c0_i32_0 : i32, i32
  }
  func.func @transform_5(%arg0: i32, %arg1: i32) -> (i32, i32, i32) {
    %c0_i32 = arith.constant 0 : i32
    %c0_i32_0 = arith.constant 0 : i32
    %c0_i32_1 = arith.constant 0 : i32
    %c0_i32_2 = arith.constant 0 : i32
    return %c0_i32, %c0_i32_0, %c0_i32_1 : i32, i32, i32
  }
  func.func @transform_6(%arg0: i32, %arg1: i32) -> (i32, i32, i32) {
    %c0_i32 = arith.constant 0 : i32
    %c0_i32_0 = arith.constant 0 : i32
    %c0_i32_1 = arith.constant 0 : i32
    %c0_i32_2 = arith.constant 0 : i32
    return %c0_i32, %c0_i32_0, %c0_i32_1 : i32, i32, i32
  }
  func.func @transform_7(%arg0: i32, %arg1: i32) -> (i32, i32, i32, i32) {
    %c0_i32 = arith.constant 0 : i32
    %c0_i32_0 = arith.constant 0 : i32
    %c0_i32_1 = arith.constant 0 : i32
    return %arg0, %arg1, %c0_i32, %c0_i32_0 : i32, i32, i32, i32
  }
  func.func @transform_8(%arg0: i32, %arg1: i32) -> (i32, i32, i32, i32) {
    %c0_i32 = arith.constant 0 : i32
    %c0_i32_0 = arith.constant 0 : i32
    %c0_i32_1 = arith.constant 0 : i32
    return %arg0, %arg1, %c0_i32, %c0_i32_0 : i32, i32, i32, i32
  }
}

module attributes {stable_mosaic.version = 11 : i64} {
  func.func @_bn_relu_pool_kernel(%arg0: i32, %arg1: i32, %arg2: memref<1x8x4x32xbf16, #tpu.memory_space<vmem>>, %arg3: memref<1x1x16xf32, #tpu.memory_space<vmem>>, %arg4: memref<1x1x16xf32, #tpu.memory_space<vmem>>, %arg5: memref<1x4x4x16xbf16, #tpu.memory_space<vmem>>) attributes {dimension_semantics = [#tpu.dimension_semantics<parallel>, #tpu.dimension_semantics<parallel>], iteration_bounds = array<i64: 2, 1>, scalar_prefetch = 0 : i64, scratch_operands = 0 : i64, tpu.core_type = #tpu.core_type<tc>, window_params = [{transform_indices = @transform_0, window_bounds = array<i64: 1, 8, 4, 32>}, {pipeline_mode = #tpu.pipeline_mode<synchronous>, transform_indices = @transform_1, window_bounds = array<i64: 1, 1, 16>}, {pipeline_mode = #tpu.pipeline_mode<synchronous>, transform_indices = @transform_2, window_bounds = array<i64: 1, 1, 16>}, {transform_indices = @transform_3, window_bounds = array<i64: 1, 4, 4, 16>}]} {
    %c0 = arith.constant 0 : index
    %c0_0 = arith.constant 0 : index
    %c0_1 = arith.constant 0 : index
    %c0_2 = arith.constant 0 : index
    %0 = vector.load %arg2[%c0, %c0_0, %c0_1, %c0_2] : memref<1x8x4x32xbf16, #tpu.memory_space<vmem>>, vector<1x8x4x16xbf16>
    %1 = vector.shape_cast %0 : vector<1x8x4x16xbf16> to vector<8x4x16xbf16>
    %2 = arith.extf %1 : vector<8x4x16xbf16> to vector<8x4x16xf32>
    %c0_3 = arith.constant 0 : index
    %c0_4 = arith.constant 0 : index
    %c0_5 = arith.constant 0 : index
    %3 = vector.load %arg3[%c0_3, %c0_4, %c0_5] : memref<1x1x16xf32, #tpu.memory_space<vmem>>, vector<1x1x16xf32>
    %4 = vector.broadcast %3 : vector<1x1x16xf32> to vector<8x4x16xf32>
    %5 = arith.mulf %2, %4 : vector<8x4x16xf32>
    %c0_6 = arith.constant 0 : index
    %c0_7 = arith.constant 0 : index
    %c0_8 = arith.constant 0 : index
    %6 = vector.load %arg4[%c0_6, %c0_7, %c0_8] : memref<1x1x16xf32, #tpu.memory_space<vmem>>, vector<1x1x16xf32>
    %7 = vector.broadcast %6 : vector<1x1x16xf32> to vector<8x4x16xf32>
    %8 = arith.addf %5, %7 : vector<8x4x16xf32>
    %cst = arith.constant 0.000000e+00 : f32
    %9 = vector.broadcast %cst : f32 to vector<8x4x16xf32>
    %10 = arith.maximumf %8, %9 : vector<8x4x16xf32>
    %c0_9 = arith.constant 0 : index
    %c0_10 = arith.constant 0 : index
    %c0_11 = arith.constant 0 : index
    %c16 = arith.constant 16 : index
    %11 = vector.load %arg2[%c0_9, %c0_10, %c0_11, %c16] : memref<1x8x4x32xbf16, #tpu.memory_space<vmem>>, vector<1x8x4x16xbf16>
    %12 = vector.shape_cast %11 : vector<1x8x4x16xbf16> to vector<8x4x16xbf16>
    %13 = arith.extf %12 : vector<8x4x16xbf16> to vector<8x4x16xf32>
    %c0_12 = arith.constant 0 : index
    %c0_13 = arith.constant 0 : index
    %c0_14 = arith.constant 0 : index
    %14 = vector.load %arg3[%c0_12, %c0_13, %c0_14] : memref<1x1x16xf32, #tpu.memory_space<vmem>>, vector<1x1x16xf32>
    %15 = vector.broadcast %14 : vector<1x1x16xf32> to vector<8x4x16xf32>
    %16 = arith.mulf %13, %15 : vector<8x4x16xf32>
    %c0_15 = arith.constant 0 : index
    %c0_16 = arith.constant 0 : index
    %c0_17 = arith.constant 0 : index
    %17 = vector.load %arg4[%c0_15, %c0_16, %c0_17] : memref<1x1x16xf32, #tpu.memory_space<vmem>>, vector<1x1x16xf32>
    %18 = vector.broadcast %17 : vector<1x1x16xf32> to vector<8x4x16xf32>
    %19 = arith.addf %16, %18 : vector<8x4x16xf32>
    %cst_18 = arith.constant 0.000000e+00 : f32
    %20 = vector.broadcast %cst_18 : f32 to vector<8x4x16xf32>
    %21 = arith.maximumf %19, %20 : vector<8x4x16xf32>
    %22 = arith.maximumf %10, %21 : vector<8x4x16xf32>
    %23 = vector.shape_cast %22 : vector<8x4x16xf32> to vector<4x2x4x16xf32>
    %24 = vector.extract_strided_slice %23 {offsets = [0, 0, 0, 0], sizes = [4, 1, 4, 16], strides = [1, 1, 1, 1]} : vector<4x2x4x16xf32> to vector<4x1x4x16xf32>
    %25 = vector.shape_cast %24 : vector<4x1x4x16xf32> to vector<4x4x16xf32>
    %26 = vector.extract_strided_slice %23 {offsets = [0, 1, 0, 0], sizes = [4, 1, 4, 16], strides = [1, 1, 1, 1]} : vector<4x2x4x16xf32> to vector<4x1x4x16xf32>
    %27 = vector.shape_cast %26 : vector<4x1x4x16xf32> to vector<4x4x16xf32>
    %28 = arith.maximumf %25, %27 : vector<4x4x16xf32>
    %29 = arith.truncf %28 : vector<4x4x16xf32> to vector<4x4x16xbf16>
    %c0_19 = arith.constant 0 : index
    %c0_20 = arith.constant 0 : index
    %c0_21 = arith.constant 0 : index
    %c0_22 = arith.constant 0 : index
    %30 = vector.load %arg5[%c0_19, %c0_20, %c0_21, %c0_22] : memref<1x4x4x16xbf16, #tpu.memory_space<vmem>>, vector<1x4x4x16xbf16>
    %31 = vector.shape_cast %30 : vector<1x4x4x16xbf16> to vector<4x4x16xbf16>
    %32 = vector.shape_cast %29 : vector<4x4x16xbf16> to vector<1x4x4x16xbf16>
    tpu.vector_store %arg5[%c0_19, %c0_20, %c0_21, %c0_22], %32 {strides = array<i32>} : memref<1x4x4x16xbf16, #tpu.memory_space<vmem>>, vector<1x4x4x16xbf16>,
    return
  }
  func.func @transform_0(%arg0: i32, %arg1: i32) -> (i32, i32, i32, i32) {
    %c0_i32 = arith.constant 0 : i32
    %c0_i32_0 = arith.constant 0 : i32
    %c0_i32_1 = arith.constant 0 : i32
    return %arg0, %arg1, %c0_i32, %c0_i32_0 : i32, i32, i32, i32
  }
  func.func @transform_1(%arg0: i32, %arg1: i32) -> (i32, i32, i32) {
    %c0_i32 = arith.constant 0 : i32
    %c0_i32_0 = arith.constant 0 : i32
    %c0_i32_1 = arith.constant 0 : i32
    %c0_i32_2 = arith.constant 0 : i32
    return %c0_i32, %c0_i32_0, %c0_i32_1 : i32, i32, i32
  }
  func.func @transform_2(%arg0: i32, %arg1: i32) -> (i32, i32, i32) {
    %c0_i32 = arith.constant 0 : i32
    %c0_i32_0 = arith.constant 0 : i32
    %c0_i32_1 = arith.constant 0 : i32
    %c0_i32_2 = arith.constant 0 : i32
    return %c0_i32, %c0_i32_0, %c0_i32_1 : i32, i32, i32
  }
  func.func @transform_3(%arg0: i32, %arg1: i32) -> (i32, i32, i32, i32) {
    %c0_i32 = arith.constant 0 : i32
    %c0_i32_0 = arith.constant 0 : i32
    %c0_i32_1 = arith.constant 0 : i32
    return %arg0, %arg1, %c0_i32, %c0_i32_0 : i32, i32, i32, i32
  }
}

module attributes {stable_mosaic.version = 11 : i64} {
  func.func @_conv3x3_kernel(%arg0: i32, %arg1: i32, %arg2: memref<1x4x4x16xbf16, #tpu.memory_space<vmem>>, %arg3: memref<1x1x4x16xbf16, #tpu.memory_space<vmem>>, %arg4: memref<1x1x4x16xbf16, #tpu.memory_space<vmem>>, %arg5: memref<9x16x32xbf16, #tpu.memory_space<vmem>>, %arg6: memref<1x32xf32, #tpu.memory_space<vmem>>, %arg7: memref<1x1x16xf32, #tpu.memory_space<vmem>>, %arg8: memref<1x1x16xf32, #tpu.memory_space<vmem>>, %arg9: memref<1x1x16x32xbf16, #tpu.memory_space<vmem>>, %arg10: memref<1x1x2x32xf32, #tpu.memory_space<vmem>>, %arg11: memref<6x6x16xf32, #tpu.memory_space<vmem>>, %arg12: memref<16x32xf32, #tpu.memory_space<vmem>>) attributes {dimension_semantics = [#tpu.dimension_semantics<parallel>, #tpu.dimension_semantics<parallel>], iteration_bounds = array<i64: 2, 1>, scalar_prefetch = 0 : i64, scratch_operands = 2 : i64, tpu.core_type = #tpu.core_type<tc>, window_params = [{transform_indices = @transform_0, window_bounds = array<i64: 1, 4, 4, 16>}, {transform_indices = @transform_1, window_bounds = array<i64: 1, 1, 4, 16>}, {transform_indices = @transform_2, window_bounds = array<i64: 1, 1, 4, 16>}, {pipeline_mode = #tpu.pipeline_mode<synchronous>, transform_indices = @transform_3, window_bounds = array<i64: 9, 16, 32>}, {pipeline_mode = #tpu.pipeline_mode<synchronous>, transform_indices = @transform_4, window_bounds = array<i64: 1, 32>}, {pipeline_mode = #tpu.pipeline_mode<synchronous>, transform_indices = @transform_5, window_bounds = array<i64: 1, 1, 16>}, {pipeline_mode = #tpu.pipeline_mode<synchronous>, transform_indices = @transform_6, window_bounds = array<i64: 1, 1, 16>}, {transform_indices = @transform_7, window_bounds = array<i64: 1, 1, 16, 32>}, {transform_indices = @transform_8, window_bounds = array<i64: 1, 1, 2, 32>}]} {
    %cst = arith.constant 0.000000e+00 : f32
    %0 = vector.broadcast %cst : f32 to vector<6x1x16xf32>
    %c0 = arith.constant 0 : index
    %c0_0 = arith.constant 0 : index
    %c0_1 = arith.constant 0 : index
    %1 = vector.load %arg11[%c0, %c0_0, %c0_1] : memref<6x6x16xf32, #tpu.memory_space<vmem>>, vector<6x1x16xf32>
    tpu.vector_store %arg11[%c0, %c0_0, %c0_1], %0 {strides = array<i32>} : memref<6x6x16xf32, #tpu.memory_space<vmem>>, vector<6x1x16xf32>,
    %c0_2 = arith.constant 0 : index
    %c5 = arith.constant 5 : index
    %c0_3 = arith.constant 0 : index
    %2 = vector.load %arg11[%c0_2, %c5, %c0_3] : memref<6x6x16xf32, #tpu.memory_space<vmem>>, vector<6x1x16xf32>
    tpu.vector_store %arg11[%c0_2, %c5, %c0_3], %0 {strides = array<i32>} : memref<6x6x16xf32, #tpu.memory_space<vmem>>, vector<6x1x16xf32>,
    %c0_4 = arith.constant 0 : index
    %c0_5 = arith.constant 0 : index
    %c0_6 = arith.constant 0 : index
    %c0_7 = arith.constant 0 : index
    %3 = vector.load %arg2[%c0_4, %c0_5, %c0_6, %c0_7] : memref<1x4x4x16xbf16, #tpu.memory_space<vmem>>, vector<1x4x4x16xbf16>
    %4 = vector.shape_cast %3 : vector<1x4x4x16xbf16> to vector<4x4x16xbf16>
    %5 = arith.extf %4 : vector<4x4x16xbf16> to vector<4x4x16xf32>
    %c1 = arith.constant 1 : index
    %c1_8 = arith.constant 1 : index
    %c0_9 = arith.constant 0 : index
    %6 = vector.load %arg11[%c1, %c1_8, %c0_9] : memref<6x6x16xf32, #tpu.memory_space<vmem>>, vector<4x4x16xf32>
    tpu.vector_store %arg11[%c1, %c1_8, %c0_9], %5 {strides = array<i32>} : memref<6x6x16xf32, #tpu.memory_space<vmem>>, vector<4x4x16xf32>,
    %c0_10 = arith.constant 0 : index
    %c0_11 = arith.constant 0 : index
    %c0_12 = arith.constant 0 : index
    %c0_13 = arith.constant 0 : index
    %7 = vector.load %arg3[%c0_10, %c0_11, %c0_12, %c0_13] : memref<1x1x4x16xbf16, #tpu.memory_space<vmem>>, vector<1x1x4x16xbf16>
    %8 = vector.shape_cast %7 : vector<1x1x4x16xbf16> to vector<1x4x16xbf16>
    %9 = arith.extf %8 : vector<1x4x16xbf16> to vector<1x4x16xf32>
    %c0_14 = arith.constant 0 : index
    %c1_15 = arith.constant 1 : index
    %c0_16 = arith.constant 0 : index
    %10 = vector.load %arg11[%c0_14, %c1_15, %c0_16] : memref<6x6x16xf32, #tpu.memory_space<vmem>>, vector<1x4x16xf32>
    tpu.vector_store %arg11[%c0_14, %c1_15, %c0_16], %9 {strides = array<i32>} : memref<6x6x16xf32, #tpu.memory_space<vmem>>, vector<1x4x16xf32>,
    %c0_17 = arith.constant 0 : index
    %c0_18 = arith.constant 0 : index
    %c0_19 = arith.constant 0 : index
    %c0_20 = arith.constant 0 : index
    %11 = vector.load %arg4[%c0_17, %c0_18, %c0_19, %c0_20] : memref<1x1x4x16xbf16, #tpu.memory_space<vmem>>, vector<1x1x4x16xbf16>
    %12 = vector.shape_cast %11 : vector<1x1x4x16xbf16> to vector<1x4x16xbf16>
    %13 = arith.extf %12 : vector<1x4x16xbf16> to vector<1x4x16xf32>
    %c5_21 = arith.constant 5 : index
    %c1_22 = arith.constant 1 : index
    %c0_23 = arith.constant 0 : index
    %14 = vector.load %arg11[%c5_21, %c1_22, %c0_23] : memref<6x6x16xf32, #tpu.memory_space<vmem>>, vector<1x4x16xf32>
    tpu.vector_store %arg11[%c5_21, %c1_22, %c0_23], %13 {strides = array<i32>} : memref<6x6x16xf32, #tpu.memory_space<vmem>>, vector<1x4x16xf32>,
    %cst_24 = arith.constant 0.000000e+00 : f32
    %15 = vector.broadcast %cst_24 : f32 to vector<1x4x16xf32>
    %c0_i32 = arith.constant 0 : i32
    %16 = arith.cmpi eq, %arg1, %c0_i32 : i32
    %17 = arith.extui %16 : i1 to i32
    %c0_i32_25 = arith.constant 0 : i32
    %18 = arith.cmpi ne, %17, %c0_i32_25 : i32
    scf.if %18 {
      %c0_137 = arith.constant 0 : index
      %c1_138 = arith.constant 1 : index
      %c0_139 = arith.constant 0 : index
      %120 = vector.load %arg11[%c0_137, %c1_138, %c0_139] : memref<6x6x16xf32, #tpu.memory_space<vmem>>, vector<1x4x16xf32>
      tpu.vector_store %arg11[%c0_137, %c1_138, %c0_139], %15 {strides = array<i32>} : memref<6x6x16xf32, #tpu.memory_space<vmem>>, vector<1x4x16xf32>,
    } else {
    }
    %c0_i32_26 = arith.constant 0 : i32
    %19 = arith.cmpi eq, %arg1, %c0_i32_26 : i32
    %20 = arith.extui %19 : i1 to i32
    %c0_i32_27 = arith.constant 0 : i32
    %21 = arith.cmpi ne, %20, %c0_i32_27 : i32
    scf.if %21 {
      %c5_137 = arith.constant 5 : index
      %c1_138 = arith.constant 1 : index
      %c0_139 = arith.constant 0 : index
      %120 = vector.load %arg11[%c5_137, %c1_138, %c0_139] : memref<6x6x16xf32, #tpu.memory_space<vmem>>, vector<1x4x16xf32>
      tpu.vector_store %arg11[%c5_137, %c1_138, %c0_139], %15 {strides = array<i32>} : memref<6x6x16xf32, #tpu.memory_space<vmem>>, vector<1x4x16xf32>,
    } else {
    }
    %c0_28 = arith.constant 0 : index
    %c0_29 = arith.constant 0 : index
    %c0_30 = arith.constant 0 : index
    %22 = vector.load %arg11[%c0_28, %c0_29, %c0_30] : memref<6x6x16xf32, #tpu.memory_space<vmem>>, vector<4x4x16xf32>
    %23 = vector.shape_cast %22 : vector<4x4x16xf32> to vector<16x16xf32>
    %24 = arith.truncf %23 : vector<16x16xf32> to vector<16x16xbf16>
    %c0_31 = arith.constant 0 : index
    %c0_32 = arith.constant 0 : index
    %c0_33 = arith.constant 0 : index
    %25 = vector.load %arg5[%c0_31, %c0_32, %c0_33] : memref<9x16x32xbf16, #tpu.memory_space<vmem>>, vector<1x16x32xbf16>
    %26 = vector.shape_cast %25 : vector<1x16x32xbf16> to vector<16x32xbf16>
    %cst_34 = arith.constant dense<0.000000e+00> : vector<16x32xf32>
    %27 = tpu.matmul %24, %26, %cst_34 {dimension_numbers = #tpu.dot_dimension_numbers<[1], [0], [0], [1], [0, 0, 1, 1], [], []>} : vector<16x16xbf16>, vector<16x32xbf16>, vector<16x32xf32> -> vector<16x32xf32>
    %c0_35 = arith.constant 0 : index
    %c0_36 = arith.constant 0 : index
    %28 = vector.load %arg6[%c0_35, %c0_36] : memref<1x32xf32, #tpu.memory_space<vmem>>, vector<1x32xf32>
    %29 = vector.broadcast %28 : vector<1x32xf32> to vector<16x32xf32>
    %30 = arith.addf %27, %29 : vector<16x32xf32>
    %c0_37 = arith.constant 0 : index
    %c0_38 = arith.constant 0 : index
    %31 = vector.load %arg12[%c0_37, %c0_38] : memref<16x32xf32, #tpu.memory_space<vmem>>, vector<16x32xf32>
    tpu.vector_store %arg12[%c0_37, %c0_38], %30 {strides = array<i32>} : memref<16x32xf32, #tpu.memory_space<vmem>>, vector<16x32xf32>,
    %c0_39 = arith.constant 0 : index
    %c1_40 = arith.constant 1 : index
    %c0_41 = arith.constant 0 : index
    %32 = vector.load %arg11[%c0_39, %c1_40, %c0_41] : memref<6x6x16xf32, #tpu.memory_space<vmem>>, vector<4x4x16xf32>
    %33 = vector.shape_cast %32 : vector<4x4x16xf32> to vector<16x16xf32>
    %34 = arith.truncf %33 : vector<16x16xf32> to vector<16x16xbf16>
    %c1_42 = arith.constant 1 : index
    %c0_43 = arith.constant 0 : index
    %c0_44 = arith.constant 0 : index
    %35 = vector.load %arg5[%c1_42, %c0_43, %c0_44] : memref<9x16x32xbf16, #tpu.memory_space<vmem>>, vector<1x16x32xbf16>
    %36 = vector.shape_cast %35 : vector<1x16x32xbf16> to vector<16x32xbf16>
    %cst_45 = arith.constant dense<0.000000e+00> : vector<16x32xf32>
    %37 = tpu.matmul %34, %36, %cst_45 {dimension_numbers = #tpu.dot_dimension_numbers<[1], [0], [0], [1], [0, 0, 1, 1], [], []>} : vector<16x16xbf16>, vector<16x32xbf16>, vector<16x32xf32> -> vector<16x32xf32>
    %c0_46 = arith.constant 0 : index
    %c0_47 = arith.constant 0 : index
    %38 = vector.load %arg12[%c0_46, %c0_47] : memref<16x32xf32, #tpu.memory_space<vmem>>, vector<16x32xf32>
    %39 = arith.addf %38, %37 : vector<16x32xf32>
    %c0_48 = arith.constant 0 : index
    %c0_49 = arith.constant 0 : index
    %40 = vector.load %arg12[%c0_48, %c0_49] : memref<16x32xf32, #tpu.memory_space<vmem>>, vector<16x32xf32>
    tpu.vector_store %arg12[%c0_48, %c0_49], %39 {strides = array<i32>} : memref<16x32xf32, #tpu.memory_space<vmem>>, vector<16x32xf32>,
    %c0_50 = arith.constant 0 : index
    %c2 = arith.constant 2 : index
    %c0_51 = arith.constant 0 : index
    %41 = vector.load %arg11[%c0_50, %c2, %c0_51] : memref<6x6x16xf32, #tpu.memory_space<vmem>>, vector<4x4x16xf32>
    %42 = vector.shape_cast %41 : vector<4x4x16xf32> to vector<16x16xf32>
    %43 = arith.truncf %42 : vector<16x16xf32> to vector<16x16xbf16>
    %c2_52 = arith.constant 2 : index
    %c0_53 = arith.constant 0 : index
    %c0_54 = arith.constant 0 : index
    %44 = vector.load %arg5[%c2_52, %c0_53, %c0_54] : memref<9x16x32xbf16, #tpu.memory_space<vmem>>, vector<1x16x32xbf16>
    %45 = vector.shape_cast %44 : vector<1x16x32xbf16> to vector<16x32xbf16>
    %cst_55 = arith.constant dense<0.000000e+00> : vector<16x32xf32>
    %46 = tpu.matmul %43, %45, %cst_55 {dimension_numbers = #tpu.dot_dimension_numbers<[1], [0], [0], [1], [0, 0, 1, 1], [], []>} : vector<16x16xbf16>, vector<16x32xbf16>, vector<16x32xf32> -> vector<16x32xf32>
    %c0_56 = arith.constant 0 : index
    %c0_57 = arith.constant 0 : index
    %47 = vector.load %arg12[%c0_56, %c0_57] : memref<16x32xf32, #tpu.memory_space<vmem>>, vector<16x32xf32>
    %48 = arith.addf %47, %46 : vector<16x32xf32>
    %c0_58 = arith.constant 0 : index
    %c0_59 = arith.constant 0 : index
    %49 = vector.load %arg12[%c0_58, %c0_59] : memref<16x32xf32, #tpu.memory_space<vmem>>, vector<16x32xf32>
    tpu.vector_store %arg12[%c0_58, %c0_59], %48 {strides = array<i32>} : memref<16x32xf32, #tpu.memory_space<vmem>>, vector<16x32xf32>,
    %c1_60 = arith.constant 1 : index
    %c0_61 = arith.constant 0 : index
    %c0_62 = arith.constant 0 : index
    %50 = vector.load %arg11[%c1_60, %c0_61, %c0_62] : memref<6x6x16xf32, #tpu.memory_space<vmem>>, vector<4x4x16xf32>
    %51 = vector.shape_cast %50 : vector<4x4x16xf32> to vector<16x16xf32>
    %52 = arith.truncf %51 : vector<16x16xf32> to vector<16x16xbf16>
    %c3 = arith.constant 3 : index
    %c0_63 = arith.constant 0 : index
    %c0_64 = arith.constant 0 : index
    %53 = vector.load %arg5[%c3, %c0_63, %c0_64] : memref<9x16x32xbf16, #tpu.memory_space<vmem>>, vector<1x16x32xbf16>
    %54 = vector.shape_cast %53 : vector<1x16x32xbf16> to vector<16x32xbf16>
    %cst_65 = arith.constant dense<0.000000e+00> : vector<16x32xf32>
    %55 = tpu.matmul %52, %54, %cst_65 {dimension_numbers = #tpu.dot_dimension_numbers<[1], [0], [0], [1], [0, 0, 1, 1], [], []>} : vector<16x16xbf16>, vector<16x32xbf16>, vector<16x32xf32> -> vector<16x32xf32>
    %c0_66 = arith.constant 0 : index
    %c0_67 = arith.constant 0 : index
    %56 = vector.load %arg12[%c0_66, %c0_67] : memref<16x32xf32, #tpu.memory_space<vmem>>, vector<16x32xf32>
    %57 = arith.addf %56, %55 : vector<16x32xf32>
    %c0_68 = arith.constant 0 : index
    %c0_69 = arith.constant 0 : index
    %58 = vector.load %arg12[%c0_68, %c0_69] : memref<16x32xf32, #tpu.memory_space<vmem>>, vector<16x32xf32>
    tpu.vector_store %arg12[%c0_68, %c0_69], %57 {strides = array<i32>} : memref<16x32xf32, #tpu.memory_space<vmem>>, vector<16x32xf32>,
    %c1_70 = arith.constant 1 : index
    %c1_71 = arith.constant 1 : index
    %c0_72 = arith.constant 0 : index
    %59 = vector.load %arg11[%c1_70, %c1_71, %c0_72] : memref<6x6x16xf32, #tpu.memory_space<vmem>>, vector<4x4x16xf32>
    %60 = vector.shape_cast %59 : vector<4x4x16xf32> to vector<16x16xf32>
    %61 = arith.truncf %60 : vector<16x16xf32> to vector<16x16xbf16>
    %c4 = arith.constant 4 : index
    %c0_73 = arith.constant 0 : index
    %c0_74 = arith.constant 0 : index
    %62 = vector.load %arg5[%c4, %c0_73, %c0_74] : memref<9x16x32xbf16, #tpu.memory_space<vmem>>, vector<1x16x32xbf16>
    %63 = vector.shape_cast %62 : vector<1x16x32xbf16> to vector<16x32xbf16>
    %cst_75 = arith.constant dense<0.000000e+00> : vector<16x32xf32>
    %64 = tpu.matmul %61, %63, %cst_75 {dimension_numbers = #tpu.dot_dimension_numbers<[1], [0], [0], [1], [0, 0, 1, 1], [], []>} : vector<16x16xbf16>, vector<16x32xbf16>, vector<16x32xf32> -> vector<16x32xf32>
    %c0_76 = arith.constant 0 : index
    %c0_77 = arith.constant 0 : index
    %65 = vector.load %arg12[%c0_76, %c0_77] : memref<16x32xf32, #tpu.memory_space<vmem>>, vector<16x32xf32>
    %66 = arith.addf %65, %64 : vector<16x32xf32>
    %c0_78 = arith.constant 0 : index
    %c0_79 = arith.constant 0 : index
    %67 = vector.load %arg12[%c0_78, %c0_79] : memref<16x32xf32, #tpu.memory_space<vmem>>, vector<16x32xf32>
    tpu.vector_store %arg12[%c0_78, %c0_79], %66 {strides = array<i32>} : memref<16x32xf32, #tpu.memory_space<vmem>>, vector<16x32xf32>,
    %c1_80 = arith.constant 1 : index
    %c2_81 = arith.constant 2 : index
    %c0_82 = arith.constant 0 : index
    %68 = vector.load %arg11[%c1_80, %c2_81, %c0_82] : memref<6x6x16xf32, #tpu.memory_space<vmem>>, vector<4x4x16xf32>
    %69 = vector.shape_cast %68 : vector<4x4x16xf32> to vector<16x16xf32>
    %70 = arith.truncf %69 : vector<16x16xf32> to vector<16x16xbf16>
    %c5_83 = arith.constant 5 : index
    %c0_84 = arith.constant 0 : index
    %c0_85 = arith.constant 0 : index
    %71 = vector.load %arg5[%c5_83, %c0_84, %c0_85] : memref<9x16x32xbf16, #tpu.memory_space<vmem>>, vector<1x16x32xbf16>
    %72 = vector.shape_cast %71 : vector<1x16x32xbf16> to vector<16x32xbf16>
    %cst_86 = arith.constant dense<0.000000e+00> : vector<16x32xf32>
    %73 = tpu.matmul %70, %72, %cst_86 {dimension_numbers = #tpu.dot_dimension_numbers<[1], [0], [0], [1], [0, 0, 1, 1], [], []>} : vector<16x16xbf16>, vector<16x32xbf16>, vector<16x32xf32> -> vector<16x32xf32>
    %c0_87 = arith.constant 0 : index
    %c0_88 = arith.constant 0 : index
    %74 = vector.load %arg12[%c0_87, %c0_88] : memref<16x32xf32, #tpu.memory_space<vmem>>, vector<16x32xf32>
    %75 = arith.addf %74, %73 : vector<16x32xf32>
    %c0_89 = arith.constant 0 : index
    %c0_90 = arith.constant 0 : index
    %76 = vector.load %arg12[%c0_89, %c0_90] : memref<16x32xf32, #tpu.memory_space<vmem>>, vector<16x32xf32>
    tpu.vector_store %arg12[%c0_89, %c0_90], %75 {strides = array<i32>} : memref<16x32xf32, #tpu.memory_space<vmem>>, vector<16x32xf32>,
    %c2_91 = arith.constant 2 : index
    %c0_92 = arith.constant 0 : index
    %c0_93 = arith.constant 0 : index
    %77 = vector.load %arg11[%c2_91, %c0_92, %c0_93] : memref<6x6x16xf32, #tpu.memory_space<vmem>>, vector<4x4x16xf32>
    %78 = vector.shape_cast %77 : vector<4x4x16xf32> to vector<16x16xf32>
    %79 = arith.truncf %78 : vector<16x16xf32> to vector<16x16xbf16>
    %c6 = arith.constant 6 : index
    %c0_94 = arith.constant 0 : index
    %c0_95 = arith.constant 0 : index
    %80 = vector.load %arg5[%c6, %c0_94, %c0_95] : memref<9x16x32xbf16, #tpu.memory_space<vmem>>, vector<1x16x32xbf16>
    %81 = vector.shape_cast %80 : vector<1x16x32xbf16> to vector<16x32xbf16>
    %cst_96 = arith.constant dense<0.000000e+00> : vector<16x32xf32>
    %82 = tpu.matmul %79, %81, %cst_96 {dimension_numbers = #tpu.dot_dimension_numbers<[1], [0], [0], [1], [0, 0, 1, 1], [], []>} : vector<16x16xbf16>, vector<16x32xbf16>, vector<16x32xf32> -> vector<16x32xf32>
    %c0_97 = arith.constant 0 : index
    %c0_98 = arith.constant 0 : index
    %83 = vector.load %arg12[%c0_97, %c0_98] : memref<16x32xf32, #tpu.memory_space<vmem>>, vector<16x32xf32>
    %84 = arith.addf %83, %82 : vector<16x32xf32>
    %c0_99 = arith.constant 0 : index
    %c0_100 = arith.constant 0 : index
    %85 = vector.load %arg12[%c0_99, %c0_100] : memref<16x32xf32, #tpu.memory_space<vmem>>, vector<16x32xf32>
    tpu.vector_store %arg12[%c0_99, %c0_100], %84 {strides = array<i32>} : memref<16x32xf32, #tpu.memory_space<vmem>>, vector<16x32xf32>,
    %c2_101 = arith.constant 2 : index
    %c1_102 = arith.constant 1 : index
    %c0_103 = arith.constant 0 : index
    %86 = vector.load %arg11[%c2_101, %c1_102, %c0_103] : memref<6x6x16xf32, #tpu.memory_space<vmem>>, vector<4x4x16xf32>
    %87 = vector.shape_cast %86 : vector<4x4x16xf32> to vector<16x16xf32>
    %88 = arith.truncf %87 : vector<16x16xf32> to vector<16x16xbf16>
    %c7 = arith.constant 7 : index
    %c0_104 = arith.constant 0 : index
    %c0_105 = arith.constant 0 : index
    %89 = vector.load %arg5[%c7, %c0_104, %c0_105] : memref<9x16x32xbf16, #tpu.memory_space<vmem>>, vector<1x16x32xbf16>
    %90 = vector.shape_cast %89 : vector<1x16x32xbf16> to vector<16x32xbf16>
    %cst_106 = arith.constant dense<0.000000e+00> : vector<16x32xf32>
    %91 = tpu.matmul %88, %90, %cst_106 {dimension_numbers = #tpu.dot_dimension_numbers<[1], [0], [0], [1], [0, 0, 1, 1], [], []>} : vector<16x16xbf16>, vector<16x32xbf16>, vector<16x32xf32> -> vector<16x32xf32>
    %c0_107 = arith.constant 0 : index
    %c0_108 = arith.constant 0 : index
    %92 = vector.load %arg12[%c0_107, %c0_108] : memref<16x32xf32, #tpu.memory_space<vmem>>, vector<16x32xf32>
    %93 = arith.addf %92, %91 : vector<16x32xf32>
    %c0_109 = arith.constant 0 : index
    %c0_110 = arith.constant 0 : index
    %94 = vector.load %arg12[%c0_109, %c0_110] : memref<16x32xf32, #tpu.memory_space<vmem>>, vector<16x32xf32>
    tpu.vector_store %arg12[%c0_109, %c0_110], %93 {strides = array<i32>} : memref<16x32xf32, #tpu.memory_space<vmem>>, vector<16x32xf32>,
    %c2_111 = arith.constant 2 : index
    %c2_112 = arith.constant 2 : index
    %c0_113 = arith.constant 0 : index
    %95 = vector.load %arg11[%c2_111, %c2_112, %c0_113] : memref<6x6x16xf32, #tpu.memory_space<vmem>>, vector<4x4x16xf32>
    %96 = vector.shape_cast %95 : vector<4x4x16xf32> to vector<16x16xf32>
    %97 = arith.truncf %96 : vector<16x16xf32> to vector<16x16xbf16>
    %c8 = arith.constant 8 : index
    %c0_114 = arith.constant 0 : index
    %c0_115 = arith.constant 0 : index
    %98 = vector.load %arg5[%c8, %c0_114, %c0_115] : memref<9x16x32xbf16, #tpu.memory_space<vmem>>, vector<1x16x32xbf16>
    %99 = vector.shape_cast %98 : vector<1x16x32xbf16> to vector<16x32xbf16>
    %cst_116 = arith.constant dense<0.000000e+00> : vector<16x32xf32>
    %100 = tpu.matmul %97, %99, %cst_116 {dimension_numbers = #tpu.dot_dimension_numbers<[1], [0], [0], [1], [0, 0, 1, 1], [], []>} : vector<16x16xbf16>, vector<16x32xbf16>, vector<16x32xf32> -> vector<16x32xf32>
    %c0_117 = arith.constant 0 : index
    %c0_118 = arith.constant 0 : index
    %101 = vector.load %arg12[%c0_117, %c0_118] : memref<16x32xf32, #tpu.memory_space<vmem>>, vector<16x32xf32>
    %102 = arith.addf %101, %100 : vector<16x32xf32>
    %c0_119 = arith.constant 0 : index
    %c0_120 = arith.constant 0 : index
    %103 = vector.load %arg12[%c0_119, %c0_120] : memref<16x32xf32, #tpu.memory_space<vmem>>, vector<16x32xf32>
    tpu.vector_store %arg12[%c0_119, %c0_120], %102 {strides = array<i32>} : memref<16x32xf32, #tpu.memory_space<vmem>>, vector<16x32xf32>,
    %c0_121 = arith.constant 0 : index
    %c0_122 = arith.constant 0 : index
    %104 = vector.load %arg12[%c0_121, %c0_122] : memref<16x32xf32, #tpu.memory_space<vmem>>, vector<16x32xf32>
    %cst_123 = arith.constant dense<0.000000e+00> : vector<32xf32>
    %105 = vector.multi_reduction <add>, %104, %cst_123 [0] : vector<16x32xf32> to vector<32xf32>
    %106 = vector.shape_cast %105 : vector<32xf32> to vector<1x32xf32>
    %c0_124 = arith.constant 0 : index
    %c0_125 = arith.constant 0 : index
    %c0_126 = arith.constant 0 : index
    %c0_127 = arith.constant 0 : index
    %107 = vector.load %arg10[%c0_124, %c0_125, %c0_126, %c0_127] : memref<1x1x2x32xf32, #tpu.memory_space<vmem>>, vector<1x1x1x32xf32>
    %108 = vector.shape_cast %107 : vector<1x1x1x32xf32> to vector<1x32xf32>
    %109 = vector.shape_cast %106 : vector<1x32xf32> to vector<1x1x1x32xf32>
    tpu.vector_store %arg10[%c0_124, %c0_125, %c0_126, %c0_127], %109 {strides = array<i32>} : memref<1x1x2x32xf32, #tpu.memory_space<vmem>>, vector<1x1x1x32xf32>,
    %110 = arith.mulf %104, %104 : vector<16x32xf32>
    %cst_128 = arith.constant dense<0.000000e+00> : vector<32xf32>
    %111 = vector.multi_reduction <add>, %110, %cst_128 [0] : vector<16x32xf32> to vector<32xf32>
    %112 = vector.shape_cast %111 : vector<32xf32> to vector<1x32xf32>
    %c0_129 = arith.constant 0 : index
    %c0_130 = arith.constant 0 : index
    %c1_131 = arith.constant 1 : index
    %c0_132 = arith.constant 0 : index
    %113 = vector.load %arg10[%c0_129, %c0_130, %c1_131, %c0_132] : memref<1x1x2x32xf32, #tpu.memory_space<vmem>>, vector<1x1x1x32xf32>
    %114 = vector.shape_cast %113 : vector<1x1x1x32xf32> to vector<1x32xf32>
    %115 = vector.shape_cast %112 : vector<1x32xf32> to vector<1x1x1x32xf32>
    tpu.vector_store %arg10[%c0_129, %c0_130, %c1_131, %c0_132], %115 {strides = array<i32>} : memref<1x1x2x32xf32, #tpu.memory_space<vmem>>, vector<1x1x1x32xf32>,
    %116 = arith.truncf %104 : vector<16x32xf32> to vector<16x32xbf16>
    %c0_133 = arith.constant 0 : index
    %c0_134 = arith.constant 0 : index
    %c0_135 = arith.constant 0 : index
    %c0_136 = arith.constant 0 : index
    %117 = vector.load %arg9[%c0_133, %c0_134, %c0_135, %c0_136] : memref<1x1x16x32xbf16, #tpu.memory_space<vmem>>, vector<1x1x16x32xbf16>
    %118 = vector.shape_cast %117 : vector<1x1x16x32xbf16> to vector<16x32xbf16>
    %119 = vector.shape_cast %116 : vector<16x32xbf16> to vector<1x1x16x32xbf16>
    tpu.vector_store %arg9[%c0_133, %c0_134, %c0_135, %c0_136], %119 {strides = array<i32>} : memref<1x1x16x32xbf16, #tpu.memory_space<vmem>>, vector<1x1x16x32xbf16>,
    return
  }
  func.func @transform_0(%arg0: i32, %arg1: i32) -> (i32, i32, i32, i32) {
    %c0_i32 = arith.constant 0 : i32
    %c0_i32_0 = arith.constant 0 : i32
    %c0_i32_1 = arith.constant 0 : i32
    return %arg0, %arg1, %c0_i32, %c0_i32_0 : i32, i32, i32, i32
  }
  func.func @transform_1(%arg0: i32, %arg1: i32) -> (i32, i32, i32, i32) {
    %c4_i32 = arith.constant 4 : i32
    %0 = arith.muli %arg1, %c4_i32 : i32
    %c1_i32 = arith.constant 1 : i32
    %1 = arith.subi %0, %c1_i32 : i32
    %c0_i32 = arith.constant 0 : i32
    %2 = arith.maxsi %1, %c0_i32 : i32
    %c0_i32_0 = arith.constant 0 : i32
    %c0_i32_1 = arith.constant 0 : i32
    %c0_i32_2 = arith.constant 0 : i32
    return %arg0, %2, %c0_i32_0, %c0_i32_1 : i32, i32, i32, i32
  }
  func.func @transform_2(%arg0: i32, %arg1: i32) -> (i32, i32, i32, i32) {
    %c1_i32 = arith.constant 1 : i32
    %0 = arith.addi %arg1, %c1_i32 : i32
    %c4_i32 = arith.constant 4 : i32
    %1 = arith.muli %0, %c4_i32 : i32
    %c3_i32 = arith.constant 3 : i32
    %2 = arith.minsi %1, %c3_i32 : i32
    %c0_i32 = arith.constant 0 : i32
    %c0_i32_0 = arith.constant 0 : i32
    %c0_i32_1 = arith.constant 0 : i32
    return %arg0, %2, %c0_i32, %c0_i32_0 : i32, i32, i32, i32
  }
  func.func @transform_3(%arg0: i32, %arg1: i32) -> (i32, i32, i32) {
    %c0_i32 = arith.constant 0 : i32
    %c0_i32_0 = arith.constant 0 : i32
    %c0_i32_1 = arith.constant 0 : i32
    %c0_i32_2 = arith.constant 0 : i32
    return %c0_i32, %c0_i32_0, %c0_i32_1 : i32, i32, i32
  }
  func.func @transform_4(%arg0: i32, %arg1: i32) -> (i32, i32) {
    %c0_i32 = arith.constant 0 : i32
    %c0_i32_0 = arith.constant 0 : i32
    %c0_i32_1 = arith.constant 0 : i32
    return %c0_i32, %c0_i32_0 : i32, i32
  }
  func.func @transform_5(%arg0: i32, %arg1: i32) -> (i32, i32, i32) {
    %c0_i32 = arith.constant 0 : i32
    %c0_i32_0 = arith.constant 0 : i32
    %c0_i32_1 = arith.constant 0 : i32
    %c0_i32_2 = arith.constant 0 : i32
    return %c0_i32, %c0_i32_0, %c0_i32_1 : i32, i32, i32
  }
  func.func @transform_6(%arg0: i32, %arg1: i32) -> (i32, i32, i32) {
    %c0_i32 = arith.constant 0 : i32
    %c0_i32_0 = arith.constant 0 : i32
    %c0_i32_1 = arith.constant 0 : i32
    %c0_i32_2 = arith.constant 0 : i32
    return %c0_i32, %c0_i32_0, %c0_i32_1 : i32, i32, i32
  }
  func.func @transform_7(%arg0: i32, %arg1: i32) -> (i32, i32, i32, i32) {
    %c0_i32 = arith.constant 0 : i32
    %c0_i32_0 = arith.constant 0 : i32
    %c0_i32_1 = arith.constant 0 : i32
    return %arg0, %arg1, %c0_i32, %c0_i32_0 : i32, i32, i32, i32
  }
  func.func @transform_8(%arg0: i32, %arg1: i32) -> (i32, i32, i32, i32) {
    %c0_i32 = arith.constant 0 : i32
    %c0_i32_0 = arith.constant 0 : i32
    %c0_i32_1 = arith.constant 0 : i32
    return %arg0, %arg1, %c0_i32, %c0_i32_0 : i32, i32, i32, i32
  }
}

module attributes {stable_mosaic.version = 11 : i64} {
  func.func @_bn_relu_pool_kernel(%arg0: i32, %arg1: i32, %arg2: memref<1x4x2x64xbf16, #tpu.memory_space<vmem>>, %arg3: memref<1x1x32xf32, #tpu.memory_space<vmem>>, %arg4: memref<1x1x32xf32, #tpu.memory_space<vmem>>, %arg5: memref<1x2x2x32xbf16, #tpu.memory_space<vmem>>) attributes {dimension_semantics = [#tpu.dimension_semantics<parallel>, #tpu.dimension_semantics<parallel>], iteration_bounds = array<i64: 2, 1>, scalar_prefetch = 0 : i64, scratch_operands = 0 : i64, tpu.core_type = #tpu.core_type<tc>, window_params = [{transform_indices = @transform_0, window_bounds = array<i64: 1, 4, 2, 64>}, {pipeline_mode = #tpu.pipeline_mode<synchronous>, transform_indices = @transform_1, window_bounds = array<i64: 1, 1, 32>}, {pipeline_mode = #tpu.pipeline_mode<synchronous>, transform_indices = @transform_2, window_bounds = array<i64: 1, 1, 32>}, {transform_indices = @transform_3, window_bounds = array<i64: 1, 2, 2, 32>}]} {
    %c0 = arith.constant 0 : index
    %c0_0 = arith.constant 0 : index
    %c0_1 = arith.constant 0 : index
    %c0_2 = arith.constant 0 : index
    %0 = vector.load %arg2[%c0, %c0_0, %c0_1, %c0_2] : memref<1x4x2x64xbf16, #tpu.memory_space<vmem>>, vector<1x4x2x32xbf16>
    %1 = vector.shape_cast %0 : vector<1x4x2x32xbf16> to vector<4x2x32xbf16>
    %2 = arith.extf %1 : vector<4x2x32xbf16> to vector<4x2x32xf32>
    %c0_3 = arith.constant 0 : index
    %c0_4 = arith.constant 0 : index
    %c0_5 = arith.constant 0 : index
    %3 = vector.load %arg3[%c0_3, %c0_4, %c0_5] : memref<1x1x32xf32, #tpu.memory_space<vmem>>, vector<1x1x32xf32>
    %4 = vector.broadcast %3 : vector<1x1x32xf32> to vector<4x2x32xf32>
    %5 = arith.mulf %2, %4 : vector<4x2x32xf32>
    %c0_6 = arith.constant 0 : index
    %c0_7 = arith.constant 0 : index
    %c0_8 = arith.constant 0 : index
    %6 = vector.load %arg4[%c0_6, %c0_7, %c0_8] : memref<1x1x32xf32, #tpu.memory_space<vmem>>, vector<1x1x32xf32>
    %7 = vector.broadcast %6 : vector<1x1x32xf32> to vector<4x2x32xf32>
    %8 = arith.addf %5, %7 : vector<4x2x32xf32>
    %cst = arith.constant 0.000000e+00 : f32
    %9 = vector.broadcast %cst : f32 to vector<4x2x32xf32>
    %10 = arith.maximumf %8, %9 : vector<4x2x32xf32>
    %c0_9 = arith.constant 0 : index
    %c0_10 = arith.constant 0 : index
    %c0_11 = arith.constant 0 : index
    %c32 = arith.constant 32 : index
    %11 = vector.load %arg2[%c0_9, %c0_10, %c0_11, %c32] : memref<1x4x2x64xbf16, #tpu.memory_space<vmem>>, vector<1x4x2x32xbf16>
    %12 = vector.shape_cast %11 : vector<1x4x2x32xbf16> to vector<4x2x32xbf16>
    %13 = arith.extf %12 : vector<4x2x32xbf16> to vector<4x2x32xf32>
    %c0_12 = arith.constant 0 : index
    %c0_13 = arith.constant 0 : index
    %c0_14 = arith.constant 0 : index
    %14 = vector.load %arg3[%c0_12, %c0_13, %c0_14] : memref<1x1x32xf32, #tpu.memory_space<vmem>>, vector<1x1x32xf32>
    %15 = vector.broadcast %14 : vector<1x1x32xf32> to vector<4x2x32xf32>
    %16 = arith.mulf %13, %15 : vector<4x2x32xf32>
    %c0_15 = arith.constant 0 : index
    %c0_16 = arith.constant 0 : index
    %c0_17 = arith.constant 0 : index
    %17 = vector.load %arg4[%c0_15, %c0_16, %c0_17] : memref<1x1x32xf32, #tpu.memory_space<vmem>>, vector<1x1x32xf32>
    %18 = vector.broadcast %17 : vector<1x1x32xf32> to vector<4x2x32xf32>
    %19 = arith.addf %16, %18 : vector<4x2x32xf32>
    %cst_18 = arith.constant 0.000000e+00 : f32
    %20 = vector.broadcast %cst_18 : f32 to vector<4x2x32xf32>
    %21 = arith.maximumf %19, %20 : vector<4x2x32xf32>
    %22 = arith.maximumf %10, %21 : vector<4x2x32xf32>
    %23 = vector.shape_cast %22 : vector<4x2x32xf32> to vector<2x2x2x32xf32>
    %24 = vector.extract_strided_slice %23 {offsets = [0, 0, 0, 0], sizes = [2, 1, 2, 32], strides = [1, 1, 1, 1]} : vector<2x2x2x32xf32> to vector<2x1x2x32xf32>
    %25 = vector.shape_cast %24 : vector<2x1x2x32xf32> to vector<2x2x32xf32>
    %26 = vector.extract_strided_slice %23 {offsets = [0, 1, 0, 0], sizes = [2, 1, 2, 32], strides = [1, 1, 1, 1]} : vector<2x2x2x32xf32> to vector<2x1x2x32xf32>
    %27 = vector.shape_cast %26 : vector<2x1x2x32xf32> to vector<2x2x32xf32>
    %28 = arith.maximumf %25, %27 : vector<2x2x32xf32>
    %29 = arith.truncf %28 : vector<2x2x32xf32> to vector<2x2x32xbf16>
    %c0_19 = arith.constant 0 : index
    %c0_20 = arith.constant 0 : index
    %c0_21 = arith.constant 0 : index
    %c0_22 = arith.constant 0 : index
    %30 = vector.load %arg5[%c0_19, %c0_20, %c0_21, %c0_22] : memref<1x2x2x32xbf16, #tpu.memory_space<vmem>>, vector<1x2x2x32xbf16>
    %31 = vector.shape_cast %30 : vector<1x2x2x32xbf16> to vector<2x2x32xbf16>
    %32 = vector.shape_cast %29 : vector<2x2x32xbf16> to vector<1x2x2x32xbf16>
    tpu.vector_store %arg5[%c0_19, %c0_20, %c0_21, %c0_22], %32 {strides = array<i32>} : memref<1x2x2x32xbf16, #tpu.memory_space<vmem>>, vector<1x2x2x32xbf16>,
    return
  }
  func.func @transform_0(%arg0: i32, %arg1: i32) -> (i32, i32, i32, i32) {
    %c0_i32 = arith.constant 0 : i32
    %c0_i32_0 = arith.constant 0 : i32
    %c0_i32_1 = arith.constant 0 : i32
    return %arg0, %arg1, %c0_i32, %c0_i32_0 : i32, i32, i32, i32
  }
  func.func @transform_1(%arg0: i32, %arg1: i32) -> (i32, i32, i32) {
    %c0_i32 = arith.constant 0 : i32
    %c0_i32_0 = arith.constant 0 : i32
    %c0_i32_1 = arith.constant 0 : i32
    %c0_i32_2 = arith.constant 0 : i32
    return %c0_i32, %c0_i32_0, %c0_i32_1 : i32, i32, i32
  }
  func.func @transform_2(%arg0: i32, %arg1: i32) -> (i32, i32, i32) {
    %c0_i32 = arith.constant 0 : i32
    %c0_i32_0 = arith.constant 0 : i32
    %c0_i32_1 = arith.constant 0 : i32
    %c0_i32_2 = arith.constant 0 : i32
    return %c0_i32, %c0_i32_0, %c0_i32_1 : i32, i32, i32
  }
  func.func @transform_3(%arg0: i32, %arg1: i32) -> (i32, i32, i32, i32) {
    %c0_i32 = arith.constant 0 : i32
    %c0_i32_0 = arith.constant 0 : i32
    %c0_i32_1 = arith.constant 0 : i32
    return %arg0, %arg1, %c0_i32, %c0_i32_0 : i32, i32, i32, i32
  }
}

module attributes {stable_mosaic.version = 11 : i64} {
  func.func @_conv3x3_kernel(%arg0: i32, %arg1: i32, %arg2: memref<1x4x4x32xbf16, #tpu.memory_space<vmem>>, %arg3: memref<1x1x4x32xbf16, #tpu.memory_space<vmem>>, %arg4: memref<1x1x4x32xbf16, #tpu.memory_space<vmem>>, %arg5: memref<9x32x32xbf16, #tpu.memory_space<vmem>>, %arg6: memref<1x32xf32, #tpu.memory_space<vmem>>, %arg7: memref<1x1x32xf32, #tpu.memory_space<vmem>>, %arg8: memref<1x1x32xf32, #tpu.memory_space<vmem>>, %arg9: memref<1x1x16x32xbf16, #tpu.memory_space<vmem>>, %arg10: memref<1x1x2x32xf32, #tpu.memory_space<vmem>>, %arg11: memref<6x6x32xf32, #tpu.memory_space<vmem>>, %arg12: memref<16x32xf32, #tpu.memory_space<vmem>>) attributes {dimension_semantics = [#tpu.dimension_semantics<parallel>, #tpu.dimension_semantics<parallel>], iteration_bounds = array<i64: 2, 1>, scalar_prefetch = 0 : i64, scratch_operands = 2 : i64, tpu.core_type = #tpu.core_type<tc>, window_params = [{transform_indices = @transform_0, window_bounds = array<i64: 1, 4, 4, 32>}, {transform_indices = @transform_1, window_bounds = array<i64: 1, 1, 4, 32>}, {transform_indices = @transform_2, window_bounds = array<i64: 1, 1, 4, 32>}, {pipeline_mode = #tpu.pipeline_mode<synchronous>, transform_indices = @transform_3, window_bounds = array<i64: 9, 32, 32>}, {pipeline_mode = #tpu.pipeline_mode<synchronous>, transform_indices = @transform_4, window_bounds = array<i64: 1, 32>}, {pipeline_mode = #tpu.pipeline_mode<synchronous>, transform_indices = @transform_5, window_bounds = array<i64: 1, 1, 32>}, {pipeline_mode = #tpu.pipeline_mode<synchronous>, transform_indices = @transform_6, window_bounds = array<i64: 1, 1, 32>}, {transform_indices = @transform_7, window_bounds = array<i64: 1, 1, 16, 32>}, {transform_indices = @transform_8, window_bounds = array<i64: 1, 1, 2, 32>}]} {
    %cst = arith.constant 0.000000e+00 : f32
    %0 = vector.broadcast %cst : f32 to vector<6x1x32xf32>
    %c0 = arith.constant 0 : index
    %c0_0 = arith.constant 0 : index
    %c0_1 = arith.constant 0 : index
    %1 = vector.load %arg11[%c0, %c0_0, %c0_1] : memref<6x6x32xf32, #tpu.memory_space<vmem>>, vector<6x1x32xf32>
    tpu.vector_store %arg11[%c0, %c0_0, %c0_1], %0 {strides = array<i32>} : memref<6x6x32xf32, #tpu.memory_space<vmem>>, vector<6x1x32xf32>,
    %c0_2 = arith.constant 0 : index
    %c5 = arith.constant 5 : index
    %c0_3 = arith.constant 0 : index
    %2 = vector.load %arg11[%c0_2, %c5, %c0_3] : memref<6x6x32xf32, #tpu.memory_space<vmem>>, vector<6x1x32xf32>
    tpu.vector_store %arg11[%c0_2, %c5, %c0_3], %0 {strides = array<i32>} : memref<6x6x32xf32, #tpu.memory_space<vmem>>, vector<6x1x32xf32>,
    %c0_4 = arith.constant 0 : index
    %c0_5 = arith.constant 0 : index
    %c0_6 = arith.constant 0 : index
    %c0_7 = arith.constant 0 : index
    %3 = vector.load %arg2[%c0_4, %c0_5, %c0_6, %c0_7] : memref<1x4x4x32xbf16, #tpu.memory_space<vmem>>, vector<1x4x4x32xbf16>
    %4 = vector.shape_cast %3 : vector<1x4x4x32xbf16> to vector<4x4x32xbf16>
    %5 = arith.extf %4 : vector<4x4x32xbf16> to vector<4x4x32xf32>
    %c0_8 = arith.constant 0 : index
    %c0_9 = arith.constant 0 : index
    %c0_10 = arith.constant 0 : index
    %6 = vector.load %arg7[%c0_8, %c0_9, %c0_10] : memref<1x1x32xf32, #tpu.memory_space<vmem>>, vector<1x1x32xf32>
    %7 = vector.broadcast %6 : vector<1x1x32xf32> to vector<4x4x32xf32>
    %8 = arith.mulf %5, %7 : vector<4x4x32xf32>
    %c0_11 = arith.constant 0 : index
    %c0_12 = arith.constant 0 : index
    %c0_13 = arith.constant 0 : index
    %9 = vector.load %arg8[%c0_11, %c0_12, %c0_13] : memref<1x1x32xf32, #tpu.memory_space<vmem>>, vector<1x1x32xf32>
    %10 = vector.broadcast %9 : vector<1x1x32xf32> to vector<4x4x32xf32>
    %11 = arith.addf %8, %10 : vector<4x4x32xf32>
    %cst_14 = arith.constant 0.000000e+00 : f32
    %12 = vector.broadcast %cst_14 : f32 to vector<4x4x32xf32>
    %13 = arith.maximumf %11, %12 : vector<4x4x32xf32>
    %c1 = arith.constant 1 : index
    %c1_15 = arith.constant 1 : index
    %c0_16 = arith.constant 0 : index
    %14 = vector.load %arg11[%c1, %c1_15, %c0_16] : memref<6x6x32xf32, #tpu.memory_space<vmem>>, vector<4x4x32xf32>
    tpu.vector_store %arg11[%c1, %c1_15, %c0_16], %13 {strides = array<i32>} : memref<6x6x32xf32, #tpu.memory_space<vmem>>, vector<4x4x32xf32>,
    %c0_17 = arith.constant 0 : index
    %c0_18 = arith.constant 0 : index
    %c0_19 = arith.constant 0 : index
    %c0_20 = arith.constant 0 : index
    %15 = vector.load %arg3[%c0_17, %c0_18, %c0_19, %c0_20] : memref<1x1x4x32xbf16, #tpu.memory_space<vmem>>, vector<1x1x4x32xbf16>
    %16 = vector.shape_cast %15 : vector<1x1x4x32xbf16> to vector<1x4x32xbf16>
    %17 = arith.extf %16 : vector<1x4x32xbf16> to vector<1x4x32xf32>
    %c0_21 = arith.constant 0 : index
    %c0_22 = arith.constant 0 : index
    %c0_23 = arith.constant 0 : index
    %18 = vector.load %arg7[%c0_21, %c0_22, %c0_23] : memref<1x1x32xf32, #tpu.memory_space<vmem>>, vector<1x1x32xf32>
    %19 = vector.broadcast %18 : vector<1x1x32xf32> to vector<1x4x32xf32>
    %20 = arith.mulf %17, %19 : vector<1x4x32xf32>
    %c0_24 = arith.constant 0 : index
    %c0_25 = arith.constant 0 : index
    %c0_26 = arith.constant 0 : index
    %21 = vector.load %arg8[%c0_24, %c0_25, %c0_26] : memref<1x1x32xf32, #tpu.memory_space<vmem>>, vector<1x1x32xf32>
    %22 = vector.broadcast %21 : vector<1x1x32xf32> to vector<1x4x32xf32>
    %23 = arith.addf %20, %22 : vector<1x4x32xf32>
    %cst_27 = arith.constant 0.000000e+00 : f32
    %24 = vector.broadcast %cst_27 : f32 to vector<1x4x32xf32>
    %25 = arith.maximumf %23, %24 : vector<1x4x32xf32>
    %c0_28 = arith.constant 0 : index
    %c1_29 = arith.constant 1 : index
    %c0_30 = arith.constant 0 : index
    %26 = vector.load %arg11[%c0_28, %c1_29, %c0_30] : memref<6x6x32xf32, #tpu.memory_space<vmem>>, vector<1x4x32xf32>
    tpu.vector_store %arg11[%c0_28, %c1_29, %c0_30], %25 {strides = array<i32>} : memref<6x6x32xf32, #tpu.memory_space<vmem>>, vector<1x4x32xf32>,
    %c0_31 = arith.constant 0 : index
    %c0_32 = arith.constant 0 : index
    %c0_33 = arith.constant 0 : index
    %c0_34 = arith.constant 0 : index
    %27 = vector.load %arg4[%c0_31, %c0_32, %c0_33, %c0_34] : memref<1x1x4x32xbf16, #tpu.memory_space<vmem>>, vector<1x1x4x32xbf16>
    %28 = vector.shape_cast %27 : vector<1x1x4x32xbf16> to vector<1x4x32xbf16>
    %29 = arith.extf %28 : vector<1x4x32xbf16> to vector<1x4x32xf32>
    %c0_35 = arith.constant 0 : index
    %c0_36 = arith.constant 0 : index
    %c0_37 = arith.constant 0 : index
    %30 = vector.load %arg7[%c0_35, %c0_36, %c0_37] : memref<1x1x32xf32, #tpu.memory_space<vmem>>, vector<1x1x32xf32>
    %31 = vector.broadcast %30 : vector<1x1x32xf32> to vector<1x4x32xf32>
    %32 = arith.mulf %29, %31 : vector<1x4x32xf32>
    %c0_38 = arith.constant 0 : index
    %c0_39 = arith.constant 0 : index
    %c0_40 = arith.constant 0 : index
    %33 = vector.load %arg8[%c0_38, %c0_39, %c0_40] : memref<1x1x32xf32, #tpu.memory_space<vmem>>, vector<1x1x32xf32>
    %34 = vector.broadcast %33 : vector<1x1x32xf32> to vector<1x4x32xf32>
    %35 = arith.addf %32, %34 : vector<1x4x32xf32>
    %cst_41 = arith.constant 0.000000e+00 : f32
    %36 = vector.broadcast %cst_41 : f32 to vector<1x4x32xf32>
    %37 = arith.maximumf %35, %36 : vector<1x4x32xf32>
    %c5_42 = arith.constant 5 : index
    %c1_43 = arith.constant 1 : index
    %c0_44 = arith.constant 0 : index
    %38 = vector.load %arg11[%c5_42, %c1_43, %c0_44] : memref<6x6x32xf32, #tpu.memory_space<vmem>>, vector<1x4x32xf32>
    tpu.vector_store %arg11[%c5_42, %c1_43, %c0_44], %37 {strides = array<i32>} : memref<6x6x32xf32, #tpu.memory_space<vmem>>, vector<1x4x32xf32>,
    %cst_45 = arith.constant 0.000000e+00 : f32
    %39 = vector.broadcast %cst_45 : f32 to vector<1x4x32xf32>
    %c0_i32 = arith.constant 0 : i32
    %40 = arith.cmpi eq, %arg1, %c0_i32 : i32
    %41 = arith.extui %40 : i1 to i32
    %c0_i32_46 = arith.constant 0 : i32
    %42 = arith.cmpi ne, %41, %c0_i32_46 : i32
    scf.if %42 {
      %c0_158 = arith.constant 0 : index
      %c1_159 = arith.constant 1 : index
      %c0_160 = arith.constant 0 : index
      %144 = vector.load %arg11[%c0_158, %c1_159, %c0_160] : memref<6x6x32xf32, #tpu.memory_space<vmem>>, vector<1x4x32xf32>
      tpu.vector_store %arg11[%c0_158, %c1_159, %c0_160], %39 {strides = array<i32>} : memref<6x6x32xf32, #tpu.memory_space<vmem>>, vector<1x4x32xf32>,
    } else {
    }
    %c0_i32_47 = arith.constant 0 : i32
    %43 = arith.cmpi eq, %arg1, %c0_i32_47 : i32
    %44 = arith.extui %43 : i1 to i32
    %c0_i32_48 = arith.constant 0 : i32
    %45 = arith.cmpi ne, %44, %c0_i32_48 : i32
    scf.if %45 {
      %c5_158 = arith.constant 5 : index
      %c1_159 = arith.constant 1 : index
      %c0_160 = arith.constant 0 : index
      %144 = vector.load %arg11[%c5_158, %c1_159, %c0_160] : memref<6x6x32xf32, #tpu.memory_space<vmem>>, vector<1x4x32xf32>
      tpu.vector_store %arg11[%c5_158, %c1_159, %c0_160], %39 {strides = array<i32>} : memref<6x6x32xf32, #tpu.memory_space<vmem>>, vector<1x4x32xf32>,
    } else {
    }
    %c0_49 = arith.constant 0 : index
    %c0_50 = arith.constant 0 : index
    %c0_51 = arith.constant 0 : index
    %46 = vector.load %arg11[%c0_49, %c0_50, %c0_51] : memref<6x6x32xf32, #tpu.memory_space<vmem>>, vector<4x4x32xf32>
    %47 = vector.shape_cast %46 : vector<4x4x32xf32> to vector<16x32xf32>
    %48 = arith.truncf %47 : vector<16x32xf32> to vector<16x32xbf16>
    %c0_52 = arith.constant 0 : index
    %c0_53 = arith.constant 0 : index
    %c0_54 = arith.constant 0 : index
    %49 = vector.load %arg5[%c0_52, %c0_53, %c0_54] : memref<9x32x32xbf16, #tpu.memory_space<vmem>>, vector<1x32x32xbf16>
    %50 = vector.shape_cast %49 : vector<1x32x32xbf16> to vector<32x32xbf16>
    %cst_55 = arith.constant dense<0.000000e+00> : vector<16x32xf32>
    %51 = tpu.matmul %48, %50, %cst_55 {dimension_numbers = #tpu.dot_dimension_numbers<[1], [0], [0], [1], [0, 0, 1, 1], [], []>} : vector<16x32xbf16>, vector<32x32xbf16>, vector<16x32xf32> -> vector<16x32xf32>
    %c0_56 = arith.constant 0 : index
    %c0_57 = arith.constant 0 : index
    %52 = vector.load %arg6[%c0_56, %c0_57] : memref<1x32xf32, #tpu.memory_space<vmem>>, vector<1x32xf32>
    %53 = vector.broadcast %52 : vector<1x32xf32> to vector<16x32xf32>
    %54 = arith.addf %51, %53 : vector<16x32xf32>
    %c0_58 = arith.constant 0 : index
    %c0_59 = arith.constant 0 : index
    %55 = vector.load %arg12[%c0_58, %c0_59] : memref<16x32xf32, #tpu.memory_space<vmem>>, vector<16x32xf32>
    tpu.vector_store %arg12[%c0_58, %c0_59], %54 {strides = array<i32>} : memref<16x32xf32, #tpu.memory_space<vmem>>, vector<16x32xf32>,
    %c0_60 = arith.constant 0 : index
    %c1_61 = arith.constant 1 : index
    %c0_62 = arith.constant 0 : index
    %56 = vector.load %arg11[%c0_60, %c1_61, %c0_62] : memref<6x6x32xf32, #tpu.memory_space<vmem>>, vector<4x4x32xf32>
    %57 = vector.shape_cast %56 : vector<4x4x32xf32> to vector<16x32xf32>
    %58 = arith.truncf %57 : vector<16x32xf32> to vector<16x32xbf16>
    %c1_63 = arith.constant 1 : index
    %c0_64 = arith.constant 0 : index
    %c0_65 = arith.constant 0 : index
    %59 = vector.load %arg5[%c1_63, %c0_64, %c0_65] : memref<9x32x32xbf16, #tpu.memory_space<vmem>>, vector<1x32x32xbf16>
    %60 = vector.shape_cast %59 : vector<1x32x32xbf16> to vector<32x32xbf16>
    %cst_66 = arith.constant dense<0.000000e+00> : vector<16x32xf32>
    %61 = tpu.matmul %58, %60, %cst_66 {dimension_numbers = #tpu.dot_dimension_numbers<[1], [0], [0], [1], [0, 0, 1, 1], [], []>} : vector<16x32xbf16>, vector<32x32xbf16>, vector<16x32xf32> -> vector<16x32xf32>
    %c0_67 = arith.constant 0 : index
    %c0_68 = arith.constant 0 : index
    %62 = vector.load %arg12[%c0_67, %c0_68] : memref<16x32xf32, #tpu.memory_space<vmem>>, vector<16x32xf32>
    %63 = arith.addf %62, %61 : vector<16x32xf32>
    %c0_69 = arith.constant 0 : index
    %c0_70 = arith.constant 0 : index
    %64 = vector.load %arg12[%c0_69, %c0_70] : memref<16x32xf32, #tpu.memory_space<vmem>>, vector<16x32xf32>
    tpu.vector_store %arg12[%c0_69, %c0_70], %63 {strides = array<i32>} : memref<16x32xf32, #tpu.memory_space<vmem>>, vector<16x32xf32>,
    %c0_71 = arith.constant 0 : index
    %c2 = arith.constant 2 : index
    %c0_72 = arith.constant 0 : index
    %65 = vector.load %arg11[%c0_71, %c2, %c0_72] : memref<6x6x32xf32, #tpu.memory_space<vmem>>, vector<4x4x32xf32>
    %66 = vector.shape_cast %65 : vector<4x4x32xf32> to vector<16x32xf32>
    %67 = arith.truncf %66 : vector<16x32xf32> to vector<16x32xbf16>
    %c2_73 = arith.constant 2 : index
    %c0_74 = arith.constant 0 : index
    %c0_75 = arith.constant 0 : index
    %68 = vector.load %arg5[%c2_73, %c0_74, %c0_75] : memref<9x32x32xbf16, #tpu.memory_space<vmem>>, vector<1x32x32xbf16>
    %69 = vector.shape_cast %68 : vector<1x32x32xbf16> to vector<32x32xbf16>
    %cst_76 = arith.constant dense<0.000000e+00> : vector<16x32xf32>
    %70 = tpu.matmul %67, %69, %cst_76 {dimension_numbers = #tpu.dot_dimension_numbers<[1], [0], [0], [1], [0, 0, 1, 1], [], []>} : vector<16x32xbf16>, vector<32x32xbf16>, vector<16x32xf32> -> vector<16x32xf32>
    %c0_77 = arith.constant 0 : index
    %c0_78 = arith.constant 0 : index
    %71 = vector.load %arg12[%c0_77, %c0_78] : memref<16x32xf32, #tpu.memory_space<vmem>>, vector<16x32xf32>
    %72 = arith.addf %71, %70 : vector<16x32xf32>
    %c0_79 = arith.constant 0 : index
    %c0_80 = arith.constant 0 : index
    %73 = vector.load %arg12[%c0_79, %c0_80] : memref<16x32xf32, #tpu.memory_space<vmem>>, vector<16x32xf32>
    tpu.vector_store %arg12[%c0_79, %c0_80], %72 {strides = array<i32>} : memref<16x32xf32, #tpu.memory_space<vmem>>, vector<16x32xf32>,
    %c1_81 = arith.constant 1 : index
    %c0_82 = arith.constant 0 : index
    %c0_83 = arith.constant 0 : index
    %74 = vector.load %arg11[%c1_81, %c0_82, %c0_83] : memref<6x6x32xf32, #tpu.memory_space<vmem>>, vector<4x4x32xf32>
    %75 = vector.shape_cast %74 : vector<4x4x32xf32> to vector<16x32xf32>
    %76 = arith.truncf %75 : vector<16x32xf32> to vector<16x32xbf16>
    %c3 = arith.constant 3 : index
    %c0_84 = arith.constant 0 : index
    %c0_85 = arith.constant 0 : index
    %77 = vector.load %arg5[%c3, %c0_84, %c0_85] : memref<9x32x32xbf16, #tpu.memory_space<vmem>>, vector<1x32x32xbf16>
    %78 = vector.shape_cast %77 : vector<1x32x32xbf16> to vector<32x32xbf16>
    %cst_86 = arith.constant dense<0.000000e+00> : vector<16x32xf32>
    %79 = tpu.matmul %76, %78, %cst_86 {dimension_numbers = #tpu.dot_dimension_numbers<[1], [0], [0], [1], [0, 0, 1, 1], [], []>} : vector<16x32xbf16>, vector<32x32xbf16>, vector<16x32xf32> -> vector<16x32xf32>
    %c0_87 = arith.constant 0 : index
    %c0_88 = arith.constant 0 : index
    %80 = vector.load %arg12[%c0_87, %c0_88] : memref<16x32xf32, #tpu.memory_space<vmem>>, vector<16x32xf32>
    %81 = arith.addf %80, %79 : vector<16x32xf32>
    %c0_89 = arith.constant 0 : index
    %c0_90 = arith.constant 0 : index
    %82 = vector.load %arg12[%c0_89, %c0_90] : memref<16x32xf32, #tpu.memory_space<vmem>>, vector<16x32xf32>
    tpu.vector_store %arg12[%c0_89, %c0_90], %81 {strides = array<i32>} : memref<16x32xf32, #tpu.memory_space<vmem>>, vector<16x32xf32>,
    %c1_91 = arith.constant 1 : index
    %c1_92 = arith.constant 1 : index
    %c0_93 = arith.constant 0 : index
    %83 = vector.load %arg11[%c1_91, %c1_92, %c0_93] : memref<6x6x32xf32, #tpu.memory_space<vmem>>, vector<4x4x32xf32>
    %84 = vector.shape_cast %83 : vector<4x4x32xf32> to vector<16x32xf32>
    %85 = arith.truncf %84 : vector<16x32xf32> to vector<16x32xbf16>
    %c4 = arith.constant 4 : index
    %c0_94 = arith.constant 0 : index
    %c0_95 = arith.constant 0 : index
    %86 = vector.load %arg5[%c4, %c0_94, %c0_95] : memref<9x32x32xbf16, #tpu.memory_space<vmem>>, vector<1x32x32xbf16>
    %87 = vector.shape_cast %86 : vector<1x32x32xbf16> to vector<32x32xbf16>
    %cst_96 = arith.constant dense<0.000000e+00> : vector<16x32xf32>
    %88 = tpu.matmul %85, %87, %cst_96 {dimension_numbers = #tpu.dot_dimension_numbers<[1], [0], [0], [1], [0, 0, 1, 1], [], []>} : vector<16x32xbf16>, vector<32x32xbf16>, vector<16x32xf32> -> vector<16x32xf32>
    %c0_97 = arith.constant 0 : index
    %c0_98 = arith.constant 0 : index
    %89 = vector.load %arg12[%c0_97, %c0_98] : memref<16x32xf32, #tpu.memory_space<vmem>>, vector<16x32xf32>
    %90 = arith.addf %89, %88 : vector<16x32xf32>
    %c0_99 = arith.constant 0 : index
    %c0_100 = arith.constant 0 : index
    %91 = vector.load %arg12[%c0_99, %c0_100] : memref<16x32xf32, #tpu.memory_space<vmem>>, vector<16x32xf32>
    tpu.vector_store %arg12[%c0_99, %c0_100], %90 {strides = array<i32>} : memref<16x32xf32, #tpu.memory_space<vmem>>, vector<16x32xf32>,
    %c1_101 = arith.constant 1 : index
    %c2_102 = arith.constant 2 : index
    %c0_103 = arith.constant 0 : index
    %92 = vector.load %arg11[%c1_101, %c2_102, %c0_103] : memref<6x6x32xf32, #tpu.memory_space<vmem>>, vector<4x4x32xf32>
    %93 = vector.shape_cast %92 : vector<4x4x32xf32> to vector<16x32xf32>
    %94 = arith.truncf %93 : vector<16x32xf32> to vector<16x32xbf16>
    %c5_104 = arith.constant 5 : index
    %c0_105 = arith.constant 0 : index
    %c0_106 = arith.constant 0 : index
    %95 = vector.load %arg5[%c5_104, %c0_105, %c0_106] : memref<9x32x32xbf16, #tpu.memory_space<vmem>>, vector<1x32x32xbf16>
    %96 = vector.shape_cast %95 : vector<1x32x32xbf16> to vector<32x32xbf16>
    %cst_107 = arith.constant dense<0.000000e+00> : vector<16x32xf32>
    %97 = tpu.matmul %94, %96, %cst_107 {dimension_numbers = #tpu.dot_dimension_numbers<[1], [0], [0], [1], [0, 0, 1, 1], [], []>} : vector<16x32xbf16>, vector<32x32xbf16>, vector<16x32xf32> -> vector<16x32xf32>
    %c0_108 = arith.constant 0 : index
    %c0_109 = arith.constant 0 : index
    %98 = vector.load %arg12[%c0_108, %c0_109] : memref<16x32xf32, #tpu.memory_space<vmem>>, vector<16x32xf32>
    %99 = arith.addf %98, %97 : vector<16x32xf32>
    %c0_110 = arith.constant 0 : index
    %c0_111 = arith.constant 0 : index
    %100 = vector.load %arg12[%c0_110, %c0_111] : memref<16x32xf32, #tpu.memory_space<vmem>>, vector<16x32xf32>
    tpu.vector_store %arg12[%c0_110, %c0_111], %99 {strides = array<i32>} : memref<16x32xf32, #tpu.memory_space<vmem>>, vector<16x32xf32>,
    %c2_112 = arith.constant 2 : index
    %c0_113 = arith.constant 0 : index
    %c0_114 = arith.constant 0 : index
    %101 = vector.load %arg11[%c2_112, %c0_113, %c0_114] : memref<6x6x32xf32, #tpu.memory_space<vmem>>, vector<4x4x32xf32>
    %102 = vector.shape_cast %101 : vector<4x4x32xf32> to vector<16x32xf32>
    %103 = arith.truncf %102 : vector<16x32xf32> to vector<16x32xbf16>
    %c6 = arith.constant 6 : index
    %c0_115 = arith.constant 0 : index
    %c0_116 = arith.constant 0 : index
    %104 = vector.load %arg5[%c6, %c0_115, %c0_116] : memref<9x32x32xbf16, #tpu.memory_space<vmem>>, vector<1x32x32xbf16>
    %105 = vector.shape_cast %104 : vector<1x32x32xbf16> to vector<32x32xbf16>
    %cst_117 = arith.constant dense<0.000000e+00> : vector<16x32xf32>
    %106 = tpu.matmul %103, %105, %cst_117 {dimension_numbers = #tpu.dot_dimension_numbers<[1], [0], [0], [1], [0, 0, 1, 1], [], []>} : vector<16x32xbf16>, vector<32x32xbf16>, vector<16x32xf32> -> vector<16x32xf32>
    %c0_118 = arith.constant 0 : index
    %c0_119 = arith.constant 0 : index
    %107 = vector.load %arg12[%c0_118, %c0_119] : memref<16x32xf32, #tpu.memory_space<vmem>>, vector<16x32xf32>
    %108 = arith.addf %107, %106 : vector<16x32xf32>
    %c0_120 = arith.constant 0 : index
    %c0_121 = arith.constant 0 : index
    %109 = vector.load %arg12[%c0_120, %c0_121] : memref<16x32xf32, #tpu.memory_space<vmem>>, vector<16x32xf32>
    tpu.vector_store %arg12[%c0_120, %c0_121], %108 {strides = array<i32>} : memref<16x32xf32, #tpu.memory_space<vmem>>, vector<16x32xf32>,
    %c2_122 = arith.constant 2 : index
    %c1_123 = arith.constant 1 : index
    %c0_124 = arith.constant 0 : index
    %110 = vector.load %arg11[%c2_122, %c1_123, %c0_124] : memref<6x6x32xf32, #tpu.memory_space<vmem>>, vector<4x4x32xf32>
    %111 = vector.shape_cast %110 : vector<4x4x32xf32> to vector<16x32xf32>
    %112 = arith.truncf %111 : vector<16x32xf32> to vector<16x32xbf16>
    %c7 = arith.constant 7 : index
    %c0_125 = arith.constant 0 : index
    %c0_126 = arith.constant 0 : index
    %113 = vector.load %arg5[%c7, %c0_125, %c0_126] : memref<9x32x32xbf16, #tpu.memory_space<vmem>>, vector<1x32x32xbf16>
    %114 = vector.shape_cast %113 : vector<1x32x32xbf16> to vector<32x32xbf16>
    %cst_127 = arith.constant dense<0.000000e+00> : vector<16x32xf32>
    %115 = tpu.matmul %112, %114, %cst_127 {dimension_numbers = #tpu.dot_dimension_numbers<[1], [0], [0], [1], [0, 0, 1, 1], [], []>} : vector<16x32xbf16>, vector<32x32xbf16>, vector<16x32xf32> -> vector<16x32xf32>
    %c0_128 = arith.constant 0 : index
    %c0_129 = arith.constant 0 : index
    %116 = vector.load %arg12[%c0_128, %c0_129] : memref<16x32xf32, #tpu.memory_space<vmem>>, vector<16x32xf32>
    %117 = arith.addf %116, %115 : vector<16x32xf32>
    %c0_130 = arith.constant 0 : index
    %c0_131 = arith.constant 0 : index
    %118 = vector.load %arg12[%c0_130, %c0_131] : memref<16x32xf32, #tpu.memory_space<vmem>>, vector<16x32xf32>
    tpu.vector_store %arg12[%c0_130, %c0_131], %117 {strides = array<i32>} : memref<16x32xf32, #tpu.memory_space<vmem>>, vector<16x32xf32>,
    %c2_132 = arith.constant 2 : index
    %c2_133 = arith.constant 2 : index
    %c0_134 = arith.constant 0 : index
    %119 = vector.load %arg11[%c2_132, %c2_133, %c0_134] : memref<6x6x32xf32, #tpu.memory_space<vmem>>, vector<4x4x32xf32>
    %120 = vector.shape_cast %119 : vector<4x4x32xf32> to vector<16x32xf32>
    %121 = arith.truncf %120 : vector<16x32xf32> to vector<16x32xbf16>
    %c8 = arith.constant 8 : index
    %c0_135 = arith.constant 0 : index
    %c0_136 = arith.constant 0 : index
    %122 = vector.load %arg5[%c8, %c0_135, %c0_136] : memref<9x32x32xbf16, #tpu.memory_space<vmem>>, vector<1x32x32xbf16>
    %123 = vector.shape_cast %122 : vector<1x32x32xbf16> to vector<32x32xbf16>
    %cst_137 = arith.constant dense<0.000000e+00> : vector<16x32xf32>
    %124 = tpu.matmul %121, %123, %cst_137 {dimension_numbers = #tpu.dot_dimension_numbers<[1], [0], [0], [1], [0, 0, 1, 1], [], []>} : vector<16x32xbf16>, vector<32x32xbf16>, vector<16x32xf32> -> vector<16x32xf32>
    %c0_138 = arith.constant 0 : index
    %c0_139 = arith.constant 0 : index
    %125 = vector.load %arg12[%c0_138, %c0_139] : memref<16x32xf32, #tpu.memory_space<vmem>>, vector<16x32xf32>
    %126 = arith.addf %125, %124 : vector<16x32xf32>
    %c0_140 = arith.constant 0 : index
    %c0_141 = arith.constant 0 : index
    %127 = vector.load %arg12[%c0_140, %c0_141] : memref<16x32xf32, #tpu.memory_space<vmem>>, vector<16x32xf32>
    tpu.vector_store %arg12[%c0_140, %c0_141], %126 {strides = array<i32>} : memref<16x32xf32, #tpu.memory_space<vmem>>, vector<16x32xf32>,
    %c0_142 = arith.constant 0 : index
    %c0_143 = arith.constant 0 : index
    %128 = vector.load %arg12[%c0_142, %c0_143] : memref<16x32xf32, #tpu.memory_space<vmem>>, vector<16x32xf32>
    %cst_144 = arith.constant dense<0.000000e+00> : vector<32xf32>
    %129 = vector.multi_reduction <add>, %128, %cst_144 [0] : vector<16x32xf32> to vector<32xf32>
    %130 = vector.shape_cast %129 : vector<32xf32> to vector<1x32xf32>
    %c0_145 = arith.constant 0 : index
    %c0_146 = arith.constant 0 : index
    %c0_147 = arith.constant 0 : index
    %c0_148 = arith.constant 0 : index
    %131 = vector.load %arg10[%c0_145, %c0_146, %c0_147, %c0_148] : memref<1x1x2x32xf32, #tpu.memory_space<vmem>>, vector<1x1x1x32xf32>
    %132 = vector.shape_cast %131 : vector<1x1x1x32xf32> to vector<1x32xf32>
    %133 = vector.shape_cast %130 : vector<1x32xf32> to vector<1x1x1x32xf32>
    tpu.vector_store %arg10[%c0_145, %c0_146, %c0_147, %c0_148], %133 {strides = array<i32>} : memref<1x1x2x32xf32, #tpu.memory_space<vmem>>, vector<1x1x1x32xf32>,
    %134 = arith.mulf %128, %128 : vector<16x32xf32>
    %cst_149 = arith.constant dense<0.000000e+00> : vector<32xf32>
    %135 = vector.multi_reduction <add>, %134, %cst_149 [0] : vector<16x32xf32> to vector<32xf32>
    %136 = vector.shape_cast %135 : vector<32xf32> to vector<1x32xf32>
    %c0_150 = arith.constant 0 : index
    %c0_151 = arith.constant 0 : index
    %c1_152 = arith.constant 1 : index
    %c0_153 = arith.constant 0 : index
    %137 = vector.load %arg10[%c0_150, %c0_151, %c1_152, %c0_153] : memref<1x1x2x32xf32, #tpu.memory_space<vmem>>, vector<1x1x1x32xf32>
    %138 = vector.shape_cast %137 : vector<1x1x1x32xf32> to vector<1x32xf32>
    %139 = vector.shape_cast %136 : vector<1x32xf32> to vector<1x1x1x32xf32>
    tpu.vector_store %arg10[%c0_150, %c0_151, %c1_152, %c0_153], %139 {strides = array<i32>} : memref<1x1x2x32xf32, #tpu.memory_space<vmem>>, vector<1x1x1x32xf32>,
    %140 = arith.truncf %128 : vector<16x32xf32> to vector<16x32xbf16>
    %c0_154 = arith.constant 0 : index
    %c0_155 = arith.constant 0 : index
    %c0_156 = arith.constant 0 : index
    %c0_157 = arith.constant 0 : index
    %141 = vector.load %arg9[%c0_154, %c0_155, %c0_156, %c0_157] : memref<1x1x16x32xbf16, #tpu.memory_space<vmem>>, vector<1x1x16x32xbf16>
    %142 = vector.shape_cast %141 : vector<1x1x16x32xbf16> to vector<16x32xbf16>
    %143 = vector.shape_cast %140 : vector<16x32xbf16> to vector<1x1x16x32xbf16>
    tpu.vector_store %arg9[%c0_154, %c0_155, %c0_156, %c0_157], %143 {strides = array<i32>} : memref<1x1x16x32xbf16, #tpu.memory_space<vmem>>, vector<1x1x16x32xbf16>,
    return
  }
  func.func @transform_0(%arg0: i32, %arg1: i32) -> (i32, i32, i32, i32) {
    %c0_i32 = arith.constant 0 : i32
    %c0_i32_0 = arith.constant 0 : i32
    %c0_i32_1 = arith.constant 0 : i32
    return %arg0, %arg1, %c0_i32, %c0_i32_0 : i32, i32, i32, i32
  }
  func.func @transform_1(%arg0: i32, %arg1: i32) -> (i32, i32, i32, i32) {
    %c4_i32 = arith.constant 4 : i32
    %0 = arith.muli %arg1, %c4_i32 : i32
    %c1_i32 = arith.constant 1 : i32
    %1 = arith.subi %0, %c1_i32 : i32
    %c0_i32 = arith.constant 0 : i32
    %2 = arith.maxsi %1, %c0_i32 : i32
    %c0_i32_0 = arith.constant 0 : i32
    %c0_i32_1 = arith.constant 0 : i32
    %c0_i32_2 = arith.constant 0 : i32
    return %arg0, %2, %c0_i32_0, %c0_i32_1 : i32, i32, i32, i32
  }
  func.func @transform_2(%arg0: i32, %arg1: i32) -> (i32, i32, i32, i32) {
    %c1_i32 = arith.constant 1 : i32
    %0 = arith.addi %arg1, %c1_i32 : i32
    %c4_i32 = arith.constant 4 : i32
    %1 = arith.muli %0, %c4_i32 : i32
    %c3_i32 = arith.constant 3 : i32
    %2 = arith.minsi %1, %c3_i32 : i32
    %c0_i32 = arith.constant 0 : i32
    %c0_i32_0 = arith.constant 0 : i32
    %c0_i32_1 = arith.constant 0 : i32
    return %arg0, %2, %c0_i32, %c0_i32_0 : i32, i32, i32, i32
  }
  func.func @transform_3(%arg0: i32, %arg1: i32) -> (i32, i32, i32) {
    %c0_i32 = arith.constant 0 : i32
    %c0_i32_0 = arith.constant 0 : i32
    %c0_i32_1 = arith.constant 0 : i32
    %c0_i32_2 = arith.constant 0 : i32
    return %c0_i32, %c0_i32_0, %c0_i32_1 : i32, i32, i32
  }
  func.func @transform_4(%arg0: i32, %arg1: i32) -> (i32, i32) {
    %c0_i32 = arith.constant 0 : i32
    %c0_i32_0 = arith.constant 0 : i32
    %c0_i32_1 = arith.constant 0 : i32
    return %c0_i32, %c0_i32_0 : i32, i32
  }
  func.func @transform_5(%arg0: i32, %arg1: i32) -> (i32, i32, i32) {
    %c0_i32 = arith.constant 0 : i32
    %c0_i32_0 = arith.constant 0 : i32
    %c0_i32_1 = arith.constant 0 : i32
    %c0_i32_2 = arith.constant 0 : i32
    return %c0_i32, %c0_i32_0, %c0_i32_1 : i32, i32, i32
  }
  func.func @transform_6(%arg0: i32, %arg1: i32) -> (i32, i32, i32) {
    %c0_i32 = arith.constant 0 : i32
    %c0_i32_0 = arith.constant 0 : i32
    %c0_i32_1 = arith.constant 0 : i32
    %c0_i32_2 = arith.constant 0 : i32
    return %c0_i32, %c0_i32_0, %c0_i32_1 : i32, i32, i32
  }
  func.func @transform_7(%arg0: i32, %arg1: i32) -> (i32, i32, i32, i32) {
    %c0_i32 = arith.constant 0 : i32
    %c0_i32_0 = arith.constant 0 : i32
    %c0_i32_1 = arith.constant 0 : i32
    return %arg0, %arg1, %c0_i32, %c0_i32_0 : i32, i32, i32, i32
  }
  func.func @transform_8(%arg0: i32, %arg1: i32) -> (i32, i32, i32, i32) {
    %c0_i32 = arith.constant 0 : i32
    %c0_i32_0 = arith.constant 0 : i32
    %c0_i32_1 = arith.constant 0 : i32
    return %arg0, %arg1, %c0_i32, %c0_i32_0 : i32, i32, i32, i32
  }
}

module attributes {stable_mosaic.version = 11 : i64} {
  func.func @_linear_kernel(%arg0: i32, %arg1: memref<2x128xbf16, #tpu.memory_space<vmem>>, %arg2: memref<128x10xbf16, #tpu.memory_space<vmem>>, %arg3: memref<1x10xf32, #tpu.memory_space<vmem>>, %arg4: memref<2x10xf32, #tpu.memory_space<vmem>>, %arg5: memref<2x10xf32, #tpu.memory_space<vmem>>) attributes {dimension_semantics = [#tpu.dimension_semantics<arbitrary>], iteration_bounds = array<i64: 1>, scalar_prefetch = 0 : i64, scratch_operands = 1 : i64, tpu.core_type = #tpu.core_type<tc>, window_params = [{transform_indices = @transform_0, window_bounds = array<i64: 2, 128>}, {transform_indices = @transform_1, window_bounds = array<i64: 128, 10>}, {pipeline_mode = #tpu.pipeline_mode<synchronous>, transform_indices = @transform_2, window_bounds = array<i64: 1, 10>}, {pipeline_mode = #tpu.pipeline_mode<synchronous>, transform_indices = @transform_3, window_bounds = array<i64: 2, 10>}]} {
    %c0_i32 = arith.constant 0 : i32
    %0 = arith.cmpi eq, %arg0, %c0_i32 : i32
    %1 = arith.extui %0 : i1 to i32
    %c0_i32_0 = arith.constant 0 : i32
    %2 = arith.cmpi ne, %1, %c0_i32_0 : i32
    scf.if %2 {
      %cst_10 = arith.constant 0.000000e+00 : f32
      %12 = vector.broadcast %cst_10 : f32 to vector<2x10xf32>
      %c0_11 = arith.constant 0 : index
      %c0_12 = arith.constant 0 : index
      %13 = vector.load %arg5[%c0_11, %c0_12] : memref<2x10xf32, #tpu.memory_space<vmem>>, vector<2x10xf32>
      tpu.vector_store %arg5[%c0_11, %c0_12], %12 {strides = array<i32>} : memref<2x10xf32, #tpu.memory_space<vmem>>, vector<2x10xf32>,
    } else {
    }
    %c0 = arith.constant 0 : index
    %c0_1 = arith.constant 0 : index
    %3 = vector.load %arg5[%c0, %c0_1] : memref<2x10xf32, #tpu.memory_space<vmem>>, vector<2x10xf32>
    %c0_2 = arith.constant 0 : index
    %c0_3 = arith.constant 0 : index
    %4 = vector.load %arg1[%c0_2, %c0_3] : memref<2x128xbf16, #tpu.memory_space<vmem>>, vector<2x128xbf16>
    %c0_4 = arith.constant 0 : index
    %c0_5 = arith.constant 0 : index
    %5 = vector.load %arg2[%c0_4, %c0_5] : memref<128x10xbf16, #tpu.memory_space<vmem>>, vector<128x10xbf16>
    %cst = arith.constant dense<0.000000e+00> : vector<2x10xf32>
    %6 = tpu.matmul %4, %5, %cst {dimension_numbers = #tpu.dot_dimension_numbers<[1], [0], [0], [1], [0, 0, 1, 1], [], []>} : vector<2x128xbf16>, vector<128x10xbf16>, vector<2x10xf32> -> vector<2x10xf32>
    %7 = arith.addf %3, %6 : vector<2x10xf32>
    %c0_6 = arith.constant 0 : index
    %c0_7 = arith.constant 0 : index
    %8 = vector.load %arg5[%c0_6, %c0_7] : memref<2x10xf32, #tpu.memory_space<vmem>>, vector<2x10xf32>
    tpu.vector_store %arg5[%c0_6, %c0_7], %7 {strides = array<i32>} : memref<2x10xf32, #tpu.memory_space<vmem>>, vector<2x10xf32>,
    %c0_i32_8 = arith.constant 0 : i32
    %9 = arith.cmpi eq, %arg0, %c0_i32_8 : i32
    %10 = arith.extui %9 : i1 to i32
    %c0_i32_9 = arith.constant 0 : i32
    %11 = arith.cmpi ne, %10, %c0_i32_9 : i32
    scf.if %11 {
      %c0_10 = arith.constant 0 : index
      %c0_11 = arith.constant 0 : index
      %12 = vector.load %arg5[%c0_10, %c0_11] : memref<2x10xf32, #tpu.memory_space<vmem>>, vector<2x10xf32>
      %c0_12 = arith.constant 0 : index
      %c0_13 = arith.constant 0 : index
      %13 = vector.load %arg3[%c0_12, %c0_13] : memref<1x10xf32, #tpu.memory_space<vmem>>, vector<1x10xf32>
      %14 = vector.broadcast %13 : vector<1x10xf32> to vector<2x10xf32>
      %15 = arith.addf %12, %14 : vector<2x10xf32>
      %c0_14 = arith.constant 0 : index
      %c0_15 = arith.constant 0 : index
      %16 = vector.load %arg4[%c0_14, %c0_15] : memref<2x10xf32, #tpu.memory_space<vmem>>, vector<2x10xf32>
      tpu.vector_store %arg4[%c0_14, %c0_15], %15 {strides = array<i32>} : memref<2x10xf32, #tpu.memory_space<vmem>>, vector<2x10xf32>,
    } else {
    }
    return
  }
  func.func @transform_0(%arg0: i32) -> (i32, i32) {
    %c0_i32 = arith.constant 0 : i32
    %c0_i32_0 = arith.constant 0 : i32
    return %c0_i32, %arg0 : i32, i32
  }
  func.func @transform_1(%arg0: i32) -> (i32, i32) {
    %c0_i32 = arith.constant 0 : i32
    %c0_i32_0 = arith.constant 0 : i32
    return %arg0, %c0_i32 : i32, i32
  }
  func.func @transform_2(%arg0: i32) -> (i32, i32) {
    %c0_i32 = arith.constant 0 : i32
    %c0_i32_0 = arith.constant 0 : i32
    %c0_i32_1 = arith.constant 0 : i32
    return %c0_i32, %c0_i32_0 : i32, i32
  }
  func.func @transform_3(%arg0: i32) -> (i32, i32) {
    %c0_i32 = arith.constant 0 : i32
    %c0_i32_0 = arith.constant 0 : i32
    %c0_i32_1 = arith.constant 0 : i32
    return %c0_i32, %c0_i32_0 : i32, i32
  }
}

</mosaic_0001>

<bundles_post_ra>
// kernel: _lambda_.10
= control target key start
LH: loop header
LB: loop body
LE: loop exit
PB: predicated region body
PF: predicated region fallthrough
CT: control target
= control target key end

     0   :  { %s716_s12 = smov 0   ;;  %s718_s13 = smov 0   ;;  %s924_s0 = inlined_call_operand.vmem [shape: bf16[2,16,8,16], index: 0, kind: input, shape index: {}]   ;;  %s925_s1 = inlined_call_operand.vmem [shape: f32[1,1,8], index: 1, kind: input, shape index: {}]   ;;  %s926_s2 = inlined_call_operand.vmem [shape: f32[1,1,8], index: 2, kind: input, shape index: {}]   ;;  %s927_s3 = inlined_call_operand.vmem [shape: bf16[2,8,8,8], index: 3, kind: output, shape index: {}]  }
   0x1   :  { %s720_s14 = smov 0  }
   0x2 LB: > { %s25_s15 = sadd.s32 1, %s688_s13  ;;  %p554_p0 = scmp.ge.s32.totalorder %s692_s14, 1  ;;  %s692_s14 = sphi %s720_s14, %s13_s14   ;;  %s688_s13 = sphi %s718_s13, %s929_s13   ;;  %s684_s12 = sphi %s716_s12, %s928_s12  }
   0x3   : > { %p27_p1 = scmp.ge.s32.totalorder %s25_s15, 2  ;;  %p158_p2 = scmp.lt.s32.totalorder %s692_s14, 3 }
   0x5   : > { %s931_s15 = smov (%p27_p1, %s25_s15), 0  ;;  %p159_p3 = pnand %p554_p0, %p158_p2 }
   0x6   : > { %v737_v0 = vld [vmem:[%s925_s1] ss:$0 sm:$0xff] (!%p159_p3)  ;;  %s694_s18 = smov (!%p159_p3), 8   ;;  %p191_p4 = scmp.lt.s32.totalorder (!%p159_p3), %s684_s12, 1  ;;  %vm454_vm0 = vcmask (!%p159_p3), 60416  }
   0x7   : > { %162 = sbr.rel (%p159_p3) target bundleno = 272 (0x110), region = 32  ;;  %304 = vrot.lane.b32.xlu0 (!%p159_p3), %v737_v0, %s694_s18  ;;  %v743_v1 = vld [vmem:[%s926_s2] ss:$0 sm:$0xff] (!%p159_p3)  ;;  %s695_s25 = smov (!%p159_p3), 120  }
   0xb   : > { %323 = vrot.lane.b32.xlu0 (!%p159_p3), %v743_v1, %s694_s18 }
   0xe   : > { %s933_s12 = smov (!%p191_p4, %s684_s12), 1 }
   0xf   : > { %s563_s21 = sshll.u32 %s933_s12, 6  ;;  %s564_s26 = sshll.u32 %s933_s12, 5 }
  0x10   : > { %s752_s24 = scalar_lea.vmem %s924_s0, %s563_s21  ;;  %s894_s29 = scalar_lea.vmem %s927_s3, %s564_s26 }
  0x11   : > { %v755_v2 = vld [vmem:[%s752_s24 + $0x10] sm:$0xff]   ;;  %v758_v3 = vld [vmem:[%s752_s24] sm:$0xff]   ;;  %v764_v5 = vld [vmem:[%s752_s24 + $0x8] sm:$0xff]  }
  0x12   : > { %v761_v4 = vld [vmem:[%s752_s24 + $0x20] sm:$0xff]   ;;  %v767_v6 = vld [vmem:[%s752_s24 + $0x30] sm:$0xff]   ;;  %v770_v7 = vld [vmem:[%s752_s24 + $0x18] sm:$0xff]   ;;  %v575_v8 = vunpack.c.l.bf16 %v755_v2  ;;  %v576_v9 = vunpack.c.h.bf16 %v755_v2  ;;  %v567_v10 = vunpack.c.l.bf16 %v758_v3  ;;  %v568_v11 = vunpack.c.h.bf16 %v758_v3 }
  0x13   : > { %v777_v12 = vld [vmem:[%s752_s24 + $0x28] sm:$0xff]   ;;  %v583_v13 = vunpack.c.l.bf16 %v761_v4  ;;  %v584_v14 = vunpack.c.h.bf16 %v761_v4  ;;  %v571_v15 = vunpack.c.l.bf16 %v764_v5  ;;  %v572_v16 = vunpack.c.h.bf16 %v764_v5  ;;  %v814_v49 = vld [vmem:[%s752_s24 + $0x38] sm:$0xff]  }
  0x14   : > { %v591_v18 = vunpack.c.l.bf16 %v767_v6  ;;  %v592_v19 = vunpack.c.h.bf16 %v767_v6  ;;  %v579_v20 = vunpack.c.l.bf16 %v770_v7  ;;  %v580_v21 = vunpack.c.h.bf16 %v770_v7 }
  0x15   : > { %v587_v22 = vunpack.c.l.bf16 %v777_v12  ;;  %v588_v23 = vunpack.c.h.bf16 %v777_v12  ;;  %v595_v60 = vunpack.c.l.bf16 %v814_v49  ;;  %v596_v61 = vunpack.c.h.bf16 %v814_v49 }
  0x16   : > { %v251_v2 = vmul.f32 %v571_v15, %v737_v0  ;;  %v262_v4 = vmul.f32 %v592_v19, %v737_v0 }
  0x79   : > { %v305_v17 = vpop.permute.xlu0 %304 }
  0x7a   : > { %v311_v24 = vmul.f32 %v575_v8, %v305_v17  ;;  %v312_v25 = vmul.f32 %v576_v9, %v305_v17  ;;  %v307_v26 = vmul.f32 %v567_v10, %v305_v17  ;;  %v308_v27 = vmul.f32 %v568_v11, %v305_v17 }
  0x7b   : > { %v315_v28 = vmul.f32 %v583_v13, %v305_v17  ;;  %v316_v29 = vmul.f32 %v584_v14, %v305_v17  ;;  %v309_v30 = vmul.f32 %v571_v15, %v305_v17  ;;  %v310_v31 = vmul.f32 %v572_v16, %v305_v17 }
  0x7c   : > { %v319_v33 = vmul.f32 %v591_v18, %v305_v17  ;;  %v320_v34 = vmul.f32 %v592_v19, %v305_v17  ;;  %v313_v35 = vmul.f32 %v579_v20, %v305_v17  ;;  %v314_v36 = vmul.f32 %v580_v21, %v305_v17 }
  0x7d   : > { %v324_v32 = vpop.permute.xlu0 %323  ;;  %v317_v62 = vmul.f32 %v587_v22, %v305_v17  ;;  %v318_v63 = vmul.f32 %v588_v23, %v305_v17 }
  0x7e   : > { %v330_v37 = vadd.f32 %v324_v32, %v311_v24  ;;  %v331_v38 = vadd.f32 %v324_v32, %v312_v25  ;;  %v326_v39 = vadd.f32 %v324_v32, %v307_v26  ;;  %v327_v40 = vadd.f32 %v324_v32, %v308_v27 }
  0x7f   : > { %v334_v41 = vadd.f32 %v324_v32, %v315_v28  ;;  %v335_v42 = vadd.f32 %v324_v32, %v316_v29  ;;  %v328_v43 = vadd.f32 %v324_v32, %v309_v30  ;;  %v329_v44 = vadd.f32 %v324_v32, %v310_v31 }
  0x80   : > { %v346_v45 = vmax.f32 %v330_v37, 0.0  ;;  %v347_v46 = vmax.f32 %v331_v38, 0.0  ;;  %v342_v47 = vmax.f32 %v326_v39, 0.0  ;;  %v343_v48 = vmax.f32 %v327_v40, 0.0 }
  0x81   : > { %v350_v50 = vmax.f32 %v334_v41, 0.0  ;;  %v351_v51 = vmax.f32 %v335_v42, 0.0  ;;  %v344_v52 = vmax.f32 %v328_v43, 0.0  ;;  %v345_v53 = vmax.f32 %v329_v44, 0.0 }
  0x82   : > { %v640_v54 = vpack.i.bf16 %v347_v46, %v346_v45  ;;  %v630_v55 = vpack.i.bf16 %v343_v48, %v342_v47  ;;  %v338_v56 = vadd.f32 %v324_v32, %v319_v33  ;;  %v339_v57 = vadd.f32 %v324_v32, %v320_v34 }
  0x83   : > { %v332_v58 = vadd.f32 %v324_v32, %v313_v35  ;;  %v333_v59 = vadd.f32 %v324_v32, %v314_v36  ;;  %v650_v24 = vpack.i.bf16 %v351_v51, %v350_v50  ;;  %v635_v25 = vpack.i.bf16 %v345_v53, %v344_v52 }
  0x84   : > { %641 = vrot.lane.b32.xlu0 %v640_v54, %s695_s25  ;;  %631 = vrot.lane.b32.xlu1 %v630_v55, %s695_s25  ;;  %v354_v26 = vmax.f32 %v338_v56, 0.0  ;;  %v355_v27 = vmax.f32 %v339_v57, 0.0  ;;  %v336_v30 = vadd.f32 %v324_v32, %v317_v62  ;;  %v337_v31 = vadd.f32 %v324_v32, %v318_v63 }
  0x85   : > { %v348_v28 = vmax.f32 %v332_v58, 0.0  ;;  %v349_v29 = vmax.f32 %v333_v59, 0.0  ;;  %v321_v33 = vmul.f32 %v595_v60, %v305_v17  ;;  %v322_v34 = vmul.f32 %v596_v61, %v305_v17 }
  0x86   : > { %v660_v37 = vpack.i.bf16 %v355_v27, %v354_v26  ;;  %v352_v39 = vmax.f32 %v336_v30, 0.0  ;;  %v353_v40 = vmax.f32 %v337_v31, 0.0  ;;  %v254_v17 = vmul.f32 %v576_v9, %v737_v0 }
  0x87   : > { %v340_v35 = vadd.f32 %v324_v32, %v321_v33  ;;  %v341_v36 = vadd.f32 %v324_v32, %v322_v34  ;;  %v645_v38 = vpack.i.bf16 %v349_v29, %v348_v28  ;;  %v253_v32 = vmul.f32 %v575_v8, %v737_v0 }
  0x88   : > { %651 = vrot.lane.b32.xlu0 %v650_v24, %s695_s25  ;;  %636 = vrot.lane.b32.xlu1 %v635_v25, %s695_s25  ;;  %v655_v41 = vpack.i.bf16 %v353_v40, %v352_v39  ;;  %v250_v45 = vmul.f32 %v568_v11, %v737_v0  ;;  %v249_v46 = vmul.f32 %v567_v10, %v737_v0 }
  0x89   : > { %v356_v42 = vmax.f32 %v340_v35, 0.0  ;;  %v357_v43 = vmax.f32 %v341_v36, 0.0  ;;  %v257_v47 = vmul.f32 %v583_v13, %v737_v0  ;;  %v258_v9 = vmul.f32 %v584_v14, %v737_v0 }
  0x8a   : > { %v252_v8 = vmul.f32 %v572_v16, %v737_v0  ;;  %v277_v11 = vadd.f32 %v743_v1, %v254_v17  ;;  %v276_v3 = vadd.f32 %v743_v1, %v253_v32  ;;  %v261_v10 = vmul.f32 %v591_v18, %v737_v0 }
  0x8b   : > { %v665_v44 = vpack.i.bf16 %v357_v43, %v356_v42  ;;  %v273_v13 = vadd.f32 %v743_v1, %v250_v45  ;;  %v272_v14 = vadd.f32 %v743_v1, %v249_v46  ;;  %v280_v15 = vadd.f32 %v743_v1, %v257_v47 }
  0x8c   : > { %661 = vrot.lane.b32.xlu0 %v660_v37, %s695_s25  ;;  %646 = vrot.lane.b32.xlu1 %v645_v38, %s695_s25  ;;  %v281_v5 = vadd.f32 %v743_v1, %v258_v9  ;;  %v274_v16 = vadd.f32 %v743_v1, %v251_v2  ;;  %v275_v48 = vadd.f32 %v743_v1, %v252_v8  ;;  %v293_v50 = vmax.f32 %v277_v11, 0.0 }
  0x8d   : > { %v255_v18 = vmul.f32 %v579_v20, %v737_v0  ;;  %v292_v6 = vmax.f32 %v276_v3, 0.0  ;;  %v868_v19 = vadd.f32 %v743_v1, %v261_v10  ;;  %v285_v51 = vadd.f32 %v743_v1, %v262_v4 }
  0x8e   : > { %v256_v52 = vmul.f32 %v580_v21, %v737_v0  ;;  %v289_v53 = vmax.f32 %v273_v13, 0.0  ;;  %v288_v54 = vmax.f32 %v272_v14, 0.0  ;;  %v296_v55 = vmax.f32 %v280_v15, 0.0 }
  0x8f   : > { %v297_v56 = vmax.f32 %v281_v5, 0.0  ;;  %v290_v20 = vmax.f32 %v274_v16, 0.0  ;;  %v291_v59 = vmax.f32 %v275_v48, 0.0  ;;  %v278_v62 = vadd.f32 %v743_v1, %v255_v18 }
  0x90   : > { %656 = vrot.lane.b32.xlu1 %v655_v41, %s695_s25  ;;  %v259_v63 = vmul.f32 %v587_v22, %v737_v0  ;;  %v300_v21 = vmax.f32 %v868_v19, 0.0  ;;  %v301_v27 = vmax.f32 %v285_v51, 0.0  ;;  %v279_v28 = vadd.f32 %v743_v1, %v256_v52 }
  0x91   : > { %v260_v29 = vmul.f32 %v588_v23, %v737_v0  ;;  %v294_v36 = vmax.f32 %v278_v62, 0.0  ;;  %v263_v38 = vmul.f32 %v595_v60, %v737_v0  ;;  %v264_v39 = vmul.f32 %v596_v61, %v737_v0 }
  0x92   : > { %v282_v37 = vadd.f32 %v743_v1, %v259_v63 }
  0x93   : > { %v283_v60 = vadd.f32 %v743_v1, %v260_v29  ;;  %v286_v2 = vadd.f32 %v743_v1, %v263_v38  ;;  %v287_v15 = vadd.f32 %v743_v1, %v264_v39 }
  0x94   : > { %666 = vrot.lane.b32.xlu1 %v665_v44, %s695_s25  ;;  %v295_v44 = vmax.f32 %v279_v28, 0.0  ;;  %v298_v9 = vmax.f32 %v282_v37, 0.0 }
  0x95   : > { %v299_v14 = vmax.f32 %v283_v60, 0.0 }
  0xf6   : > { %v642_v57 = vpop.permute.xlu0 %641  ;;  %v632_v58 = vpop.permute.xlu1 %631 }
  0xf7   : > { %v644_v24 = vunpack.i.h.bf16 %v642_v57  ;;  %v643_v25 = vunpack.i.l.bf16 %v642_v57  ;;  %v634_v26 = vunpack.i.h.bf16 %v632_v58  ;;  %v633_v7 = vunpack.i.l.bf16 %v632_v58 }
  0xf8   : > { %v303_v58 = vmax.f32 %v287_v15, 0.0 }
  0xf9   : > { %v427_v30 = vmax.f32 %v293_v50, %v644_v24  ;;  %v426_v31 = vmax.f32 %v292_v6, %v643_v25  ;;  %v423_v33 = vmax.f32 %v289_v53, %v634_v26  ;;  %v422_v34 = vmax.f32 %v288_v54, %v633_v7 }
  0xfa   : > { %v652_v35 = vpop.permute.xlu0 %651  ;;  %v637_v22 = vpop.permute.xlu1 %636 }
  0xfb   : > { %v440_v12 = vmax.f32 %v426_v31, %v427_v30  ;;  %v438_v23 = vmax.f32 %v422_v34, %v423_v33  ;;  %v654_v40 = vunpack.i.h.bf16 %v652_v35  ;;  %v653_v41 = vunpack.i.l.bf16 %v652_v35 }
  0xfc   : > { %v639_v42 = vunpack.i.h.bf16 %v637_v22  ;;  %v638_v43 = vunpack.i.l.bf16 %v637_v22 }
  0xfd   : > { %v448_v17 = vpack.c.bf16 %v440_v12, %v440_v12  ;;  %v446_v32 = vpack.c.bf16 %v438_v23, %v438_v23  ;;  %v431_v49 = vmax.f32 %v297_v56, %v654_v40  ;;  %v430_v0 = vmax.f32 %v296_v55, %v653_v41 }
  0xfe   : > { %v425_v61 = vmax.f32 %v291_v59, %v639_v42  ;;  %v424_v45 = vmax.f32 %v290_v20, %v638_v43  ;;  %v662_v46 = vpop.permute.xlu0 %661  ;;  %v647_v47 = vpop.permute.xlu1 %646  ;;  %v302_v55 = vmax.f32 %v286_v2, 0.0 }
  0xff   : > { %457 = vst.msk [vmem:[%s894_s29 + $0x8] sm:$0xf] %vm454_vm0, %v448_v17  ;;  %455 = vst.msk [vmem:[%s894_s29] sm:$0xf] %vm454_vm0, %v446_v32  ;;  %v442_v8 = vmax.f32 %v430_v0, %v431_v49  ;;  %v664_v11 = vunpack.i.h.bf16 %v662_v46  ;;  %v663_v3 = vunpack.i.l.bf16 %v662_v46  ;;  %v649_v10 = vunpack.i.h.bf16 %v647_v47 }
 0x100   : > { %v439_v4 = vmax.f32 %v424_v45, %v425_v61  ;;  %v648_v13 = vunpack.i.l.bf16 %v647_v47 }
 0x101   : > { %v450_v5 = vpack.c.bf16 %v442_v8, %v442_v8  ;;  %v435_v16 = vmax.f32 %v301_v27, %v664_v11  ;;  %v434_v48 = vmax.f32 %v300_v21, %v663_v3  ;;  %v429_v18 = vmax.f32 %v295_v44, %v649_v10 }
 0x102   : > { %v447_v50 = vpack.c.bf16 %v439_v4, %v439_v4  ;;  %v428_v6 = vmax.f32 %v294_v36, %v648_v13  ;;  %v657_v19 = vpop.permute.xlu1 %656 }
 0x103   : > { %459 = vst.msk [vmem:[%s894_s29 + $0x10] sm:$0xf] %vm454_vm0, %v450_v5  ;;  %v444_v51 = vmax.f32 %v434_v48, %v435_v16  ;;  %v659_v52 = vunpack.i.h.bf16 %v657_v19  ;;  %v658_v53 = vunpack.i.l.bf16 %v657_v19 }
 0x104   : > { %456 = vst.msk [vmem:[%s894_s29 + $0x4] sm:$0xf] %vm454_vm0, %v447_v50  ;;  %v441_v54 = vmax.f32 %v428_v6, %v429_v18 }
 0x105   : > { %v452_v1 = vpack.c.bf16 %v444_v51, %v444_v51  ;;  %v433_v56 = vmax.f32 %v299_v14, %v659_v52  ;;  %v432_v57 = vmax.f32 %v298_v9, %v658_v53 }
 0x106   : > { %v449_v20 = vpack.c.bf16 %v441_v54, %v441_v54  ;;  %v667_v59 = vpop.permute.xlu1 %666 }
 0x107   : > { %461 = vst.msk [vmem:[%s894_s29 + $0x18] sm:$0xf] %vm454_vm0, %v452_v1  ;;  %v443_v62 = vmax.f32 %v432_v57, %v433_v56  ;;  %v669_v63 = vunpack.i.h.bf16 %v667_v59  ;;  %v668_v24 = vunpack.i.l.bf16 %v667_v59 }
 0x108   : > { %458 = vst.msk [vmem:[%s894_s29 + $0xc] sm:$0xf] %vm454_vm0, %v449_v20 }
 0x109   : > { %v451_v25 = vpack.c.bf16 %v443_v62, %v443_v62  ;;  %v437_v26 = vmax.f32 %v303_v58, %v669_v63  ;;  %v436_v7 = vmax.f32 %v302_v55, %v668_v24 }
 0x10b   : > { %460 = vst.msk [vmem:[%s894_s29 + $0x14] sm:$0xf] %vm454_vm0, %v451_v25  ;;  %v445_v21 = vmax.f32 %v436_v7, %v437_v26 }
 0x10d   : > { %v453_v27 = vpack.c.bf16 %v445_v21, %v445_v21 }
 0x10f   : > { %462 = vst.msk [vmem:[%s894_s29 + $0x1c] sm:$0xf] %vm454_vm0, %v453_v27 }
 0x110 PF: > { %s13_s14 = sadd.s32 1, %s692_s14   ;;  %s928_s12 = smov %s688_s13 }
 0x111   : > { %p10_p5 = scmp.ge.s32.totalorder %s13_s14, 4   ;;  %s929_s13 = smov %s931_s15 }
 0x113   :  { %12 = sbr.rel (!%p10_p5) target bundleno = 2 (0x2), region = 62 }

// kernel: _lambda_.11
= control target key start
LH: loop header
LB: loop body
LE: loop exit
PB: predicated region body
PF: predicated region fallthrough
CT: control target
= control target key end

     0   :  { %s2209_s27 = smov 0   ;;  %s2211_s28 = smov 0   ;;  %s2566_s0 = inlined_call_operand.vmem [shape: bf16[2,8,8,8], index: 0, kind: input, shape index: {}, may-alias: {0,1,2}]   ;;  %s2567_s1 = inlined_call_operand.vmem [shape: bf16[2,8,8,8], index: 1, kind: input, shape index: {}, may-alias: {0,1,2}]   ;;  %s2568_s2 = inlined_call_operand.vmem [shape: bf16[2,8,8,8], index: 2, kind: input, shape index: {}, may-alias: {0,1,2}]   ;;  %s2569_s3 = inlined_call_operand.vmem [shape: bf16[9,8,16], index: 3, kind: input, shape index: {}]   ;;  %s2570_s4 = inlined_call_operand.vmem [shape: f32[1,16], index: 4, kind: input, shape index: {}]   ;;  %s2571_s5 = inlined_call_operand.vmem [shape: f32[1,1,8], index: 5, kind: input, shape index: {}]   ;;  %s2572_s6 = inlined_call_operand.vmem [shape: f32[1,1,8], index: 6, kind: input, shape index: {}]   ;;  %s2573_s7 = inlined_call_operand.vmem [shape: bf16[2,1,64,16], index: 7, kind: output, shape index: {0}]   ;;  %s2574_s8 = inlined_call_operand.vmem [shape: f32[2,1,2,16], index: 8, kind: output, shape index: {1}]  }
   0x1   :  { %s2213_s29 = smov 0  }
   0x2 LB: > { %s31_s5 = sadd.s32 1, %s2157_s28  ;;  %p1869_p0 = scmp.ge.s32.totalorder %s2161_s29, 1  ;;  %s2161_s29 = sphi %s2213_s29, %s19_s29   ;;  %s2157_s28 = sphi %s2211_s28, %s2576_s28   ;;  %s2153_s27 = sphi %s2209_s27, %s2575_s27  }
   0x3   : > { %p33_p1 = scmp.ge.s32.totalorder %s31_s5, 2  ;;  %p350_p2 = scmp.lt.s32.totalorder %s2161_s29, 3 }
   0x5   : > { %s2578_s5 = smov (%p33_p1, %s31_s5), 0  ;;  %p351_p3 = pnand %p1869_p0, %p350_p2 }
   0x6   : > { %v554_v0 = vld [vmem:[%s2569_s3] sm:$0xf] (!%p351_p3)  ;;  %vm574_vm0 = vcmask (!%p351_p3), 1043456   ;;  %p424_p4 = scmp.lt.s32.totalorder (!%p351_p3), %s2153_s27, 1  ;;  %vm482_vm1 = vcmask (!%p351_p3), 57344   ;;  %v2163_v2 = vmov (!%p351_p3), 0.0  }
   0x7   : > { %354 = sbr.rel (%p351_p3) target bundleno = 370 (0x172), region = 48  ;;  %2105 = vmatprep.subr.msk.bf16.mxu1 (!%p351_p3), %vm574_vm0, %v554_v0  ;;  %2104 = vmatprep.subr.msk.bf16.mxu0 (!%p351_p3), %vm574_vm0, %v554_v0  ;;  %v576_v1 = vsel (!%p351_p3), %vm574_vm0, %v554_v0, 0  ;;  %487 = vst.msk [vmem:[#allocation2 + $0x40] sm:$0x1] (!%p351_p3), %vm482_vm1, %v2163_v2  ;;  %488 = vst.msk [vmem:[#allocation2 + $0x50] sm:$0x1] (!%p351_p3), %vm482_vm1, %v2163_v2 }
   0x8   : > { %483 = vst.msk [vmem:[#allocation2] sm:$0x1] (!%p351_p3), %vm482_vm1, %v2163_v2  ;;  %484 = vst.msk [vmem:[#allocation2 + $0x10] sm:$0x1] (!%p351_p3), %vm482_vm1, %v2163_v2  ;;  %v1884_v3 = vld [vmem:[%s2569_s3 + $0x4] sm:$0xf] (!%p351_p3)  ;;  %2103 = vmatpush3.bf16.msra.mxu1 (!%p351_p3), %v576_v1  ;;  %2013 = vmatpush3.bf16.msra.mxu0 (!%p351_p3), %v576_v1 }
   0x9   : > { %485 = vst.msk [vmem:[#allocation2 + $0x20] sm:$0x1] (!%p351_p3), %vm482_vm1, %v2163_v2  ;;  %486 = vst.msk [vmem:[#allocation2 + $0x30] sm:$0x1] (!%p351_p3), %vm482_vm1, %v2163_v2  ;;  %v1889_v4 = vld [vmem:[%s2569_s3 + $0x8] sm:$0xf] (!%p351_p3)  ;;  %2106 = vmatprep.subr.msk.bf16.mxu1 (!%p351_p3), %vm574_vm0, %v1884_v3 }
   0xa   : > { %489 = vst.msk [vmem:[#allocation2 + $0x60] sm:$0x1] (!%p351_p3), %vm482_vm1, %v2163_v2  ;;  %490 = vst.msk [vmem:[#allocation2 + $0x70] sm:$0x1] (!%p351_p3), %vm482_vm1, %v2163_v2  ;;  %2107 = vmatprep.subr.msk.bf16.mxu0 (!%p351_p3), %vm574_vm0, %v1889_v4  ;;  %vm520_vm2 = vcmask (!%p351_p3), 64512   ;;  %v679_v31 = vsel (!%p351_p3), %vm574_vm0, %v1884_v3, 0 }
   0xb   : > { %491 = vst.msk [vmem:[#allocation2 + $0x80] sm:$0x1] (!%p351_p3), %vm482_vm1, %v2163_v2  ;;  %492 = vst.msk [vmem:[#allocation2 + $0x90] sm:$0x1] (!%p351_p3), %vm482_vm1, %v2163_v2  ;;  %v797_v38 = vsel (!%p351_p3), %vm574_vm0, %v1889_v4, 0  ;;  %vm643_vm3 = vcmask (!%p351_p3), 130048  }
   0xc   : > { %493 = vst.msk [vmem:[#allocation2 + $0x9] sm:$0x1] (!%p351_p3), %vm482_vm1, %v2163_v2  ;;  %494 = vst.msk [vmem:[#allocation2 + $0x19] sm:$0x1] (!%p351_p3), %vm482_vm1, %v2163_v2  ;;  %v1894_v39 = vld [vmem:[%s2569_s3 + $0xc] sm:$0xf] (!%p351_p3) }
   0xd   : > { %495 = vst.msk [vmem:[#allocation2 + $0x29] sm:$0x1] (!%p351_p3), %vm482_vm1, %v2163_v2  ;;  %496 = vst.msk [vmem:[#allocation2 + $0x39] sm:$0x1] (!%p351_p3), %vm482_vm1, %v2163_v2  ;;  %v1899_v40 = vld [vmem:[%s2569_s3 + $0x10] sm:$0xf] (!%p351_p3) }
   0xe   : > { %497 = vst.msk [vmem:[#allocation2 + $0x49] sm:$0x1] %vm482_vm1, %v2163_v2  ;;  %498 = vst.msk [vmem:[#allocation2 + $0x59] sm:$0x1] %vm482_vm1, %v2163_v2  ;;  %s2580_s27 = smov (!%p424_p4, %s2153_s27), 1  ;;  %v915_v53 = vsel %vm574_vm0, %v1894_v39, 0 }
   0xf   : > { %499 = vst.msk [vmem:[#allocation2 + $0x69] sm:$0x1] %vm482_vm1, %v2163_v2  ;;  %500 = vst.msk [vmem:[#allocation2 + $0x79] sm:$0x1] %vm482_vm1, %v2163_v2  ;;  %s2270_s13 = sshll.u32 %s2580_s27, 5  ;;  %v1033_v57 = vsel %vm574_vm0, %v1899_v40, 0 }
  0x10   : > { %501 = vst.msk [vmem:[#allocation2 + $0x89] sm:$0x1] %vm482_vm1, %v2163_v2  ;;  %502 = vst.msk [vmem:[#allocation2 + $0x99] sm:$0x1] %vm482_vm1, %v2163_v2  ;;  %s431_s16 = scalar_lea.vmem %s2566_s0, %s2270_s13  ;;  %s444_s19 = scalar_lea.vmem %s2567_s1, %s2270_s13  ;;  %v1904_v56 = vld [vmem:[%s2569_s3 + $0x14] sm:$0xf] }
  0x11   : > { %v1964_v5 = vld [vmem:[%s431_s16 + $0x8] sm:$0xff]   ;;  %v1965_v6 = vld [vmem:[%s431_s16 + $0x10] sm:$0xff]   ;;  %v1948_v7 = vld [vmem:[%s431_s16] sm:$0xff]   ;;  %s1937_s20 = sadd.s32 28, %s2270_s13  ;;  %s2518_s21 = scalar_lea.vmem %s2573_s7, %s2270_s13  ;;  %vm1690_vm4 = vcmask 125952   ;;  %vm1626_vm5 = vcmask 122880  }
  0x12   : > { %v1953_v8 = vunpack.c.l.bf16 %v1964_v5  ;;  %v1954_v9 = vunpack.c.h.bf16 %v1964_v5  ;;  %v1957_v10 = vunpack.c.l.bf16 %v1965_v6  ;;  %v1958_v11 = vunpack.c.h.bf16 %v1965_v6  ;;  %v529_v12 = vld [vmem:[%s444_s19] sm:$0xf]  ;;  %v1966_v13 = vld [vmem:[%s431_s16 + $0x18] sm:$0xff]   ;;  %s460_s23 = scalar_lea.vmem %s2568_s2, %s1937_s20  ;;  %s1878_s13 = sshll.u32 %s2580_s27, 1 }
  0x13   : > { %v1949_v14 = vunpack.c.l.bf16 %v1948_v7  ;;  %v1950_v15 = vunpack.c.h.bf16 %v1948_v7  ;;  %v530_v16 = vunpack.c.l.bf16 %v529_v12  ;;  %v1961_v17 = vunpack.c.l.bf16 %v1966_v13  ;;  %v532_v19 = vld [vmem:[%s460_s23] sm:$0xf]  ;;  %v1909_v60 = vld [vmem:[%s2569_s3 + $0x18] sm:$0xf]  ;;  %s480_s24 = scalar_lea.vmem %s2574_s8, %s1878_s13 }
  0x14   : > { %524 = vst.msk [vmem:[#allocation2 + $0x41] sm:$0xff] %vm520_vm2, %v1954_v9  ;;  %525 = vst.msk [vmem:[#allocation2 + $0x51] sm:$0xff] %vm520_vm2, %v1957_v10  ;;  %v1962_v18 = vunpack.c.h.bf16 %v1966_v13  ;;  %v533_v20 = vunpack.c.l.bf16 %v532_v19  ;;  %v1151_v5 = vsel %vm574_vm0, %v1904_v56, 0  ;;  %v1270_v9 = vsel %vm574_vm0, %v1909_v60, 0 }
  0x15   : > { %523 = vst.msk [vmem:[#allocation2 + $0x31] sm:$0xff] %vm520_vm2, %v1953_v8  ;;  %526 = vst.msk [vmem:[#allocation2 + $0x61] sm:$0xff] %vm520_vm2, %v1958_v11  ;;  %v1914_v8 = vld [vmem:[%s2569_s3 + $0x1c] sm:$0xf]  ;;  %v1919_v11 = vld [vmem:[%s2569_s3 + $0x20] sm:$0xf] }
  0x16   : > { %521 = vst.msk [vmem:[#allocation2 + $0x11] sm:$0xff] %vm520_vm2, %v1949_v14  ;;  %531 = vst.msk [vmem:[#allocation2 + $0x1] sm:$0xff] %vm520_vm2, %v530_v16  ;;  %v1506_v19 = vsel %vm574_vm0, %v1919_v11, 0 }
  0x17   : > { %522 = vst.msk [vmem:[#allocation2 + $0x21] sm:$0xff] %vm520_vm2, %v1950_v15  ;;  %527 = vst.msk [vmem:[#allocation2 + $0x71] sm:$0xff] %vm520_vm2, %v1961_v17 }
  0x18   : > { %540 = vst.msk [vmem:[#allocation2 + $0x1] sm:$0xff] %vm520_vm2, %v2163_v2  ;;  %528 = vst.msk [vmem:[#allocation2 + $0x81] sm:$0xff] %vm520_vm2, %v1962_v18  ;;  %v1388_v18 = vsel %vm574_vm0, %v1914_v8, 0 }
  0x19   : > { %535 = vst.msk [vmem:[#allocation2 + $0x91] sm:$0xff] %vm520_vm2, %v533_v20 }
  0x1a   : > { %541 = vst.msk [vmem:[#allocation2 + $0x91] sm:$0xff] %vm520_vm2, %v2163_v2 }
  0x1b   : > { %v2296_v21 = vld [vmem:[#allocation2 + $0x40] sm:$0xff]  ;;  %v2298_v22 = vld [vmem:[#allocation2 + $0x50] sm:$0xff] }
  0x1c   : > { %v2300_v23 = vld [vmem:[#allocation2 + $0x60] sm:$0xff]  ;;  %v2304_v24 = vpack.c.bf16 %v2298_v22, %v2296_v21  ;;  %v2312_v30 = vld [vmem:[#allocation2 + $0x30] sm:$0xff] }
  0x1d   : > { %v543_v25 = vld [vmem:[#allocation2 + $0x10] sm:$0xff]  ;;  %v656_v44 = vld [vmem:[#allocation2 + $0x41] sm:$0xff]  ;;  %v897_v3 = vpack.c.bf16 %v2296_v21, %v2312_v30  ;;  %v898_v4 = vpack.c.bf16 %v2300_v23, %v2298_v22 }
  0x1e   : > { %v2306_v26 = vld [vmem:[#allocation2 + $0x70] sm:$0xff]  ;;  %v544_v27 = vld [vmem:[#allocation2 + $0x20] sm:$0xff]  ;;  %2018 = vmatprep.mubr.msk.bf16.mxu1 %vm520_vm2, %v2304_v24 }
  0x1f   : > { %v542_v28 = vld [vmem:[#allocation2] sm:$0xff]  ;;  %v2310_v29 = vpack.c.bf16 %v2306_v26, %v2300_v23  ;;  %v2318_v34 = vpack.c.bf16 %v2312_v30, %v544_v27  ;;  %v653_v35 = vld [vmem:[#allocation2 + $0x11] sm:$0xff]  ;;  %v896_v0 = vpack.c.bf16 %v544_v27, %v543_v25 }
  0x20   : > { %v652_v32 = vld [vmem:[#allocation2 + $0x1] sm:$0xff]  ;;  %v550_v33 = vpack.c.bf16 %v543_v25, %v542_v28  ;;  %v655_v41 = vld [vmem:[#allocation2 + $0x31] sm:$0xff]  ;;  %v1879_v28 = vld [vmem:[%s2570_s4] ss:$0 sm:$0xff] }
  0x21   : > { %2019 = vmatmul.mubr.msk.bf16.vlgmr.msra.gmra.mrb[0].mxu1 %vm520_vm2, %v2310_v29  ;;  %v660_v36 = vpack.c.bf16 %v653_v35, %v652_v32  ;;  %v654_v37 = vld [vmem:[#allocation2 + $0x21] sm:$0xff]  ;;  %v2330_v43 = vld [vmem:[#allocation2 + $0x12] sm:$0xff]  ;;  %v1015_v6 = vpack.c.bf16 %v656_v44, %v655_v41 }
  0x22   : > { %2014 = vmatprep.mubr.msk.bf16.mxu0 %vm520_vm2, %v550_v33  ;;  %2023 = vmatpush3.bf16.msra.mxu1 %v679_v31  ;;  %v770_v42 = vld [vmem:[#allocation2 + $0x2] sm:$0xff]  ;;  %v657_v45 = vld [vmem:[#allocation2 + $0x51] sm:$0xff]  ;;  %v2337_v49 = vpack.c.bf16 %v655_v41, %v654_v37  ;;  %v1014_v2 = vpack.c.bf16 %v654_v37, %v653_v35 }
  0x23   : > { %2015 = vmatmul.mubr.msk.bf16.vlgmr.msra.gmra.mrb[0].mxu0 %vm520_vm2, %v2318_v34  ;;  %2024 = vmatprep.mubr.msk.bf16.mxu1 %vm520_vm2, %v660_v36  ;;  %v778_v46 = vpack.c.bf16 %v2330_v43, %v770_v42  ;;  %v772_v47 = vld [vmem:[#allocation2 + $0x22] sm:$0xff]  ;;  %v773_v48 = vld [vmem:[#allocation2 + $0x32] sm:$0xff]  ;;  %v2341_v52 = vpack.c.bf16 %v657_v45, %v656_v44 }
  0x24   : > { %2033 = vmatpush3.bf16.msra.mxu0 %v797_v38  ;;  %2108 = vmatprep.subr.msk.bf16.mxu1 %vm574_vm0, %v1894_v39  ;;  %v774_v50 = vld [vmem:[#allocation2 + $0x42] sm:$0xff]  ;;  %v775_v51 = vld [vmem:[#allocation2 + $0x52] sm:$0xff]  ;;  %v2344_v54 = vpack.c.bf16 %v773_v48, %v772_v47  ;;  %v1132_v14 = vpack.c.bf16 %v772_v47, %v2330_v43 }
  0x25   : > { %2034 = vmatprep.mubr.msk.bf16.mxu0 %vm520_vm2, %v778_v46  ;;  %2109 = vmatprep.subr.msk.bf16.mxu0 %vm574_vm0, %v1899_v40  ;;  %v2346_v55 = vpack.c.bf16 %v775_v51, %v774_v50  ;;  %v658_v58 = vld [vmem:[#allocation2 + $0x61] sm:$0xff]  ;;  %v659_v59 = vld [vmem:[#allocation2 + $0x71] sm:$0xff]  ;;  %v1133_v16 = vpack.c.bf16 %v774_v50, %v773_v48 }
  0x26   : > { %v776_v61 = vld [vmem:[#allocation2 + $0x62] sm:$0xff]  ;;  %v777_v62 = vld [vmem:[#allocation2 + $0x72] sm:$0xff]  ;;  %v663_v63 = vpack.c.bf16 %v659_v59, %v658_v58  ;;  %v1016_v7 = vpack.c.bf16 %v658_v58, %v657_v45 }
  0x27   : > { %v781_v1 = vpack.c.bf16 %v777_v62, %v776_v61  ;;  %v895_v10 = vld [vmem:[#allocation2 + $0x80] sm:$0xff]  ;;  %v1134_v17 = vpack.c.bf16 %v776_v61, %v775_v51  ;;  %v1250_v21 = vld [vmem:[#allocation2 + $0x90] sm:$0xff] }
  0x28   : > { %v1013_v12 = vld [vmem:[#allocation2 + $0x81] sm:$0xff]  ;;  %v899_v13 = vpack.c.bf16 %v895_v10, %v2306_v26  ;;  %v1254_v23 = vpack.c.bf16 %v1250_v21, %v895_v10  ;;  %v1486_v25 = vld [vmem:[#allocation2 + $0x92] sm:$0xff] }
  0x29   : > { %2025 = vmatmul.mubr.msk.bf16.vlgmr.msra.gmra.mrb[4].mxu1 %vm520_vm2, %v2337_v49  ;;  %v1017_v15 = vpack.c.bf16 %v1013_v12, %v659_v59  ;;  %v1131_v20 = vld [vmem:[#allocation2 + $0x82] sm:$0xff] }
  0x2a   : > { %2028 = vmatprep.mubr.msk.bf16.mxu1 %vm520_vm2, %v2341_v52  ;;  %2043 = vmatpush3.bf16.msra.mxu1 %v915_v53  ;;  %v1135_v22 = vpack.c.bf16 %v1131_v20, %v777_v62  ;;  %v1490_v27 = vpack.c.bf16 %v1486_v25, %v1131_v20 }
  0x2b   : > { %2035 = vmatmul.mubr.msk.bf16.vlgmr.msra.gmra.mrb[4].mxu0 %vm520_vm2, %v2344_v54  ;;  %2110 = vmatprep.subr.msk.bf16.mxu1 %vm574_vm0, %v1904_v56 }
  0x2c   : > { %2038 = vmatprep.mubr.msk.bf16.mxu0 %vm520_vm2, %v2346_v55  ;;  %2053 = vmatpush3.bf16.msra.mxu0 %v1033_v57 }
  0x2d   : > { %2111 = vmatprep.subr.msk.bf16.mxu0 %vm574_vm0, %v1909_v60 }
  0x31   : > { %2029 = vmatmul.mubr.msk.bf16.gmra.mrb[8].mxu1 %vm520_vm2, %v663_v63 }
  0x32   : > { %2044 = vmatprep.mubr.msk.bf16.mxu1 %vm520_vm2, %v896_v0 }
  0x33   : > { %2039 = vmatmul.mubr.msk.bf16.gmra.mrb[8].mxu0 %vm520_vm2, %v781_v1 }
  0x34   : > { %2054 = vmatprep.mubr.msk.bf16.mxu0 %vm520_vm2, %v1014_v2 }
  0x39   : > { %2045 = vmatmul.mubr.msk.bf16.vlgmr.msra.gmra.mrb[12].mxu1 %vm520_vm2, %v897_v3 }
  0x3a   : > { %2048 = vmatprep.mubr.msk.bf16.mxu1 %vm520_vm2, %v898_v4  ;;  %2063 = vmatpush3.bf16.msra.mxu1 %v1151_v5 }
  0x3b   : > { %2055 = vmatmul.mubr.msk.bf16.vlgmr.msra.gmra.mrb[12].mxu0 %vm520_vm2, %v1015_v6  ;;  %2112 = vmatprep.subr.msk.bf16.mxu1 %vm574_vm0, %v1914_v8 }
  0x3c   : > { %2058 = vmatprep.mubr.msk.bf16.mxu0 %vm520_vm2, %v1016_v7  ;;  %2073 = vmatpush3.bf16.msra.mxu0 %v1270_v9 }
  0x3d   : > { %2113 = vmatprep.subr.msk.bf16.mxu0 %vm574_vm0, %v1919_v11 }
  0x41   : > { %2049 = vmatmul.mubr.msk.bf16.gmra.mrb[16].mxu1 %vm520_vm2, %v899_v13 }
  0x42   : > { %2064 = vmatprep.mubr.msk.bf16.mxu1 %vm520_vm2, %v1132_v14 }
  0x43   : > { %2059 = vmatmul.mubr.msk.bf16.gmra.mrb[16].mxu0 %vm520_vm2, %v1017_v15 }
  0x44   : > { %2074 = vmatprep.mubr.msk.bf16.mxu0 %vm520_vm2, %v2318_v34 }
  0x49   : > { %2065 = vmatmul.mubr.msk.bf16.vlgmr.msra.gmra.mrb[20].mxu1 %vm520_vm2, %v1133_v16 }
  0x4a   : > { %2068 = vmatprep.mubr.msk.bf16.mxu1 %vm520_vm2, %v1134_v17  ;;  %2083 = vmatpush3.bf16.msra.mxu1 %v1388_v18 }
  0x4b   : > { %2075 = vmatmul.mubr.msk.bf16.vlgmr.msra.gmra.mrb[20].mxu0 %vm520_vm2, %v2304_v24  ;;  %v1368_v24 = vld [vmem:[#allocation2 + $0x91] sm:$0xff] }
  0x4c   : > { %2078 = vmatprep.mubr.msk.bf16.mxu0 %vm520_vm2, %v2310_v29  ;;  %2093 = vmatpush3.bf16.msra.mxu0 %v1506_v19  ;;  %v1372_v26 = vpack.c.bf16 %v1368_v24, %v1013_v12 }
  0x51   : > { %2069 = vmatmul.mubr.msk.bf16.gmra.mrb[24].mxu1 %vm520_vm2, %v1135_v22 }
  0x52   : > { %2084 = vmatprep.mubr.msk.bf16.mxu1 %vm520_vm2, %v2337_v49 }
  0x53   : > { %2079 = vmatmul.mubr.msk.bf16.gmra.mrb[24].mxu0 %vm520_vm2, %v1254_v23 }
  0x54   : > { %2094 = vmatprep.mubr.msk.bf16.mxu0 %vm520_vm2, %v2344_v54 }
  0x59   : > { %2085 = vmatmul.mubr.msk.bf16.vlgmr.msra.gmra.mrb[28].mxu1 %vm520_vm2, %v2341_v52 }
  0x5a   : > { %2088 = vmatprep.mubr.msk.bf16.mxu1 %vm520_vm2, %v663_v63 }
  0x5b   : > { %2095 = vmatmul.mubr.msk.bf16.vlgmr.msra.gmra.mrb[28].mxu0 %vm520_vm2, %v2346_v55 }
  0x5c   : > { %2098 = vmatprep.mubr.msk.bf16.mxu0 %vm520_vm2, %v781_v1 }
  0x61   : > { %2089 = vmatmul.mubr.msk.bf16.gmra.mrb[32].mxu1 %vm520_vm2, %v1372_v26 }
  0x63   : > { %2099 = vmatmul.mubr.msk.bf16.gmra.mrb[32].mxu0 %vm520_vm2, %v1490_v27 }
  0xf4   : > { %v2020_v29 = vpop.f32.mrb[0].mxu1 }
  0xf5   : > { %v637_v30 = vadd.f32 %v2020_v29, %v1879_v28  ;;  %v628_v31 = vpop.f32.mrb[1].mxu1 }
  0xf6   : > { %v2016_v32 = vpop.f32.mrb[0].mxu0  ;;  %v629_v33 = vadd.f32 %v1879_v28, %v628_v31  ;;  %v2021_v34 = vpop.f32.mrb[2].mxu1 }
  0xf7   : > { %650 = vst.msk [vmem:[#allocation3 + $0x30] sm:$0xff] %vm643_vm3, %v637_v30  ;;  %v621_v35 = vadd.f32 %v2016_v32, %v1879_v28  ;;  %v612_v36 = vpop.f32.mrb[1].mxu0  ;;  %v640_v37 = vadd.f32 %v2021_v34, %v1879_v28  ;;  %v631_v38 = vpop.f32.mrb[3].mxu1 }
  0xf8   : > { %648 = vst.msk [vmem:[#allocation3 + $0x20] sm:$0xff] %vm643_vm3, %v629_v33  ;;  %v613_v39 = vadd.f32 %v1879_v28, %v612_v36  ;;  %v2017_v40 = vpop.f32.mrb[2].mxu0  ;;  %v632_v41 = vadd.f32 %v1879_v28, %v631_v38 }
  0xf9   : > { %646 = vst.msk [vmem:[#allocation3 + $0x10] sm:$0xff] %vm643_vm3, %v621_v35  ;;  %651 = vst.msk [vmem:[#allocation3 + $0x38] sm:$0xff] %vm643_vm3, %v640_v37  ;;  %v624_v42 = vadd.f32 %v2017_v40, %v1879_v28  ;;  %v615_v43 = vpop.f32.mrb[3].mxu0 }
  0xfa   : > { %644 = vst.msk [vmem:[#allocation3] sm:$0xff] %vm643_vm3, %v613_v39  ;;  %649 = vst.msk [vmem:[#allocation3 + $0x28] sm:$0xff] %vm643_vm3, %v632_v41  ;;  %v616_v44 = vadd.f32 %v1879_v28, %v615_v43 }
  0xfb   : > { %647 = vst.msk [vmem:[#allocation3 + $0x18] sm:$0xff] %vm643_vm3, %v624_v42 }
  0xfc   : > { %645 = vst.msk [vmem:[#allocation3 + $0x8] sm:$0xff] %vm643_vm3, %v616_v44  ;;  %v2026_v45 = vpop.f32.mrb[4].mxu1 }
  0xfd   : > { %v715_v46 = vpop.f32.mrb[5].mxu1 }
  0xfe   : > { %v2027_v47 = vpop.f32.mrb[6].mxu1  ;;  %v2036_v48 = vpop.f32.mrb[4].mxu0  ;;  %v752_v62 = vld [vmem:[#allocation3 + $0x30] sm:$0xff] }
  0xff   : > { %v718_v49 = vpop.f32.mrb[7].mxu1  ;;  %v833_v50 = vpop.f32.mrb[5].mxu0  ;;  %v750_v1 = vld [vmem:[#allocation3 + $0x20] sm:$0xff] }
 0x100   : > { %v748_v51 = vld [vmem:[#allocation3 + $0x10] sm:$0xff]  ;;  %v2037_v52 = vpop.f32.mrb[6].mxu0  ;;  %v753_v4 = vld [vmem:[#allocation3 + $0x38] sm:$0xff] }
 0x101   : > { %v756_v53 = vadd.f32 %v2026_v45, %v748_v51  ;;  %v746_v54 = vld [vmem:[#allocation3] sm:$0xff]  ;;  %v836_v55 = vpop.f32.mrb[7].mxu0  ;;  %v751_v8 = vld [vmem:[#allocation3 + $0x28] sm:$0xff] }
 0x102   : > { %v754_v56 = vadd.f32 %v746_v54, %v715_v46  ;;  %v749_v57 = vld [vmem:[#allocation3 + $0x18] sm:$0xff] }
 0x103   : > { %764 = vst.msk [vmem:[#allocation3 + $0x10] sm:$0xff] %vm643_vm3, %v756_v53  ;;  %v757_v58 = vadd.f32 %v2027_v47, %v749_v57  ;;  %v747_v59 = vld [vmem:[#allocation3 + $0x8] sm:$0xff] }
 0x104   : > { %762 = vst.msk [vmem:[#allocation3] sm:$0xff] %vm643_vm3, %v754_v56  ;;  %v755_v60 = vadd.f32 %v747_v59, %v718_v49  ;;  %v2030_v61 = vpop.f32.mrb[8].mxu1 }
 0x105   : > { %765 = vst.msk [vmem:[#allocation3 + $0x18] sm:$0xff] %vm643_vm3, %v757_v58  ;;  %v760_v63 = vadd.f32 %v2030_v61, %v752_v62  ;;  %v731_v0 = vpop.f32.mrb[9].mxu1 }
 0x106   : > { %763 = vst.msk [vmem:[#allocation3 + $0x8] sm:$0xff] %vm643_vm3, %v755_v60  ;;  %v758_v2 = vadd.f32 %v750_v1, %v731_v0  ;;  %v2031_v3 = vpop.f32.mrb[10].mxu1  ;;  %v2040_v5 = vpop.f32.mrb[8].mxu0 }
 0x107   : > { %768 = vst.msk [vmem:[#allocation3 + $0x30] sm:$0xff] %vm643_vm3, %v760_v63  ;;  %v761_v6 = vadd.f32 %v2031_v3, %v753_v4  ;;  %v734_v7 = vpop.f32.mrb[11].mxu1  ;;  %v849_v9 = vpop.f32.mrb[9].mxu0 }
 0x108   : > { %766 = vst.msk [vmem:[#allocation3 + $0x20] sm:$0xff] %vm643_vm3, %v758_v2  ;;  %v759_v10 = vadd.f32 %v751_v8, %v734_v7  ;;  %v2041_v11 = vpop.f32.mrb[10].mxu0 }
 0x109   : > { %769 = vst.msk [vmem:[#allocation3 + $0x38] sm:$0xff] %vm643_vm3, %v761_v6  ;;  %v852_v12 = vpop.f32.mrb[11].mxu0 }
 0x10a   : > { %v866_v13 = vld [vmem:[#allocation3 + $0x10] sm:$0xff]  ;;  %767 = vst.msk [vmem:[#allocation3 + $0x28] sm:$0xff] %vm643_vm3, %v759_v10 }
 0x10b   : > { %v874_v14 = vadd.f32 %v2036_v48, %v866_v13  ;;  %v864_v15 = vld [vmem:[#allocation3] sm:$0xff] }
 0x10c   : > { %v872_v16 = vadd.f32 %v864_v15, %v833_v50  ;;  %v867_v17 = vld [vmem:[#allocation3 + $0x18] sm:$0xff]  ;;  %v2046_v18 = vpop.f32.mrb[12].mxu1 }
 0x10d   : > { %882 = vst.msk [vmem:[#allocation3 + $0x10] sm:$0xff] %vm643_vm3, %v874_v14  ;;  %v875_v19 = vadd.f32 %v2037_v52, %v867_v17  ;;  %v865_v20 = vld [vmem:[#allocation3 + $0x8] sm:$0xff]  ;;  %v951_v21 = vpop.f32.mrb[13].mxu1 }
 0x10e   : > { %880 = vst.msk [vmem:[#allocation3] sm:$0xff] %vm643_vm3, %v872_v16  ;;  %v873_v22 = vadd.f32 %v865_v20, %v836_v55  ;;  %v870_v23 = vld [vmem:[#allocation3 + $0x30] sm:$0xff]  ;;  %v2047_v24 = vpop.f32.mrb[14].mxu1  ;;  %v2056_v25 = vpop.f32.mrb[12].mxu0 }
 0x10f   : > { %883 = vst.msk [vmem:[#allocation3 + $0x18] sm:$0xff] %vm643_vm3, %v875_v19  ;;  %v878_v26 = vadd.f32 %v2040_v5, %v870_v23  ;;  %v868_v27 = vld [vmem:[#allocation3 + $0x20] sm:$0xff]  ;;  %v954_v28 = vpop.f32.mrb[15].mxu1  ;;  %v1069_v29 = vpop.f32.mrb[13].mxu0 }
 0x110   : > { %881 = vst.msk [vmem:[#allocation3 + $0x8] sm:$0xff] %vm643_vm3, %v873_v22  ;;  %v876_v30 = vadd.f32 %v868_v27, %v849_v9  ;;  %v871_v31 = vld [vmem:[#allocation3 + $0x38] sm:$0xff]  ;;  %v2057_v32 = vpop.f32.mrb[14].mxu0 }
 0x111   : > { %886 = vst.msk [vmem:[#allocation3 + $0x30] sm:$0xff] %vm643_vm3, %v878_v26  ;;  %v879_v33 = vadd.f32 %v2041_v11, %v871_v31  ;;  %v869_v34 = vld [vmem:[#allocation3 + $0x28] sm:$0xff]  ;;  %v1072_v35 = vpop.f32.mrb[15].mxu0 }
 0x112   : > { %884 = vst.msk [vmem:[#allocation3 + $0x20] sm:$0xff] %vm643_vm3, %v876_v30  ;;  %v877_v36 = vadd.f32 %v869_v34, %v852_v12 }
 0x113   : > { %887 = vst.msk [vmem:[#allocation3 + $0x38] sm:$0xff] %vm643_vm3, %v879_v33 }
 0x114   : > { %v984_v37 = vld [vmem:[#allocation3 + $0x10] sm:$0xff]  ;;  %885 = vst.msk [vmem:[#allocation3 + $0x28] sm:$0xff] %vm643_vm3, %v877_v36  ;;  %v2050_v38 = vpop.f32.mrb[16].mxu1 }
 0x115   : > { %v992_v39 = vadd.f32 %v2046_v18, %v984_v37  ;;  %v982_v40 = vld [vmem:[#allocation3] sm:$0xff]  ;;  %v967_v41 = vpop.f32.mrb[17].mxu1 }
 0x116   : > { %v990_v42 = vadd.f32 %v982_v40, %v951_v21  ;;  %v985_v43 = vld [vmem:[#allocation3 + $0x18] sm:$0xff]  ;;  %v2051_v44 = vpop.f32.mrb[18].mxu1  ;;  %v2060_v45 = vpop.f32.mrb[16].mxu0 }
 0x117   : > { %1000 = vst.msk [vmem:[#allocation3 + $0x10] sm:$0xff] %vm643_vm3, %v992_v39  ;;  %v993_v46 = vadd.f32 %v2047_v24, %v985_v43  ;;  %v983_v47 = vld [vmem:[#allocation3 + $0x8] sm:$0xff]  ;;  %v970_v48 = vpop.f32.mrb[19].mxu1  ;;  %v1085_v49 = vpop.f32.mrb[17].mxu0 }
 0x118   : > { %998 = vst.msk [vmem:[#allocation3] sm:$0xff] %vm643_vm3, %v990_v42  ;;  %v991_v50 = vadd.f32 %v983_v47, %v954_v28  ;;  %v988_v51 = vld [vmem:[#allocation3 + $0x30] sm:$0xff]  ;;  %v2061_v52 = vpop.f32.mrb[18].mxu0 }
 0x119   : > { %1001 = vst.msk [vmem:[#allocation3 + $0x18] sm:$0xff] %vm643_vm3, %v993_v46  ;;  %v996_v53 = vadd.f32 %v2050_v38, %v988_v51  ;;  %v986_v54 = vld [vmem:[#allocation3 + $0x20] sm:$0xff]  ;;  %v1088_v55 = vpop.f32.mrb[19].mxu0 }
 0x11a   : > { %999 = vst.msk [vmem:[#allocation3 + $0x8] sm:$0xff] %vm643_vm3, %v991_v50  ;;  %v994_v56 = vadd.f32 %v986_v54, %v967_v41  ;;  %v989_v57 = vld [vmem:[#allocation3 + $0x38] sm:$0xff] }
 0x11b   : > { %1004 = vst.msk [vmem:[#allocation3 + $0x30] sm:$0xff] %vm643_vm3, %v996_v53  ;;  %v997_v58 = vadd.f32 %v2051_v44, %v989_v57  ;;  %v987_v59 = vld [vmem:[#allocation3 + $0x28] sm:$0xff] }
 0x11c   : > { %1002 = vst.msk [vmem:[#allocation3 + $0x20] sm:$0xff] %vm643_vm3, %v994_v56  ;;  %v995_v60 = vadd.f32 %v987_v59, %v970_v48  ;;  %v2066_v61 = vpop.f32.mrb[20].mxu1 }
 0x11d   : > { %1005 = vst.msk [vmem:[#allocation3 + $0x38] sm:$0xff] %vm643_vm3, %v997_v58  ;;  %v1187_v62 = vpop.f32.mrb[21].mxu1 }
 0x11e   : > { %v1102_v63 = vld [vmem:[#allocation3 + $0x10] sm:$0xff]  ;;  %1003 = vst.msk [vmem:[#allocation3 + $0x28] sm:$0xff] %vm643_vm3, %v995_v60  ;;  %v2067_v0 = vpop.f32.mrb[22].mxu1  ;;  %v2451_v1 = vpop.f32.mrb[20].mxu0 }
 0x11f   : > { %v1110_v2 = vadd.f32 %v2056_v25, %v1102_v63  ;;  %v1100_v3 = vld [vmem:[#allocation3] sm:$0xff]  ;;  %v1190_v4 = vpop.f32.mrb[23].mxu1  ;;  %v2453_v5 = vpop.f32.mrb[21].mxu0 }
 0x120   : > { %v1108_v6 = vadd.f32 %v1100_v3, %v1069_v29  ;;  %v1103_v7 = vld [vmem:[#allocation3 + $0x18] sm:$0xff]  ;;  %v2455_v8 = vpop.f32.mrb[22].mxu0 }
 0x121   : > { %1118 = vst.msk [vmem:[#allocation3 + $0x10] sm:$0xff] %vm643_vm3, %v1110_v2  ;;  %v1111_v9 = vadd.f32 %v2057_v32, %v1103_v7  ;;  %v1101_v10 = vld [vmem:[#allocation3 + $0x8] sm:$0xff]  ;;  %v2458_v11 = vpop.f32.mrb[23].mxu0 }
 0x122   : > { %1116 = vst.msk [vmem:[#allocation3] sm:$0xff] %vm643_vm3, %v1108_v6  ;;  %v1109_v12 = vadd.f32 %v1101_v10, %v1072_v35  ;;  %v1106_v13 = vld [vmem:[#allocation3 + $0x30] sm:$0xff] }
 0x123   : > { %1119 = vst.msk [vmem:[#allocation3 + $0x18] sm:$0xff] %vm643_vm3, %v1111_v9  ;;  %v1114_v14 = vadd.f32 %v2060_v45, %v1106_v13  ;;  %v1104_v15 = vld [vmem:[#allocation3 + $0x20] sm:$0xff] }
 0x124   : > { %1117 = vst.msk [vmem:[#allocation3 + $0x8] sm:$0xff] %vm643_vm3, %v1109_v12  ;;  %v1112_v16 = vadd.f32 %v1104_v15, %v1085_v49  ;;  %v1107_v17 = vld [vmem:[#allocation3 + $0x38] sm:$0xff]  ;;  %v2070_v18 = vpop.f32.mrb[24].mxu1 }
 0x125   : > { %1122 = vst.msk [vmem:[#allocation3 + $0x30] sm:$0xff] %vm643_vm3, %v1114_v14  ;;  %v1115_v19 = vadd.f32 %v2061_v52, %v1107_v17  ;;  %v1105_v20 = vld [vmem:[#allocation3 + $0x28] sm:$0xff]  ;;  %v1203_v21 = vpop.f32.mrb[25].mxu1 }
 0x126   : > { %1120 = vst.msk [vmem:[#allocation3 + $0x20] sm:$0xff] %vm643_vm3, %v1112_v16  ;;  %v1113_v22 = vadd.f32 %v1105_v20, %v1088_v55  ;;  %v2071_v23 = vpop.f32.mrb[26].mxu1  ;;  %v2080_v24 = vpop.f32.mrb[24].mxu0 }
 0x127   : > { %1123 = vst.msk [vmem:[#allocation3 + $0x38] sm:$0xff] %vm643_vm3, %v1115_v19  ;;  %v1206_v25 = vpop.f32.mrb[27].mxu1  ;;  %v1322_v26 = vpop.f32.mrb[25].mxu0 }
 0x128   : > { %v1220_v27 = vld [vmem:[#allocation3 + $0x10] sm:$0xff]  ;;  %1121 = vst.msk [vmem:[#allocation3 + $0x28] sm:$0xff] %vm643_vm3, %v1113_v22  ;;  %v2081_v28 = vpop.f32.mrb[26].mxu0 }
 0x129   : > { %v1228_v29 = vadd.f32 %v2066_v61, %v1220_v27  ;;  %v1218_v30 = vld [vmem:[#allocation3] sm:$0xff]  ;;  %v1325_v31 = vpop.f32.mrb[27].mxu0 }
 0x12a   : > { %v1226_v32 = vadd.f32 %v1218_v30, %v1187_v62  ;;  %v1221_v33 = vld [vmem:[#allocation3 + $0x18] sm:$0xff] }
 0x12b   : > { %1236 = vst.msk [vmem:[#allocation3 + $0x10] sm:$0xff] %vm643_vm3, %v1228_v29  ;;  %v1229_v34 = vadd.f32 %v2067_v0, %v1221_v33  ;;  %v1219_v35 = vld [vmem:[#allocation3 + $0x8] sm:$0xff] }
 0x12c   : > { %1234 = vst.msk [vmem:[#allocation3] sm:$0xff] %vm643_vm3, %v1226_v32  ;;  %v1227_v36 = vadd.f32 %v1219_v35, %v1190_v4  ;;  %v1224_v37 = vld [vmem:[#allocation3 + $0x30] sm:$0xff]  ;;  %v2086_v38 = vpop.f32.mrb[28].mxu1 }
 0x12d   : > { %1237 = vst.msk [vmem:[#allocation3 + $0x18] sm:$0xff] %vm643_vm3, %v1229_v34  ;;  %v1232_v39 = vadd.f32 %v2070_v18, %v1224_v37  ;;  %v1222_v40 = vld [vmem:[#allocation3 + $0x20] sm:$0xff]  ;;  %v1424_v41 = vpop.f32.mrb[29].mxu1 }
 0x12e   : > { %1235 = vst.msk [vmem:[#allocation3 + $0x8] sm:$0xff] %vm643_vm3, %v1227_v36  ;;  %v1230_v42 = vadd.f32 %v1222_v40, %v1203_v21  ;;  %v1225_v43 = vld [vmem:[#allocation3 + $0x38] sm:$0xff]  ;;  %v2087_v44 = vpop.f32.mrb[30].mxu1  ;;  %v2471_v45 = vpop.f32.mrb[28].mxu0 }
 0x12f   : > { %1240 = vst.msk [vmem:[#allocation3 + $0x30] sm:$0xff] %vm643_vm3, %v1232_v39  ;;  %v1233_v46 = vadd.f32 %v2071_v23, %v1225_v43  ;;  %v1223_v47 = vld [vmem:[#allocation3 + $0x28] sm:$0xff]  ;;  %v1427_v48 = vpop.f32.mrb[31].mxu1  ;;  %v2474_v49 = vpop.f32.mrb[29].mxu0 }
 0x130   : > { %1238 = vst.msk [vmem:[#allocation3 + $0x20] sm:$0xff] %vm643_vm3, %v1230_v42  ;;  %v1231_v50 = vadd.f32 %v1223_v47, %v1206_v25  ;;  %v2477_v51 = vpop.f32.mrb[30].mxu0 }
 0x131   : > { %1241 = vst.msk [vmem:[#allocation3 + $0x38] sm:$0xff] %vm643_vm3, %v1233_v46  ;;  %v2480_v52 = vpop.f32.mrb[31].mxu0 }
 0x132   : > { %v1339_v53 = vld [vmem:[#allocation3 + $0x10] sm:$0xff]  ;;  %1239 = vst.msk [vmem:[#allocation3 + $0x28] sm:$0xff] %vm643_vm3, %v1231_v50 }
 0x133   : > { %v1347_v54 = vadd.f32 %v2451_v1, %v1339_v53  ;;  %v1337_v55 = vld [vmem:[#allocation3] sm:$0xff] }
 0x134   : > { %v1345_v56 = vadd.f32 %v1337_v55, %v2453_v5  ;;  %v1340_v57 = vld [vmem:[#allocation3 + $0x18] sm:$0xff]  ;;  %v2090_v58 = vpop.f32.mrb[32].mxu1 }
 0x135   : > { %1355 = vst.msk [vmem:[#allocation3 + $0x10] sm:$0xff] %vm643_vm3, %v1347_v54  ;;  %v1348_v59 = vadd.f32 %v2455_v8, %v1340_v57  ;;  %v1338_v60 = vld [vmem:[#allocation3 + $0x8] sm:$0xff]  ;;  %v1440_v61 = vpop.f32.mrb[33].mxu1 }
 0x136   : > { %1353 = vst.msk [vmem:[#allocation3] sm:$0xff] %vm643_vm3, %v1345_v56  ;;  %v1346_v62 = vadd.f32 %v1338_v60, %v2458_v11  ;;  %v1343_v63 = vld [vmem:[#allocation3 + $0x30] sm:$0xff]  ;;  %v2091_v0 = vpop.f32.mrb[34].mxu1  ;;  %v2100_v2 = vpop.f32.mrb[32].mxu0 }
 0x137   : > { %1356 = vst.msk [vmem:[#allocation3 + $0x18] sm:$0xff] %vm643_vm3, %v1348_v59  ;;  %v1351_v1 = vadd.f32 %v2080_v24, %v1343_v63  ;;  %v1341_v3 = vld [vmem:[#allocation3 + $0x20] sm:$0xff]  ;;  %v1443_v4 = vpop.f32.mrb[35].mxu1  ;;  %v1558_v5 = vpop.f32.mrb[33].mxu0 }
 0x138   : > { %1354 = vst.msk [vmem:[#allocation3 + $0x8] sm:$0xff] %vm643_vm3, %v1346_v62  ;;  %v1349_v6 = vadd.f32 %v1341_v3, %v1322_v26  ;;  %v1344_v7 = vld [vmem:[#allocation3 + $0x38] sm:$0xff]  ;;  %v2101_v8 = vpop.f32.mrb[34].mxu0 }
 0x139   : > { %1359 = vst.msk [vmem:[#allocation3 + $0x30] sm:$0xff] %vm643_vm3, %v1351_v1  ;;  %v1352_v9 = vadd.f32 %v2081_v28, %v1344_v7  ;;  %v1342_v10 = vld [vmem:[#allocation3 + $0x28] sm:$0xff]  ;;  %v1561_v12 = vpop.f32.mrb[35].mxu0 }
 0x13a   : > { %1357 = vst.msk [vmem:[#allocation3 + $0x20] sm:$0xff] %vm643_vm3, %v1349_v6  ;;  %v1350_v11 = vadd.f32 %v1342_v10, %v1325_v31 }
 0x13b   : > { %1360 = vst.msk [vmem:[#allocation3 + $0x38] sm:$0xff] %vm643_vm3, %v1352_v9 }
 0x13c   : > { %v1457_v13 = vld [vmem:[#allocation3 + $0x10] sm:$0xff]  ;;  %1358 = vst.msk [vmem:[#allocation3 + $0x28] sm:$0xff] %vm643_vm3, %v1350_v11 }
 0x13d   : > { %v1465_v14 = vadd.f32 %v2086_v38, %v1457_v13  ;;  %v1455_v15 = vld [vmem:[#allocation3] sm:$0xff] }
 0x13e   : > { %v1463_v16 = vadd.f32 %v1455_v15, %v1424_v41  ;;  %v1458_v17 = vld [vmem:[#allocation3 + $0x18] sm:$0xff] }
 0x13f   : > { %1473 = vst.msk [vmem:[#allocation3 + $0x10] sm:$0xff] %vm643_vm3, %v1465_v14  ;;  %v1466_v18 = vadd.f32 %v2087_v44, %v1458_v17  ;;  %v1456_v19 = vld [vmem:[#allocation3 + $0x8] sm:$0xff] }
 0x140   : > { %1471 = vst.msk [vmem:[#allocation3] sm:$0xff] %vm643_vm3, %v1463_v16  ;;  %v1464_v20 = vadd.f32 %v1456_v19, %v1427_v48  ;;  %v1461_v21 = vld [vmem:[#allocation3 + $0x30] sm:$0xff] }
 0x141   : > { %1474 = vst.msk [vmem:[#allocation3 + $0x18] sm:$0xff] %vm643_vm3, %v1466_v18  ;;  %v1469_v22 = vadd.f32 %v2090_v58, %v1461_v21  ;;  %v1459_v23 = vld [vmem:[#allocation3 + $0x20] sm:$0xff] }
 0x142   : > { %1472 = vst.msk [vmem:[#allocation3 + $0x8] sm:$0xff] %vm643_vm3, %v1464_v20  ;;  %v1467_v24 = vadd.f32 %v1459_v23, %v1440_v61  ;;  %v1462_v25 = vld [vmem:[#allocation3 + $0x38] sm:$0xff] }
 0x143   : > { %1477 = vst.msk [vmem:[#allocation3 + $0x30] sm:$0xff] %vm643_vm3, %v1469_v22  ;;  %v1470_v26 = vadd.f32 %v2091_v0, %v1462_v25  ;;  %v1460_v27 = vld [vmem:[#allocation3 + $0x28] sm:$0xff] }
 0x144   : > { %1475 = vst.msk [vmem:[#allocation3 + $0x20] sm:$0xff] %vm643_vm3, %v1467_v24  ;;  %v1468_v28 = vadd.f32 %v1460_v27, %v1443_v4 }
 0x145   : > { %1478 = vst.msk [vmem:[#allocation3 + $0x38] sm:$0xff] %vm643_vm3, %v1470_v26 }
 0x146   : > { %v1575_v29 = vld [vmem:[#allocation3 + $0x10] sm:$0xff]  ;;  %1476 = vst.msk [vmem:[#allocation3 + $0x28] sm:$0xff] %vm643_vm3, %v1468_v28 }
 0x147   : > { %v1583_v30 = vadd.f32 %v2471_v45, %v1575_v29  ;;  %v1573_v31 = vld [vmem:[#allocation3] sm:$0xff] }
 0x148   : > { %v1581_v32 = vadd.f32 %v1573_v31, %v2474_v49  ;;  %v1576_v33 = vld [vmem:[#allocation3 + $0x18] sm:$0xff] }
 0x149   : > { %1591 = vst.msk [vmem:[#allocation3 + $0x10] sm:$0xff] %vm643_vm3, %v1583_v30  ;;  %v1584_v34 = vadd.f32 %v2477_v51, %v1576_v33  ;;  %v1574_v35 = vld [vmem:[#allocation3 + $0x8] sm:$0xff] }
 0x14a   : > { %1589 = vst.msk [vmem:[#allocation3] sm:$0xff] %vm643_vm3, %v1581_v32  ;;  %v1582_v36 = vadd.f32 %v1574_v35, %v2480_v52  ;;  %v1579_v37 = vld [vmem:[#allocation3 + $0x30] sm:$0xff] }
 0x14b   : > { %1592 = vst.msk [vmem:[#allocation3 + $0x18] sm:$0xff] %vm643_vm3, %v1584_v34  ;;  %v1587_v38 = vadd.f32 %v2100_v2, %v1579_v37  ;;  %v1577_v39 = vld [vmem:[#allocation3 + $0x20] sm:$0xff] }
 0x14c   : > { %1590 = vst.msk [vmem:[#allocation3 + $0x8] sm:$0xff] %vm643_vm3, %v1582_v36  ;;  %v1585_v40 = vadd.f32 %v1577_v39, %v1558_v5  ;;  %v1580_v41 = vld [vmem:[#allocation3 + $0x38] sm:$0xff] }
 0x14d   : > { %1595 = vst.msk [vmem:[#allocation3 + $0x30] sm:$0xff] %vm643_vm3, %v1587_v38  ;;  %v1588_v42 = vadd.f32 %v2101_v8, %v1580_v41  ;;  %v1578_v43 = vld [vmem:[#allocation3 + $0x28] sm:$0xff] }
 0x14e   : > { %1593 = vst.msk [vmem:[#allocation3 + $0x20] sm:$0xff] %vm643_vm3, %v1585_v40  ;;  %v1586_v44 = vadd.f32 %v1578_v43, %v1561_v12 }
 0x14f   : > { %1596 = vst.msk [vmem:[#allocation3 + $0x38] sm:$0xff] %vm643_vm3, %v1588_v42 }
 0x150   : > { %v1599_v45 = vld [vmem:[#allocation3 + $0x10] sm:$0xff]  ;;  %1594 = vst.msk [vmem:[#allocation3 + $0x28] sm:$0xff] %vm643_vm3, %v1586_v44 }
 0x151   : > { %v1941_v46 = vpack.c.bf16 %v1599_v45, %v1599_v45  ;;  %v1597_v47 = vld [vmem:[#allocation3] sm:$0xff]  ;;  %v1630_v51 = vmul.f32 %v1599_v45, %v1599_v45  ;;  %v1608_v59 = vsel %vm643_vm3, %v1599_v45, 0.0 }
 0x152   : > { %v1628_v48 = vmul.f32 %v1597_v47, %v1597_v47  ;;  %v1939_v49 = vpack.c.bf16 %v1597_v47, %v1597_v47  ;;  %v1600_v50 = vld [vmem:[#allocation3 + $0x18] sm:$0xff]  ;;  %v1605_v54 = vsel %vm643_vm3, %v1597_v47, 0.0 }
 0x153   : > { %1693 = vst.msk [vmem:[%s2518_s21 + $0x8] sm:$0xf] %vm1690_vm4, %v1941_v46  ;;  %v1942_v52 = vpack.c.bf16 %v1600_v50, %v1600_v50  ;;  %v1598_v53 = vld [vmem:[#allocation3 + $0x8] sm:$0xff]  ;;  %v1631_v63 = vmul.f32 %v1600_v50, %v1600_v50  ;;  %v1639_v7 = vsel %vm643_vm3, %v1630_v51, 0.0  ;;  %v1610_v8 = vsel %vm643_vm3, %v1600_v50, 0.0 }
 0x154   : > { %1691 = vst.msk [vmem:[%s2518_s21] sm:$0xf] %vm1690_vm4, %v1939_v49  ;;  %v1606_v55 = vsel %vm643_vm3, %v1598_v53, 0.0  ;;  %v1629_v56 = vmul.f32 %v1598_v53, %v1598_v53  ;;  %v1940_v57 = vpack.c.bf16 %v1598_v53, %v1598_v53  ;;  %v1603_v58 = vld [vmem:[#allocation3 + $0x30] sm:$0xff]  ;;  %v1636_v62 = vsel %vm643_vm3, %v1628_v48, 0.0 }
 0x155   : > { %1694 = vst.msk [vmem:[%s2518_s21 + $0xc] sm:$0xf] %vm1690_vm4, %v1942_v52  ;;  %v1607_v60 = vadd.f32 %v1606_v55, %v1605_v54  ;;  %v1601_v61 = vld [vmem:[#allocation3 + $0x20] sm:$0xff]  ;;  %v1945_v2 = vpack.c.bf16 %v1603_v58, %v1603_v58  ;;  %v1641_v13 = vsel %vm643_vm3, %v1631_v63, 0.0  ;;  %v1634_v19 = vmul.f32 %v1603_v58, %v1603_v58 }
 0x156   : > { %v1637_v0 = vsel %vm643_vm3, %v1629_v56, 0.0  ;;  %1692 = vst.msk [vmem:[%s2518_s21 + $0x4] sm:$0xf] %vm1690_vm4, %v1940_v57  ;;  %v1604_v1 = vld [vmem:[#allocation3 + $0x38] sm:$0xff]  ;;  %v1943_v5 = vpack.c.bf16 %v1601_v61, %v1601_v61  ;;  %v1632_v9 = vmul.f32 %v1601_v61, %v1601_v61  ;;  %v1612_v14 = vsel %vm643_vm3, %v1601_v61, 0.0 }
 0x157   : > { %v1609_v3 = vadd.f32 %v1608_v59, %v1607_v60  ;;  %v1638_v4 = vadd.f32 %v1637_v0, %v1636_v62  ;;  %v1602_v6 = vld [vmem:[#allocation3 + $0x28] sm:$0xff]  ;;  %1697 = vst.msk [vmem:[%s2518_s21 + $0x18] sm:$0xf] %vm1690_vm4, %v1945_v2  ;;  %v1946_v10 = vpack.c.bf16 %v1604_v1, %v1604_v1  ;;  %v1616_v24 = vsel %vm643_vm3, %v1603_v58, 0.0 }
 0x158   : > { %1695 = vst.msk [vmem:[%s2518_s21 + $0x10] sm:$0xf] %vm1690_vm4, %v1943_v5  ;;  %v1633_v15 = vmul.f32 %v1602_v6, %v1602_v6  ;;  %v1944_v16 = vpack.c.bf16 %v1602_v6, %v1602_v6  ;;  %v1643_v20 = vsel %vm643_vm3, %v1632_v9, 0.0  ;;  %v1614_v21 = vsel %vm643_vm3, %v1602_v6, 0.0 }
 0x159   : > { %v1640_v12 = vadd.f32 %v1639_v7, %v1638_v4  ;;  %v1611_v11 = vadd.f32 %v1610_v8, %v1609_v3  ;;  %1698 = vst.msk [vmem:[%s2518_s21 + $0x1c] sm:$0xf] %vm1690_vm4, %v1946_v10  ;;  %v1635_v25 = vmul.f32 %v1604_v1, %v1604_v1  ;;  %v1647_v29 = vsel %vm643_vm3, %v1634_v19, 0.0 }
 0x15a   : > { %1696 = vst.msk [vmem:[%s2518_s21 + $0x14] sm:$0xf] %vm1690_vm4, %v1944_v16  ;;  %v1645_v26 = vsel %vm643_vm3, %v1633_v15, 0.0  ;;  %v1618_v30 = vsel %vm643_vm3, %v1604_v1, 0.0 }
 0x15b   : > { %v1613_v17 = vadd.f32 %v1612_v14, %v1611_v11  ;;  %v1642_v18 = vadd.f32 %v1641_v13, %v1640_v12  ;;  %v1649_v33 = vsel %vm643_vm3, %v1635_v25, 0.0 }
 0x15d   : > { %v1644_v22 = vadd.f32 %v1643_v20, %v1642_v18  ;;  %v1615_v23 = vadd.f32 %v1614_v21, %v1613_v17 }
 0x15f   : > { %v1617_v27 = vadd.f32 %v1616_v24, %v1615_v23  ;;  %v1646_v28 = vadd.f32 %v1645_v26, %v1644_v22 }
 0x161   : > { %v1619_v31 = vadd.f32 %v1618_v30, %v1617_v27  ;;  %v1648_v32 = vadd.f32 %v1647_v29, %v1646_v28 }
 0x163   : > { %v1620_v34 = vrot.slane %v1619_v31, 4  ;;  %v1650_v35 = vadd.f32 %v1649_v33, %v1648_v32 }
 0x165   : > { %v1621_v36 = vadd.f32 %v1620_v34, %v1619_v31  ;;  %v1651_v37 = vrot.slane %v1650_v35, 4 }
 0x167   : > { %v1622_v38 = vrot.slane %v1621_v36, 2  ;;  %v1652_v39 = vadd.f32 %v1651_v37, %v1650_v35 }
 0x169   : > { %v1623_v40 = vadd.f32 %v1622_v38, %v1621_v36  ;;  %v1653_v41 = vrot.slane %v1652_v39, 2 }
 0x16b   : > { %v1624_v42 = vrot.slane %v1623_v40, 1  ;;  %v1654_v43 = vadd.f32 %v1653_v41, %v1652_v39 }
 0x16d   : > { %v1625_v44 = vadd.f32 %v1624_v42, %v1623_v40  ;;  %v1655_v45 = vrot.slane %v1654_v43, 1 }
 0x16f   : > { %1627 = vst.msk [vmem:[%s480_s24] sm:$0x1] %vm1626_vm5, %v1625_v44  ;;  %v1656_v46 = vadd.f32 %v1655_v45, %v1654_v43 }
 0x171   : > { %1657 = vst.msk [vmem:[%s480_s24 + $0x1] sm:$0x1] %vm1626_vm5, %v1656_v46 }
 0x172 PF: > { %s19_s29 = sadd.s32 1, %s2161_s29   ;;  %s2575_s27 = smov %s2157_s28 }
 0x173   : > { %p16_p5 = scmp.ge.s32.totalorder %s19_s29, 4   ;;  %s2576_s28 = smov %s2578_s5 }
 0x175   :  { %18 = sbr.rel (!%p16_p5) target bundleno = 2 (0x2), region = 111 }

// kernel: _lambda_.12
= control target key start
LH: loop header
LB: loop body
LE: loop exit
PB: predicated region body
PF: predicated region fallthrough
CT: control target
= control target key end

     0   :  { %s2336_s27 = smov 0   ;;  %s2338_s28 = smov 0   ;;  %s2694_s0 = inlined_call_operand.vmem [shape: bf16[2,8,8,16], index: 0, kind: input, shape index: {}, may-alias: {0,1,2}]   ;;  %s2695_s1 = inlined_call_operand.vmem [shape: bf16[2,8,8,16], index: 1, kind: input, shape index: {}, may-alias: {0,1,2}]   ;;  %s2696_s2 = inlined_call_operand.vmem [shape: bf16[2,8,8,16], index: 2, kind: input, shape index: {}, may-alias: {0,1,2}]   ;;  %s2697_s3 = inlined_call_operand.vmem [shape: bf16[9,16,16], index: 3, kind: input, shape index: {}]   ;;  %s2698_s4 = inlined_call_operand.vmem [shape: f32[1,16], index: 4, kind: input, shape index: {}]   ;;  %s2699_s5 = inlined_call_operand.vmem [shape: f32[1,1,16], index: 5, kind: input, shape index: {}]   ;;  %s2700_s6 = inlined_call_operand.vmem [shape: f32[1,1,16], index: 6, kind: input, shape index: {}]   ;;  %s2701_s7 = inlined_call_operand.vmem [shape: bf16[2,1,64,16], index: 7, kind: output, shape index: {0}]   ;;  %s2702_s8 = inlined_call_operand.vmem [shape: f32[2,1,2,16], index: 8, kind: output, shape index: {1}]  }
   0x1   :  { %s2340_s29 = smov 0  }
   0x2 LB: > { %s31_s30 = sadd.s32 1, %s2284_s28  ;;  %p1974_p0 = scmp.ge.s32.totalorder %s2288_s29, 1  ;;  %s2288_s29 = sphi %s2340_s29, %s19_s29   ;;  %s2284_s28 = sphi %s2338_s28, %s2704_s28   ;;  %s2280_s27 = sphi %s2336_s27, %s2703_s27  }
   0x3   : > { %p33_p1 = scmp.ge.s32.totalorder %s31_s30, 2  ;;  %p350_p2 = scmp.lt.s32.totalorder %s2288_s29, 3 }
   0x5   : > { %s2706_s30 = smov (%p33_p1, %s31_s30), 0  ;;  %p351_p3 = pnand %p1974_p0, %p350_p2 }
   0x6   : > { %v2257_v0 = vld [vmem:[%s2697_s3] sm:$0xff] (!%p351_p3)   ;;  %p424_p4 = scmp.lt.s32.totalorder (!%p351_p3), %s2280_s27, 1  ;;  %vm482_vm0 = vcmask (!%p351_p3), 122880   ;;  %v2290_v1 = vmov (!%p351_p3), 0.0   ;;  %v2402_v2 = vld [vmem:[%s2697_s3 + $0x8] sm:$0xff] (!%p351_p3)   ;;  %v2413_v4 = vld [vmem:[%s2697_s3 + $0x10] sm:$0xff] (!%p351_p3)  }
   0x7   : > { %354 = sbr.rel (%p351_p3) target bundleno = 376 (0x178), region = 48  ;;  %2230 = vmatprep.subr.bf16.mxu1 (!%p351_p3), %v2257_v0  ;;  %2140 = vmatprep.subr.bf16.mxu0 (!%p351_p3), %v2257_v0  ;;  %487 = vst.msk [vmem:[#allocation2 + $0x40] sm:$0x1] (!%p351_p3), %vm482_vm0, %v2290_v1  ;;  %488 = vst.msk [vmem:[#allocation2 + $0x50] sm:$0x1] (!%p351_p3), %vm482_vm0, %v2290_v1  ;;  %vm558_vm1 = vcmask (!%p351_p3), 130048  }
   0x8   : > { %483 = vst.msk [vmem:[#allocation2] sm:$0x1] (!%p351_p3), %vm482_vm0, %v2290_v1  ;;  %484 = vst.msk [vmem:[#allocation2 + $0x10] sm:$0x1] (!%p351_p3), %vm482_vm0, %v2290_v1  ;;  %2231 = vmatpush3.bf16.msra.mxu1 (!%p351_p3), %v2257_v0  ;;  %2141 = vmatpush3.bf16.msra.mxu0 (!%p351_p3), %v2257_v0  ;;  %v1984_v3 = vld [vmem:[%s2699_s5] ss:$0 sm:$0xff] (!%p351_p3) }
   0x9   : > { %485 = vst.msk [vmem:[#allocation2 + $0x20] sm:$0x1] (!%p351_p3), %vm482_vm0, %v2290_v1  ;;  %486 = vst.msk [vmem:[#allocation2 + $0x30] sm:$0x1] (!%p351_p3), %vm482_vm0, %v2290_v1  ;;  %2150 = vmatprep.subr.bf16.mxu1 (!%p351_p3), %v2402_v2  ;;  %2160 = vmatprep.subr.bf16.mxu0 (!%p351_p3), %v2413_v4  ;;  %v1985_v14 = vld [vmem:[%s2700_s6] ss:$0 sm:$0xff] (!%p351_p3) }
   0xa   : > { %489 = vst.msk [vmem:[#allocation2 + $0x60] sm:$0x1] (!%p351_p3), %vm482_vm0, %v2290_v1  ;;  %490 = vst.msk [vmem:[#allocation2 + $0x70] sm:$0x1] (!%p351_p3), %vm482_vm0, %v2290_v1  ;;  %vm1795_vm2 = vcmask (!%p351_p3), 125952  }
   0xb   : > { %491 = vst.msk [vmem:[#allocation2 + $0x80] sm:$0x1] (!%p351_p3), %vm482_vm0, %v2290_v1  ;;  %492 = vst.msk [vmem:[#allocation2 + $0x90] sm:$0x1] (!%p351_p3), %vm482_vm0, %v2290_v1 }
   0xc   : > { %493 = vst.msk [vmem:[#allocation2 + $0x9] sm:$0x1] (!%p351_p3), %vm482_vm0, %v2290_v1  ;;  %494 = vst.msk [vmem:[#allocation2 + $0x19] sm:$0x1] (!%p351_p3), %vm482_vm0, %v2290_v1 }
   0xd   : > { %495 = vst.msk [vmem:[#allocation2 + $0x29] sm:$0x1] (!%p351_p3), %vm482_vm0, %v2290_v1  ;;  %496 = vst.msk [vmem:[#allocation2 + $0x39] sm:$0x1] (!%p351_p3), %vm482_vm0, %v2290_v1 }
   0xe   : > { %s2708_s27 = smov (!%p424_p4, %s2280_s27), 1  ;;  %497 = vst.msk [vmem:[#allocation2 + $0x49] sm:$0x1] %vm482_vm0, %v2290_v1  ;;  %498 = vst.msk [vmem:[#allocation2 + $0x59] sm:$0x1] %vm482_vm0, %v2290_v1 }
   0xf   : > { %499 = vst.msk [vmem:[#allocation2 + $0x69] sm:$0x1] %vm482_vm0, %v2290_v1  ;;  %500 = vst.msk [vmem:[#allocation2 + $0x79] sm:$0x1] %vm482_vm0, %v2290_v1  ;;  %s2405_s13 = sshll.u32 %s2708_s27, 5 }
  0x10   : > { %501 = vst.msk [vmem:[#allocation2 + $0x89] sm:$0x1] %vm482_vm0, %v2290_v1  ;;  %502 = vst.msk [vmem:[#allocation2 + $0x99] sm:$0x1] %vm482_vm0, %v2290_v1  ;;  %s431_s20 = scalar_lea.vmem %s2694_s0, %s2405_s13  ;;  %s444_s23 = scalar_lea.vmem %s2695_s1, %s2405_s13 }
  0x11   : > { %v2092_v5 = vld [vmem:[%s431_s20 + $0x8] sm:$0xff]   ;;  %v2093_v6 = vld [vmem:[%s431_s20 + $0x10] sm:$0xff]   ;;  %v2076_v7 = vld [vmem:[%s431_s20] sm:$0xff]   ;;  %s2065_s24 = sadd.s32 28, %s2405_s13 }
  0x12   : > { %v2081_v8 = vunpack.c.l.bf16 %v2092_v5  ;;  %v2082_v9 = vunpack.c.h.bf16 %v2092_v5  ;;  %v2085_v10 = vunpack.c.l.bf16 %v2093_v6  ;;  %v2086_v11 = vunpack.c.h.bf16 %v2093_v6  ;;  %v567_v12 = vld [vmem:[%s444_s23] sm:$0xf]  ;;  %v2094_v13 = vld [vmem:[%s431_s20 + $0x18] sm:$0xff]   ;;  %s460_s11 = scalar_lea.vmem %s2696_s2, %s2065_s24 }
  0x13   : > { %v2077_v15 = vunpack.c.l.bf16 %v2076_v7  ;;  %v2078_v16 = vunpack.c.h.bf16 %v2076_v7  ;;  %v568_v17 = vunpack.c.l.bf16 %v567_v12  ;;  %v2089_v18 = vunpack.c.l.bf16 %v2094_v13  ;;  %v587_v35 = vld [vmem:[%s460_s11] sm:$0xf]  ;;  %v2260_v5 = vld [vmem:[%s2697_s3 + $0x18] sm:$0xff]   ;;  %s2644_s11 = scalar_lea.vmem %s2701_s7, %s2405_s13  ;;  %s1983_s13 = sshll.u32 %s2708_s27, 1 }
  0x14   : > { %v529_v19 = vmul.f32 %v2082_v9, %v1984_v3  ;;  %v530_v20 = vmul.f32 %v2085_v10, %v1984_v3  ;;  %v531_v21 = vmul.f32 %v2086_v11, %v1984_v3  ;;  %v528_v22 = vmul.f32 %v2081_v8, %v1984_v3  ;;  %s480_s15 = scalar_lea.vmem %s2702_s8, %s1983_s13 }
  0x15   : > { %v526_v23 = vmul.f32 %v2077_v15, %v1984_v3  ;;  %v576_v24 = vmul.f32 %v1984_v3, %v568_v17  ;;  %v532_v25 = vmul.f32 %v2089_v18, %v1984_v3  ;;  %v527_v26 = vmul.f32 %v2078_v16, %v1984_v3 }
  0x16   : > { %v544_v27 = vadd.f32 %v1985_v14, %v529_v19  ;;  %v545_v28 = vadd.f32 %v1985_v14, %v530_v20  ;;  %v546_v29 = vadd.f32 %v1985_v14, %v531_v21  ;;  %v543_v30 = vadd.f32 %v1985_v14, %v528_v22  ;;  %v2262_v20 = vld [vmem:[%s2697_s3 + $0x28] sm:$0xff]  }
  0x17   : > { %v541_v31 = vadd.f32 %v1985_v14, %v526_v23  ;;  %v584_v32 = vadd.f32 %v1985_v14, %v576_v24  ;;  %v547_v33 = vadd.f32 %v1985_v14, %v532_v25  ;;  %v542_v34 = vadd.f32 %v1985_v14, %v527_v26 }
  0x18   : > { %v552_v36 = vmax.f32 %v544_v27, 0.0  ;;  %v553_v37 = vmax.f32 %v545_v28, 0.0  ;;  %v554_v38 = vmax.f32 %v546_v29, 0.0  ;;  %v551_v39 = vmax.f32 %v543_v30, 0.0 }
  0x19   : > { %v549_v40 = vmax.f32 %v541_v31, 0.0  ;;  %v585_v41 = vmax.f32 %v584_v32, 0.0  ;;  %v555_v42 = vmax.f32 %v547_v33, 0.0  ;;  %v550_v43 = vmax.f32 %v542_v34, 0.0  ;;  %v2264_v33 = vld [vmem:[%s2697_s3 + $0x38] sm:$0xff]  }
  0x1a   : > { %562 = vst.msk [vmem:[#allocation2 + $0x41] sm:$0xff] %vm558_vm1, %v552_v36  ;;  %563 = vst.msk [vmem:[#allocation2 + $0x51] sm:$0xff] %vm558_vm1, %v553_v37  ;;  %v2090_v44 = vunpack.c.h.bf16 %v2094_v13  ;;  %v588_v45 = vunpack.c.l.bf16 %v587_v35  ;;  %v2265_v35 = vld [vmem:[%s2697_s3 + $0x40] sm:$0xff]  }
  0x1b   : > { %564 = vst.msk [vmem:[#allocation2 + $0x61] sm:$0xff] %vm558_vm1, %v554_v38  ;;  %561 = vst.msk [vmem:[#allocation2 + $0x31] sm:$0xff] %vm558_vm1, %v551_v39 }
  0x1c   : > { %559 = vst.msk [vmem:[#allocation2 + $0x11] sm:$0xff] %vm558_vm1, %v549_v40  ;;  %586 = vst.msk [vmem:[#allocation2 + $0x1] sm:$0xff] %vm558_vm1, %v585_v41  ;;  %v533_v46 = vmul.f32 %v2090_v44, %v1984_v3  ;;  %v596_v47 = vmul.f32 %v1984_v3, %v588_v45 }
  0x1d   : > { %565 = vst.msk [vmem:[#allocation2 + $0x71] sm:$0xff] %vm558_vm1, %v555_v42  ;;  %560 = vst.msk [vmem:[#allocation2 + $0x21] sm:$0xff] %vm558_vm1, %v550_v43 }
  0x1e   : > { %612 = vst.msk [vmem:[#allocation2 + $0x1] sm:$0xff] %vm558_vm1, %v2290_v1  ;;  %v548_v48 = vadd.f32 %v1985_v14, %v533_v46  ;;  %v604_v49 = vadd.f32 %v1985_v14, %v596_v47 }
  0x20   : > { %v556_v50 = vmax.f32 %v548_v48, 0.0  ;;  %v605_v51 = vmax.f32 %v604_v49, 0.0 }
  0x21   : > { %v2442_v52 = vld [vmem:[#allocation2 + $0x40] sm:$0xff]  ;;  %v2444_v53 = vld [vmem:[#allocation2 + $0x50] sm:$0xff] }
  0x22   : > { %v2446_v54 = vld [vmem:[#allocation2 + $0x60] sm:$0xff]  ;;  %v2450_v55 = vpack.c.bf16 %v2444_v53, %v2442_v52  ;;  %566 = vst.msk [vmem:[#allocation2 + $0x81] sm:$0xff] %vm558_vm1, %v556_v50  ;;  %607 = vst.msk [vmem:[#allocation2 + $0x91] sm:$0xff] %vm558_vm1, %v605_v51  ;;  %v617_v61 = vld [vmem:[#allocation2 + $0x30] sm:$0xff] }
  0x23   : > { %v615_v56 = vld [vmem:[#allocation2 + $0x10] sm:$0xff]  ;;  %613 = vst.msk [vmem:[#allocation2 + $0x91] sm:$0xff] %vm558_vm1, %v2290_v1  ;;  %v2261_v1 = vld [vmem:[%s2697_s3 + $0x20] sm:$0xff]   ;;  %v979_v30 = vpack.c.bf16 %v2442_v52, %v617_v61  ;;  %v980_v31 = vpack.c.bf16 %v2446_v54, %v2444_v53 }
  0x24   : > { %v2452_v57 = vld [vmem:[#allocation2 + $0x70] sm:$0xff]  ;;  %v616_v58 = vld [vmem:[#allocation2 + $0x20] sm:$0xff]  ;;  %2146 = vmatprep.mubr.msk.bf16.mxu1 %vm558_vm1, %v2450_v55 }
  0x25   : > { %v614_v59 = vld [vmem:[#allocation2] sm:$0xff]  ;;  %v2458_v60 = vpack.c.bf16 %v2452_v57, %v2446_v54  ;;  %v2464_v0 = vpack.c.bf16 %v617_v61, %v616_v58  ;;  %v727_v3 = vld [vmem:[#allocation2 + $0x11] sm:$0xff]  ;;  %v978_v27 = vpack.c.bf16 %v616_v58, %v615_v56 }
  0x26   : > { %v726_v62 = vld [vmem:[#allocation2 + $0x1] sm:$0xff]  ;;  %v622_v63 = vpack.c.bf16 %v615_v56, %v614_v59  ;;  %v729_v8 = vld [vmem:[#allocation2 + $0x31] sm:$0xff]  ;;  %v1990_v51 = vld [vmem:[%s2698_s4] ss:$0 sm:$0xff] }
  0x27   : > { %2147 = vmatmul.mubr.msk.bf16.vlgmr.msra.gmra.mrb[0].mxu1 %vm558_vm1, %v2458_v60  ;;  %v734_v6 = vpack.c.bf16 %v727_v3, %v726_v62  ;;  %v728_v7 = vld [vmem:[#allocation2 + $0x21] sm:$0xff]  ;;  %v849_v10 = vld [vmem:[#allocation2 + $0x12] sm:$0xff] }
  0x28   : > { %2142 = vmatprep.mubr.msk.bf16.mxu0 %vm558_vm1, %v622_v63  ;;  %2151 = vmatpush3.bf16.msra.mxu1 %v2402_v2  ;;  %v848_v9 = vld [vmem:[#allocation2 + $0x2] sm:$0xff]  ;;  %v731_v12 = vld [vmem:[#allocation2 + $0x51] sm:$0xff]  ;;  %v2480_v16 = vpack.c.bf16 %v729_v8, %v728_v7  ;;  %v1100_v29 = vpack.c.bf16 %v728_v7, %v727_v3 }
  0x29   : > { %2143 = vmatmul.mubr.msk.bf16.vlgmr.msra.gmra.mrb[0].mxu0 %vm558_vm1, %v2464_v0  ;;  %2152 = vmatprep.mubr.msk.bf16.mxu1 %vm558_vm1, %v734_v6  ;;  %v730_v11 = vld [vmem:[#allocation2 + $0x41] sm:$0xff]  ;;  %v856_v13 = vpack.c.bf16 %v849_v10, %v848_v9  ;;  %v851_v15 = vld [vmem:[#allocation2 + $0x32] sm:$0xff] }
  0x2a   : > { %2161 = vmatpush3.bf16.msra.mxu0 %v2413_v4  ;;  %2170 = vmatprep.subr.bf16.mxu1 %v2260_v5  ;;  %v850_v14 = vld [vmem:[#allocation2 + $0x22] sm:$0xff]  ;;  %v853_v17 = vld [vmem:[#allocation2 + $0x52] sm:$0xff]  ;;  %v2483_v18 = vpack.c.bf16 %v731_v12, %v730_v11  ;;  %v1101_v32 = vpack.c.bf16 %v730_v11, %v729_v8 }
  0x2b   : > { %2162 = vmatprep.mubr.msk.bf16.mxu0 %vm558_vm1, %v856_v13  ;;  %2180 = vmatprep.subr.bf16.mxu0 %v2261_v1  ;;  %v852_v2 = vld [vmem:[#allocation2 + $0x42] sm:$0xff]  ;;  %v857_v19 = vpack.c.bf16 %v851_v15, %v850_v14  ;;  %v2263_v4 = vld [vmem:[%s2697_s3 + $0x30] sm:$0xff]   ;;  %v1222_v39 = vpack.c.bf16 %v850_v14, %v849_v10 }
  0x2c   : > { %v2488_v21 = vpack.c.bf16 %v853_v17, %v852_v2  ;;  %v732_v22 = vld [vmem:[#allocation2 + $0x61] sm:$0xff]  ;;  %v733_v23 = vld [vmem:[#allocation2 + $0x71] sm:$0xff]  ;;  %v1223_v41 = vpack.c.bf16 %v852_v2, %v851_v15 }
  0x2d   : > { %v854_v24 = vld [vmem:[#allocation2 + $0x62] sm:$0xff]  ;;  %v855_v25 = vld [vmem:[#allocation2 + $0x72] sm:$0xff]  ;;  %v737_v26 = vpack.c.bf16 %v733_v23, %v732_v22  ;;  %v1102_v34 = vpack.c.bf16 %v732_v22, %v731_v12 }
  0x2e   : > { %v859_v28 = vpack.c.bf16 %v855_v25, %v854_v24  ;;  %v977_v36 = vld [vmem:[#allocation2 + $0x80] sm:$0xff]  ;;  %v1224_v42 = vpack.c.bf16 %v854_v24, %v853_v17  ;;  %v1344_v44 = vld [vmem:[#allocation2 + $0x90] sm:$0xff] }
  0x2f   : > { %2153 = vmatmul.mubr.msk.bf16.vlgmr.msra.gmra.mrb[4].mxu1 %vm558_vm1, %v2480_v16  ;;  %v1099_v37 = vld [vmem:[#allocation2 + $0x81] sm:$0xff]  ;;  %v981_v38 = vpack.c.bf16 %v977_v36, %v2452_v57  ;;  %v1348_v46 = vpack.c.bf16 %v1344_v44, %v977_v36  ;;  %v1466_v47 = vld [vmem:[#allocation2 + $0x91] sm:$0xff] }
  0x30   : > { %2156 = vmatprep.mubr.msk.bf16.mxu1 %vm558_vm1, %v2483_v18  ;;  %2171 = vmatpush3.bf16.msra.mxu1 %v2260_v5  ;;  %v1103_v40 = vpack.c.bf16 %v1099_v37, %v733_v23  ;;  %v1221_v43 = vld [vmem:[#allocation2 + $0x82] sm:$0xff]  ;;  %v1588_v48 = vld [vmem:[#allocation2 + $0x92] sm:$0xff]  ;;  %v1470_v49 = vpack.c.bf16 %v1466_v47, %v1099_v37 }
  0x31   : > { %2163 = vmatmul.mubr.msk.bf16.vlgmr.msra.gmra.mrb[4].mxu0 %vm558_vm1, %v857_v19  ;;  %2190 = vmatprep.subr.bf16.mxu1 %v2262_v20  ;;  %v1225_v45 = vpack.c.bf16 %v1221_v43, %v855_v25  ;;  %v1592_v50 = vpack.c.bf16 %v1588_v48, %v1221_v43 }
  0x32   : > { %2166 = vmatprep.mubr.msk.bf16.mxu0 %vm558_vm1, %v2488_v21  ;;  %2181 = vmatpush3.bf16.msra.mxu0 %v2261_v1 }
  0x33   : > { %2200 = vmatprep.subr.bf16.mxu0 %v2263_v4 }
  0x37   : > { %2157 = vmatmul.mubr.msk.bf16.gmra.mrb[8].mxu1 %vm558_vm1, %v737_v26 }
  0x38   : > { %2172 = vmatprep.mubr.msk.bf16.mxu1 %vm558_vm1, %v978_v27 }
  0x39   : > { %2167 = vmatmul.mubr.msk.bf16.gmra.mrb[8].mxu0 %vm558_vm1, %v859_v28 }
  0x3a   : > { %2182 = vmatprep.mubr.msk.bf16.mxu0 %vm558_vm1, %v1100_v29 }
  0x3f   : > { %2173 = vmatmul.mubr.msk.bf16.vlgmr.msra.gmra.mrb[12].mxu1 %vm558_vm1, %v979_v30 }
  0x40   : > { %2176 = vmatprep.mubr.msk.bf16.mxu1 %vm558_vm1, %v980_v31  ;;  %2191 = vmatpush3.bf16.msra.mxu1 %v2262_v20 }
  0x41   : > { %2183 = vmatmul.mubr.msk.bf16.vlgmr.msra.gmra.mrb[12].mxu0 %vm558_vm1, %v1101_v32  ;;  %2210 = vmatprep.subr.bf16.mxu1 %v2264_v33 }
  0x42   : > { %2186 = vmatprep.mubr.msk.bf16.mxu0 %vm558_vm1, %v1102_v34  ;;  %2201 = vmatpush3.bf16.msra.mxu0 %v2263_v4 }
  0x43   : > { %2220 = vmatprep.subr.bf16.mxu0 %v2265_v35 }
  0x47   : > { %2177 = vmatmul.mubr.msk.bf16.gmra.mrb[16].mxu1 %vm558_vm1, %v981_v38 }
  0x48   : > { %2192 = vmatprep.mubr.msk.bf16.mxu1 %vm558_vm1, %v1222_v39 }
  0x49   : > { %2187 = vmatmul.mubr.msk.bf16.gmra.mrb[16].mxu0 %vm558_vm1, %v1103_v40 }
  0x4a   : > { %2202 = vmatprep.mubr.msk.bf16.mxu0 %vm558_vm1, %v2464_v0 }
  0x4f   : > { %2193 = vmatmul.mubr.msk.bf16.vlgmr.msra.gmra.mrb[20].mxu1 %vm558_vm1, %v1223_v41 }
  0x50   : > { %2196 = vmatprep.mubr.msk.bf16.mxu1 %vm558_vm1, %v1224_v42  ;;  %2211 = vmatpush3.bf16.msra.mxu1 %v2264_v33 }
  0x51   : > { %2203 = vmatmul.mubr.msk.bf16.vlgmr.msra.gmra.mrb[20].mxu0 %vm558_vm1, %v2450_v55 }
  0x52   : > { %2206 = vmatprep.mubr.msk.bf16.mxu0 %vm558_vm1, %v2458_v60  ;;  %2221 = vmatpush3.bf16.msra.mxu0 %v2265_v35 }
  0x57   : > { %2197 = vmatmul.mubr.msk.bf16.gmra.mrb[24].mxu1 %vm558_vm1, %v1225_v45 }
  0x58   : > { %2212 = vmatprep.mubr.msk.bf16.mxu1 %vm558_vm1, %v2480_v16 }
  0x59   : > { %2207 = vmatmul.mubr.msk.bf16.gmra.mrb[24].mxu0 %vm558_vm1, %v1348_v46 }
  0x5a   : > { %2222 = vmatprep.mubr.msk.bf16.mxu0 %vm558_vm1, %v857_v19 }
  0x5f   : > { %2213 = vmatmul.mubr.msk.bf16.vlgmr.msra.gmra.mrb[28].mxu1 %vm558_vm1, %v2483_v18 }
  0x60   : > { %2216 = vmatprep.mubr.msk.bf16.mxu1 %vm558_vm1, %v737_v26 }
  0x61   : > { %2223 = vmatmul.mubr.msk.bf16.vlgmr.msra.gmra.mrb[28].mxu0 %vm558_vm1, %v2488_v21 }
  0x62   : > { %2226 = vmatprep.mubr.msk.bf16.mxu0 %vm558_vm1, %v859_v28 }
  0x67   : > { %2217 = vmatmul.mubr.msk.bf16.gmra.mrb[32].mxu1 %vm558_vm1, %v1470_v49 }
  0x69   : > { %2227 = vmatmul.mubr.msk.bf16.gmra.mrb[32].mxu0 %vm558_vm1, %v1592_v50 }
  0xfa   : > { %v2148_v52 = vpop.f32.mrb[0].mxu1 }
  0xfb   : > { %v712_v53 = vadd.f32 %v2148_v52, %v1990_v51  ;;  %v703_v54 = vpop.f32.mrb[1].mxu1 }
  0xfc   : > { %v2144_v55 = vpop.f32.mrb[0].mxu0  ;;  %v704_v56 = vadd.f32 %v1990_v51, %v703_v54  ;;  %v2149_v57 = vpop.f32.mrb[2].mxu1 }
  0xfd   : > { %724 = vst.msk [vmem:[#allocation3 + $0x30] sm:$0xff] %vm558_vm1, %v712_v53  ;;  %v696_v58 = vadd.f32 %v2144_v55, %v1990_v51  ;;  %v687_v59 = vpop.f32.mrb[1].mxu0  ;;  %v715_v60 = vadd.f32 %v2149_v57, %v1990_v51  ;;  %v706_v61 = vpop.f32.mrb[3].mxu1 }
  0xfe   : > { %722 = vst.msk [vmem:[#allocation3 + $0x20] sm:$0xff] %vm558_vm1, %v704_v56  ;;  %v688_v62 = vadd.f32 %v1990_v51, %v687_v59  ;;  %v2145_v63 = vpop.f32.mrb[2].mxu0  ;;  %v707_v0 = vadd.f32 %v1990_v51, %v706_v61 }
  0xff   : > { %720 = vst.msk [vmem:[#allocation3 + $0x10] sm:$0xff] %vm558_vm1, %v696_v58  ;;  %725 = vst.msk [vmem:[#allocation3 + $0x38] sm:$0xff] %vm558_vm1, %v715_v60  ;;  %v699_v3 = vadd.f32 %v2145_v63, %v1990_v51  ;;  %v690_v5 = vpop.f32.mrb[3].mxu0 }
 0x100   : > { %718 = vst.msk [vmem:[#allocation3] sm:$0xff] %vm558_vm1, %v688_v62  ;;  %723 = vst.msk [vmem:[#allocation3 + $0x28] sm:$0xff] %vm558_vm1, %v707_v0  ;;  %v691_v6 = vadd.f32 %v1990_v51, %v690_v5 }
 0x101   : > { %721 = vst.msk [vmem:[#allocation3 + $0x18] sm:$0xff] %vm558_vm1, %v699_v3 }
 0x102   : > { %719 = vst.msk [vmem:[#allocation3 + $0x8] sm:$0xff] %vm558_vm1, %v691_v6  ;;  %v2154_v7 = vpop.f32.mrb[4].mxu1 }
 0x103   : > { %v793_v1 = vpop.f32.mrb[5].mxu1 }
 0x104   : > { %v2155_v8 = vpop.f32.mrb[6].mxu1  ;;  %v2164_v9 = vpop.f32.mrb[4].mxu0  ;;  %v830_v4 = vld [vmem:[#allocation3 + $0x30] sm:$0xff] }
 0x105   : > { %v796_v10 = vpop.f32.mrb[7].mxu1  ;;  %v915_v11 = vpop.f32.mrb[5].mxu0  ;;  %v828_v24 = vld [vmem:[#allocation3 + $0x20] sm:$0xff] }
 0x106   : > { %v826_v12 = vld [vmem:[#allocation3 + $0x10] sm:$0xff]  ;;  %v2165_v13 = vpop.f32.mrb[6].mxu0  ;;  %v831_v27 = vld [vmem:[#allocation3 + $0x38] sm:$0xff] }
 0x107   : > { %v834_v14 = vadd.f32 %v2154_v7, %v826_v12  ;;  %v824_v15 = vld [vmem:[#allocation3] sm:$0xff]  ;;  %v918_v16 = vpop.f32.mrb[7].mxu0  ;;  %v829_v31 = vld [vmem:[#allocation3 + $0x28] sm:$0xff] }
 0x108   : > { %v832_v2 = vadd.f32 %v824_v15, %v793_v1  ;;  %v827_v17 = vld [vmem:[#allocation3 + $0x18] sm:$0xff] }
 0x109   : > { %842 = vst.msk [vmem:[#allocation3 + $0x10] sm:$0xff] %vm558_vm1, %v834_v14  ;;  %v835_v18 = vadd.f32 %v2155_v8, %v827_v17  ;;  %v825_v19 = vld [vmem:[#allocation3 + $0x8] sm:$0xff] }
 0x10a   : > { %840 = vst.msk [vmem:[#allocation3] sm:$0xff] %vm558_vm1, %v832_v2  ;;  %v833_v20 = vadd.f32 %v825_v19, %v796_v10  ;;  %v2158_v21 = vpop.f32.mrb[8].mxu1 }
 0x10b   : > { %843 = vst.msk [vmem:[#allocation3 + $0x18] sm:$0xff] %vm558_vm1, %v835_v18  ;;  %v838_v22 = vadd.f32 %v2158_v21, %v830_v4  ;;  %v809_v23 = vpop.f32.mrb[9].mxu1 }
 0x10c   : > { %841 = vst.msk [vmem:[#allocation3 + $0x8] sm:$0xff] %vm558_vm1, %v833_v20  ;;  %v836_v25 = vadd.f32 %v828_v24, %v809_v23  ;;  %v2159_v26 = vpop.f32.mrb[10].mxu1  ;;  %v2168_v28 = vpop.f32.mrb[8].mxu0 }
 0x10d   : > { %846 = vst.msk [vmem:[#allocation3 + $0x30] sm:$0xff] %vm558_vm1, %v838_v22  ;;  %v839_v29 = vadd.f32 %v2159_v26, %v831_v27  ;;  %v812_v30 = vpop.f32.mrb[11].mxu1  ;;  %v931_v32 = vpop.f32.mrb[9].mxu0 }
 0x10e   : > { %844 = vst.msk [vmem:[#allocation3 + $0x20] sm:$0xff] %vm558_vm1, %v836_v25  ;;  %v837_v33 = vadd.f32 %v829_v31, %v812_v30  ;;  %v2169_v34 = vpop.f32.mrb[10].mxu0 }
 0x10f   : > { %847 = vst.msk [vmem:[#allocation3 + $0x38] sm:$0xff] %vm558_vm1, %v839_v29  ;;  %v934_v35 = vpop.f32.mrb[11].mxu0 }
 0x110   : > { %v948_v36 = vld [vmem:[#allocation3 + $0x10] sm:$0xff]  ;;  %845 = vst.msk [vmem:[#allocation3 + $0x28] sm:$0xff] %vm558_vm1, %v837_v33 }
 0x111   : > { %v956_v37 = vadd.f32 %v2164_v9, %v948_v36  ;;  %v946_v38 = vld [vmem:[#allocation3] sm:$0xff] }
 0x112   : > { %v954_v39 = vadd.f32 %v946_v38, %v915_v11  ;;  %v949_v40 = vld [vmem:[#allocation3 + $0x18] sm:$0xff]  ;;  %v2174_v41 = vpop.f32.mrb[12].mxu1 }
 0x113   : > { %964 = vst.msk [vmem:[#allocation3 + $0x10] sm:$0xff] %vm558_vm1, %v956_v37  ;;  %v957_v42 = vadd.f32 %v2165_v13, %v949_v40  ;;  %v947_v43 = vld [vmem:[#allocation3 + $0x8] sm:$0xff]  ;;  %v1037_v44 = vpop.f32.mrb[13].mxu1 }
 0x114   : > { %962 = vst.msk [vmem:[#allocation3] sm:$0xff] %vm558_vm1, %v954_v39  ;;  %v955_v45 = vadd.f32 %v947_v43, %v918_v16  ;;  %v952_v46 = vld [vmem:[#allocation3 + $0x30] sm:$0xff]  ;;  %v2175_v47 = vpop.f32.mrb[14].mxu1  ;;  %v2184_v48 = vpop.f32.mrb[12].mxu0 }
 0x115   : > { %965 = vst.msk [vmem:[#allocation3 + $0x18] sm:$0xff] %vm558_vm1, %v957_v42  ;;  %v960_v49 = vadd.f32 %v2168_v28, %v952_v46  ;;  %v950_v50 = vld [vmem:[#allocation3 + $0x20] sm:$0xff]  ;;  %v1040_v51 = vpop.f32.mrb[15].mxu1  ;;  %v1159_v52 = vpop.f32.mrb[13].mxu0 }
 0x116   : > { %963 = vst.msk [vmem:[#allocation3 + $0x8] sm:$0xff] %vm558_vm1, %v955_v45  ;;  %v958_v53 = vadd.f32 %v950_v50, %v931_v32  ;;  %v953_v54 = vld [vmem:[#allocation3 + $0x38] sm:$0xff]  ;;  %v2185_v55 = vpop.f32.mrb[14].mxu0 }
 0x117   : > { %968 = vst.msk [vmem:[#allocation3 + $0x30] sm:$0xff] %vm558_vm1, %v960_v49  ;;  %v961_v56 = vadd.f32 %v2169_v34, %v953_v54  ;;  %v951_v57 = vld [vmem:[#allocation3 + $0x28] sm:$0xff]  ;;  %v1162_v58 = vpop.f32.mrb[15].mxu0 }
 0x118   : > { %966 = vst.msk [vmem:[#allocation3 + $0x20] sm:$0xff] %vm558_vm1, %v958_v53  ;;  %v959_v59 = vadd.f32 %v951_v57, %v934_v35 }
 0x119   : > { %969 = vst.msk [vmem:[#allocation3 + $0x38] sm:$0xff] %vm558_vm1, %v961_v56 }
 0x11a   : > { %v1070_v60 = vld [vmem:[#allocation3 + $0x10] sm:$0xff]  ;;  %967 = vst.msk [vmem:[#allocation3 + $0x28] sm:$0xff] %vm558_vm1, %v959_v59  ;;  %v2178_v61 = vpop.f32.mrb[16].mxu1 }
 0x11b   : > { %v1078_v62 = vadd.f32 %v2174_v41, %v1070_v60  ;;  %v1068_v63 = vld [vmem:[#allocation3] sm:$0xff]  ;;  %v1053_v0 = vpop.f32.mrb[17].mxu1 }
 0x11c   : > { %v1076_v3 = vadd.f32 %v1068_v63, %v1037_v44  ;;  %v1071_v5 = vld [vmem:[#allocation3 + $0x18] sm:$0xff]  ;;  %v2179_v6 = vpop.f32.mrb[18].mxu1  ;;  %v2188_v7 = vpop.f32.mrb[16].mxu0 }
 0x11d   : > { %1086 = vst.msk [vmem:[#allocation3 + $0x10] sm:$0xff] %vm558_vm1, %v1078_v62  ;;  %v1079_v1 = vadd.f32 %v2175_v47, %v1071_v5  ;;  %v1069_v8 = vld [vmem:[#allocation3 + $0x8] sm:$0xff]  ;;  %v1056_v9 = vpop.f32.mrb[19].mxu1  ;;  %v1175_v10 = vpop.f32.mrb[17].mxu0 }
 0x11e   : > { %1084 = vst.msk [vmem:[#allocation3] sm:$0xff] %vm558_vm1, %v1076_v3  ;;  %v1077_v11 = vadd.f32 %v1069_v8, %v1040_v51  ;;  %v1074_v12 = vld [vmem:[#allocation3 + $0x30] sm:$0xff]  ;;  %v2189_v13 = vpop.f32.mrb[18].mxu0 }
 0x11f   : > { %1087 = vst.msk [vmem:[#allocation3 + $0x18] sm:$0xff] %vm558_vm1, %v1079_v1  ;;  %v1082_v14 = vadd.f32 %v2178_v61, %v1074_v12  ;;  %v1072_v15 = vld [vmem:[#allocation3 + $0x20] sm:$0xff]  ;;  %v1178_v16 = vpop.f32.mrb[19].mxu0 }
 0x120   : > { %1085 = vst.msk [vmem:[#allocation3 + $0x8] sm:$0xff] %vm558_vm1, %v1077_v11  ;;  %v1080_v2 = vadd.f32 %v1072_v15, %v1053_v0  ;;  %v1075_v17 = vld [vmem:[#allocation3 + $0x38] sm:$0xff] }
 0x121   : > { %1090 = vst.msk [vmem:[#allocation3 + $0x30] sm:$0xff] %vm558_vm1, %v1082_v14  ;;  %v1083_v18 = vadd.f32 %v2179_v6, %v1075_v17  ;;  %v1073_v19 = vld [vmem:[#allocation3 + $0x28] sm:$0xff] }
 0x122   : > { %1088 = vst.msk [vmem:[#allocation3 + $0x20] sm:$0xff] %vm558_vm1, %v1080_v2  ;;  %v1081_v20 = vadd.f32 %v1073_v19, %v1056_v9  ;;  %v2194_v21 = vpop.f32.mrb[20].mxu1 }
 0x123   : > { %1091 = vst.msk [vmem:[#allocation3 + $0x38] sm:$0xff] %vm558_vm1, %v1083_v18  ;;  %v1281_v4 = vpop.f32.mrb[21].mxu1 }
 0x124   : > { %v1192_v22 = vld [vmem:[#allocation3 + $0x10] sm:$0xff]  ;;  %1089 = vst.msk [vmem:[#allocation3 + $0x28] sm:$0xff] %vm558_vm1, %v1081_v20  ;;  %v2195_v23 = vpop.f32.mrb[22].mxu1  ;;  %v2577_v24 = vpop.f32.mrb[20].mxu0 }
 0x125   : > { %v1200_v25 = vadd.f32 %v2184_v48, %v1192_v22  ;;  %v1190_v26 = vld [vmem:[#allocation3] sm:$0xff]  ;;  %v1284_v27 = vpop.f32.mrb[23].mxu1  ;;  %v2579_v28 = vpop.f32.mrb[21].mxu0 }
 0x126   : > { %v1198_v29 = vadd.f32 %v1190_v26, %v1159_v52  ;;  %v1193_v30 = vld [vmem:[#allocation3 + $0x18] sm:$0xff]  ;;  %v2581_v31 = vpop.f32.mrb[22].mxu0 }
 0x127   : > { %1208 = vst.msk [vmem:[#allocation3 + $0x10] sm:$0xff] %vm558_vm1, %v1200_v25  ;;  %v1201_v32 = vadd.f32 %v2185_v55, %v1193_v30  ;;  %v1191_v33 = vld [vmem:[#allocation3 + $0x8] sm:$0xff]  ;;  %v2584_v34 = vpop.f32.mrb[23].mxu0 }
 0x128   : > { %1206 = vst.msk [vmem:[#allocation3] sm:$0xff] %vm558_vm1, %v1198_v29  ;;  %v1199_v35 = vadd.f32 %v1191_v33, %v1162_v58  ;;  %v1196_v36 = vld [vmem:[#allocation3 + $0x30] sm:$0xff] }
 0x129   : > { %1209 = vst.msk [vmem:[#allocation3 + $0x18] sm:$0xff] %vm558_vm1, %v1201_v32  ;;  %v1204_v37 = vadd.f32 %v2188_v7, %v1196_v36  ;;  %v1194_v38 = vld [vmem:[#allocation3 + $0x20] sm:$0xff] }
 0x12a   : > { %1207 = vst.msk [vmem:[#allocation3 + $0x8] sm:$0xff] %vm558_vm1, %v1199_v35  ;;  %v1202_v39 = vadd.f32 %v1194_v38, %v1175_v10  ;;  %v1197_v40 = vld [vmem:[#allocation3 + $0x38] sm:$0xff]  ;;  %v2198_v41 = vpop.f32.mrb[24].mxu1 }
 0x12b   : > { %1212 = vst.msk [vmem:[#allocation3 + $0x30] sm:$0xff] %vm558_vm1, %v1204_v37  ;;  %v1205_v42 = vadd.f32 %v2189_v13, %v1197_v40  ;;  %v1195_v43 = vld [vmem:[#allocation3 + $0x28] sm:$0xff]  ;;  %v1297_v44 = vpop.f32.mrb[25].mxu1 }
 0x12c   : > { %1210 = vst.msk [vmem:[#allocation3 + $0x20] sm:$0xff] %vm558_vm1, %v1202_v39  ;;  %v1203_v45 = vadd.f32 %v1195_v43, %v1178_v16  ;;  %v2199_v46 = vpop.f32.mrb[26].mxu1  ;;  %v2208_v47 = vpop.f32.mrb[24].mxu0 }
 0x12d   : > { %1213 = vst.msk [vmem:[#allocation3 + $0x38] sm:$0xff] %vm558_vm1, %v1205_v42  ;;  %v1300_v48 = vpop.f32.mrb[27].mxu1  ;;  %v1420_v49 = vpop.f32.mrb[25].mxu0 }
 0x12e   : > { %v1314_v50 = vld [vmem:[#allocation3 + $0x10] sm:$0xff]  ;;  %1211 = vst.msk [vmem:[#allocation3 + $0x28] sm:$0xff] %vm558_vm1, %v1203_v45  ;;  %v2209_v51 = vpop.f32.mrb[26].mxu0 }
 0x12f   : > { %v1322_v52 = vadd.f32 %v2194_v21, %v1314_v50  ;;  %v1312_v53 = vld [vmem:[#allocation3] sm:$0xff]  ;;  %v1423_v54 = vpop.f32.mrb[27].mxu0 }
 0x130   : > { %v1320_v55 = vadd.f32 %v1312_v53, %v1281_v4  ;;  %v1315_v56 = vld [vmem:[#allocation3 + $0x18] sm:$0xff] }
 0x131   : > { %1330 = vst.msk [vmem:[#allocation3 + $0x10] sm:$0xff] %vm558_vm1, %v1322_v52  ;;  %v1323_v57 = vadd.f32 %v2195_v23, %v1315_v56  ;;  %v1313_v58 = vld [vmem:[#allocation3 + $0x8] sm:$0xff] }
 0x132   : > { %1328 = vst.msk [vmem:[#allocation3] sm:$0xff] %vm558_vm1, %v1320_v55  ;;  %v1321_v59 = vadd.f32 %v1313_v58, %v1284_v27  ;;  %v1318_v60 = vld [vmem:[#allocation3 + $0x30] sm:$0xff]  ;;  %v2214_v61 = vpop.f32.mrb[28].mxu1 }
 0x133   : > { %1331 = vst.msk [vmem:[#allocation3 + $0x18] sm:$0xff] %vm558_vm1, %v1323_v57  ;;  %v1326_v62 = vadd.f32 %v2198_v41, %v1318_v60  ;;  %v1316_v63 = vld [vmem:[#allocation3 + $0x20] sm:$0xff]  ;;  %v1526_v0 = vpop.f32.mrb[29].mxu1 }
 0x134   : > { %1329 = vst.msk [vmem:[#allocation3 + $0x8] sm:$0xff] %vm558_vm1, %v1321_v59  ;;  %v1324_v3 = vadd.f32 %v1316_v63, %v1297_v44  ;;  %v1319_v5 = vld [vmem:[#allocation3 + $0x38] sm:$0xff]  ;;  %v2215_v6 = vpop.f32.mrb[30].mxu1  ;;  %v2597_v7 = vpop.f32.mrb[28].mxu0 }
 0x135   : > { %1334 = vst.msk [vmem:[#allocation3 + $0x30] sm:$0xff] %vm558_vm1, %v1326_v62  ;;  %v1327_v1 = vadd.f32 %v2199_v46, %v1319_v5  ;;  %v1317_v8 = vld [vmem:[#allocation3 + $0x28] sm:$0xff]  ;;  %v1529_v9 = vpop.f32.mrb[31].mxu1  ;;  %v2600_v10 = vpop.f32.mrb[29].mxu0 }
 0x136   : > { %1332 = vst.msk [vmem:[#allocation3 + $0x20] sm:$0xff] %vm558_vm1, %v1324_v3  ;;  %v1325_v11 = vadd.f32 %v1317_v8, %v1300_v48  ;;  %v2603_v12 = vpop.f32.mrb[30].mxu0 }
 0x137   : > { %1335 = vst.msk [vmem:[#allocation3 + $0x38] sm:$0xff] %vm558_vm1, %v1327_v1  ;;  %v2606_v13 = vpop.f32.mrb[31].mxu0 }
 0x138   : > { %v1437_v14 = vld [vmem:[#allocation3 + $0x10] sm:$0xff]  ;;  %1333 = vst.msk [vmem:[#allocation3 + $0x28] sm:$0xff] %vm558_vm1, %v1325_v11 }
 0x139   : > { %v1445_v15 = vadd.f32 %v2577_v24, %v1437_v14  ;;  %v1435_v16 = vld [vmem:[#allocation3] sm:$0xff] }
 0x13a   : > { %v1443_v2 = vadd.f32 %v1435_v16, %v2579_v28  ;;  %v1438_v17 = vld [vmem:[#allocation3 + $0x18] sm:$0xff]  ;;  %v2218_v18 = vpop.f32.mrb[32].mxu1 }
 0x13b   : > { %1453 = vst.msk [vmem:[#allocation3 + $0x10] sm:$0xff] %vm558_vm1, %v1445_v15  ;;  %v1446_v19 = vadd.f32 %v2581_v31, %v1438_v17  ;;  %v1436_v20 = vld [vmem:[#allocation3 + $0x8] sm:$0xff]  ;;  %v1542_v21 = vpop.f32.mrb[33].mxu1 }
 0x13c   : > { %1451 = vst.msk [vmem:[#allocation3] sm:$0xff] %vm558_vm1, %v1443_v2  ;;  %v1444_v4 = vadd.f32 %v1436_v20, %v2584_v34  ;;  %v1441_v22 = vld [vmem:[#allocation3 + $0x30] sm:$0xff]  ;;  %v2219_v23 = vpop.f32.mrb[34].mxu1  ;;  %v2228_v25 = vpop.f32.mrb[32].mxu0 }
 0x13d   : > { %1454 = vst.msk [vmem:[#allocation3 + $0x18] sm:$0xff] %vm558_vm1, %v1446_v19  ;;  %v1449_v24 = vadd.f32 %v2208_v47, %v1441_v22  ;;  %v1439_v26 = vld [vmem:[#allocation3 + $0x20] sm:$0xff]  ;;  %v1545_v27 = vpop.f32.mrb[35].mxu1  ;;  %v1664_v28 = vpop.f32.mrb[33].mxu0 }
 0x13e   : > { %1452 = vst.msk [vmem:[#allocation3 + $0x8] sm:$0xff] %vm558_vm1, %v1444_v4  ;;  %v1447_v29 = vadd.f32 %v1439_v26, %v1420_v49  ;;  %v1442_v30 = vld [vmem:[#allocation3 + $0x38] sm:$0xff]  ;;  %v2229_v31 = vpop.f32.mrb[34].mxu0 }
 0x13f   : > { %1457 = vst.msk [vmem:[#allocation3 + $0x30] sm:$0xff] %vm558_vm1, %v1449_v24  ;;  %v1450_v32 = vadd.f32 %v2209_v51, %v1442_v30  ;;  %v1440_v33 = vld [vmem:[#allocation3 + $0x28] sm:$0xff]  ;;  %v1667_v35 = vpop.f32.mrb[35].mxu0 }
 0x140   : > { %1455 = vst.msk [vmem:[#allocation3 + $0x20] sm:$0xff] %vm558_vm1, %v1447_v29  ;;  %v1448_v34 = vadd.f32 %v1440_v33, %v1423_v54 }
 0x141   : > { %1458 = vst.msk [vmem:[#allocation3 + $0x38] sm:$0xff] %vm558_vm1, %v1450_v32 }
 0x142   : > { %v1559_v36 = vld [vmem:[#allocation3 + $0x10] sm:$0xff]  ;;  %1456 = vst.msk [vmem:[#allocation3 + $0x28] sm:$0xff] %vm558_vm1, %v1448_v34 }
 0x143   : > { %v1567_v37 = vadd.f32 %v2214_v61, %v1559_v36  ;;  %v1557_v38 = vld [vmem:[#allocation3] sm:$0xff] }
 0x144   : > { %v1565_v39 = vadd.f32 %v1557_v38, %v1526_v0  ;;  %v1560_v40 = vld [vmem:[#allocation3 + $0x18] sm:$0xff] }
 0x145   : > { %1575 = vst.msk [vmem:[#allocation3 + $0x10] sm:$0xff] %vm558_vm1, %v1567_v37  ;;  %v1568_v41 = vadd.f32 %v2215_v6, %v1560_v40  ;;  %v1558_v42 = vld [vmem:[#allocation3 + $0x8] sm:$0xff] }
 0x146   : > { %1573 = vst.msk [vmem:[#allocation3] sm:$0xff] %vm558_vm1, %v1565_v39  ;;  %v1566_v43 = vadd.f32 %v1558_v42, %v1529_v9  ;;  %v1563_v44 = vld [vmem:[#allocation3 + $0x30] sm:$0xff] }
 0x147   : > { %1576 = vst.msk [vmem:[#allocation3 + $0x18] sm:$0xff] %vm558_vm1, %v1568_v41  ;;  %v1571_v45 = vadd.f32 %v2218_v18, %v1563_v44  ;;  %v1561_v46 = vld [vmem:[#allocation3 + $0x20] sm:$0xff] }
 0x148   : > { %1574 = vst.msk [vmem:[#allocation3 + $0x8] sm:$0xff] %vm558_vm1, %v1566_v43  ;;  %v1569_v47 = vadd.f32 %v1561_v46, %v1542_v21  ;;  %v1564_v48 = vld [vmem:[#allocation3 + $0x38] sm:$0xff] }
 0x149   : > { %1579 = vst.msk [vmem:[#allocation3 + $0x30] sm:$0xff] %vm558_vm1, %v1571_v45  ;;  %v1572_v49 = vadd.f32 %v2219_v23, %v1564_v48  ;;  %v1562_v50 = vld [vmem:[#allocation3 + $0x28] sm:$0xff] }
 0x14a   : > { %1577 = vst.msk [vmem:[#allocation3 + $0x20] sm:$0xff] %vm558_vm1, %v1569_v47  ;;  %v1570_v51 = vadd.f32 %v1562_v50, %v1545_v27 }
 0x14b   : > { %1580 = vst.msk [vmem:[#allocation3 + $0x38] sm:$0xff] %vm558_vm1, %v1572_v49 }
 0x14c   : > { %v1681_v52 = vld [vmem:[#allocation3 + $0x10] sm:$0xff]  ;;  %1578 = vst.msk [vmem:[#allocation3 + $0x28] sm:$0xff] %vm558_vm1, %v1570_v51 }
 0x14d   : > { %v1689_v53 = vadd.f32 %v2597_v7, %v1681_v52  ;;  %v1679_v54 = vld [vmem:[#allocation3] sm:$0xff] }
 0x14e   : > { %v1687_v55 = vadd.f32 %v1679_v54, %v2600_v10  ;;  %v1682_v56 = vld [vmem:[#allocation3 + $0x18] sm:$0xff] }
 0x14f   : > { %1697 = vst.msk [vmem:[#allocation3 + $0x10] sm:$0xff] %vm558_vm1, %v1689_v53  ;;  %v1690_v57 = vadd.f32 %v2603_v12, %v1682_v56  ;;  %v1680_v58 = vld [vmem:[#allocation3 + $0x8] sm:$0xff] }
 0x150   : > { %1695 = vst.msk [vmem:[#allocation3] sm:$0xff] %vm558_vm1, %v1687_v55  ;;  %v1688_v59 = vadd.f32 %v1680_v58, %v2606_v13  ;;  %v1685_v60 = vld [vmem:[#allocation3 + $0x30] sm:$0xff] }
 0x151   : > { %1698 = vst.msk [vmem:[#allocation3 + $0x18] sm:$0xff] %vm558_vm1, %v1690_v57  ;;  %v1693_v61 = vadd.f32 %v2228_v25, %v1685_v60  ;;  %v1683_v62 = vld [vmem:[#allocation3 + $0x20] sm:$0xff] }
 0x152   : > { %1696 = vst.msk [vmem:[#allocation3 + $0x8] sm:$0xff] %vm558_vm1, %v1688_v59  ;;  %v1691_v63 = vadd.f32 %v1683_v62, %v1664_v28  ;;  %v1686_v0 = vld [vmem:[#allocation3 + $0x38] sm:$0xff] }
 0x153   : > { %1701 = vst.msk [vmem:[#allocation3 + $0x30] sm:$0xff] %vm558_vm1, %v1693_v61  ;;  %v1694_v3 = vadd.f32 %v2229_v31, %v1686_v0  ;;  %v1684_v5 = vld [vmem:[#allocation3 + $0x28] sm:$0xff] }
 0x154   : > { %1699 = vst.msk [vmem:[#allocation3 + $0x20] sm:$0xff] %vm558_vm1, %v1691_v63  ;;  %v1692_v6 = vadd.f32 %v1684_v5, %v1667_v35 }
 0x155   : > { %1702 = vst.msk [vmem:[#allocation3 + $0x38] sm:$0xff] %vm558_vm1, %v1694_v3 }
 0x156   : > { %v1705_v7 = vld [vmem:[#allocation3 + $0x10] sm:$0xff]  ;;  %1700 = vst.msk [vmem:[#allocation3 + $0x28] sm:$0xff] %vm558_vm1, %v1692_v6 }
 0x157   : > { %v2069_v1 = vpack.c.bf16 %v1705_v7, %v1705_v7  ;;  %v1703_v8 = vld [vmem:[#allocation3] sm:$0xff]  ;;  %v1735_v12 = vmul.f32 %v1705_v7, %v1705_v7  ;;  %v1714_v19 = vsel %vm558_vm1, %v1705_v7, 0.0 }
 0x158   : > { %v1733_v9 = vmul.f32 %v1703_v8, %v1703_v8  ;;  %v2067_v10 = vpack.c.bf16 %v1703_v8, %v1703_v8  ;;  %v1706_v11 = vld [vmem:[#allocation3 + $0x18] sm:$0xff]  ;;  %v1711_v15 = vsel %vm558_vm1, %v1703_v8, 0.0 }
 0x159   : > { %1798 = vst.msk [vmem:[%s2644_s11 + $0x8] sm:$0xf] %vm1795_vm2, %v2069_v1  ;;  %v2070_v13 = vpack.c.bf16 %v1706_v11, %v1706_v11  ;;  %v1704_v14 = vld [vmem:[#allocation3 + $0x8] sm:$0xff]  ;;  %v1736_v22 = vmul.f32 %v1706_v11, %v1706_v11  ;;  %v1744_v30 = vsel %vm558_vm1, %v1735_v12, 0.0  ;;  %v1716_v31 = vsel %vm558_vm1, %v1706_v11, 0.0 }
 0x15a   : > { %1796 = vst.msk [vmem:[%s2644_s11] sm:$0xf] %vm1795_vm2, %v2067_v10  ;;  %v1712_v16 = vsel %vm558_vm1, %v1704_v14, 0.0  ;;  %v1734_v2 = vmul.f32 %v1704_v14, %v1704_v14  ;;  %v2068_v17 = vpack.c.bf16 %v1704_v14, %v1704_v14  ;;  %v1709_v18 = vld [vmem:[#allocation3 + $0x30] sm:$0xff]  ;;  %v1741_v4 = vsel %vm558_vm1, %v1733_v9, 0.0 }
 0x15b   : > { %1799 = vst.msk [vmem:[%s2644_s11 + $0xc] sm:$0xf] %vm1795_vm2, %v2070_v13  ;;  %v1713_v20 = vadd.f32 %v1712_v16, %v1711_v15  ;;  %v1707_v21 = vld [vmem:[#allocation3 + $0x20] sm:$0xff]  ;;  %v2073_v25 = vpack.c.bf16 %v1709_v18, %v1709_v18  ;;  %v1746_v36 = vsel %vm558_vm1, %v1736_v22, 0.0  ;;  %v1739_v42 = vmul.f32 %v1709_v18, %v1709_v18 }
 0x15c   : > { %v1742_v23 = vsel %vm558_vm1, %v1734_v2, 0.0  ;;  %1797 = vst.msk [vmem:[%s2644_s11 + $0x4] sm:$0xf] %vm1795_vm2, %v2068_v17  ;;  %v1710_v24 = vld [vmem:[#allocation3 + $0x38] sm:$0xff]  ;;  %v2071_v28 = vpack.c.bf16 %v1707_v21, %v1707_v21  ;;  %v1737_v32 = vmul.f32 %v1707_v21, %v1707_v21  ;;  %v1718_v37 = vsel %vm558_vm1, %v1707_v21, 0.0 }
 0x15d   : > { %v1715_v26 = vadd.f32 %v1714_v19, %v1713_v20  ;;  %v1743_v27 = vadd.f32 %v1742_v23, %v1741_v4  ;;  %v1708_v29 = vld [vmem:[#allocation3 + $0x28] sm:$0xff]  ;;  %1802 = vst.msk [vmem:[%s2644_s11 + $0x18] sm:$0xf] %vm1795_vm2, %v2073_v25  ;;  %v2074_v33 = vpack.c.bf16 %v1710_v24, %v1710_v24  ;;  %v1722_v47 = vsel %vm558_vm1, %v1709_v18, 0.0 }
 0x15e   : > { %1800 = vst.msk [vmem:[%s2644_s11 + $0x10] sm:$0xf] %vm1795_vm2, %v2071_v28  ;;  %v1738_v38 = vmul.f32 %v1708_v29, %v1708_v29  ;;  %v2072_v39 = vpack.c.bf16 %v1708_v29, %v1708_v29  ;;  %v1748_v43 = vsel %vm558_vm1, %v1737_v32, 0.0  ;;  %v1720_v44 = vsel %vm558_vm1, %v1708_v29, 0.0 }
 0x15f   : > { %v1745_v35 = vadd.f32 %v1744_v30, %v1743_v27  ;;  %v1717_v34 = vadd.f32 %v1716_v31, %v1715_v26  ;;  %1803 = vst.msk [vmem:[%s2644_s11 + $0x1c] sm:$0xf] %vm1795_vm2, %v2074_v33  ;;  %v1740_v48 = vmul.f32 %v1710_v24, %v1710_v24  ;;  %v1752_v52 = vsel %vm558_vm1, %v1739_v42, 0.0 }
 0x160   : > { %1801 = vst.msk [vmem:[%s2644_s11 + $0x14] sm:$0xf] %vm1795_vm2, %v2072_v39  ;;  %v1750_v49 = vsel %vm558_vm1, %v1738_v38, 0.0  ;;  %v1724_v53 = vsel %vm558_vm1, %v1710_v24, 0.0 }
 0x161   : > { %v1719_v40 = vadd.f32 %v1718_v37, %v1717_v34  ;;  %v1747_v41 = vadd.f32 %v1746_v36, %v1745_v35  ;;  %v1754_v56 = vsel %vm558_vm1, %v1740_v48, 0.0 }
 0x163   : > { %v1749_v45 = vadd.f32 %v1748_v43, %v1747_v41  ;;  %v1721_v46 = vadd.f32 %v1720_v44, %v1719_v40 }
 0x165   : > { %v1723_v50 = vadd.f32 %v1722_v47, %v1721_v46  ;;  %v1751_v51 = vadd.f32 %v1750_v49, %v1749_v45 }
 0x167   : > { %v1725_v54 = vadd.f32 %v1724_v53, %v1723_v50  ;;  %v1753_v55 = vadd.f32 %v1752_v52, %v1751_v51 }
 0x169   : > { %v1726_v57 = vrot.slane %v1725_v54, 4  ;;  %v1755_v58 = vadd.f32 %v1754_v56, %v1753_v55 }
 0x16b   : > { %v1727_v59 = vadd.f32 %v1726_v57, %v1725_v54  ;;  %v1756_v60 = vrot.slane %v1755_v58, 4 }
 0x16d   : > { %v1728_v61 = vrot.slane %v1727_v59, 2  ;;  %v1757_v62 = vadd.f32 %v1756_v60, %v1755_v58 }
 0x16f   : > { %v1729_v63 = vadd.f32 %v1728_v61, %v1727_v59  ;;  %v1758_v0 = vrot.slane %v1757_v62, 2 }
 0x171   : > { %v1730_v3 = vrot.slane %v1729_v63, 1  ;;  %v1759_v5 = vadd.f32 %v1758_v0, %v1757_v62 }
 0x173   : > { %v1731_v6 = vadd.f32 %v1730_v3, %v1729_v63  ;;  %v1760_v7 = vrot.slane %v1759_v5, 1 }
 0x175   : > { %1732 = vst.msk [vmem:[%s480_s15] sm:$0x1] %vm482_vm0, %v1731_v6  ;;  %v1761_v1 = vadd.f32 %v1760_v7, %v1759_v5 }
 0x177   : > { %1762 = vst.msk [vmem:[%s480_s15 + $0x1] sm:$0x1] %vm482_vm0, %v1761_v1 }
 0x178 PF: > { %s19_s29 = sadd.s32 1, %s2288_s29   ;;  %s2703_s27 = smov %s2284_s28 }
 0x179   : > { %p16_p5 = scmp.ge.s32.totalorder %s19_s29, 4   ;;  %s2704_s28 = smov %s2706_s30 }
 0x17b   :  { %18 = sbr.rel (!%p16_p5) target bundleno = 2 (0x2), region = 111 }

// kernel: _lambda_.13
= control target key start
LH: loop header
LB: loop body
LE: loop exit
PB: predicated region body
PF: predicated region fallthrough
CT: control target
= control target key end

     0   :  { %s541_s12 = smov 0   ;;  %s543_s13 = smov 0   ;;  %s610_s0 = inlined_call_operand.vmem [shape: bf16[2,8,4,32], index: 0, kind: input, shape index: {}]   ;;  %s611_s1 = inlined_call_operand.vmem [shape: f32[1,1,16], index: 1, kind: input, shape index: {}]   ;;  %s612_s2 = inlined_call_operand.vmem [shape: f32[1,1,16], index: 2, kind: input, shape index: {}]   ;;  %s613_s3 = inlined_call_operand.vmem [shape: bf16[2,4,4,16], index: 3, kind: output, shape index: {}]  }
   0x1   :  { %s545_s14 = smov 0  }
   0x2 LB: > { %s25_s15 = sadd.s32 1, %s513_s13  ;;  %p438_p0 = scmp.ge.s32.totalorder %s517_s14, 1  ;;  %s517_s14 = sphi %s545_s14, %s13_s14   ;;  %s513_s13 = sphi %s543_s13, %s615_s13   ;;  %s509_s12 = sphi %s541_s12, %s614_s12  }
   0x3   : > { %p27_p1 = scmp.ge.s32.totalorder %s25_s15, 2  ;;  %p158_p2 = scmp.lt.s32.totalorder %s517_s14, 3 }
   0x5   : > { %s617_s15 = smov (%p27_p1, %s25_s15), 0  ;;  %p159_p3 = pnand %p438_p0, %p158_p2 }
   0x6   : > { %v562_v0 = vld [vmem:[%s611_s1] ss:$0 sm:$0xff] (!%p159_p3)  ;;  %s519_s18 = smov (!%p159_p3), 16   ;;  %p191_p4 = scmp.lt.s32.totalorder (!%p159_p3), %s509_s12, 1  ;;  %vm342_vm0 = vcmask (!%p159_p3), 123904  }
   0x7   : > { %162 = sbr.rel (%p159_p3) target bundleno = 264 (0x108), region = 32  ;;  %264 = vrot.lane.b32.xlu0 (!%p159_p3), %v562_v0, %s519_s18  ;;  %v568_v1 = vld [vmem:[%s612_s2] ss:$0 sm:$0xff] (!%p159_p3)  ;;  %s520_s25 = smov (!%p159_p3), 112  }
   0xb   : > { %275 = vrot.lane.b32.xlu0 (!%p159_p3), %v568_v1, %s519_s18 }
   0xe   : > { %s619_s12 = smov (!%p191_p4, %s509_s12), 1 }
   0xf   : > { %s447_s21 = sshll.u32 %s619_s12, 4  ;;  %s448_s26 = sshll.u32 %s619_s12, 3 }
  0x10   : > { %s198_s24 = scalar_lea.vmem %s610_s0, %s447_s21  ;;  %s208_s29 = scalar_lea.vmem %s613_s3, %s448_s26 }
  0x11   : > { %v214_v2 = vld [vmem:[%s198_s24 + $0x8] sm:$0x3]  ;;  %v215_v3 = vld [vmem:[%s198_s24 + $0xa] sm:$0x3]  ;;  %v210_v4 = vld [vmem:[%s198_s24] sm:$0x3] }
  0x12   : > { %v211_v5 = vld [vmem:[%s198_s24 + $0x2] sm:$0x3]  ;;  %v212_v6 = vld [vmem:[%s198_s24 + $0x4] sm:$0x3]  ;;  %v213_v7 = vld [vmem:[%s198_s24 + $0x6] sm:$0x3]  ;;  %v222_v8 = vunpack.c.l.bf16 %v214_v2  ;;  %v223_v9 = vunpack.c.l.bf16 %v215_v3  ;;  %v218_v10 = vunpack.c.l.bf16 %v210_v4 }
  0x13   : > { %v219_v11 = vunpack.c.l.bf16 %v211_v5  ;;  %v216_v12 = vld [vmem:[%s198_s24 + $0xc] sm:$0x3]  ;;  %v217_v13 = vld [vmem:[%s198_s24 + $0xe] sm:$0x3]  ;;  %v220_v15 = vunpack.c.l.bf16 %v212_v6  ;;  %v221_v16 = vunpack.c.l.bf16 %v213_v7 }
  0x14   : > { %v224_v17 = vunpack.c.l.bf16 %v216_v12  ;;  %v225_v18 = vunpack.c.l.bf16 %v217_v13  ;;  %v238_v48 = vmul.f32 %v562_v0, %v223_v9  ;;  %v237_v49 = vmul.f32 %v562_v0, %v222_v8 }
  0x15   : > { %v234_v50 = vmul.f32 %v562_v0, %v219_v11  ;;  %v233_v51 = vmul.f32 %v562_v0, %v218_v10  ;;  %v235_v52 = vmul.f32 %v562_v0, %v220_v15  ;;  %v236_v53 = vmul.f32 %v562_v0, %v221_v16 }
  0x16   : > { %v253_v54 = vadd.f32 %v568_v1, %v238_v48  ;;  %v252_v55 = vadd.f32 %v568_v1, %v237_v49  ;;  %v239_v60 = vmul.f32 %v562_v0, %v224_v17  ;;  %v240_v61 = vmul.f32 %v562_v0, %v225_v18 }
  0x17   : > { %v249_v56 = vadd.f32 %v568_v1, %v234_v50  ;;  %v248_v57 = vadd.f32 %v568_v1, %v233_v51  ;;  %v250_v58 = vadd.f32 %v568_v1, %v235_v52  ;;  %v251_v59 = vadd.f32 %v568_v1, %v236_v53 }
  0x18   : > { %v261_v62 = vmax.f32 %v253_v54, 0.0  ;;  %v260_v63 = vmax.f32 %v252_v55, 0.0  ;;  %v254_v12 = vadd.f32 %v568_v1, %v239_v60  ;;  %v255_v13 = vadd.f32 %v568_v1, %v240_v61 }
  0x19   : > { %v257_v2 = vmax.f32 %v249_v56, 0.0  ;;  %v256_v3 = vmax.f32 %v248_v57, 0.0 }
  0x79   : > { %v265_v14 = vpop.permute.xlu0 %264 }
  0x7a   : > { %v271_v19 = vmul.f32 %v265_v14, %v222_v8  ;;  %v272_v20 = vmul.f32 %v265_v14, %v223_v9  ;;  %v267_v21 = vmul.f32 %v265_v14, %v218_v10  ;;  %v268_v22 = vmul.f32 %v265_v14, %v219_v11 }
  0x7b   : > { %v269_v24 = vmul.f32 %v265_v14, %v220_v15  ;;  %v270_v25 = vmul.f32 %v265_v14, %v221_v16  ;;  %v273_v32 = vmul.f32 %v265_v14, %v224_v17  ;;  %v274_v33 = vmul.f32 %v265_v14, %v225_v18 }
  0x7c   : > { %v258_v10 = vmax.f32 %v250_v58, 0.0  ;;  %v259_v11 = vmax.f32 %v251_v59, 0.0 }
  0x7d   : > { %v276_v23 = vpop.permute.xlu0 %275 }
  0x7e   : > { %v282_v26 = vadd.f32 %v276_v23, %v271_v19  ;;  %v283_v27 = vadd.f32 %v276_v23, %v272_v20  ;;  %v278_v28 = vadd.f32 %v276_v23, %v267_v21  ;;  %v279_v29 = vadd.f32 %v276_v23, %v268_v22 }
  0x7f   : > { %v280_v30 = vadd.f32 %v276_v23, %v269_v24  ;;  %v281_v31 = vadd.f32 %v276_v23, %v270_v25  ;;  %v284_v38 = vadd.f32 %v276_v23, %v273_v32  ;;  %v285_v39 = vadd.f32 %v276_v23, %v274_v33 }
  0x80   : > { %v290_v34 = vmax.f32 %v282_v26, 0.0  ;;  %v291_v35 = vmax.f32 %v283_v27, 0.0  ;;  %v286_v36 = vmax.f32 %v278_v28, 0.0  ;;  %v287_v37 = vmax.f32 %v279_v29, 0.0 }
  0x81   : > { %v288_v42 = vmax.f32 %v280_v30, 0.0  ;;  %v289_v43 = vmax.f32 %v281_v31, 0.0  ;;  %v292_v45 = vmax.f32 %v284_v38, 0.0  ;;  %v293_v46 = vmax.f32 %v285_v39, 0.0 }
  0x82   : > { %v485_v40 = vpack.i.bf16 %v291_v35, %v290_v34  ;;  %v475_v41 = vpack.i.bf16 %v287_v37, %v286_v36  ;;  %v262_v22 = vmax.f32 %v254_v12, 0.0  ;;  %v263_v23 = vmax.f32 %v255_v13, 0.0 }
  0x83   : > { %v480_v44 = vpack.i.bf16 %v289_v43, %v288_v42  ;;  %v490_v47 = vpack.i.bf16 %v293_v46, %v292_v45 }
  0x84   : > { %486 = vrot.lane.b32.xlu0 %v485_v40, %s520_s25  ;;  %476 = vrot.lane.b32.xlu1 %v475_v41, %s520_s25 }
  0x88   : > { %481 = vrot.lane.b32.xlu1 %v480_v44, %s520_s25 }
  0x8c   : > { %491 = vrot.lane.b32.xlu1 %v490_v47, %s520_s25 }
  0xf6   : > { %v487_v4 = vpop.permute.xlu0 %486  ;;  %v477_v5 = vpop.permute.xlu1 %476 }
  0xf7   : > { %v489_v6 = vunpack.i.h.bf16 %v487_v4  ;;  %v488_v7 = vunpack.i.l.bf16 %v487_v4  ;;  %v479_v8 = vunpack.i.h.bf16 %v477_v5  ;;  %v478_v9 = vunpack.i.l.bf16 %v477_v5 }
  0xf9   : > { %v331_v14 = vmax.f32 %v261_v62, %v489_v6  ;;  %v330_v15 = vmax.f32 %v260_v63, %v488_v7  ;;  %v327_v0 = vmax.f32 %v257_v2, %v479_v8  ;;  %v326_v16 = vmax.f32 %v256_v3, %v478_v9 }
  0xfa   : > { %v482_v17 = vpop.permute.xlu1 %481 }
  0xfb   : > { %v336_v18 = vmax.f32 %v330_v15, %v331_v14  ;;  %v334_v19 = vmax.f32 %v326_v16, %v327_v0  ;;  %v484_v20 = vunpack.i.h.bf16 %v482_v17  ;;  %v483_v21 = vunpack.i.l.bf16 %v482_v17 }
  0xfd   : > { %v340_v24 = vpack.c.bf16 %v336_v18, %v336_v18  ;;  %v338_v25 = vpack.c.bf16 %v334_v19, %v334_v19  ;;  %v329_v1 = vmax.f32 %v259_v11, %v484_v20  ;;  %v328_v26 = vmax.f32 %v258_v10, %v483_v21 }
  0xfe   : > { %v492_v27 = vpop.permute.xlu1 %491 }
  0xff   : > { %345 = vst.msk [vmem:[%s208_s29 + $0x4] sm:$0x3] %vm342_vm0, %v340_v24  ;;  %343 = vst.msk [vmem:[%s208_s29] sm:$0x3] %vm342_vm0, %v338_v25  ;;  %v335_v28 = vmax.f32 %v328_v26, %v329_v1  ;;  %v494_v29 = vunpack.i.h.bf16 %v492_v27  ;;  %v493_v30 = vunpack.i.l.bf16 %v492_v27 }
 0x101   : > { %v339_v31 = vpack.c.bf16 %v335_v28, %v335_v28  ;;  %v333_v32 = vmax.f32 %v263_v23, %v494_v29  ;;  %v332_v33 = vmax.f32 %v262_v22, %v493_v30 }
 0x103   : > { %344 = vst.msk [vmem:[%s208_s29 + $0x2] sm:$0x3] %vm342_vm0, %v339_v31  ;;  %v337_v34 = vmax.f32 %v332_v33, %v333_v32 }
 0x105   : > { %v341_v35 = vpack.c.bf16 %v337_v34, %v337_v34 }
 0x107   : > { %346 = vst.msk [vmem:[%s208_s29 + $0x6] sm:$0x3] %vm342_vm0, %v341_v35 }
 0x108 PF: > { %s13_s14 = sadd.s32 1, %s517_s14   ;;  %s614_s12 = smov %s513_s13 }
 0x109   : > { %p10_p5 = scmp.ge.s32.totalorder %s13_s14, 4   ;;  %s615_s13 = smov %s617_s15 }
 0x10b   :  { %12 = sbr.rel (!%p10_p5) target bundleno = 2 (0x2), region = 62 }

// kernel: _lambda_.9
= control target key start
LH: loop header
LB: loop body
LE: loop exit
PB: predicated region body
PF: predicated region fallthrough
CT: control target
= control target key end

     0   :  { %s5247_s27 = smov 0   ;;  %s5249_s28 = smov 0   ;;  %s6399_s0 = inlined_call_operand.vmem [shape: bf16[2,16,16,4], index: 0, kind: input, shape index: {}, may-alias: {0,1,2}]   ;;  %s6400_s1 = inlined_call_operand.vmem [shape: bf16[2,16,16,4], index: 1, kind: input, shape index: {}, may-alias: {0,1,2}]   ;;  %s6401_s2 = inlined_call_operand.vmem [shape: bf16[2,16,16,4], index: 2, kind: input, shape index: {}, may-alias: {0,1,2}]   ;;  %s6402_s3 = inlined_call_operand.vmem [shape: bf16[9,4,8], index: 3, kind: input, shape index: {}]   ;;  %s6403_s4 = inlined_call_operand.vmem [shape: f32[1,8], index: 4, kind: input, shape index: {}]   ;;  %s6404_s5 = inlined_call_operand.vmem [shape: f32[1,1,4], index: 5, kind: input, shape index: {}]   ;;  %s6405_s6 = inlined_call_operand.vmem [shape: f32[1,1,4], index: 6, kind: input, shape index: {}]   ;;  %s6406_s7 = inlined_call_operand.vmem [shape: bf16[2,1,256,8], index: 7, kind: output, shape index: {0}]   ;;  %s6407_s8 = inlined_call_operand.vmem [shape: f32[2,1,2,8], index: 8, kind: output, shape index: {1}]  }
   0x1   :  { %s5251_s29 = smov 0  }
   0x2 LB: > { %s31_s5 = sadd.s32 1, %s5195_s28  ;;  %p4359_p0 = scmp.ge.s32.totalorder %s5199_s29, 1  ;;  %s5199_s29 = sphi %s5251_s29, %s19_s29   ;;  %s5195_s28 = sphi %s5249_s28, %s6409_s28   ;;  %s5191_s27 = sphi %s5247_s27, %s6408_s27  }
   0x3   : > { %p33_p1 = scmp.ge.s32.totalorder %s31_s5, 2  ;;  %p353_p2 = scmp.lt.s32.totalorder %s5199_s29, 3 }
   0x5   : > { %s6411_s5 = smov (%p33_p1, %s31_s5), 0  ;;  %p354_p3 = pnand %p4359_p0, %p353_p2 }
   0x6   : > { %v695_v0 = vld [vmem:[%s6402_s3] sm:$0x3] (!%p354_p3)  ;;  %vm751_vm0 = vcmask (!%p354_p3), 1041408   ;;  %p430_p4 = scmp.lt.s32.totalorder (!%p354_p3), %s5191_s27, 1  ;;  %vm491_vm1 = vcmask (!%p354_p3), 24576   ;;  %v5201_v2 = vmov (!%p354_p3), 0.0  }
   0x7   : > { %357 = sbr.rel (%p354_p3) target bundleno = 584 (0x248), region = 48  ;;  %5143 = vmatprep.subr.msk.bf16.mxu1 (!%p354_p3), %vm751_vm0, %v695_v0  ;;  %v753_v1 = vsel (!%p354_p3), %vm751_vm0, %v695_v0, 0  ;;  %500 = vst.msk [vmem:[#allocation2 + $0xc0] sm:$0x1] (!%p354_p3), %vm491_vm1, %v5201_v2  ;;  %492 = vst.msk [vmem:[#allocation2] sm:$0x1] (!%p354_p3), %vm491_vm1, %v5201_v2  ;;  %5142 = vmatprep.subr.msk.bf16.mxu0 (!%p354_p3), %vm751_vm0, %v695_v0 }
   0x8   : > { %493 = vst.msk [vmem:[#allocation2 + $0x18] sm:$0x1] (!%p354_p3), %vm491_vm1, %v5201_v2  ;;  %494 = vst.msk [vmem:[#allocation2 + $0x30] sm:$0x1] (!%p354_p3), %vm491_vm1, %v5201_v2  ;;  %v5348_v3 = vld [vmem:[%s6402_s3 + $0x2] sm:$0x3] (!%p354_p3)  ;;  %5141 = vmatpush3.bf16.msra.mxu1 (!%p354_p3), %v753_v1  ;;  %4835 = vmatpush3.bf16.msra.mxu0 (!%p354_p3), %v753_v1 }
   0x9   : > { %495 = vst.msk [vmem:[#allocation2 + $0x48] sm:$0x1] (!%p354_p3), %vm491_vm1, %v5201_v2  ;;  %496 = vst.msk [vmem:[#allocation2 + $0x60] sm:$0x1] (!%p354_p3), %vm491_vm1, %v5201_v2  ;;  %v5354_v4 = vld [vmem:[%s6402_s3 + $0x4] sm:$0x3] (!%p354_p3)  ;;  %5144 = vmatprep.subr.msk.bf16.mxu1 (!%p354_p3), %vm751_vm0, %v5348_v3 }
   0xa   : > { %497 = vst.msk [vmem:[#allocation2 + $0x78] sm:$0x1] (!%p354_p3), %vm491_vm1, %v5201_v2  ;;  %498 = vst.msk [vmem:[#allocation2 + $0x90] sm:$0x1] (!%p354_p3), %vm491_vm1, %v5201_v2  ;;  %5145 = vmatprep.subr.msk.bf16.mxu0 (!%p354_p3), %vm751_vm0, %v5354_v4  ;;  %vm593_vm2 = vcmask (!%p354_p3), 31744   ;;  %v1048_v61 = vsel (!%p354_p3), %vm751_vm0, %v5348_v3, 0 }
   0xb   : > { %499 = vst.msk [vmem:[#allocation2 + $0xa8] sm:$0x1] (!%p354_p3), %vm491_vm1, %v5201_v2  ;;  %501 = vst.msk [vmem:[#allocation2 + $0xd8] sm:$0x1] (!%p354_p3), %vm491_vm1, %v5201_v2  ;;  %vm916_vm3 = vcmask (!%p354_p3), 64512   ;;  %vm4147_vm4 = vcmask (!%p354_p3), 60416  }
   0xc   : > { %502 = vst.msk [vmem:[#allocation2 + $0xf0] sm:$0x1] (!%p354_p3), %vm491_vm1, %v5201_v2  ;;  %503 = vst.msk [vmem:[#allocation2 + $0x108] sm:$0x1] (!%p354_p3), %vm491_vm1, %v5201_v2  ;;  %vm3915_vm5 = vcmask (!%p354_p3), 57344  }
   0xd   : > { %504 = vst.msk [vmem:[#allocation2 + $0x120] sm:$0x1] (!%p354_p3), %vm491_vm1, %v5201_v2  ;;  %505 = vst.msk [vmem:[#allocation2 + $0x138] sm:$0x1] (!%p354_p3), %vm491_vm1, %v5201_v2 }
   0xe   : > { %506 = vst.msk [vmem:[#allocation2 + $0x150] sm:$0x1] %vm491_vm1, %v5201_v2  ;;  %507 = vst.msk [vmem:[#allocation2 + $0x168] sm:$0x1] %vm491_vm1, %v5201_v2  ;;  %s6413_s27 = smov (!%p430_p4, %s5191_s27), 1 }
   0xf   : > { %508 = vst.msk [vmem:[#allocation2 + $0x180] sm:$0x1] %vm491_vm1, %v5201_v2  ;;  %509 = vst.msk [vmem:[#allocation2 + $0x198] sm:$0x1] %vm491_vm1, %v5201_v2  ;;  %s5366_s13 = sshll.u32 %s6413_s27, 7 }
  0x10   : > { %510 = vst.msk [vmem:[#allocation2 + $0x11] sm:$0x1] %vm491_vm1, %v5201_v2  ;;  %511 = vst.msk [vmem:[#allocation2 + $0x29] sm:$0x1] %vm491_vm1, %v5201_v2  ;;  %s5372_s16 = scalar_lea.vmem %s6399_s0, %s5366_s13  ;;  %s452_s19 = scalar_lea.vmem %s6400_s1, %s5366_s13 }
  0x11   : > { %512 = vst.msk [vmem:[#allocation2 + $0x41] sm:$0x1] %vm491_vm1, %v5201_v2  ;;  %513 = vst.msk [vmem:[#allocation2 + $0x59] sm:$0x1] %vm491_vm1, %v5201_v2  ;;  %v4672_v5 = vld [vmem:[%s5372_s16 + $0x38] sm:$0xff]   ;;  %v4673_v6 = vld [vmem:[%s5372_s16 + $0x40] sm:$0xff]   ;;  %s6117_s21 = scalar_lea.vmem %s6406_s7, %s5366_s13 }
  0x12   : > { %514 = vst.msk [vmem:[#allocation2 + $0x71] sm:$0x1] %vm491_vm1, %v5201_v2  ;;  %515 = vst.msk [vmem:[#allocation2 + $0x89] sm:$0x1] %vm491_vm1, %v5201_v2  ;;  %v4594_v7 = vld [vmem:[%s5372_s16] sm:$0xff]   ;;  %v4623_v8 = vunpack.c.l.bf16 %v4672_v5  ;;  %v4624_v9 = vunpack.c.h.bf16 %v4672_v5  ;;  %v4627_v10 = vunpack.c.l.bf16 %v4673_v6  ;;  %v4628_v11 = vunpack.c.h.bf16 %v4673_v6  ;;  %v4674_v13 = vld [vmem:[%s5372_s16 + $0x48] sm:$0xff]  }
  0x13   : > { %516 = vst.msk [vmem:[#allocation2 + $0xa1] sm:$0x1] %vm491_vm1, %v5201_v2  ;;  %517 = vst.msk [vmem:[#allocation2 + $0xb9] sm:$0x1] %vm491_vm1, %v5201_v2  ;;  %v4658_v12 = vld [vmem:[%s452_s19] sm:$0xff]   ;;  %v4675_v14 = vld [vmem:[%s5372_s16 + $0x50] sm:$0xff]   ;;  %v4595_v17 = vunpack.c.l.bf16 %v4594_v7  ;;  %v4596_v18 = vunpack.c.h.bf16 %v4594_v7  ;;  %v4631_v22 = vunpack.c.l.bf16 %v4674_v13  ;;  %v4632_v23 = vunpack.c.h.bf16 %v4674_v13 }
  0x14   : > { %518 = vst.msk [vmem:[#allocation2 + $0xd1] sm:$0x1] %vm491_vm1, %v5201_v2  ;;  %519 = vst.msk [vmem:[#allocation2 + $0xe9] sm:$0x1] %vm491_vm1, %v5201_v2  ;;  %v4659_v15 = vunpack.c.l.bf16 %v4658_v12  ;;  %v4660_v16 = vunpack.c.h.bf16 %v4658_v12  ;;  %v4666_v19 = vld [vmem:[%s5372_s16 + $0x8] sm:$0xff]   ;;  %v4667_v20 = vld [vmem:[%s5372_s16 + $0x10] sm:$0xff]   ;;  %v4635_v24 = vunpack.c.l.bf16 %v4675_v14  ;;  %v4636_v25 = vunpack.c.h.bf16 %v4675_v14 }
  0x15   : > { %520 = vst.msk [vmem:[#allocation2 + $0x101] sm:$0x1] %vm491_vm1, %v5201_v2  ;;  %521 = vst.msk [vmem:[#allocation2 + $0x119] sm:$0x1] %vm491_vm1, %v5201_v2  ;;  %v4676_v21 = vld [vmem:[%s5372_s16 + $0x58] sm:$0xff]   ;;  %v4677_v26 = vld [vmem:[%s5372_s16 + $0x60] sm:$0xff]   ;;  %v4599_v29 = vunpack.c.l.bf16 %v4666_v19  ;;  %v4600_v30 = vunpack.c.h.bf16 %v4666_v19  ;;  %v4603_v31 = vunpack.c.l.bf16 %v4667_v20  ;;  %v4604_v32 = vunpack.c.h.bf16 %v4667_v20 }
  0x16   : > { %522 = vst.msk [vmem:[#allocation2 + $0x131] sm:$0x1] %vm491_vm1, %v5201_v2  ;;  %523 = vst.msk [vmem:[#allocation2 + $0x149] sm:$0x1] %vm491_vm1, %v5201_v2  ;;  %v4668_v27 = vld [vmem:[%s5372_s16 + $0x18] sm:$0xff]   ;;  %v4669_v28 = vld [vmem:[%s5372_s16 + $0x20] sm:$0xff]   ;;  %v4639_v35 = vunpack.c.l.bf16 %v4676_v21  ;;  %v4640_v36 = vunpack.c.h.bf16 %v4676_v21  ;;  %v4643_v37 = vunpack.c.l.bf16 %v4677_v26  ;;  %v4644_v38 = vunpack.c.h.bf16 %v4677_v26 }
  0x17   : > { %524 = vst.msk [vmem:[#allocation2 + $0x161] sm:$0x1] %vm491_vm1, %v5201_v2  ;;  %525 = vst.msk [vmem:[#allocation2 + $0x179] sm:$0x1] %vm491_vm1, %v5201_v2  ;;  %v4678_v33 = vld [vmem:[%s5372_s16 + $0x68] sm:$0xff]   ;;  %v4679_v34 = vld [vmem:[%s5372_s16 + $0x70] sm:$0xff]   ;;  %v4607_v41 = vunpack.c.l.bf16 %v4668_v27  ;;  %v4608_v42 = vunpack.c.h.bf16 %v4668_v27  ;;  %v4611_v43 = vunpack.c.l.bf16 %v4669_v28  ;;  %v4612_v44 = vunpack.c.h.bf16 %v4669_v28 }
  0x18   : > { %526 = vst.msk [vmem:[#allocation2 + $0x191] sm:$0x1] %vm491_vm1, %v5201_v2  ;;  %527 = vst.msk [vmem:[#allocation2 + $0x1a9] sm:$0x1] %vm491_vm1, %v5201_v2  ;;  %v4670_v39 = vld [vmem:[%s5372_s16 + $0x28] sm:$0xff]   ;;  %v4671_v40 = vld [vmem:[%s5372_s16 + $0x30] sm:$0xff]   ;;  %v4647_v45 = vunpack.c.l.bf16 %v4678_v33  ;;  %v4648_v46 = vunpack.c.h.bf16 %v4678_v33  ;;  %v4651_v47 = vunpack.c.l.bf16 %v4679_v34  ;;  %v4652_v48 = vunpack.c.h.bf16 %v4679_v34 }
  0x19   : > { %608 = vst.msk [vmem:[#allocation2 + $0xc1] sm:$0xff] %vm593_vm2, %v4623_v8  ;;  %609 = vst.msk [vmem:[#allocation2 + $0xc9] sm:$0xff] %vm593_vm2, %v4624_v9  ;;  %v4615_v49 = vunpack.c.l.bf16 %v4670_v39  ;;  %v4616_v50 = vunpack.c.h.bf16 %v4670_v39  ;;  %v4619_v51 = vunpack.c.l.bf16 %v4671_v40  ;;  %v4620_v52 = vunpack.c.h.bf16 %v4671_v40  ;;  %v5456_v14 = vld [vmem:[%s6402_s3 + $0x8] sm:$0x3]  ;;  %s4559_s30 = sadd.s32 120, %s5366_s13  ;;  %s4368_s13 = sshll.u32 %s6413_s27, 1 }
  0x1a   : > { %610 = vst.msk [vmem:[#allocation2 + $0xd9] sm:$0xff] %vm593_vm2, %v4627_v10  ;;  %611 = vst.msk [vmem:[#allocation2 + $0xe1] sm:$0xff] %vm593_vm2, %v4628_v11  ;;  %v1406_v8 = vsel %vm751_vm0, %v5354_v4, 0  ;;  %v5448_v10 = vld [vmem:[%s6402_s3 + $0x6] sm:$0x3]  ;;  %s469_s11 = scalar_lea.vmem %s6401_s2, %s4559_s30  ;;  %s489_s24 = scalar_lea.vmem %s6407_s8, %s4368_s13 }
  0x1b   : > { %630 = vst.msk [vmem:[#allocation2 + $0x1] sm:$0xff] %vm593_vm2, %v4659_v15  ;;  %631 = vst.msk [vmem:[#allocation2 + $0x9] sm:$0xff] %vm593_vm2, %v4660_v16 }
  0x1c   : > { %594 = vst.msk [vmem:[#allocation2 + $0x19] sm:$0xff] %vm593_vm2, %v4595_v17  ;;  %595 = vst.msk [vmem:[#allocation2 + $0x21] sm:$0xff] %vm593_vm2, %v4596_v18 }
  0x1d   : > { %643 = vst.msk [vmem:[#allocation2 + $0x1] sm:$0xff] %vm593_vm2, %v5201_v2  ;;  %644 = vst.msk [vmem:[#allocation2 + $0x9] sm:$0xff] %vm593_vm2, %v5201_v2 }
  0x1e   : > { %612 = vst.msk [vmem:[#allocation2 + $0xf1] sm:$0xff] %vm593_vm2, %v4631_v22  ;;  %613 = vst.msk [vmem:[#allocation2 + $0xf9] sm:$0xff] %vm593_vm2, %v4632_v23 }
  0x1f   : > { %614 = vst.msk [vmem:[#allocation2 + $0x109] sm:$0xff] %vm593_vm2, %v4635_v24  ;;  %615 = vst.msk [vmem:[#allocation2 + $0x111] sm:$0xff] %vm593_vm2, %v4636_v25 }
  0x20   : > { %596 = vst.msk [vmem:[#allocation2 + $0x31] sm:$0xff] %vm593_vm2, %v4599_v29  ;;  %597 = vst.msk [vmem:[#allocation2 + $0x39] sm:$0xff] %vm593_vm2, %v4600_v30  ;;  %v663_v53 = vld [vmem:[#allocation2 + $0xc0] sm:$0xff]  ;;  %v664_v54 = vld [vmem:[#allocation2 + $0xc8] sm:$0xff] }
  0x21   : > { %598 = vst.msk [vmem:[#allocation2 + $0x49] sm:$0xff] %vm593_vm2, %v4603_v31  ;;  %599 = vst.msk [vmem:[#allocation2 + $0x51] sm:$0xff] %vm593_vm2, %v4604_v32  ;;  %v665_v55 = vld [vmem:[#allocation2 + $0xd8] sm:$0xff]  ;;  %v5429_v56 = vpack.c.bf16 %v664_v54, %v663_v53  ;;  %v666_v57 = vld [vmem:[#allocation2 + $0xe0] sm:$0xff] }
  0x22   : > { %616 = vst.msk [vmem:[#allocation2 + $0x121] sm:$0xff] %vm593_vm2, %v4639_v35  ;;  %617 = vst.msk [vmem:[#allocation2 + $0x129] sm:$0xff] %vm593_vm2, %v4640_v36  ;;  %v5431_v60 = vpack.c.bf16 %v666_v57, %v665_v55 }
  0x23   : > { %618 = vst.msk [vmem:[#allocation2 + $0x139] sm:$0xff] %vm593_vm2, %v4643_v37  ;;  %619 = vst.msk [vmem:[#allocation2 + $0x141] sm:$0xff] %vm593_vm2, %v4644_v38  ;;  %v649_v58 = vld [vmem:[#allocation2 + $0x18] sm:$0xff]  ;;  %v650_v59 = vld [vmem:[#allocation2 + $0x20] sm:$0xff]  ;;  %4852 = vmatprep.mubr.msk.bf16.mxu1 %vm593_vm2, %v5429_v56 }
  0x24   : > { %600 = vst.msk [vmem:[#allocation2 + $0x61] sm:$0xff] %vm593_vm2, %v4607_v41  ;;  %601 = vst.msk [vmem:[#allocation2 + $0x69] sm:$0xff] %vm593_vm2, %v4608_v42  ;;  %v647_v62 = vld [vmem:[#allocation2] sm:$0xff]  ;;  %v648_v63 = vld [vmem:[#allocation2 + $0x8] sm:$0xff]  ;;  %v5435_v0 = vpack.c.bf16 %v650_v59, %v649_v58  ;;  %4853 = vmatmul.mubr.msk.bf16.vlgmr.msra.gmra.mrb[0].mxu1 %vm593_vm2, %v5431_v60 }
  0x25   : > { %602 = vst.msk [vmem:[#allocation2 + $0x79] sm:$0xff] %vm593_vm2, %v4611_v43  ;;  %603 = vst.msk [vmem:[#allocation2 + $0x81] sm:$0xff] %vm593_vm2, %v4612_v44  ;;  %v667_v1 = vld [vmem:[#allocation2 + $0xf0] sm:$0xff]  ;;  %v679_v5 = vpack.c.bf16 %v648_v63, %v647_v62  ;;  %v668_v6 = vld [vmem:[#allocation2 + $0xf8] sm:$0xff]  ;;  %4869 = vmatpush3.bf16.msra.mxu1 %v1048_v61  ;;  %v1764_v63 = vsel %vm751_vm0, %v5448_v10, 0 }
  0x26   : > { %620 = vst.msk [vmem:[#allocation2 + $0x151] sm:$0xff] %vm593_vm2, %v4647_v45  ;;  %621 = vst.msk [vmem:[#allocation2 + $0x159] sm:$0xff] %vm593_vm2, %v4648_v46  ;;  %v5441_v7 = vpack.c.bf16 %v668_v6, %v667_v1  ;;  %v669_v11 = vld [vmem:[#allocation2 + $0x108] sm:$0xff]  ;;  %v670_v12 = vld [vmem:[#allocation2 + $0x110] sm:$0xff]  ;;  %5146 = vmatprep.subr.msk.bf16.mxu1 %vm751_vm0, %v5448_v10 }
  0x27   : > { %622 = vst.msk [vmem:[#allocation2 + $0x169] sm:$0xff] %vm593_vm2, %v4651_v47  ;;  %623 = vst.msk [vmem:[#allocation2 + $0x171] sm:$0xff] %vm593_vm2, %v4652_v48  ;;  %v651_v9 = vld [vmem:[#allocation2 + $0x30] sm:$0xff]  ;;  %v652_v3 = vld [vmem:[#allocation2 + $0x38] sm:$0xff]  ;;  %4836 = vmatprep.mubr.msk.bf16.mxu0 %vm593_vm2, %v679_v5  ;;  %v5464_v18 = vpack.c.bf16 %v670_v12, %v669_v11 }
  0x28   : > { %604 = vst.msk [vmem:[#allocation2 + $0x91] sm:$0xff] %vm593_vm2, %v4615_v49  ;;  %605 = vst.msk [vmem:[#allocation2 + $0x99] sm:$0xff] %vm593_vm2, %v4616_v50  ;;  %v5451_v13 = vpack.c.bf16 %v652_v3, %v651_v9  ;;  %4837 = vmatmul.mubr.msk.bf16.vlgmr.msra.gmra.mrb[0].mxu0 %vm593_vm2, %v5435_v0  ;;  %4856 = vmatprep.mubr.msk.bf16.mxu1 %vm593_vm2, %v5441_v7  ;;  %v653_v16 = vld [vmem:[#allocation2 + $0x48] sm:$0xff]  ;;  %v654_v17 = vld [vmem:[#allocation2 + $0x50] sm:$0xff] }
  0x29   : > { %606 = vst.msk [vmem:[#allocation2 + $0xa9] sm:$0xff] %vm593_vm2, %v4619_v51  ;;  %607 = vst.msk [vmem:[#allocation2 + $0xb1] sm:$0xff] %vm593_vm2, %v4620_v52  ;;  %v671_v4 = vld [vmem:[#allocation2 + $0x120] sm:$0xff]  ;;  %v672_v15 = vld [vmem:[#allocation2 + $0x128] sm:$0xff]  ;;  %4903 = vmatpush3.bf16.msra.mxu0 %v1406_v8  ;;  %v5472_v22 = vpack.c.bf16 %v654_v17, %v653_v16  ;;  %v2122_v8 = vsel %vm751_vm0, %v5456_v14, 0 }
  0x2a   : > { %4840 = vmatprep.mubr.msk.bf16.mxu0 %vm593_vm2, %v5451_v13  ;;  %5147 = vmatprep.subr.msk.bf16.mxu0 %vm751_vm0, %v5456_v14  ;;  %v5470_v21 = vpack.c.bf16 %v672_v15, %v671_v4  ;;  %v673_v24 = vld [vmem:[#allocation2 + $0x138] sm:$0xff]  ;;  %v674_v25 = vld [vmem:[#allocation2 + $0x140] sm:$0xff]  ;;  %v950_v39 = vld [vmem:[#allocation2 + $0x9] sm:$0xff] }
  0x2b   : > { %v655_v19 = vld [vmem:[#allocation2 + $0x60] sm:$0xff]  ;;  %v656_v20 = vld [vmem:[#allocation2 + $0x68] sm:$0xff]  ;;  %v5484_v30 = vpack.c.bf16 %v674_v25, %v673_v24  ;;  %v953_v50 = vld [vmem:[#allocation2 + $0x31] sm:$0xff] }
  0x2c   : > { %v5474_v23 = vpack.c.bf16 %v656_v20, %v655_v19  ;;  %4857 = vmatmul.mubr.msk.bf16.gmra.mrb[4].mxu1 %vm593_vm2, %v5464_v18  ;;  %v657_v28 = vld [vmem:[#allocation2 + $0x78] sm:$0xff]  ;;  %v658_v29 = vld [vmem:[#allocation2 + $0x80] sm:$0xff]  ;;  %v1308_v44 = vld [vmem:[#allocation2 + $0xa] sm:$0xff] }
  0x2d   : > { %4860 = vmatprep.mubr.msk.bf16.mxu1 %vm593_vm2, %v5470_v21  ;;  %v675_v26 = vld [vmem:[#allocation2 + $0x150] sm:$0xff]  ;;  %v676_v27 = vld [vmem:[#allocation2 + $0x158] sm:$0xff]  ;;  %v5488_v34 = vpack.c.bf16 %v658_v29, %v657_v28  ;;  %v949_v38 = vld [vmem:[#allocation2 + $0x1] sm:$0xff] }
  0x2e   : > { %v5486_v33 = vpack.c.bf16 %v676_v27, %v675_v26  ;;  %v677_v36 = vld [vmem:[#allocation2 + $0x168] sm:$0xff]  ;;  %v678_v37 = vld [vmem:[#allocation2 + $0x170] sm:$0xff]  ;;  %v981_v45 = vpack.c.bf16 %v950_v39, %v949_v38  ;;  %v951_v48 = vld [vmem:[#allocation2 + $0x19] sm:$0xff] }
  0x2f   : > { %v659_v31 = vld [vmem:[#allocation2 + $0x90] sm:$0xff]  ;;  %v660_v32 = vld [vmem:[#allocation2 + $0x98] sm:$0xff]  ;;  %v5500_v42 = vpack.c.bf16 %v678_v37, %v677_v36  ;;  %v1307_v43 = vld [vmem:[#allocation2 + $0x2] sm:$0xff] }
  0x30   : > { %4841 = vmatmul.mubr.msk.bf16.gmra.mrb[4].mxu0 %vm593_vm2, %v5472_v22  ;;  %v5490_v35 = vpack.c.bf16 %v660_v32, %v659_v31  ;;  %v661_v40 = vld [vmem:[#allocation2 + $0xa8] sm:$0xff]  ;;  %v662_v41 = vld [vmem:[#allocation2 + $0xb0] sm:$0xff]  ;;  %v1339_v47 = vpack.c.bf16 %v1308_v44, %v1307_v43  ;;  %v954_v51 = vld [vmem:[#allocation2 + $0x39] sm:$0xff] }
  0x31   : > { %4844 = vmatprep.mubr.msk.bf16.mxu0 %vm593_vm2, %v5474_v23  ;;  %v5502_v46 = vpack.c.bf16 %v662_v41, %v661_v40  ;;  %v952_v49 = vld [vmem:[#allocation2 + $0x21] sm:$0xff]  ;;  %v1311_v55 = vld [vmem:[#allocation2 + $0x32] sm:$0xff]  ;;  %v5513_v59 = vpack.c.bf16 %v954_v51, %v953_v50  ;;  %v5524_v6 = vld [vmem:[%s6402_s3 + $0xa] sm:$0x3] }
  0x32   : > { %v1309_v52 = vld [vmem:[#allocation2 + $0x1a] sm:$0xff]  ;;  %v1310_v53 = vld [vmem:[#allocation2 + $0x22] sm:$0xff]  ;;  %v5510_v54 = vpack.c.bf16 %v952_v49, %v951_v48  ;;  %v956_v3 = vld [vmem:[#allocation2 + $0x51] sm:$0xff] }
  0x33   : > { %v1312_v57 = vld [vmem:[#allocation2 + $0x3a] sm:$0xff]  ;;  %v5517_v1 = vpack.c.bf16 %v1310_v53, %v1309_v52  ;;  %v955_v9 = vld [vmem:[#allocation2 + $0x49] sm:$0xff]  ;;  %v1314_v4 = vld [vmem:[#allocation2 + $0x52] sm:$0xff] }
  0x34   : > { %4861 = vmatmul.mubr.msk.bf16.gmra.mrb[8].mxu1 %vm593_vm2, %v5484_v30  ;;  %v4680_v58 = vld [vmem:[%s5372_s16 + $0x78] sm:$0xff]   ;;  %v5519_v5 = vpack.c.bf16 %v1312_v57, %v1311_v55  ;;  %v5537_v10 = vld [vmem:[%s6402_s3 + $0xc] sm:$0x3]  ;;  %v957_v11 = vld [vmem:[#allocation2 + $0x61] sm:$0xff]  ;;  %v5545_v15 = vpack.c.bf16 %v956_v3, %v955_v9 }
  0x35   : > { %4864 = vmatprep.mubr.msk.bf16.mxu1 %vm593_vm2, %v5486_v33  ;;  %v4655_v61 = vunpack.c.l.bf16 %v4680_v58  ;;  %v4656_v62 = vunpack.c.h.bf16 %v4680_v58  ;;  %v958_v12 = vld [vmem:[#allocation2 + $0x69] sm:$0xff]  ;;  %v959_v25 = vld [vmem:[#allocation2 + $0x79] sm:$0xff]  ;;  %v960_v26 = vld [vmem:[#allocation2 + $0x81] sm:$0xff] }
  0x36   : > { %v1313_v14 = vld [vmem:[#allocation2 + $0x4a] sm:$0xff]  ;;  %v1315_v16 = vld [vmem:[#allocation2 + $0x62] sm:$0xff]  ;;  %v5549_v19 = vpack.c.bf16 %v958_v12, %v957_v11  ;;  %v962_v28 = vld [vmem:[#allocation2 + $0x99] sm:$0xff]  ;;  %v5563_v32 = vpack.c.bf16 %v960_v26, %v959_v25 }
  0x37   : > { %624 = vst.msk [vmem:[#allocation2 + $0x181] sm:$0xff] %vm593_vm2, %v4655_v61  ;;  %625 = vst.msk [vmem:[#allocation2 + $0x189] sm:$0xff] %vm593_vm2, %v4656_v62  ;;  %v1316_v17 = vld [vmem:[#allocation2 + $0x6a] sm:$0xff]  ;;  %v5551_v20 = vpack.c.bf16 %v1314_v4, %v1313_v14  ;;  %v1317_v29 = vld [vmem:[#allocation2 + $0x7a] sm:$0xff] }
  0x38   : > { %4845 = vmatmul.mubr.msk.bf16.gmra.mrb[8].mxu0 %vm593_vm2, %v5488_v34  ;;  %v5553_v24 = vpack.c.bf16 %v1316_v17, %v1315_v16  ;;  %v961_v27 = vld [vmem:[#allocation2 + $0x91] sm:$0xff]  ;;  %v1318_v31 = vld [vmem:[#allocation2 + $0x82] sm:$0xff]  ;;  %v1320_v37 = vld [vmem:[#allocation2 + $0x9a] sm:$0xff] }
  0x39   : > { %4848 = vmatprep.mubr.msk.bf16.mxu0 %vm593_vm2, %v5490_v35  ;;  %v1319_v36 = vld [vmem:[#allocation2 + $0x92] sm:$0xff]  ;;  %v5565_v38 = vpack.c.bf16 %v962_v28, %v961_v27  ;;  %v5567_v39 = vpack.c.bf16 %v1318_v31, %v1317_v29  ;;  %v963_v41 = vld [vmem:[#allocation2 + $0xa9] sm:$0xff]  ;;  %v965_v44 = vld [vmem:[#allocation2 + $0xc1] sm:$0xff] }
  0x3a   : > { %v5569_v40 = vpack.c.bf16 %v1320_v37, %v1319_v36  ;;  %v964_v43 = vld [vmem:[#allocation2 + $0xb1] sm:$0xff]  ;;  %v1323_v50 = vld [vmem:[#allocation2 + $0xc2] sm:$0xff]  ;;  %v967_v57 = vld [vmem:[#allocation2 + $0xd9] sm:$0xff] }
  0x3b   : > { %v1322_v48 = vld [vmem:[#allocation2 + $0xb2] sm:$0xff]  ;;  %v5579_v49 = vpack.c.bf16 %v964_v43, %v963_v41  ;;  %v1324_v51 = vld [vmem:[#allocation2 + $0xca] sm:$0xff]  ;;  %v968_v58 = vld [vmem:[#allocation2 + $0xe1] sm:$0xff] }
  0x3c   : > { %4865 = vmatmul.mubr.msk.bf16.gmra.mrb[12].mxu1 %vm593_vm2, %v5500_v42  ;;  %v5585_v55 = vpack.c.bf16 %v1324_v51, %v1323_v50  ;;  %v969_v61 = vld [vmem:[#allocation2 + $0xf1] sm:$0xff]  ;;  %v970_v62 = vld [vmem:[#allocation2 + $0xf9] sm:$0xff]  ;;  %v5595_v9 = vpack.c.bf16 %v968_v58, %v967_v57  ;;  %v971_v16 = vld [vmem:[#allocation2 + $0x109] sm:$0xff] }
  0x3d   : > { %4870 = vmatprep.mubr.msk.bf16.mxu1 %vm593_vm2, %v981_v45  ;;  %v966_v45 = vld [vmem:[#allocation2 + $0xc9] sm:$0xff]  ;;  %v1327_v3 = vld [vmem:[#allocation2 + $0xf2] sm:$0xff]  ;;  %v1328_v11 = vld [vmem:[#allocation2 + $0xfa] sm:$0xff]  ;;  %v5597_v12 = vpack.c.bf16 %v970_v62, %v969_v61 }
  0x3e   : > { %v5581_v52 = vpack.c.bf16 %v966_v45, %v965_v44  ;;  %v5601_v4 = vpack.c.bf16 %v1328_v11, %v1327_v3  ;;  %v972_v17 = vld [vmem:[#allocation2 + $0x111] sm:$0xff]  ;;  %v973_v25 = vld [vmem:[#allocation2 + $0x121] sm:$0xff]  ;;  %v974_v26 = vld [vmem:[#allocation2 + $0x129] sm:$0xff] }
  0x3f   : > { %v1329_v27 = vld [vmem:[#allocation2 + $0x10a] sm:$0xff]  ;;  %v1330_v28 = vld [vmem:[#allocation2 + $0x112] sm:$0xff]  ;;  %v5611_v29 = vpack.c.bf16 %v972_v17, %v971_v16  ;;  %v1331_v31 = vld [vmem:[#allocation2 + $0x122] sm:$0xff]  ;;  %v5613_v37 = vpack.c.bf16 %v974_v26, %v973_v25 }
  0x40   : > { %4849 = vmatmul.mubr.msk.bf16.gmra.mrb[12].mxu0 %vm593_vm2, %v5502_v46  ;;  %v1332_v36 = vld [vmem:[#allocation2 + $0x12a] sm:$0xff]  ;;  %v5615_v41 = vpack.c.bf16 %v1330_v28, %v1329_v27  ;;  %v975_v44 = vld [vmem:[#allocation2 + $0x139] sm:$0xff]  ;;  %v976_v45 = vld [vmem:[#allocation2 + $0x141] sm:$0xff] }
  0x41   : > { %4904 = vmatprep.mubr.msk.bf16.mxu0 %vm593_vm2, %v1339_v47  ;;  %v1321_v47 = vld [vmem:[#allocation2 + $0xaa] sm:$0xff]  ;;  %v5617_v43 = vpack.c.bf16 %v1332_v36, %v1331_v31  ;;  %v1333_v50 = vld [vmem:[#allocation2 + $0x13a] sm:$0xff]  ;;  %v1334_v51 = vld [vmem:[#allocation2 + $0x142] sm:$0xff]  ;;  %v994_v57 = vpack.c.bf16 %v976_v45, %v975_v44  ;;  %v2480_v36 = vsel %vm751_vm0, %v5524_v6, 0  ;;  %v2839_v44 = vsel %vm751_vm0, %v5537_v10, 0 }
  0x42   : > { %v5583_v53 = vpack.c.bf16 %v1322_v48, %v1321_v47  ;;  %v977_v47 = vld [vmem:[#allocation2 + $0x151] sm:$0xff]  ;;  %v978_v48 = vld [vmem:[#allocation2 + $0x159] sm:$0xff]  ;;  %v979_v3 = vld [vmem:[#allocation2 + $0x169] sm:$0xff] }
  0x43   : > { %v1335_v58 = vld [vmem:[#allocation2 + $0x152] sm:$0xff]  ;;  %v1336_v61 = vld [vmem:[#allocation2 + $0x15a] sm:$0xff]  ;;  %v995_v62 = vpack.c.bf16 %v978_v48, %v977_v47  ;;  %v1337_v26 = vld [vmem:[#allocation2 + $0x16a] sm:$0xff] }
  0x44   : > { %4871 = vmatmul.mubr.msk.bf16.vlgmr.msra.gmra.mrb[16].mxu1 %vm593_vm2, %v5510_v54  ;;  %v980_v11 = vld [vmem:[#allocation2 + $0x171] sm:$0xff]  ;;  %v4662_v16 = vld [vmem:[%s469_s11] sm:$0xff]  }
  0x45   : > { %4937 = vmatpush3.bf16.msra.mxu1 %v1764_v63  ;;  %4874 = vmatprep.mubr.msk.bf16.mxu1 %vm593_vm2, %v5513_v59  ;;  %v1325_v63 = vld [vmem:[#allocation2 + $0xda] sm:$0xff]  ;;  %v4663_v17 = vunpack.c.l.bf16 %v4662_v16  ;;  %v4664_v25 = vunpack.c.h.bf16 %v4662_v16  ;;  %v1338_v27 = vld [vmem:[#allocation2 + $0x172] sm:$0xff]  ;;  %v996_v28 = vpack.c.bf16 %v980_v11, %v979_v3 }
  0x46   : > { %5148 = vmatprep.subr.msk.bf16.mxu1 %vm751_vm0, %v5524_v6  ;;  %v5647_v31 = vpack.c.bf16 %v1338_v27, %v1337_v26  ;;  %v2053_v6 = vld [vmem:[#allocation2 + $0x181] sm:$0xff] }
  0x47   : > { %637 = vst.msk [vmem:[#allocation2 + $0x199] sm:$0xff] %vm593_vm2, %v4663_v17  ;;  %638 = vst.msk [vmem:[#allocation2 + $0x1a1] sm:$0xff] %vm593_vm2, %v4664_v25 }
  0x48   : > { %4905 = vmatmul.mubr.msk.bf16.vlgmr.msra.gmra.mrb[16].mxu0 %vm593_vm2, %v5517_v1  ;;  %645 = vst.msk [vmem:[#allocation2 + $0x199] sm:$0xff] %vm593_vm2, %v5201_v2  ;;  %646 = vst.msk [vmem:[#allocation2 + $0x1a1] sm:$0xff] %vm593_vm2, %v5201_v2  ;;  %v4488_v2 = vld [vmem:[%s6402_s3 + $0xe] sm:$0x3] }
  0x49   : > { %4971 = vmatpush3.bf16.msra.mxu0 %v2122_v8  ;;  %4908 = vmatprep.mubr.msk.bf16.mxu0 %vm593_vm2, %v5519_v5  ;;  %v1326_v8 = vld [vmem:[#allocation2 + $0xe2] sm:$0xff] }
  0x4a   : > { %5149 = vmatprep.subr.msk.bf16.mxu0 %vm751_vm0, %v5537_v10  ;;  %v5599_v14 = vpack.c.bf16 %v1326_v8, %v1325_v63  ;;  %v5627_v63 = vpack.c.bf16 %v1334_v51, %v1333_v50  ;;  %v5629_v8 = vpack.c.bf16 %v1336_v61, %v1335_v58  ;;  %v2054_v10 = vld [vmem:[#allocation2 + $0x189] sm:$0xff] }
  0x4c   : > { %4875 = vmatmul.mubr.msk.bf16.gmra.mrb[20].mxu1 %vm593_vm2, %v5545_v15 }
  0x4d   : > { %4878 = vmatprep.mubr.msk.bf16.mxu1 %vm593_vm2, %v5549_v19 }
  0x50   : > { %4909 = vmatmul.mubr.msk.bf16.gmra.mrb[20].mxu0 %vm593_vm2, %v5551_v20 }
  0x51   : > { %4912 = vmatprep.mubr.msk.bf16.mxu0 %vm593_vm2, %v5553_v24 }
  0x54   : > { %4879 = vmatmul.mubr.msk.bf16.gmra.mrb[24].mxu1 %vm593_vm2, %v5563_v32 }
  0x55   : > { %4882 = vmatprep.mubr.msk.bf16.mxu1 %vm593_vm2, %v5565_v38 }
  0x58   : > { %4913 = vmatmul.mubr.msk.bf16.gmra.mrb[24].mxu0 %vm593_vm2, %v5567_v39 }
  0x59   : > { %4916 = vmatprep.mubr.msk.bf16.mxu0 %vm593_vm2, %v5569_v40 }
  0x5c   : > { %4883 = vmatmul.mubr.msk.bf16.gmra.mrb[28].mxu1 %vm593_vm2, %v5579_v49 }
  0x5d   : > { %4886 = vmatprep.mubr.msk.bf16.mxu1 %vm593_vm2, %v5581_v52 }
  0x60   : > { %4917 = vmatmul.mubr.msk.bf16.gmra.mrb[28].mxu0 %vm593_vm2, %v5583_v53 }
  0x61   : > { %4920 = vmatprep.mubr.msk.bf16.mxu0 %vm593_vm2, %v5585_v55 }
  0x64   : > { %4887 = vmatmul.mubr.msk.bf16.gmra.mrb[32].mxu1 %vm593_vm2, %v5595_v9 }
  0x65   : > { %4890 = vmatprep.mubr.msk.bf16.mxu1 %vm593_vm2, %v5597_v12 }
  0x68   : > { %4921 = vmatmul.mubr.msk.bf16.gmra.mrb[32].mxu0 %vm593_vm2, %v5599_v14 }
  0x69   : > { %4924 = vmatprep.mubr.msk.bf16.mxu0 %vm593_vm2, %v5601_v4 }
  0x6c   : > { %4891 = vmatmul.mubr.msk.bf16.gmra.mrb[36].mxu1 %vm593_vm2, %v5611_v29 }
  0x6d   : > { %4894 = vmatprep.mubr.msk.bf16.mxu1 %vm593_vm2, %v5613_v37 }
  0x70   : > { %4925 = vmatmul.mubr.msk.bf16.gmra.mrb[36].mxu0 %vm593_vm2, %v5615_v41 }
  0x71   : > { %4928 = vmatprep.mubr.msk.bf16.mxu0 %vm593_vm2, %v5617_v43 }
  0x74   : > { %4895 = vmatmul.mubr.msk.bf16.gmra.mrb[40].mxu1 %vm593_vm2, %v994_v57 }
  0x75   : > { %4898 = vmatprep.mubr.msk.bf16.mxu1 %vm593_vm2, %v995_v62 }
  0x78   : > { %4929 = vmatmul.mubr.msk.bf16.gmra.mrb[40].mxu0 %vm593_vm2, %v5627_v63 }
  0x79   : > { %4932 = vmatprep.mubr.msk.bf16.mxu0 %vm593_vm2, %v5629_v8 }
  0x7c   : > { %4899 = vmatmul.mubr.msk.bf16.gmra.mrb[44].mxu1 %vm593_vm2, %v996_v28 }
  0x7d   : > { %4938 = vmatprep.mubr.msk.bf16.mxu1 %vm593_vm2, %v5435_v0  ;;  %v4505_v0 = vld [vmem:[%s6402_s3 + $0x10] sm:$0x3] }
  0x7e   : > { %v3555_v45 = vsel %vm751_vm0, %v4505_v0, 0 }
  0x80   : > { %4933 = vmatmul.mubr.msk.bf16.gmra.mrb[44].mxu0 %vm593_vm2, %v5647_v31 }
  0x81   : > { %4972 = vmatprep.mubr.msk.bf16.mxu0 %vm593_vm2, %v5510_v54  ;;  %v1696_v54 = vld [vmem:[#allocation2 + $0x188] sm:$0xff] }
  0x84   : > { %4939 = vmatmul.mubr.msk.bf16.vlgmr.msra.gmra.mrb[48].mxu1 %vm593_vm2, %v5451_v13 }
  0x85   : > { %5005 = vmatpush3.bf16.msra.mxu1 %v2480_v36  ;;  %4942 = vmatprep.mubr.msk.bf16.mxu1 %vm593_vm2, %v5472_v22 }
  0x86   : > { %5150 = vmatprep.subr.msk.bf16.mxu1 %vm751_vm0, %v4488_v2 }
  0x88   : > { %4973 = vmatmul.mubr.msk.bf16.vlgmr.msra.gmra.mrb[48].mxu0 %vm593_vm2, %v5513_v59 }
  0x89   : > { %5039 = vmatpush3.bf16.msra.mxu0 %v2839_v44  ;;  %4976 = vmatprep.mubr.msk.bf16.mxu0 %vm593_vm2, %v5545_v15 }
  0x8a   : > { %5151 = vmatprep.subr.msk.bf16.mxu0 %vm751_vm0, %v4505_v0 }
  0x8c   : > { %4943 = vmatmul.mubr.msk.bf16.gmra.mrb[52].mxu1 %vm593_vm2, %v5474_v23 }
  0x8d   : > { %4946 = vmatprep.mubr.msk.bf16.mxu1 %vm593_vm2, %v5488_v34 }
  0x90   : > { %4977 = vmatmul.mubr.msk.bf16.gmra.mrb[52].mxu0 %vm593_vm2, %v5549_v19 }
  0x91   : > { %4980 = vmatprep.mubr.msk.bf16.mxu0 %vm593_vm2, %v5563_v32 }
  0x94   : > { %4947 = vmatmul.mubr.msk.bf16.gmra.mrb[56].mxu1 %vm593_vm2, %v5490_v35 }
  0x95   : > { %4950 = vmatprep.mubr.msk.bf16.mxu1 %vm593_vm2, %v5502_v46 }
  0x98   : > { %4981 = vmatmul.mubr.msk.bf16.gmra.mrb[56].mxu0 %vm593_vm2, %v5565_v38 }
  0x99   : > { %4984 = vmatprep.mubr.msk.bf16.mxu0 %vm593_vm2, %v5579_v49 }
  0x9c   : > { %4951 = vmatmul.mubr.msk.bf16.gmra.mrb[60].mxu1 %vm593_vm2, %v5429_v56  ;;  %v1695_v56 = vld [vmem:[#allocation2 + $0x180] sm:$0xff] }
  0x9d   : > { %4954 = vmatprep.mubr.msk.bf16.mxu1 %vm593_vm2, %v5431_v60 }
  0xa0   : > { %4985 = vmatmul.mubr.msk.bf16.gmra.mrb[60].mxu0 %vm593_vm2, %v5581_v52 }
  0xa1   : > { %4988 = vmatprep.mubr.msk.bf16.mxu0 %vm593_vm2, %v5595_v9 }
  0xa4   : > { %4955 = vmatmul.mubr.msk.bf16.gmra.mrb[64].mxu1 %vm593_vm2, %v5441_v7 }
  0xa5   : > { %4958 = vmatprep.mubr.msk.bf16.mxu1 %vm593_vm2, %v5464_v18 }
  0xa8   : > { %4989 = vmatmul.mubr.msk.bf16.gmra.mrb[64].mxu0 %vm593_vm2, %v5597_v12  ;;  %v1712_v12 = vpack.c.bf16 %v1696_v54, %v1695_v56 }
  0xa9   : > { %4992 = vmatprep.mubr.msk.bf16.mxu0 %vm593_vm2, %v5611_v29  ;;  %v5721_v29 = vpack.c.bf16 %v2054_v10, %v2053_v6 }
  0xac   : > { %4959 = vmatmul.mubr.msk.bf16.gmra.mrb[68].mxu1 %vm593_vm2, %v5470_v21 }
  0xad   : > { %4962 = vmatprep.mubr.msk.bf16.mxu1 %vm593_vm2, %v5484_v30 }
  0xb0   : > { %4993 = vmatmul.mubr.msk.bf16.gmra.mrb[68].mxu0 %vm593_vm2, %v5613_v37  ;;  %v3197_v37 = vsel %vm751_vm0, %v4488_v2, 0 }
  0xb1   : > { %4996 = vmatprep.mubr.msk.bf16.mxu0 %vm593_vm2, %v994_v57 }
  0xb4   : > { %4963 = vmatmul.mubr.msk.bf16.gmra.mrb[72].mxu1 %vm593_vm2, %v5486_v33 }
  0xb5   : > { %4966 = vmatprep.mubr.msk.bf16.mxu1 %vm593_vm2, %v5500_v42 }
  0xb8   : > { %4997 = vmatmul.mubr.msk.bf16.gmra.mrb[72].mxu0 %vm593_vm2, %v995_v62 }
  0xb9   : > { %5000 = vmatprep.mubr.msk.bf16.mxu0 %vm593_vm2, %v996_v28 }
  0xbc   : > { %4967 = vmatmul.mubr.msk.bf16.gmra.mrb[76].mxu1 %vm593_vm2, %v1712_v12 }
  0xbd   : > { %5006 = vmatprep.mubr.msk.bf16.mxu1 %vm593_vm2, %v5517_v1  ;;  %v2753_v1 = vld [vmem:[#allocation2 + $0xc8] sm:$0xff] }
  0xc0   : > { %5001 = vmatmul.mubr.msk.bf16.gmra.mrb[76].mxu0 %vm593_vm2, %v5721_v29 }
  0xc1   : > { %5040 = vmatprep.mubr.msk.bf16.mxu0 %vm593_vm2, %v5451_v13  ;;  %v2752_v13 = vld [vmem:[#allocation2 + $0xc0] sm:$0xff] }
  0xc2   : > { %v2778_v47 = vpack.c.bf16 %v2753_v1, %v2752_v13 }
  0xc4   : > { %5007 = vmatmul.mubr.msk.bf16.vlgmr.msra.gmra.mrb[80].mxu1 %vm593_vm2, %v5519_v5 }
  0xc5   : > { %5073 = vmatpush3.bf16.msra.mxu1 %v3197_v37  ;;  %5010 = vmatprep.mubr.msk.bf16.mxu1 %vm593_vm2, %v5551_v20 }
  0xc8   : > { %5041 = vmatmul.mubr.msk.bf16.vlgmr.msra.gmra.mrb[80].mxu0 %vm593_vm2, %v5472_v22  ;;  %v2770_v22 = vld [vmem:[#allocation2 + $0x198] sm:$0xff] }
  0xc9   : > { %5107 = vmatpush3.bf16.msra.mxu0 %v3555_v45  ;;  %5044 = vmatprep.mubr.msk.bf16.mxu0 %vm593_vm2, %v5474_v23  ;;  %v2771_v23 = vld [vmem:[#allocation2 + $0x1a0] sm:$0xff] }
  0xcc   : > { %5011 = vmatmul.mubr.msk.bf16.gmra.mrb[84].mxu1 %vm593_vm2, %v5553_v24 }
  0xcd   : > { %5014 = vmatprep.mubr.msk.bf16.mxu1 %vm593_vm2, %v5567_v39 }
  0xd0   : > { %5045 = vmatmul.mubr.msk.bf16.gmra.mrb[84].mxu0 %vm593_vm2, %v5488_v34 }
  0xd1   : > { %5048 = vmatprep.mubr.msk.bf16.mxu0 %vm593_vm2, %v5490_v35 }
  0xd4   : > { %5015 = vmatmul.mubr.msk.bf16.gmra.mrb[88].mxu1 %vm593_vm2, %v5569_v40 }
  0xd5   : > { %5018 = vmatprep.mubr.msk.bf16.mxu1 %vm593_vm2, %v5583_v53 }
  0xd8   : > { %5049 = vmatmul.mubr.msk.bf16.gmra.mrb[88].mxu0 %vm593_vm2, %v5502_v46 }
  0xd9   : > { %5052 = vmatprep.mubr.msk.bf16.mxu0 %vm593_vm2, %v2778_v47 }
  0xdc   : > { %5019 = vmatmul.mubr.msk.bf16.gmra.mrb[92].mxu1 %vm593_vm2, %v5585_v55 }
  0xdd   : > { %5022 = vmatprep.mubr.msk.bf16.mxu1 %vm593_vm2, %v5599_v14 }
  0xe0   : > { %5053 = vmatmul.mubr.msk.bf16.gmra.mrb[92].mxu0 %vm593_vm2, %v5431_v60  ;;  %v5784_v60 = vld [vmem:[%s6403_s4] ss:$0 sm:$0xff] }
  0xe1   : > { %5056 = vmatprep.mubr.msk.bf16.mxu0 %vm593_vm2, %v5441_v7  ;;  %v2411_v7 = vld [vmem:[#allocation2 + $0x182] sm:$0xff] }
  0xe4   : > { %5023 = vmatmul.mubr.msk.bf16.gmra.mrb[96].mxu1 %vm593_vm2, %v5601_v4 }
  0xe5   : > { %5026 = vmatprep.mubr.msk.bf16.mxu1 %vm593_vm2, %v5615_v41 }
  0xe8   : > { %5057 = vmatmul.mubr.msk.bf16.gmra.mrb[96].mxu0 %vm593_vm2, %v5464_v18  ;;  %v2412_v18 = vld [vmem:[#allocation2 + $0x18a] sm:$0xff] }
  0xe9   : > { %5060 = vmatprep.mubr.msk.bf16.mxu0 %vm593_vm2, %v5470_v21  ;;  %v5792_v34 = vpack.c.bf16 %v2412_v18, %v2411_v7 }
  0xec   : > { %5027 = vmatmul.mubr.msk.bf16.gmra.mrb[100].mxu1 %vm593_vm2, %v5617_v43  ;;  %v2787_v43 = vpack.c.bf16 %v2771_v23, %v2770_v22  ;;  %v3469_v22 = vld [vmem:[#allocation2 + $0xca] sm:$0xff] }
  0xed   : > { %5030 = vmatprep.mubr.msk.bf16.mxu1 %vm593_vm2, %v5627_v63 }
  0xf0   : > { %5061 = vmatmul.mubr.msk.bf16.gmra.mrb[100].mxu0 %vm593_vm2, %v5484_v30 }
  0xf1   : > { %5064 = vmatprep.mubr.msk.bf16.mxu0 %vm593_vm2, %v5486_v33 }
  0xf4   : > { %5031 = vmatmul.mubr.msk.bf16.gmra.mrb[104].mxu1 %vm593_vm2, %v5629_v8 }
  0xf5   : > { %5034 = vmatprep.mubr.msk.bf16.mxu1 %vm593_vm2, %v5647_v31 }
  0xf7   : > { %v4854_v21 = vpop.f32.mrb[0].mxu1 }
  0xf8   : > { %5065 = vmatmul.mubr.msk.bf16.gmra.mrb[104].mxu0 %vm593_vm2, %v5500_v42  ;;  %v862_v30 = vadd.f32 %v4854_v21, %v5784_v60  ;;  %v853_v33 = vpop.f32.mrb[1].mxu1  ;;  %v3468_v21 = vld [vmem:[#allocation2 + $0xc2] sm:$0xff] }
  0xf9   : > { %5068 = vmatprep.mubr.msk.bf16.mxu0 %vm593_vm2, %v1712_v12  ;;  %v854_v35 = vadd.f32 %v5784_v60, %v853_v33  ;;  %v4855_v46 = vpop.f32.mrb[2].mxu1 }
  0xfa   : > { %935 = vst.msk [vmem:[#allocation3 + $0x90] sm:$0xff] %vm916_vm3, %v862_v30  ;;  %v865_v14 = vadd.f32 %v4855_v46, %v5784_v60  ;;  %v856_v42 = vpop.f32.mrb[3].mxu1 }
  0xfb   : > { %v4838_v55 = vpop.f32.mrb[0].mxu0  ;;  %933 = vst.msk [vmem:[#allocation3 + $0x80] sm:$0xff] %vm916_vm3, %v854_v35  ;;  %v857_v48 = vadd.f32 %v5784_v60, %v856_v42  ;;  %v3494_v42 = vpack.c.bf16 %v3469_v22, %v3468_v21 }
  0xfc   : > { %v798_v4 = vadd.f32 %v4838_v55, %v5784_v60  ;;  %v789_v41 = vpop.f32.mrb[1].mxu0  ;;  %936 = vst.msk [vmem:[#allocation3 + $0x98] sm:$0xff] %vm916_vm3, %v865_v14  ;;  %5035 = vmatmul.mubr.msk.bf16.gmra.mrb[108].mxu1 %vm593_vm2, %v5792_v34 }
  0xfd   : > { %v790_v50 = vadd.f32 %v5784_v60, %v789_v41  ;;  %v4839_v51 = vpop.f32.mrb[2].mxu0  ;;  %934 = vst.msk [vmem:[#allocation3 + $0x88] sm:$0xff] %vm916_vm3, %v857_v48  ;;  %5074 = vmatprep.mubr.msk.bf16.mxu1 %vm593_vm2, %v5513_v59  ;;  %v3115_v48 = vld [vmem:[#allocation2 + $0xf9] sm:$0xff] }
  0xfe   : > { %919 = vst.msk [vmem:[#allocation3 + $0x10] sm:$0xff] %vm916_vm3, %v798_v4  ;;  %v801_v57 = vadd.f32 %v4839_v51, %v5784_v60  ;;  %v792_v58 = vpop.f32.mrb[3].mxu0 }
  0xff   : > { %917 = vst.msk [vmem:[#allocation3] sm:$0xff] %vm916_vm3, %v790_v50  ;;  %v793_v61 = vadd.f32 %v5784_v60, %v792_v58  ;;  %v4858_v62 = vpop.f32.mrb[4].mxu1  ;;  %v3471_v58 = vld [vmem:[#allocation2 + $0xe2] sm:$0xff] }
 0x100   : > { %920 = vst.msk [vmem:[#allocation3 + $0x18] sm:$0xff] %vm916_vm3, %v801_v57  ;;  %5069 = vmatmul.mubr.msk.bf16.gmra.mrb[108].mxu0 %vm593_vm2, %v2787_v43  ;;  %v878_v63 = vadd.f32 %v4858_v62, %v5784_v60  ;;  %v869_v8 = vpop.f32.mrb[5].mxu1  ;;  %v3470_v57 = vld [vmem:[#allocation2 + $0xda] sm:$0xff] }
 0x101   : > { %918 = vst.msk [vmem:[#allocation3 + $0x8] sm:$0xff] %vm916_vm3, %v793_v61  ;;  %5108 = vmatprep.mubr.msk.bf16.mxu0 %vm593_vm2, %v5519_v5  ;;  %v870_v3 = vadd.f32 %v5784_v60, %v869_v8  ;;  %v4859_v11 = vpop.f32.mrb[6].mxu1 }
 0x102   : > { %939 = vst.msk [vmem:[#allocation3 + $0xb0] sm:$0xff] %vm916_vm3, %v878_v63  ;;  %v881_v59 = vadd.f32 %v4859_v11, %v5784_v60  ;;  %v872_v17 = vpop.f32.mrb[7].mxu1  ;;  %v3472_v63 = vld [vmem:[#allocation2 + $0xf2] sm:$0xff] }
 0x103   : > { %v4842_v16 = vpop.f32.mrb[4].mxu0  ;;  %937 = vst.msk [vmem:[#allocation3 + $0xa0] sm:$0xff] %vm916_vm3, %v870_v3  ;;  %v873_v27 = vadd.f32 %v5784_v60, %v872_v17 }
 0x104   : > { %v814_v25 = vadd.f32 %v4842_v16, %v5784_v60  ;;  %v805_v26 = vpop.f32.mrb[5].mxu0  ;;  %940 = vst.msk [vmem:[#allocation3 + $0xb8] sm:$0xff] %vm916_vm3, %v881_v59  ;;  %5075 = vmatmul.mubr.msk.bf16.vlgmr.msra.gmra.mrb[112].mxu1 %vm593_vm2, %v5545_v15 }
 0x105   : > { %v806_v5 = vadd.f32 %v5784_v60, %v805_v26  ;;  %v4843_v28 = vpop.f32.mrb[6].mxu0  ;;  %938 = vst.msk [vmem:[#allocation3 + $0xa8] sm:$0xff] %vm916_vm3, %v873_v27  ;;  %5078 = vmatprep.mubr.msk.bf16.mxu1 %vm593_vm2, %v5549_v19  ;;  %v1213_v51 = vld [vmem:[#allocation3 + $0x10] sm:$0xff]  ;;  %v3495_v27 = vpack.c.bf16 %v3471_v58, %v3470_v57 }
 0x106   : > { %923 = vst.msk [vmem:[#allocation3 + $0x30] sm:$0xff] %vm916_vm3, %v814_v25  ;;  %v817_v31 = vadd.f32 %v4843_v28, %v5784_v60  ;;  %v808_v36 = vpop.f32.mrb[7].mxu0  ;;  %v1211_v62 = vld [vmem:[#allocation3] sm:$0xff]  ;;  %v3478_v58 = vld [vmem:[#allocation2 + $0x13a] sm:$0xff] }
 0x107   : > { %921 = vst.msk [vmem:[#allocation3 + $0x20] sm:$0xff] %vm916_vm3, %v806_v5  ;;  %v809_v2 = vadd.f32 %v5784_v60, %v808_v36  ;;  %v4862_v15 = vpop.f32.mrb[8].mxu1  ;;  %v1214_v11 = vld [vmem:[#allocation3 + $0x18] sm:$0xff] }
 0x108   : > { %924 = vst.msk [vmem:[#allocation3 + $0x38] sm:$0xff] %vm916_vm3, %v817_v31  ;;  %5109 = vmatmul.mubr.msk.bf16.vlgmr.msra.gmra.mrb[112].mxu0 %vm593_vm2, %v5551_v20  ;;  %v894_v44 = vadd.f32 %v4862_v15, %v5784_v60  ;;  %v885_v0 = vpop.f32.mrb[9].mxu1  ;;  %v1212_v25 = vld [vmem:[#allocation3 + $0x8] sm:$0xff] }
 0x109   : > { %922 = vst.msk [vmem:[#allocation3 + $0x28] sm:$0xff] %vm916_vm3, %v809_v2  ;;  %5112 = vmatprep.mubr.msk.bf16.mxu0 %vm593_vm2, %v5553_v24  ;;  %v886_v56 = vadd.f32 %v5784_v60, %v885_v0  ;;  %v4863_v54 = vpop.f32.mrb[10].mxu1  ;;  %v3116_v2 = vld [vmem:[#allocation2 + $0x109] sm:$0xff]  ;;  %v3117_v15 = vld [vmem:[#allocation2 + $0x111] sm:$0xff] }
 0x10a   : > { %943 = vst.msk [vmem:[#allocation3 + $0xd0] sm:$0xff] %vm916_vm3, %v894_v44  ;;  %v897_v19 = vadd.f32 %v4863_v54, %v5784_v60  ;;  %v888_v10 = vpop.f32.mrb[11].mxu1  ;;  %v3118_v44 = vld [vmem:[#allocation2 + $0x121] sm:$0xff]  ;;  %v3119_v0 = vld [vmem:[#allocation2 + $0x129] sm:$0xff] }
 0x10b   : > { %v4846_v6 = vpop.f32.mrb[8].mxu0  ;;  %941 = vst.msk [vmem:[#allocation3 + $0xc0] sm:$0xff] %vm916_vm3, %v886_v56  ;;  %v889_v37 = vadd.f32 %v5784_v60, %v888_v10 }
 0x10c   : > { %v830_v20 = vadd.f32 %v4846_v6, %v5784_v60  ;;  %v821_v12 = vpop.f32.mrb[9].mxu0  ;;  %944 = vst.msk [vmem:[#allocation3 + $0xd8] sm:$0xff] %vm916_vm3, %v897_v19  ;;  %5079 = vmatmul.mubr.msk.bf16.gmra.mrb[116].mxu1 %vm593_vm2, %v5563_v32  ;;  %v3474_v6 = vld [vmem:[#allocation2 + $0x10a] sm:$0xff]  ;;  %v3475_v19 = vld [vmem:[#allocation2 + $0x112] sm:$0xff] }
 0x10d   : > { %v822_v24 = vadd.f32 %v5784_v60, %v821_v12  ;;  %v4847_v45 = vpop.f32.mrb[10].mxu0  ;;  %942 = vst.msk [vmem:[#allocation3 + $0xc8] sm:$0xff] %vm916_vm3, %v889_v37  ;;  %5082 = vmatprep.mubr.msk.bf16.mxu1 %vm593_vm2, %v5565_v38  ;;  %v1217_v54 = vld [vmem:[#allocation3 + $0x30] sm:$0xff]  ;;  %v3139_v12 = vpack.c.bf16 %v3117_v15, %v3116_v2 }
 0x10e   : > { %927 = vst.msk [vmem:[#allocation3 + $0x50] sm:$0xff] %vm916_vm3, %v830_v20  ;;  %v833_v13 = vadd.f32 %v4847_v45, %v5784_v60  ;;  %v824_v1 = vpop.f32.mrb[11].mxu0  ;;  %v3476_v37 = vld [vmem:[#allocation2 + $0x122] sm:$0xff] }
 0x10f   : > { %925 = vst.msk [vmem:[#allocation3 + $0x40] sm:$0xff] %vm916_vm3, %v822_v24  ;;  %v825_v47 = vadd.f32 %v5784_v60, %v824_v1  ;;  %v4866_v32 = vpop.f32.mrb[12].mxu1  ;;  %v3477_v24 = vld [vmem:[#allocation2 + $0x12a] sm:$0xff] }
 0x110   : > { %928 = vst.msk [vmem:[#allocation3 + $0x58] sm:$0xff] %vm916_vm3, %v833_v13  ;;  %5113 = vmatmul.mubr.msk.bf16.gmra.mrb[116].mxu0 %vm593_vm2, %v5567_v39  ;;  %v910_v7 = vadd.f32 %v4866_v32, %v5784_v60  ;;  %v901_v18 = vpop.f32.mrb[13].mxu1 }
 0x111   : > { %926 = vst.msk [vmem:[#allocation3 + $0x48] sm:$0xff] %vm916_vm3, %v825_v47  ;;  %5116 = vmatprep.mubr.msk.bf16.mxu0 %vm593_vm2, %v5569_v40  ;;  %v902_v23 = vadd.f32 %v5784_v60, %v901_v18  ;;  %v4867_v30 = vpop.f32.mrb[14].mxu1  ;;  %v1218_v47 = vld [vmem:[#allocation3 + $0x38] sm:$0xff] }
 0x112   : > { %947 = vst.msk [vmem:[#allocation3 + $0xf0] sm:$0xff] %vm916_vm3, %v910_v7  ;;  %v913_v33 = vadd.f32 %v4867_v30, %v5784_v60  ;;  %v904_v39 = vpop.f32.mrb[15].mxu1  ;;  %v3140_v7 = vpack.c.bf16 %v3119_v0, %v3118_v44  ;;  %v1216_v30 = vld [vmem:[#allocation3 + $0x28] sm:$0xff] }
 0x113   : > { %v4850_v38 = vpop.f32.mrb[12].mxu0  ;;  %945 = vst.msk [vmem:[#allocation3 + $0xe0] sm:$0xff] %vm916_vm3, %v902_v23  ;;  %v905_v40 = vadd.f32 %v5784_v60, %v904_v39 }
 0x114   : > { %v846_v35 = vadd.f32 %v4850_v38, %v5784_v60  ;;  %v837_v46 = vpop.f32.mrb[13].mxu0  ;;  %948 = vst.msk [vmem:[#allocation3 + $0xf8] sm:$0xff] %vm916_vm3, %v913_v33  ;;  %5083 = vmatmul.mubr.msk.bf16.gmra.mrb[120].mxu1 %vm593_vm2, %v5579_v49  ;;  %v3114_v49 = vld [vmem:[#allocation2 + $0xf1] sm:$0xff]  ;;  %v3497_v33 = vpack.c.bf16 %v3475_v19, %v3474_v6 }
 0x115   : > { %v838_v55 = vadd.f32 %v5784_v60, %v837_v46  ;;  %v4851_v14 = vpop.f32.mrb[14].mxu0  ;;  %946 = vst.msk [vmem:[#allocation3 + $0xe8] sm:$0xff] %vm916_vm3, %v905_v40  ;;  %5086 = vmatprep.mubr.msk.bf16.mxu1 %vm593_vm2, %v5581_v52  ;;  %v3473_v52 = vld [vmem:[#allocation2 + $0xfa] sm:$0xff] }
 0x116   : > { %931 = vst.msk [vmem:[#allocation3 + $0x70] sm:$0xff] %vm916_vm3, %v846_v35  ;;  %v849_v4 = vadd.f32 %v4851_v14, %v5784_v60  ;;  %v840_v41 = vpop.f32.mrb[15].mxu0  ;;  %v3496_v31 = vpack.c.bf16 %v3473_v52, %v3472_v63  ;;  %v1221_v57 = vld [vmem:[#allocation3 + $0x50] sm:$0xff]  ;;  %v1219_v63 = vld [vmem:[#allocation3 + $0x40] sm:$0xff] }
 0x117   : > { %929 = vst.msk [vmem:[#allocation3 + $0x60] sm:$0xff] %vm916_vm3, %v838_v55  ;;  %v841_v43 = vadd.f32 %v5784_v60, %v840_v41  ;;  %v4872_v50 = vpop.f32.mrb[16].mxu1  ;;  %v3498_v55 = vpack.c.bf16 %v3477_v24, %v3476_v37 }
 0x118   : > { %932 = vst.msk [vmem:[#allocation3 + $0x78] sm:$0xff] %vm916_vm3, %v849_v4  ;;  %5117 = vmatmul.mubr.msk.bf16.gmra.mrb[120].mxu0 %vm593_vm2, %v5583_v53  ;;  %v1245_v61 = vadd.f32 %v4872_v50, %v1213_v51  ;;  %v1084_v60 = vpop.f32.mrb[17].mxu1  ;;  %v3138_v53 = vpack.c.bf16 %v3115_v48, %v3114_v49  ;;  %v3121_v49 = vld [vmem:[#allocation2 + $0x141] sm:$0xff]  ;;  %v3122_v48 = vld [vmem:[#allocation2 + $0x151] sm:$0xff]  ;;  %v3123_v50 = vld [vmem:[#allocation2 + $0x159] sm:$0xff] }
 0x119   : > { %930 = vst.msk [vmem:[#allocation3 + $0x68] sm:$0xff] %vm916_vm3, %v841_v43  ;;  %5120 = vmatprep.mubr.msk.bf16.mxu0 %vm593_vm2, %v3494_v42  ;;  %v1243_v8 = vadd.f32 %v1211_v62, %v1084_v60  ;;  %v4873_v3 = vpop.f32.mrb[18].mxu1  ;;  %v3120_v43 = vld [vmem:[#allocation2 + $0x139] sm:$0xff] }
 0x11a   : > { %1277 = vst.msk [vmem:[#allocation3 + $0x10] sm:$0xff] %vm916_vm3, %v1245_v61  ;;  %v1246_v59 = vadd.f32 %v4873_v3, %v1214_v11  ;;  %v1087_v17 = vpop.f32.mrb[19].mxu1  ;;  %v3479_v61 = vld [vmem:[#allocation2 + $0x142] sm:$0xff]  ;;  %v3141_v52 = vpack.c.bf16 %v3121_v49, %v3120_v43  ;;  %v3481_v3 = vld [vmem:[#allocation2 + $0x15a] sm:$0xff] }
 0x11b   : > { %v4906_v16 = vpop.f32.mrb[16].mxu0  ;;  %1275 = vst.msk [vmem:[#allocation3] sm:$0xff] %vm916_vm3, %v1243_v8  ;;  %v1244_v5 = vadd.f32 %v1212_v25, %v1087_v17  ;;  %v3480_v8 = vld [vmem:[#allocation2 + $0x152] sm:$0xff]  ;;  %v3142_v25 = vpack.c.bf16 %v3123_v50, %v3122_v48  ;;  %v3499_v2 = vpack.c.bf16 %v3479_v61, %v3478_v58  ;;  %v1229_v61 = vld [vmem:[#allocation3 + $0x90] sm:$0xff] }
 0x11c   : > { %v1442_v26 = vpop.f32.mrb[17].mxu0  ;;  %1278 = vst.msk [vmem:[#allocation3 + $0x18] sm:$0xff] %vm916_vm3, %v1246_v59  ;;  %5087 = vmatmul.mubr.msk.bf16.gmra.mrb[124].mxu1 %vm593_vm2, %v5595_v9  ;;  %v1215_v9 = vld [vmem:[#allocation3 + $0x20] sm:$0xff]  ;;  %v1222_v59 = vld [vmem:[#allocation3 + $0x58] sm:$0xff] }
 0x11d   : > { %v4907_v28 = vpop.f32.mrb[18].mxu0  ;;  %1276 = vst.msk [vmem:[#allocation3 + $0x8] sm:$0xff] %vm916_vm3, %v1244_v5  ;;  %5090 = vmatprep.mubr.msk.bf16.mxu1 %vm593_vm2, %v3138_v53  ;;  %v1225_v24 = vld [vmem:[#allocation3 + $0x70] sm:$0xff] }
 0x11e   : > { %v1445_v36 = vpop.f32.mrb[19].mxu0 }
 0x11f   : > { %v4876_v56 = vpop.f32.mrb[20].mxu1 }
 0x120   : > { %5121 = vmatmul.mubr.msk.bf16.gmra.mrb[124].mxu0 %vm593_vm2, %v3495_v27  ;;  %v1249_v10 = vadd.f32 %v4876_v56, %v1217_v54  ;;  %v1100_v20 = vpop.f32.mrb[21].mxu1  ;;  %v3500_v54 = vpack.c.bf16 %v3481_v3, %v3480_v8  ;;  %v1227_v8 = vld [vmem:[#allocation3 + $0x80] sm:$0xff] }
 0x121   : > { %5124 = vmatprep.mubr.msk.bf16.mxu0 %vm593_vm2, %v3496_v31  ;;  %v1571_v45 = vld [vmem:[#allocation3 + $0x10] sm:$0xff]  ;;  %v1247_v13 = vadd.f32 %v1215_v9, %v1100_v20  ;;  %v4877_v1 = vpop.f32.mrb[22].mxu1  ;;  %v1220_v31 = vld [vmem:[#allocation3 + $0x48] sm:$0xff]  ;;  %v3124_v9 = vld [vmem:[#allocation2 + $0x169] sm:$0xff] }
 0x122   : > { %v1603_v18 = vadd.f32 %v4906_v16, %v1571_v45  ;;  %1281 = vst.msk [vmem:[#allocation3 + $0x30] sm:$0xff] %vm916_vm3, %v1249_v10  ;;  %v1569_v21 = vld [vmem:[#allocation3] sm:$0xff]  ;;  %v1250_v22 = vadd.f32 %v4877_v1, %v1218_v47  ;;  %v1103_v23 = vpop.f32.mrb[23].mxu1 }
 0x123   : > { %v4910_v32 = vpop.f32.mrb[20].mxu0  ;;  %v1601_v39 = vadd.f32 %v1569_v21, %v1442_v26  ;;  %1279 = vst.msk [vmem:[#allocation3 + $0x20] sm:$0xff] %vm916_vm3, %v1247_v13  ;;  %v1572_v35 = vld [vmem:[#allocation3 + $0x18] sm:$0xff]  ;;  %v1248_v46 = vadd.f32 %v1216_v30, %v1103_v23  ;;  %v3483_v13 = vld [vmem:[#allocation2 + $0x172] sm:$0xff] }
 0x124   : > { %v1458_v38 = vpop.f32.mrb[21].mxu0  ;;  %1635 = vst.msk [vmem:[#allocation3 + $0x10] sm:$0xff] %vm916_vm3, %v1603_v18  ;;  %v1604_v14 = vadd.f32 %v4907_v28, %v1572_v35  ;;  %1282 = vst.msk [vmem:[#allocation3 + $0x38] sm:$0xff] %vm916_vm3, %v1250_v22  ;;  %v1570_v42 = vld [vmem:[#allocation3 + $0x8] sm:$0xff]  ;;  %5091 = vmatmul.mubr.msk.bf16.gmra.mrb[128].mxu1 %vm593_vm2, %v3139_v12  ;;  %v3482_v45 = vld [vmem:[#allocation2 + $0x16a] sm:$0xff] }
 0x125   : > { %v4911_v40 = vpop.f32.mrb[22].mxu0  ;;  %1633 = vst.msk [vmem:[#allocation3] sm:$0xff] %vm916_vm3, %v1601_v39  ;;  %v1602_v41 = vadd.f32 %v1570_v42, %v1445_v36  ;;  %1280 = vst.msk [vmem:[#allocation3 + $0x28] sm:$0xff] %vm916_vm3, %v1248_v46  ;;  %5094 = vmatprep.mubr.msk.bf16.mxu1 %vm593_vm2, %v3140_v7  ;;  %v3125_v12 = vld [vmem:[#allocation2 + $0x171] sm:$0xff]  ;;  %v1226_v23 = vld [vmem:[#allocation3 + $0x78] sm:$0xff] }
 0x126   : > { %v1461_v4 = vpop.f32.mrb[23].mxu0  ;;  %1636 = vst.msk [vmem:[#allocation3 + $0x18] sm:$0xff] %vm916_vm3, %v1604_v14  ;;  %v3143_v7 = vpack.c.bf16 %v3125_v12, %v3124_v9  ;;  %v1224_v46 = vld [vmem:[#allocation3 + $0x68] sm:$0xff]  ;;  %v1231_v9 = vld [vmem:[#allocation3 + $0xa0] sm:$0xff] }
 0x127   : > { %1634 = vst.msk [vmem:[#allocation3 + $0x8] sm:$0xff] %vm916_vm3, %v1602_v41  ;;  %v4880_v51 = vpop.f32.mrb[24].mxu1 }
 0x128   : > { %5125 = vmatmul.mubr.msk.bf16.gmra.mrb[128].mxu0 %vm593_vm2, %v3497_v33  ;;  %v1253_v60 = vadd.f32 %v4880_v51, %v1221_v57  ;;  %v1116_v62 = vpop.f32.mrb[25].mxu1  ;;  %v3128_v51 = vld [vmem:[#allocation2 + $0x199] sm:$0xff]  ;;  %v3129_v57 = vld [vmem:[#allocation2 + $0x1a1] sm:$0xff] }
 0x129   : > { %5128 = vmatprep.mubr.msk.bf16.mxu0 %vm593_vm2, %v3498_v55  ;;  %v1575_v11 = vld [vmem:[#allocation3 + $0x30] sm:$0xff]  ;;  %v1251_v16 = vadd.f32 %v1219_v63, %v1116_v62  ;;  %v4881_v53 = vpop.f32.mrb[26].mxu1  ;;  %v3501_v55 = vpack.c.bf16 %v3483_v13, %v3482_v45  ;;  %v3145_v3 = vpack.c.bf16 %v3129_v57, %v3128_v51  ;;  %v1234_v45 = vld [vmem:[#allocation3 + $0xb8] sm:$0xff] }
 0x12a   : > { %v1607_v26 = vadd.f32 %v4910_v32, %v1575_v11  ;;  %1285 = vst.msk [vmem:[#allocation3 + $0x50] sm:$0xff] %vm916_vm3, %v1253_v60  ;;  %v1573_v27 = vld [vmem:[#allocation3 + $0x20] sm:$0xff]  ;;  %v1254_v5 = vadd.f32 %v4881_v53, %v1222_v59  ;;  %v1119_v28 = vpop.f32.mrb[27].mxu1  ;;  %v3486_v60 = vld [vmem:[#allocation2 + $0x19a] sm:$0xff]  ;;  %v3487_v62 = vld [vmem:[#allocation2 + $0x1a2] sm:$0xff] }
 0x12b   : > { %v4914_v17 = vpop.f32.mrb[24].mxu0  ;;  %v1605_v15 = vadd.f32 %v1573_v27, %v1458_v38  ;;  %1283 = vst.msk [vmem:[#allocation3 + $0x40] sm:$0xff] %vm916_vm3, %v1251_v16  ;;  %v1576_v44 = vld [vmem:[#allocation3 + $0x38] sm:$0xff]  ;;  %v1252_v0 = vadd.f32 %v1220_v31, %v1119_v28  ;;  %v1223_v32 = vld [vmem:[#allocation3 + $0x60] sm:$0xff] }
 0x12c   : > { %v1474_v36 = vpop.f32.mrb[25].mxu0  ;;  %1639 = vst.msk [vmem:[#allocation3 + $0x30] sm:$0xff] %vm916_vm3, %v1607_v26  ;;  %v1608_v6 = vadd.f32 %v4911_v40, %v1576_v44  ;;  %1286 = vst.msk [vmem:[#allocation3 + $0x58] sm:$0xff] %vm916_vm3, %v1254_v5  ;;  %v1574_v19 = vld [vmem:[#allocation3 + $0x28] sm:$0xff]  ;;  %5095 = vmatmul.mubr.msk.bf16.gmra.mrb[132].mxu1 %vm593_vm2, %v3141_v52  ;;  %v1230_v53 = vld [vmem:[#allocation3 + $0x98] sm:$0xff] }
 0x12d   : > { %v4915_v56 = vpop.f32.mrb[26].mxu0  ;;  %1637 = vst.msk [vmem:[#allocation3 + $0x20] sm:$0xff] %vm916_vm3, %v1605_v15  ;;  %v1606_v20 = vadd.f32 %v1574_v19, %v1461_v4  ;;  %1284 = vst.msk [vmem:[#allocation3 + $0x48] sm:$0xff] %vm916_vm3, %v1252_v0  ;;  %5098 = vmatprep.mubr.msk.bf16.mxu1 %vm593_vm2, %v3142_v25  ;;  %v1228_v5 = vld [vmem:[#allocation3 + $0x88] sm:$0xff]  ;;  %v1233_v19 = vld [vmem:[#allocation3 + $0xb0] sm:$0xff] }
 0x12e   : > { %v1477_v10 = vpop.f32.mrb[27].mxu0  ;;  %1640 = vst.msk [vmem:[#allocation3 + $0x38] sm:$0xff] %vm916_vm3, %v1608_v6 }
 0x12f   : > { %1638 = vst.msk [vmem:[#allocation3 + $0x28] sm:$0xff] %vm916_vm3, %v1606_v20  ;;  %v4884_v37 = vpop.f32.mrb[28].mxu1 }
 0x130   : > { %5129 = vmatmul.mubr.msk.bf16.gmra.mrb[132].mxu0 %vm593_vm2, %v3499_v2  ;;  %v1257_v1 = vadd.f32 %v4884_v37, %v1225_v24  ;;  %v1132_v47 = vpop.f32.mrb[29].mxu1 }
 0x131   : > { %5132 = vmatprep.mubr.msk.bf16.mxu0 %vm593_vm2, %v3500_v54  ;;  %v1579_v18 = vld [vmem:[#allocation3 + $0x50] sm:$0xff]  ;;  %v1255_v21 = vadd.f32 %v1223_v32, %v1132_v47  ;;  %v4885_v22 = vpop.f32.mrb[30].mxu1 }
 0x132   : > { %v1611_v38 = vadd.f32 %v4914_v17, %v1579_v18  ;;  %1289 = vst.msk [vmem:[#allocation3 + $0x70] sm:$0xff] %vm916_vm3, %v1257_v1  ;;  %v1577_v33 = vld [vmem:[#allocation3 + $0x40] sm:$0xff]  ;;  %v1258_v39 = vadd.f32 %v4885_v22, %v1226_v23  ;;  %v1135_v35 = vpop.f32.mrb[31].mxu1  ;;  %v1232_v18 = vld [vmem:[#allocation3 + $0xa8] sm:$0xff] }
 0x133   : > { %v4918_v30 = vpop.f32.mrb[28].mxu0  ;;  %v1609_v14 = vadd.f32 %v1577_v33, %v1474_v36  ;;  %1287 = vst.msk [vmem:[#allocation3 + $0x60] sm:$0xff] %vm916_vm3, %v1255_v21  ;;  %v1580_v42 = vld [vmem:[#allocation3 + $0x58] sm:$0xff]  ;;  %v1256_v4 = vadd.f32 %v1224_v46, %v1135_v35 }
 0x134   : > { %v1490_v40 = vpop.f32.mrb[29].mxu0  ;;  %1643 = vst.msk [vmem:[#allocation3 + $0x50] sm:$0xff] %vm916_vm3, %v1611_v38  ;;  %v1612_v43 = vadd.f32 %v4915_v56, %v1580_v42  ;;  %1290 = vst.msk [vmem:[#allocation3 + $0x78] sm:$0xff] %vm916_vm3, %v1258_v39  ;;  %v1578_v49 = vld [vmem:[#allocation3 + $0x48] sm:$0xff]  ;;  %5099 = vmatmul.mubr.msk.bf16.gmra.mrb[136].mxu1 %vm593_vm2, %v3143_v7 }
 0x135   : > { %v4919_v41 = vpop.f32.mrb[30].mxu0  ;;  %1641 = vst.msk [vmem:[#allocation3 + $0x40] sm:$0xff] %vm916_vm3, %v1609_v14  ;;  %v1610_v50 = vadd.f32 %v1578_v49, %v1477_v10  ;;  %1288 = vst.msk [vmem:[#allocation3 + $0x68] sm:$0xff] %vm916_vm3, %v1256_v4  ;;  %5102 = vmatprep.mubr.msk.bf16.mxu1 %vm593_vm2, %v5721_v29  ;;  %v1235_v4 = vld [vmem:[#allocation3 + $0xc0] sm:$0xff] }
 0x136   : > { %v1493_v48 = vpop.f32.mrb[31].mxu0  ;;  %1644 = vst.msk [vmem:[#allocation3 + $0x58] sm:$0xff] %vm916_vm3, %v1612_v43 }
 0x137   : > { %1642 = vst.msk [vmem:[#allocation3 + $0x48] sm:$0xff] %vm916_vm3, %v1610_v50  ;;  %v4888_v58 = vpop.f32.mrb[32].mxu1 }
 0x138   : > { %5133 = vmatmul.mubr.msk.bf16.gmra.mrb[136].mxu0 %vm593_vm2, %v3501_v55  ;;  %v1261_v63 = vadd.f32 %v4888_v58, %v1229_v61  ;;  %v1148_v52 = vpop.f32.mrb[33].mxu1  ;;  %v1237_v55 = vld [vmem:[#allocation3 + $0xd0] sm:$0xff] }
 0x139   : > { %5136 = vmatprep.mubr.msk.bf16.mxu0 %vm593_vm2, %v5792_v34  ;;  %v1583_v29 = vld [vmem:[#allocation3 + $0x70] sm:$0xff]  ;;  %v1259_v11 = vadd.f32 %v1227_v8, %v1148_v52  ;;  %v4889_v16 = vpop.f32.mrb[34].mxu1  ;;  %v3503_v34 = vpack.c.bf16 %v3487_v62, %v3486_v60  ;;  %v1236_v60 = vld [vmem:[#allocation3 + $0xc8] sm:$0xff] }
 0x13a   : > { %v1615_v17 = vadd.f32 %v4918_v30, %v1583_v29  ;;  %1293 = vst.msk [vmem:[#allocation3 + $0x90] sm:$0xff] %vm916_vm3, %v1261_v63  ;;  %v1581_v25 = vld [vmem:[#allocation3 + $0x60] sm:$0xff]  ;;  %v1262_v26 = vadd.f32 %v4889_v16, %v1230_v53  ;;  %v1151_v27 = vpop.f32.mrb[35].mxu1 }
 0x13b   : > { %v4922_v59 = vpop.f32.mrb[32].mxu0  ;;  %v1613_v31 = vadd.f32 %v1581_v25, %v1490_v40  ;;  %1291 = vst.msk [vmem:[#allocation3 + $0x80] sm:$0xff] %vm916_vm3, %v1259_v11  ;;  %v1584_v36 = vld [vmem:[#allocation3 + $0x78] sm:$0xff]  ;;  %v1260_v2 = vadd.f32 %v1228_v5, %v1151_v27  ;;  %v1239_v27 = vld [vmem:[#allocation3 + $0xe0] sm:$0xff] }
 0x13c   : > { %v1506_v28 = vpop.f32.mrb[33].mxu0  ;;  %1647 = vst.msk [vmem:[#allocation3 + $0x70] sm:$0xff] %vm916_vm3, %v1615_v17  ;;  %v1616_v44 = vadd.f32 %v4919_v41, %v1584_v36  ;;  %1294 = vst.msk [vmem:[#allocation3 + $0x98] sm:$0xff] %vm916_vm3, %v1262_v26  ;;  %v1582_v0 = vld [vmem:[#allocation3 + $0x68] sm:$0xff]  ;;  %5103 = vmatmul.mubr.msk.bf16.gmra.mrb[140].mxu1 %vm593_vm2, %v3145_v3  ;;  %v1241_v17 = vld [vmem:[#allocation3 + $0xf0] sm:$0xff] }
 0x13d   : > { %v4923_v15 = vpop.f32.mrb[34].mxu0  ;;  %1645 = vst.msk [vmem:[#allocation3 + $0x60] sm:$0xff] %vm916_vm3, %v1613_v31  ;;  %v1614_v54 = vadd.f32 %v1582_v0, %v1493_v48  ;;  %1292 = vst.msk [vmem:[#allocation3 + $0x88] sm:$0xff] %vm916_vm3, %v1260_v2  ;;  %v1238_v48 = vld [vmem:[#allocation3 + $0xd8] sm:$0xff] }
 0x13e   : > { %v1509_v56 = vpop.f32.mrb[35].mxu0  ;;  %1648 = vst.msk [vmem:[#allocation3 + $0x78] sm:$0xff] %vm916_vm3, %v1616_v44  ;;  %v1242_v31 = vld [vmem:[#allocation3 + $0xf8] sm:$0xff] }
 0x13f   : > { %1646 = vst.msk [vmem:[#allocation3 + $0x68] sm:$0xff] %vm916_vm3, %v1614_v54  ;;  %v4892_v6 = vpop.f32.mrb[36].mxu1 }
 0x140   : > { %5137 = vmatmul.mubr.msk.bf16.gmra.mrb[140].mxu0 %vm593_vm2, %v3503_v34  ;;  %v1265_v10 = vadd.f32 %v4892_v6, %v1233_v19  ;;  %v1164_v20 = vpop.f32.mrb[37].mxu1 }
 0x141   : > { %v1587_v12 = vld [vmem:[#allocation3 + $0x90] sm:$0xff]  ;;  %v1263_v37 = vadd.f32 %v1231_v9, %v1164_v20  ;;  %v4893_v24 = vpop.f32.mrb[38].mxu1 }
 0x142   : > { %v1619_v1 = vadd.f32 %v4922_v59, %v1587_v12  ;;  %1297 = vst.msk [vmem:[#allocation3 + $0xb0] sm:$0xff] %vm916_vm3, %v1265_v10  ;;  %v1585_v47 = vld [vmem:[#allocation3 + $0x80] sm:$0xff]  ;;  %v1266_v32 = vadd.f32 %v4893_v24, %v1234_v45  ;;  %v1167_v7 = vpop.f32.mrb[39].mxu1 }
 0x143   : > { %v4926_v13 = vpop.f32.mrb[36].mxu0  ;;  %v1617_v22 = vadd.f32 %v1585_v47, %v1506_v28  ;;  %1295 = vst.msk [vmem:[#allocation3 + $0xa0] sm:$0xff] %vm916_vm3, %v1263_v37  ;;  %v1588_v23 = vld [vmem:[#allocation3 + $0x98] sm:$0xff]  ;;  %v1264_v30 = vadd.f32 %v1232_v18, %v1167_v7 }
 0x144   : > { %v1522_v21 = vpop.f32.mrb[37].mxu0  ;;  %1651 = vst.msk [vmem:[#allocation3 + $0x90] sm:$0xff] %vm916_vm3, %v1619_v1  ;;  %v1620_v33 = vadd.f32 %v4923_v15, %v1588_v23  ;;  %1298 = vst.msk [vmem:[#allocation3 + $0xb8] sm:$0xff] %vm916_vm3, %v1266_v32  ;;  %v1586_v39 = vld [vmem:[#allocation3 + $0x88] sm:$0xff]  ;;  %v1927_v32 = vld [vmem:[#allocation3] sm:$0xff] }
 0x145   : > { %v4927_v38 = vpop.f32.mrb[38].mxu0  ;;  %1649 = vst.msk [vmem:[#allocation3 + $0x80] sm:$0xff] %vm916_vm3, %v1617_v22  ;;  %v1618_v46 = vadd.f32 %v1586_v39, %v1509_v56  ;;  %1296 = vst.msk [vmem:[#allocation3 + $0xa8] sm:$0xff] %vm916_vm3, %v1264_v30  ;;  %v1240_v56 = vld [vmem:[#allocation3 + $0xe8] sm:$0xff]  ;;  %v1930_v22 = vld [vmem:[#allocation3 + $0x18] sm:$0xff] }
 0x146   : > { %v1525_v35 = vpop.f32.mrb[39].mxu0  ;;  %1652 = vst.msk [vmem:[#allocation3 + $0x98] sm:$0xff] %vm916_vm3, %v1620_v33 }
 0x147   : > { %1650 = vst.msk [vmem:[#allocation3 + $0x88] sm:$0xff] %vm916_vm3, %v1618_v46  ;;  %v4896_v40 = vpop.f32.mrb[40].mxu1 }
 0x148   : > { %v1269_v14 = vadd.f32 %v4896_v40, %v1237_v55  ;;  %v1180_v42 = vpop.f32.mrb[41].mxu1 }
 0x149   : > { %v1591_v41 = vld [vmem:[#allocation3 + $0xb0] sm:$0xff]  ;;  %v1267_v43 = vadd.f32 %v1235_v4, %v1180_v42  ;;  %v4897_v49 = vpop.f32.mrb[42].mxu1 }
 0x14a   : > { %v1623_v51 = vadd.f32 %v4926_v13, %v1591_v41  ;;  %1301 = vst.msk [vmem:[#allocation3 + $0xd0] sm:$0xff] %vm916_vm3, %v1269_v14  ;;  %v1589_v57 = vld [vmem:[#allocation3 + $0xa0] sm:$0xff]  ;;  %v1270_v58 = vadd.f32 %v4897_v49, %v1238_v48  ;;  %v1183_v61 = vpop.f32.mrb[43].mxu1  ;;  %v1929_v13 = vld [vmem:[#allocation3 + $0x10] sm:$0xff] }
 0x14b   : > { %v4930_v50 = vpop.f32.mrb[40].mxu0  ;;  %v1621_v63 = vadd.f32 %v1589_v57, %v1522_v21  ;;  %1299 = vst.msk [vmem:[#allocation3 + $0xc0] sm:$0xff] %vm916_vm3, %v1267_v43  ;;  %v1592_v52 = vld [vmem:[#allocation3 + $0xb8] sm:$0xff]  ;;  %v1268_v8 = vadd.f32 %v1236_v60, %v1183_v61 }
 0x14c   : > { %v1538_v62 = vpop.f32.mrb[41].mxu0  ;;  %1655 = vst.msk [vmem:[#allocation3 + $0xb0] sm:$0xff] %vm916_vm3, %v1623_v51  ;;  %v1624_v29 = vadd.f32 %v4927_v38, %v1592_v52  ;;  %1302 = vst.msk [vmem:[#allocation3 + $0xd8] sm:$0xff] %vm916_vm3, %v1270_v58  ;;  %v1590_v11 = vld [vmem:[#allocation3 + $0xa8] sm:$0xff]  ;;  %v1931_v58 = vld [vmem:[#allocation3 + $0x20] sm:$0xff] }
 0x14d   : > { %v4931_v3 = vpop.f32.mrb[42].mxu0  ;;  %1653 = vst.msk [vmem:[#allocation3 + $0xa0] sm:$0xff] %vm916_vm3, %v1621_v63  ;;  %v1622_v53 = vadd.f32 %v1590_v11, %v1525_v35  ;;  %1300 = vst.msk [vmem:[#allocation3 + $0xc8] sm:$0xff] %vm916_vm3, %v1268_v8  ;;  %v1928_v35 = vld [vmem:[#allocation3 + $0x8] sm:$0xff]  ;;  %v1934_v63 = vld [vmem:[#allocation3 + $0x38] sm:$0xff] }
 0x14e   : > { %v1541_v16 = vpop.f32.mrb[43].mxu0  ;;  %1656 = vst.msk [vmem:[#allocation3 + $0xb8] sm:$0xff] %vm916_vm3, %v1624_v29 }
 0x14f   : > { %1654 = vst.msk [vmem:[#allocation3 + $0xa8] sm:$0xff] %vm916_vm3, %v1622_v53  ;;  %v4900_v59 = vpop.f32.mrb[44].mxu1 }
 0x150   : > { %v1273_v25 = vadd.f32 %v4900_v59, %v1241_v17  ;;  %v1196_v26 = vpop.f32.mrb[45].mxu1 }
 0x151   : > { %v1595_v5 = vld [vmem:[#allocation3 + $0xd0] sm:$0xff]  ;;  %v1271_v28 = vadd.f32 %v1239_v27, %v1196_v26  ;;  %v4901_v34 = vpop.f32.mrb[46].mxu1 }
 0x152   : > { %v1627_v2 = vadd.f32 %v4930_v50, %v1595_v5  ;;  %1305 = vst.msk [vmem:[#allocation3 + $0xf0] sm:$0xff] %vm916_vm3, %v1273_v25  ;;  %v1593_v15 = vld [vmem:[#allocation3 + $0xc0] sm:$0xff]  ;;  %v1274_v44 = vadd.f32 %v4901_v34, %v1242_v31  ;;  %v1199_v0 = vpop.f32.mrb[47].mxu1  ;;  %v1933_v50 = vld [vmem:[#allocation3 + $0x30] sm:$0xff] }
 0x153   : > { %v4934_v36 = vpop.f32.mrb[44].mxu0  ;;  %v1625_v6 = vadd.f32 %v1593_v15, %v1538_v62  ;;  %1303 = vst.msk [vmem:[#allocation3 + $0xe0] sm:$0xff] %vm916_vm3, %v1271_v28  ;;  %v1596_v19 = vld [vmem:[#allocation3 + $0xd8] sm:$0xff]  ;;  %v1272_v10 = vadd.f32 %v1240_v56, %v1199_v0 }
 0x154   : > { %v1554_v54 = vpop.f32.mrb[45].mxu0  ;;  %1659 = vst.msk [vmem:[#allocation3 + $0xd0] sm:$0xff] %vm916_vm3, %v1627_v2  ;;  %v1628_v9 = vadd.f32 %v4931_v3, %v1596_v19  ;;  %1306 = vst.msk [vmem:[#allocation3 + $0xf8] sm:$0xff] %vm916_vm3, %v1274_v44  ;;  %v1594_v12 = vld [vmem:[#allocation3 + $0xc8] sm:$0xff]  ;;  %v1935_v44 = vld [vmem:[#allocation3 + $0x40] sm:$0xff] }
 0x155   : > { %v4935_v20 = vpop.f32.mrb[46].mxu0  ;;  %1657 = vst.msk [vmem:[#allocation3 + $0xc0] sm:$0xff] %vm916_vm3, %v1625_v6  ;;  %v1626_v24 = vadd.f32 %v1594_v12, %v1541_v16  ;;  %1304 = vst.msk [vmem:[#allocation3 + $0xe8] sm:$0xff] %vm916_vm3, %v1272_v10  ;;  %v1932_v16 = vld [vmem:[#allocation3 + $0x28] sm:$0xff]  ;;  %v1938_v6 = vld [vmem:[#allocation3 + $0x58] sm:$0xff] }
 0x156   : > { %v1557_v37 = vpop.f32.mrb[47].mxu0  ;;  %1660 = vst.msk [vmem:[#allocation3 + $0xd8] sm:$0xff] %vm916_vm3, %v1628_v9 }
 0x157   : > { %1658 = vst.msk [vmem:[#allocation3 + $0xc8] sm:$0xff] %vm916_vm3, %v1626_v24  ;;  %v4940_v45 = vpop.f32.mrb[48].mxu1 }
 0x158   : > { %v1961_v1 = vadd.f32 %v4940_v45, %v1929_v13  ;;  %v1800_v47 = vpop.f32.mrb[49].mxu1 }
 0x159   : > { %v1599_v7 = vld [vmem:[#allocation3 + $0xf0] sm:$0xff]  ;;  %v1959_v18 = vadd.f32 %v1927_v32, %v1800_v47  ;;  %v4941_v21 = vpop.f32.mrb[50].mxu1 }
 0x15a   : > { %v1631_v30 = vadd.f32 %v4934_v36, %v1599_v7  ;;  %v1597_v38 = vld [vmem:[#allocation3 + $0xe0] sm:$0xff]  ;;  %1993 = vst.msk [vmem:[#allocation3 + $0x10] sm:$0xff] %vm916_vm3, %v1961_v1  ;;  %v1962_v33 = vadd.f32 %v4941_v21, %v1930_v22  ;;  %v1803_v39 = vpop.f32.mrb[51].mxu1  ;;  %v1937_v36 = vld [vmem:[#allocation3 + $0x50] sm:$0xff] }
 0x15b   : > { %v4974_v23 = vpop.f32.mrb[48].mxu0  ;;  %v1629_v40 = vadd.f32 %v1597_v38, %v1554_v54  ;;  %v1600_v55 = vld [vmem:[#allocation3 + $0xf8] sm:$0xff]  ;;  %1991 = vst.msk [vmem:[#allocation3] sm:$0xff] %vm916_vm3, %v1959_v18  ;;  %v1960_v14 = vadd.f32 %v1928_v35, %v1803_v39 }
 0x15c   : > { %v2158_v46 = vpop.f32.mrb[49].mxu0  ;;  %1663 = vst.msk [vmem:[#allocation3 + $0xf0] sm:$0xff] %vm916_vm3, %v1631_v30  ;;  %v1632_v4 = vadd.f32 %v4935_v20, %v1600_v55  ;;  %v1598_v41 = vld [vmem:[#allocation3 + $0xe8] sm:$0xff]  ;;  %1994 = vst.msk [vmem:[#allocation3 + $0x18] sm:$0xff] %vm916_vm3, %v1962_v33  ;;  %v1939_v33 = vld [vmem:[#allocation3 + $0x60] sm:$0xff] }
 0x15d   : > { %v4975_v42 = vpop.f32.mrb[50].mxu0  ;;  %1661 = vst.msk [vmem:[#allocation3 + $0xe0] sm:$0xff] %vm916_vm3, %v1629_v40  ;;  %v1630_v49 = vadd.f32 %v1598_v41, %v1557_v37  ;;  %1992 = vst.msk [vmem:[#allocation3 + $0x8] sm:$0xff] %vm916_vm3, %v1960_v14  ;;  %v1936_v37 = vld [vmem:[#allocation3 + $0x48] sm:$0xff]  ;;  %v1942_v40 = vld [vmem:[#allocation3 + $0x78] sm:$0xff] }
 0x15e   : > { %v2161_v43 = vpop.f32.mrb[51].mxu0  ;;  %1664 = vst.msk [vmem:[#allocation3 + $0xf8] sm:$0xff] %vm916_vm3, %v1632_v4 }
 0x15f   : > { %1662 = vst.msk [vmem:[#allocation3 + $0xe8] sm:$0xff] %vm916_vm3, %v1630_v49  ;;  %v4944_v48 = vpop.f32.mrb[52].mxu1 }
 0x160   : > { %v1965_v51 = vadd.f32 %v4944_v48, %v1933_v50  ;;  %v1816_v57 = vpop.f32.mrb[53].mxu1 }
 0x161   : > { %v2287_v61 = vld [vmem:[#allocation3 + $0x10] sm:$0xff]  ;;  %v1963_v60 = vadd.f32 %v1931_v58, %v1816_v57  ;;  %v4945_v62 = vpop.f32.mrb[54].mxu1 }
 0x162   : > { %v2319_v8 = vadd.f32 %v4974_v23, %v2287_v61  ;;  %1997 = vst.msk [vmem:[#allocation3 + $0x30] sm:$0xff] %vm916_vm3, %v1965_v51  ;;  %v2285_v3 = vld [vmem:[#allocation3] sm:$0xff]  ;;  %v1966_v29 = vadd.f32 %v4945_v62, %v1934_v63  ;;  %v1819_v11 = vpop.f32.mrb[55].mxu1  ;;  %v1941_v23 = vld [vmem:[#allocation3 + $0x70] sm:$0xff] }
 0x163   : > { %v4978_v52 = vpop.f32.mrb[52].mxu0  ;;  %v2317_v59 = vadd.f32 %v2285_v3, %v2158_v46  ;;  %1995 = vst.msk [vmem:[#allocation3 + $0x20] sm:$0xff] %vm916_vm3, %v1963_v60  ;;  %v2288_v17 = vld [vmem:[#allocation3 + $0x18] sm:$0xff]  ;;  %v1964_v25 = vadd.f32 %v1932_v16, %v1819_v11 }
 0x164   : > { %v2174_v53 = vpop.f32.mrb[53].mxu0  ;;  %2351 = vst.msk [vmem:[#allocation3 + $0x10] sm:$0xff] %vm916_vm3, %v2319_v8  ;;  %v2320_v27 = vadd.f32 %v4975_v42, %v2288_v17  ;;  %1998 = vst.msk [vmem:[#allocation3 + $0x38] sm:$0xff] %vm916_vm3, %v1966_v29  ;;  %v2286_v5 = vld [vmem:[#allocation3 + $0x8] sm:$0xff]  ;;  %v1943_v29 = vld [vmem:[#allocation3 + $0x80] sm:$0xff] }
 0x165   : > { %v4979_v26 = vpop.f32.mrb[54].mxu0  ;;  %2349 = vst.msk [vmem:[#allocation3] sm:$0xff] %vm916_vm3, %v2317_v59  ;;  %v2318_v34 = vadd.f32 %v2286_v5, %v2161_v43  ;;  %1996 = vst.msk [vmem:[#allocation3 + $0x28] sm:$0xff] %vm916_vm3, %v1964_v25  ;;  %v1940_v43 = vld [vmem:[#allocation3 + $0x68] sm:$0xff]  ;;  %v1946_v59 = vld [vmem:[#allocation3 + $0x98] sm:$0xff] }
 0x166   : > { %v2177_v28 = vpop.f32.mrb[55].mxu0  ;;  %2352 = vst.msk [vmem:[#allocation3 + $0x18] sm:$0xff] %vm916_vm3, %v2320_v27 }
 0x167   : > { %2350 = vst.msk [vmem:[#allocation3 + $0x8] sm:$0xff] %vm916_vm3, %v2318_v34  ;;  %v4948_v31 = vpop.f32.mrb[56].mxu1 }
 0x168   : > { %v1969_v2 = vadd.f32 %v4948_v31, %v1937_v36  ;;  %v1832_v15 = vpop.f32.mrb[57].mxu1 }
 0x169   : > { %v2291_v0 = vld [vmem:[#allocation3 + $0x30] sm:$0xff]  ;;  %v1967_v56 = vadd.f32 %v1935_v44, %v1832_v15  ;;  %v4949_v54 = vpop.f32.mrb[58].mxu1 }
 0x16a   : > { %v2323_v10 = vadd.f32 %v4978_v52, %v2291_v0  ;;  %2001 = vst.msk [vmem:[#allocation3 + $0x50] sm:$0xff] %vm916_vm3, %v1969_v2  ;;  %v2289_v20 = vld [vmem:[#allocation3 + $0x20] sm:$0xff]  ;;  %v1970_v9 = vadd.f32 %v4949_v54, %v1938_v6  ;;  %v1835_v12 = vpop.f32.mrb[59].mxu1  ;;  %v1945_v52 = vld [vmem:[#allocation3 + $0x90] sm:$0xff] }
 0x16b   : > { %v4982_v19 = vpop.f32.mrb[56].mxu0  ;;  %v2321_v45 = vadd.f32 %v2289_v20, %v2174_v53  ;;  %1999 = vst.msk [vmem:[#allocation3 + $0x40] sm:$0xff] %vm916_vm3, %v1967_v56  ;;  %v2292_v13 = vld [vmem:[#allocation3 + $0x38] sm:$0xff]  ;;  %v1968_v1 = vadd.f32 %v1936_v37, %v1835_v12 }
 0x16c   : > { %v2190_v24 = vpop.f32.mrb[57].mxu0  ;;  %2355 = vst.msk [vmem:[#allocation3 + $0x30] sm:$0xff] %vm916_vm3, %v2323_v10  ;;  %v2324_v32 = vadd.f32 %v4979_v26, %v2292_v13  ;;  %2002 = vst.msk [vmem:[#allocation3 + $0x58] sm:$0xff] %vm916_vm3, %v1970_v9  ;;  %v2290_v7 = vld [vmem:[#allocation3 + $0x28] sm:$0xff]  ;;  %v1947_v9 = vld [vmem:[#allocation3 + $0xa0] sm:$0xff] }
 0x16d   : > { %v4983_v47 = vpop.f32.mrb[58].mxu0  ;;  %2353 = vst.msk [vmem:[#allocation3 + $0x20] sm:$0xff] %vm916_vm3, %v2321_v45  ;;  %v2322_v21 = vadd.f32 %v2290_v7, %v2177_v28  ;;  %2000 = vst.msk [vmem:[#allocation3 + $0x48] sm:$0xff] %vm916_vm3, %v1968_v1  ;;  %v1944_v28 = vld [vmem:[#allocation3 + $0x88] sm:$0xff]  ;;  %v1950_v45 = vld [vmem:[#allocation3 + $0xb8] sm:$0xff] }
 0x16e   : > { %v2193_v18 = vpop.f32.mrb[59].mxu0  ;;  %2356 = vst.msk [vmem:[#allocation3 + $0x38] sm:$0xff] %vm916_vm3, %v2324_v32 }
 0x16f   : > { %2354 = vst.msk [vmem:[#allocation3 + $0x28] sm:$0xff] %vm916_vm3, %v2322_v21  ;;  %v4952_v22 = vpop.f32.mrb[60].mxu1 }
 0x170   : > { %v1973_v30 = vadd.f32 %v4952_v22, %v1941_v23  ;;  %v1848_v38 = vpop.f32.mrb[61].mxu1 }
 0x171   : > { %v2295_v39 = vld [vmem:[#allocation3 + $0x50] sm:$0xff]  ;;  %v1971_v35 = vadd.f32 %v1939_v33, %v1848_v38  ;;  %v4953_v46 = vpop.f32.mrb[62].mxu1 }
 0x172   : > { %v2327_v14 = vadd.f32 %v4982_v19, %v2295_v39  ;;  %2005 = vst.msk [vmem:[#allocation3 + $0x70] sm:$0xff] %vm916_vm3, %v1973_v30  ;;  %v2293_v42 = vld [vmem:[#allocation3 + $0x40] sm:$0xff]  ;;  %v1974_v4 = vadd.f32 %v4953_v46, %v1942_v40  ;;  %v1851_v41 = vpop.f32.mrb[63].mxu1  ;;  %v1949_v19 = vld [vmem:[#allocation3 + $0xb0] sm:$0xff] }
 0x173   : > { %v4986_v55 = vpop.f32.mrb[60].mxu0  ;;  %v2325_v48 = vadd.f32 %v2293_v42, %v2190_v24  ;;  %2003 = vst.msk [vmem:[#allocation3 + $0x60] sm:$0xff] %vm916_vm3, %v1971_v35  ;;  %v2296_v50 = vld [vmem:[#allocation3 + $0x58] sm:$0xff]  ;;  %v1972_v51 = vadd.f32 %v1940_v43, %v1851_v41 }
 0x174   : > { %v2206_v49 = vpop.f32.mrb[61].mxu0  ;;  %2359 = vst.msk [vmem:[#allocation3 + $0x50] sm:$0xff] %vm916_vm3, %v2327_v14  ;;  %v2328_v58 = vadd.f32 %v4983_v47, %v2296_v50  ;;  %2006 = vst.msk [vmem:[#allocation3 + $0x78] sm:$0xff] %vm916_vm3, %v1974_v4  ;;  %v2294_v61 = vld [vmem:[#allocation3 + $0x48] sm:$0xff]  ;;  %v1951_v4 = vld [vmem:[#allocation3 + $0xc0] sm:$0xff] }
 0x175   : > { %v4987_v57 = vpop.f32.mrb[62].mxu0  ;;  %2357 = vst.msk [vmem:[#allocation3 + $0x40] sm:$0xff] %vm916_vm3, %v2325_v48  ;;  %v2326_v62 = vadd.f32 %v2294_v61, %v2193_v18  ;;  %2004 = vst.msk [vmem:[#allocation3 + $0x68] sm:$0xff] %vm916_vm3, %v1972_v51  ;;  %v1948_v18 = vld [vmem:[#allocation3 + $0xa8] sm:$0xff]  ;;  %v1954_v48 = vld [vmem:[#allocation3 + $0xd8] sm:$0xff] }
 0x176   : > { %v2209_v60 = vpop.f32.mrb[63].mxu0  ;;  %2360 = vst.msk [vmem:[#allocation3 + $0x58] sm:$0xff] %vm916_vm3, %v2328_v58 }
 0x177   : > { %2358 = vst.msk [vmem:[#allocation3 + $0x48] sm:$0xff] %vm916_vm3, %v2326_v62  ;;  %v4956_v63 = vpop.f32.mrb[64].mxu1 }
 0x178   : > { %v1977_v8 = vadd.f32 %v4956_v63, %v1945_v52  ;;  %v1864_v3 = vpop.f32.mrb[65].mxu1 }
 0x179   : > { %v2299_v11 = vld [vmem:[#allocation3 + $0x70] sm:$0xff]  ;;  %v1975_v16 = vadd.f32 %v1943_v29, %v1864_v3  ;;  %v4957_v53 = vpop.f32.mrb[66].mxu1 }
 0x17a   : > { %v2331_v25 = vadd.f32 %v4986_v55, %v2299_v11  ;;  %2009 = vst.msk [vmem:[#allocation3 + $0x90] sm:$0xff] %vm916_vm3, %v1977_v8  ;;  %v2297_v26 = vld [vmem:[#allocation3 + $0x60] sm:$0xff]  ;;  %v1978_v27 = vadd.f32 %v4957_v53, %v1946_v59  ;;  %v1867_v5 = vpop.f32.mrb[67].mxu1  ;;  %v1953_v55 = vld [vmem:[#allocation3 + $0xd0] sm:$0xff] }
 0x17b   : > { %v4990_v17 = vpop.f32.mrb[64].mxu0  ;;  %v2329_v31 = vadd.f32 %v2297_v26, %v2206_v49  ;;  %2007 = vst.msk [vmem:[#allocation3 + $0x80] sm:$0xff] %vm916_vm3, %v1975_v16  ;;  %v2300_v36 = vld [vmem:[#allocation3 + $0x78] sm:$0xff]  ;;  %v1976_v2 = vadd.f32 %v1944_v28, %v1867_v5 }
 0x17c   : > { %v2222_v34 = vpop.f32.mrb[65].mxu0  ;;  %2363 = vst.msk [vmem:[#allocation3 + $0x70] sm:$0xff] %vm916_vm3, %v2331_v25  ;;  %v2332_v44 = vadd.f32 %v4987_v57, %v2300_v36  ;;  %2010 = vst.msk [vmem:[#allocation3 + $0x98] sm:$0xff] %vm916_vm3, %v1978_v27  ;;  %v2298_v0 = vld [vmem:[#allocation3 + $0x68] sm:$0xff]  ;;  %v1955_v27 = vld [vmem:[#allocation3 + $0xe0] sm:$0xff] }
 0x17d   : > { %v4991_v15 = vpop.f32.mrb[66].mxu0  ;;  %2361 = vst.msk [vmem:[#allocation3 + $0x60] sm:$0xff] %vm916_vm3, %v2329_v31  ;;  %v2330_v54 = vadd.f32 %v2298_v0, %v2209_v60  ;;  %2008 = vst.msk [vmem:[#allocation3 + $0x88] sm:$0xff] %vm916_vm3, %v1976_v2  ;;  %v1952_v60 = vld [vmem:[#allocation3 + $0xc8] sm:$0xff]  ;;  %v1958_v31 = vld [vmem:[#allocation3 + $0xf8] sm:$0xff] }
 0x17e   : > { %v2225_v56 = vpop.f32.mrb[67].mxu0  ;;  %2364 = vst.msk [vmem:[#allocation3 + $0x78] sm:$0xff] %vm916_vm3, %v2332_v44 }
 0x17f   : > { %2362 = vst.msk [vmem:[#allocation3 + $0x68] sm:$0xff] %vm916_vm3, %v2330_v54  ;;  %v4960_v6 = vpop.f32.mrb[68].mxu1 }
 0x180   : > { %v1981_v10 = vadd.f32 %v4960_v6, %v1949_v19  ;;  %v1880_v20 = vpop.f32.mrb[69].mxu1 }
 0x181   : > { %v2303_v12 = vld [vmem:[#allocation3 + $0x90] sm:$0xff]  ;;  %v1979_v37 = vadd.f32 %v1947_v9, %v1880_v20  ;;  %v4961_v24 = vpop.f32.mrb[70].mxu1 }
 0x182   : > { %v2335_v1 = vadd.f32 %v4990_v17, %v2303_v12  ;;  %2013 = vst.msk [vmem:[#allocation3 + $0xb0] sm:$0xff] %vm916_vm3, %v1981_v10  ;;  %v2301_v47 = vld [vmem:[#allocation3 + $0x80] sm:$0xff]  ;;  %v1982_v32 = vadd.f32 %v4961_v24, %v1950_v45  ;;  %v1883_v7 = vpop.f32.mrb[71].mxu1  ;;  %v1957_v17 = vld [vmem:[#allocation3 + $0xf0] sm:$0xff] }
 0x183   : > { %v4994_v13 = vpop.f32.mrb[68].mxu0  ;;  %v2333_v22 = vadd.f32 %v2301_v47, %v2222_v34  ;;  %2011 = vst.msk [vmem:[#allocation3 + $0xa0] sm:$0xff] %vm916_vm3, %v1979_v37  ;;  %v2304_v23 = vld [vmem:[#allocation3 + $0x98] sm:$0xff]  ;;  %v1980_v30 = vadd.f32 %v1948_v18, %v1883_v7 }
 0x184   : > { %v2238_v21 = vpop.f32.mrb[69].mxu0  ;;  %2367 = vst.msk [vmem:[#allocation3 + $0x90] sm:$0xff] %vm916_vm3, %v2335_v1  ;;  %v2336_v33 = vadd.f32 %v4991_v15, %v2304_v23  ;;  %2014 = vst.msk [vmem:[#allocation3 + $0xb8] sm:$0xff] %vm916_vm3, %v1982_v32  ;;  %v2302_v39 = vld [vmem:[#allocation3 + $0x88] sm:$0xff]  ;;  %v2643_v32 = vld [vmem:[#allocation3] sm:$0xff] }
 0x185   : > { %v4995_v38 = vpop.f32.mrb[70].mxu0  ;;  %2365 = vst.msk [vmem:[#allocation3 + $0x80] sm:$0xff] %vm916_vm3, %v2333_v22  ;;  %v2334_v46 = vadd.f32 %v2302_v39, %v2225_v56  ;;  %2012 = vst.msk [vmem:[#allocation3 + $0xa8] sm:$0xff] %vm916_vm3, %v1980_v30  ;;  %v1956_v56 = vld [vmem:[#allocation3 + $0xe8] sm:$0xff]  ;;  %v2646_v22 = vld [vmem:[#allocation3 + $0x18] sm:$0xff] }
 0x186   : > { %v2241_v35 = vpop.f32.mrb[71].mxu0  ;;  %2368 = vst.msk [vmem:[#allocation3 + $0x98] sm:$0xff] %vm916_vm3, %v2336_v33 }
 0x187   : > { %2366 = vst.msk [vmem:[#allocation3 + $0x88] sm:$0xff] %vm916_vm3, %v2334_v46  ;;  %v4964_v40 = vpop.f32.mrb[72].mxu1 }
 0x188   : > { %v1985_v14 = vadd.f32 %v4964_v40, %v1953_v55  ;;  %v1896_v42 = vpop.f32.mrb[73].mxu1 }
 0x189   : > { %v2307_v41 = vld [vmem:[#allocation3 + $0xb0] sm:$0xff]  ;;  %v1983_v43 = vadd.f32 %v1951_v4, %v1896_v42  ;;  %v4965_v49 = vpop.f32.mrb[74].mxu1 }
 0x18a   : > { %v2339_v51 = vadd.f32 %v4994_v13, %v2307_v41  ;;  %2017 = vst.msk [vmem:[#allocation3 + $0xd0] sm:$0xff] %vm916_vm3, %v1985_v14  ;;  %v2305_v57 = vld [vmem:[#allocation3 + $0xa0] sm:$0xff]  ;;  %v1986_v58 = vadd.f32 %v4965_v49, %v1954_v48  ;;  %v1899_v61 = vpop.f32.mrb[75].mxu1  ;;  %v2645_v13 = vld [vmem:[#allocation3 + $0x10] sm:$0xff] }
 0x18b   : > { %v4998_v50 = vpop.f32.mrb[72].mxu0  ;;  %v2337_v63 = vadd.f32 %v2305_v57, %v2238_v21  ;;  %2015 = vst.msk [vmem:[#allocation3 + $0xc0] sm:$0xff] %vm916_vm3, %v1983_v43  ;;  %v2308_v52 = vld [vmem:[#allocation3 + $0xb8] sm:$0xff]  ;;  %v1984_v8 = vadd.f32 %v1952_v60, %v1899_v61 }
 0x18c   : > { %v2254_v62 = vpop.f32.mrb[73].mxu0  ;;  %2371 = vst.msk [vmem:[#allocation3 + $0xb0] sm:$0xff] %vm916_vm3, %v2339_v51  ;;  %v2340_v29 = vadd.f32 %v4995_v38, %v2308_v52  ;;  %2018 = vst.msk [vmem:[#allocation3 + $0xd8] sm:$0xff] %vm916_vm3, %v1986_v58  ;;  %v2306_v11 = vld [vmem:[#allocation3 + $0xa8] sm:$0xff]  ;;  %v2647_v58 = vld [vmem:[#allocation3 + $0x20] sm:$0xff] }
 0x18d   : > { %v4999_v3 = vpop.f32.mrb[74].mxu0  ;;  %2369 = vst.msk [vmem:[#allocation3 + $0xa0] sm:$0xff] %vm916_vm3, %v2337_v63  ;;  %v2338_v53 = vadd.f32 %v2306_v11, %v2241_v35  ;;  %2016 = vst.msk [vmem:[#allocation3 + $0xc8] sm:$0xff] %vm916_vm3, %v1984_v8  ;;  %v2644_v35 = vld [vmem:[#allocation3 + $0x8] sm:$0xff]  ;;  %v2650_v63 = vld [vmem:[#allocation3 + $0x38] sm:$0xff] }
 0x18e   : > { %v2257_v16 = vpop.f32.mrb[75].mxu0  ;;  %2372 = vst.msk [vmem:[#allocation3 + $0xb8] sm:$0xff] %vm916_vm3, %v2340_v29 }
 0x18f   : > { %2370 = vst.msk [vmem:[#allocation3 + $0xa8] sm:$0xff] %vm916_vm3, %v2338_v53  ;;  %v4968_v59 = vpop.f32.mrb[76].mxu1 }
 0x190   : > { %v1989_v25 = vadd.f32 %v4968_v59, %v1957_v17  ;;  %v1912_v26 = vpop.f32.mrb[77].mxu1 }
 0x191   : > { %v2311_v5 = vld [vmem:[#allocation3 + $0xd0] sm:$0xff]  ;;  %v1987_v28 = vadd.f32 %v1955_v27, %v1912_v26  ;;  %v4969_v34 = vpop.f32.mrb[78].mxu1 }
 0x192   : > { %v2343_v2 = vadd.f32 %v4998_v50, %v2311_v5  ;;  %2021 = vst.msk [vmem:[#allocation3 + $0xf0] sm:$0xff] %vm916_vm3, %v1989_v25  ;;  %v2309_v15 = vld [vmem:[#allocation3 + $0xc0] sm:$0xff]  ;;  %v1990_v44 = vadd.f32 %v4969_v34, %v1958_v31  ;;  %v1915_v0 = vpop.f32.mrb[79].mxu1  ;;  %v2649_v50 = vld [vmem:[#allocation3 + $0x30] sm:$0xff] }
 0x193   : > { %v5002_v36 = vpop.f32.mrb[76].mxu0  ;;  %v2341_v6 = vadd.f32 %v2309_v15, %v2254_v62  ;;  %2019 = vst.msk [vmem:[#allocation3 + $0xe0] sm:$0xff] %vm916_vm3, %v1987_v28  ;;  %v2312_v19 = vld [vmem:[#allocation3 + $0xd8] sm:$0xff]  ;;  %v1988_v10 = vadd.f32 %v1956_v56, %v1915_v0 }
 0x194   : > { %v2270_v54 = vpop.f32.mrb[77].mxu0  ;;  %2375 = vst.msk [vmem:[#allocation3 + $0xd0] sm:$0xff] %vm916_vm3, %v2343_v2  ;;  %v2344_v9 = vadd.f32 %v4999_v3, %v2312_v19  ;;  %2022 = vst.msk [vmem:[#allocation3 + $0xf8] sm:$0xff] %vm916_vm3, %v1990_v44  ;;  %v2310_v12 = vld [vmem:[#allocation3 + $0xc8] sm:$0xff]  ;;  %v2651_v44 = vld [vmem:[#allocation3 + $0x40] sm:$0xff] }
 0x195   : > { %v5003_v20 = vpop.f32.mrb[78].mxu0  ;;  %2373 = vst.msk [vmem:[#allocation3 + $0xc0] sm:$0xff] %vm916_vm3, %v2341_v6  ;;  %v2342_v24 = vadd.f32 %v2310_v12, %v2257_v16  ;;  %2020 = vst.msk [vmem:[#allocation3 + $0xe8] sm:$0xff] %vm916_vm3, %v1988_v10  ;;  %v2648_v16 = vld [vmem:[#allocation3 + $0x28] sm:$0xff]  ;;  %v2654_v6 = vld [vmem:[#allocation3 + $0x58] sm:$0xff] }
 0x196   : > { %v2273_v37 = vpop.f32.mrb[79].mxu0  ;;  %2376 = vst.msk [vmem:[#allocation3 + $0xd8] sm:$0xff] %vm916_vm3, %v2344_v9 }
 0x197   : > { %2374 = vst.msk [vmem:[#allocation3 + $0xc8] sm:$0xff] %vm916_vm3, %v2342_v24  ;;  %v5008_v45 = vpop.f32.mrb[80].mxu1 }
 0x198   : > { %v2677_v1 = vadd.f32 %v5008_v45, %v2645_v13  ;;  %v2516_v47 = vpop.f32.mrb[81].mxu1 }
 0x199   : > { %v2315_v7 = vld [vmem:[#allocation3 + $0xf0] sm:$0xff]  ;;  %v2675_v18 = vadd.f32 %v2643_v32, %v2516_v47  ;;  %v5009_v21 = vpop.f32.mrb[82].mxu1 }
 0x19a   : > { %v2347_v30 = vadd.f32 %v5002_v36, %v2315_v7  ;;  %v2313_v38 = vld [vmem:[#allocation3 + $0xe0] sm:$0xff]  ;;  %2709 = vst.msk [vmem:[#allocation3 + $0x10] sm:$0xff] %vm916_vm3, %v2677_v1  ;;  %v2678_v33 = vadd.f32 %v5009_v21, %v2646_v22  ;;  %v2519_v39 = vpop.f32.mrb[83].mxu1  ;;  %v2653_v36 = vld [vmem:[#allocation3 + $0x50] sm:$0xff] }
 0x19b   : > { %v5042_v23 = vpop.f32.mrb[80].mxu0  ;;  %v2345_v40 = vadd.f32 %v2313_v38, %v2270_v54  ;;  %v2316_v55 = vld [vmem:[#allocation3 + $0xf8] sm:$0xff]  ;;  %2707 = vst.msk [vmem:[#allocation3] sm:$0xff] %vm916_vm3, %v2675_v18  ;;  %v2676_v14 = vadd.f32 %v2644_v35, %v2519_v39 }
 0x19c   : > { %v2875_v46 = vpop.f32.mrb[81].mxu0  ;;  %2379 = vst.msk [vmem:[#allocation3 + $0xf0] sm:$0xff] %vm916_vm3, %v2347_v30  ;;  %v2348_v4 = vadd.f32 %v5003_v20, %v2316_v55  ;;  %v2314_v41 = vld [vmem:[#allocation3 + $0xe8] sm:$0xff]  ;;  %2710 = vst.msk [vmem:[#allocation3 + $0x18] sm:$0xff] %vm916_vm3, %v2678_v33  ;;  %v2655_v33 = vld [vmem:[#allocation3 + $0x60] sm:$0xff] }
 0x19d   : > { %v5043_v42 = vpop.f32.mrb[82].mxu0  ;;  %2377 = vst.msk [vmem:[#allocation3 + $0xe0] sm:$0xff] %vm916_vm3, %v2345_v40  ;;  %v2346_v49 = vadd.f32 %v2314_v41, %v2273_v37  ;;  %2708 = vst.msk [vmem:[#allocation3 + $0x8] sm:$0xff] %vm916_vm3, %v2676_v14  ;;  %v2652_v37 = vld [vmem:[#allocation3 + $0x48] sm:$0xff]  ;;  %v2658_v40 = vld [vmem:[#allocation3 + $0x78] sm:$0xff] }
 0x19e   : > { %v2878_v43 = vpop.f32.mrb[83].mxu0  ;;  %2380 = vst.msk [vmem:[#allocation3 + $0xf8] sm:$0xff] %vm916_vm3, %v2348_v4 }
 0x19f   : > { %2378 = vst.msk [vmem:[#allocation3 + $0xe8] sm:$0xff] %vm916_vm3, %v2346_v49  ;;  %v5012_v48 = vpop.f32.mrb[84].mxu1 }
 0x1a0   : > { %v2681_v51 = vadd.f32 %v5012_v48, %v2649_v50  ;;  %v2532_v57 = vpop.f32.mrb[85].mxu1 }
 0x1a1   : > { %v3004_v61 = vld [vmem:[#allocation3 + $0x10] sm:$0xff]  ;;  %v2679_v60 = vadd.f32 %v2647_v58, %v2532_v57  ;;  %v5013_v62 = vpop.f32.mrb[86].mxu1 }
 0x1a2   : > { %v3036_v8 = vadd.f32 %v5042_v23, %v3004_v61  ;;  %2713 = vst.msk [vmem:[#allocation3 + $0x30] sm:$0xff] %vm916_vm3, %v2681_v51  ;;  %v3002_v3 = vld [vmem:[#allocation3] sm:$0xff]  ;;  %v2682_v29 = vadd.f32 %v5013_v62, %v2650_v63  ;;  %v2535_v11 = vpop.f32.mrb[87].mxu1  ;;  %v2657_v23 = vld [vmem:[#allocation3 + $0x70] sm:$0xff] }
 0x1a3   : > { %v5046_v52 = vpop.f32.mrb[84].mxu0  ;;  %v3034_v59 = vadd.f32 %v3002_v3, %v2875_v46  ;;  %2711 = vst.msk [vmem:[#allocation3 + $0x20] sm:$0xff] %vm916_vm3, %v2679_v60  ;;  %v3005_v17 = vld [vmem:[#allocation3 + $0x18] sm:$0xff]  ;;  %v2680_v25 = vadd.f32 %v2648_v16, %v2535_v11 }
 0x1a4   : > { %v2891_v53 = vpop.f32.mrb[85].mxu0  ;;  %3068 = vst.msk [vmem:[#allocation3 + $0x10] sm:$0xff] %vm916_vm3, %v3036_v8  ;;  %v3037_v27 = vadd.f32 %v5043_v42, %v3005_v17  ;;  %2714 = vst.msk [vmem:[#allocation3 + $0x38] sm:$0xff] %vm916_vm3, %v2682_v29  ;;  %v3003_v5 = vld [vmem:[#allocation3 + $0x8] sm:$0xff]  ;;  %v2659_v29 = vld [vmem:[#allocation3 + $0x80] sm:$0xff] }
 0x1a5   : > { %v5047_v26 = vpop.f32.mrb[86].mxu0  ;;  %3066 = vst.msk [vmem:[#allocation3] sm:$0xff] %vm916_vm3, %v3034_v59  ;;  %v3035_v34 = vadd.f32 %v3003_v5, %v2878_v43  ;;  %2712 = vst.msk [vmem:[#allocation3 + $0x28] sm:$0xff] %vm916_vm3, %v2680_v25  ;;  %v2656_v43 = vld [vmem:[#allocation3 + $0x68] sm:$0xff]  ;;  %v2662_v59 = vld [vmem:[#allocation3 + $0x98] sm:$0xff] }
 0x1a6   : > { %v2894_v28 = vpop.f32.mrb[87].mxu0  ;;  %3069 = vst.msk [vmem:[#allocation3 + $0x18] sm:$0xff] %vm916_vm3, %v3037_v27 }
 0x1a7   : > { %3067 = vst.msk [vmem:[#allocation3 + $0x8] sm:$0xff] %vm916_vm3, %v3035_v34  ;;  %v5016_v31 = vpop.f32.mrb[88].mxu1 }
 0x1a8   : > { %v2685_v2 = vadd.f32 %v5016_v31, %v2653_v36  ;;  %v2548_v15 = vpop.f32.mrb[89].mxu1 }
 0x1a9   : > { %v3008_v0 = vld [vmem:[#allocation3 + $0x30] sm:$0xff]  ;;  %v2683_v56 = vadd.f32 %v2651_v44, %v2548_v15  ;;  %v5017_v54 = vpop.f32.mrb[90].mxu1 }
 0x1aa   : > { %v3040_v10 = vadd.f32 %v5046_v52, %v3008_v0  ;;  %2717 = vst.msk [vmem:[#allocation3 + $0x50] sm:$0xff] %vm916_vm3, %v2685_v2  ;;  %v3006_v20 = vld [vmem:[#allocation3 + $0x20] sm:$0xff]  ;;  %v2686_v9 = vadd.f32 %v5017_v54, %v2654_v6  ;;  %v2551_v12 = vpop.f32.mrb[91].mxu1  ;;  %v2661_v52 = vld [vmem:[#allocation3 + $0x90] sm:$0xff] }
 0x1ab   : > { %v5050_v19 = vpop.f32.mrb[88].mxu0  ;;  %v3038_v45 = vadd.f32 %v3006_v20, %v2891_v53  ;;  %2715 = vst.msk [vmem:[#allocation3 + $0x40] sm:$0xff] %vm916_vm3, %v2683_v56  ;;  %v3009_v13 = vld [vmem:[#allocation3 + $0x38] sm:$0xff]  ;;  %v2684_v1 = vadd.f32 %v2652_v37, %v2551_v12 }
 0x1ac   : > { %v2907_v24 = vpop.f32.mrb[89].mxu0  ;;  %3072 = vst.msk [vmem:[#allocation3 + $0x30] sm:$0xff] %vm916_vm3, %v3040_v10  ;;  %v3041_v32 = vadd.f32 %v5047_v26, %v3009_v13  ;;  %2718 = vst.msk [vmem:[#allocation3 + $0x58] sm:$0xff] %vm916_vm3, %v2686_v9  ;;  %v3007_v7 = vld [vmem:[#allocation3 + $0x28] sm:$0xff]  ;;  %v2663_v9 = vld [vmem:[#allocation3 + $0xa0] sm:$0xff] }
 0x1ad   : > { %v5051_v47 = vpop.f32.mrb[90].mxu0  ;;  %3070 = vst.msk [vmem:[#allocation3 + $0x20] sm:$0xff] %vm916_vm3, %v3038_v45  ;;  %v3039_v21 = vadd.f32 %v3007_v7, %v2894_v28  ;;  %2716 = vst.msk [vmem:[#allocation3 + $0x48] sm:$0xff] %vm916_vm3, %v2684_v1  ;;  %v2660_v28 = vld [vmem:[#allocation3 + $0x88] sm:$0xff]  ;;  %v2666_v45 = vld [vmem:[#allocation3 + $0xb8] sm:$0xff] }
 0x1ae   : > { %v2910_v18 = vpop.f32.mrb[91].mxu0  ;;  %3073 = vst.msk [vmem:[#allocation3 + $0x38] sm:$0xff] %vm916_vm3, %v3041_v32 }
 0x1af   : > { %3071 = vst.msk [vmem:[#allocation3 + $0x28] sm:$0xff] %vm916_vm3, %v3039_v21  ;;  %v5020_v22 = vpop.f32.mrb[92].mxu1 }
 0x1b0   : > { %v2689_v30 = vadd.f32 %v5020_v22, %v2657_v23  ;;  %v2564_v38 = vpop.f32.mrb[93].mxu1 }
 0x1b1   : > { %v3012_v39 = vld [vmem:[#allocation3 + $0x50] sm:$0xff]  ;;  %v2687_v35 = vadd.f32 %v2655_v33, %v2564_v38  ;;  %v5021_v46 = vpop.f32.mrb[94].mxu1 }
 0x1b2   : > { %v3044_v14 = vadd.f32 %v5050_v19, %v3012_v39  ;;  %2721 = vst.msk [vmem:[#allocation3 + $0x70] sm:$0xff] %vm916_vm3, %v2689_v30  ;;  %v3010_v42 = vld [vmem:[#allocation3 + $0x40] sm:$0xff]  ;;  %v2690_v4 = vadd.f32 %v5021_v46, %v2658_v40  ;;  %v2567_v41 = vpop.f32.mrb[95].mxu1  ;;  %v2665_v19 = vld [vmem:[#allocation3 + $0xb0] sm:$0xff] }
 0x1b3   : > { %v5054_v55 = vpop.f32.mrb[92].mxu0  ;;  %v3042_v48 = vadd.f32 %v3010_v42, %v2907_v24  ;;  %2719 = vst.msk [vmem:[#allocation3 + $0x60] sm:$0xff] %vm916_vm3, %v2687_v35  ;;  %v3013_v50 = vld [vmem:[#allocation3 + $0x58] sm:$0xff]  ;;  %v2688_v51 = vadd.f32 %v2656_v43, %v2567_v41 }
 0x1b4   : > { %v2923_v49 = vpop.f32.mrb[93].mxu0  ;;  %3076 = vst.msk [vmem:[#allocation3 + $0x50] sm:$0xff] %vm916_vm3, %v3044_v14  ;;  %v3045_v58 = vadd.f32 %v5051_v47, %v3013_v50  ;;  %2722 = vst.msk [vmem:[#allocation3 + $0x78] sm:$0xff] %vm916_vm3, %v2690_v4  ;;  %v3011_v61 = vld [vmem:[#allocation3 + $0x48] sm:$0xff]  ;;  %v2667_v4 = vld [vmem:[#allocation3 + $0xc0] sm:$0xff] }
 0x1b5   : > { %v5055_v57 = vpop.f32.mrb[94].mxu0  ;;  %3074 = vst.msk [vmem:[#allocation3 + $0x40] sm:$0xff] %vm916_vm3, %v3042_v48  ;;  %v3043_v62 = vadd.f32 %v3011_v61, %v2910_v18  ;;  %2720 = vst.msk [vmem:[#allocation3 + $0x68] sm:$0xff] %vm916_vm3, %v2688_v51  ;;  %v2664_v18 = vld [vmem:[#allocation3 + $0xa8] sm:$0xff]  ;;  %v2670_v48 = vld [vmem:[#allocation3 + $0xd8] sm:$0xff] }
 0x1b6   : > { %v2926_v60 = vpop.f32.mrb[95].mxu0  ;;  %3077 = vst.msk [vmem:[#allocation3 + $0x58] sm:$0xff] %vm916_vm3, %v3045_v58 }
 0x1b7   : > { %3075 = vst.msk [vmem:[#allocation3 + $0x48] sm:$0xff] %vm916_vm3, %v3043_v62  ;;  %v5024_v63 = vpop.f32.mrb[96].mxu1 }
 0x1b8   : > { %v2693_v8 = vadd.f32 %v5024_v63, %v2661_v52  ;;  %v2580_v3 = vpop.f32.mrb[97].mxu1 }
 0x1b9   : > { %v3016_v11 = vld [vmem:[#allocation3 + $0x70] sm:$0xff]  ;;  %v2691_v16 = vadd.f32 %v2659_v29, %v2580_v3  ;;  %v5025_v53 = vpop.f32.mrb[98].mxu1 }
 0x1ba   : > { %v3048_v25 = vadd.f32 %v5054_v55, %v3016_v11  ;;  %2725 = vst.msk [vmem:[#allocation3 + $0x90] sm:$0xff] %vm916_vm3, %v2693_v8  ;;  %v3014_v26 = vld [vmem:[#allocation3 + $0x60] sm:$0xff]  ;;  %v2694_v27 = vadd.f32 %v5025_v53, %v2662_v59  ;;  %v2583_v5 = vpop.f32.mrb[99].mxu1  ;;  %v2669_v55 = vld [vmem:[#allocation3 + $0xd0] sm:$0xff] }
 0x1bb   : > { %v5058_v17 = vpop.f32.mrb[96].mxu0  ;;  %v3046_v31 = vadd.f32 %v3014_v26, %v2923_v49  ;;  %2723 = vst.msk [vmem:[#allocation3 + $0x80] sm:$0xff] %vm916_vm3, %v2691_v16  ;;  %v3017_v36 = vld [vmem:[#allocation3 + $0x78] sm:$0xff]  ;;  %v2692_v2 = vadd.f32 %v2660_v28, %v2583_v5 }
 0x1bc   : > { %v2939_v34 = vpop.f32.mrb[97].mxu0  ;;  %3080 = vst.msk [vmem:[#allocation3 + $0x70] sm:$0xff] %vm916_vm3, %v3048_v25  ;;  %v3049_v44 = vadd.f32 %v5055_v57, %v3017_v36  ;;  %2726 = vst.msk [vmem:[#allocation3 + $0x98] sm:$0xff] %vm916_vm3, %v2694_v27  ;;  %v3015_v0 = vld [vmem:[#allocation3 + $0x68] sm:$0xff]  ;;  %v2671_v27 = vld [vmem:[#allocation3 + $0xe0] sm:$0xff] }
 0x1bd   : > { %v5059_v15 = vpop.f32.mrb[98].mxu0  ;;  %3078 = vst.msk [vmem:[#allocation3 + $0x60] sm:$0xff] %vm916_vm3, %v3046_v31  ;;  %v3047_v54 = vadd.f32 %v3015_v0, %v2926_v60  ;;  %2724 = vst.msk [vmem:[#allocation3 + $0x88] sm:$0xff] %vm916_vm3, %v2692_v2  ;;  %v2668_v60 = vld [vmem:[#allocation3 + $0xc8] sm:$0xff]  ;;  %v2674_v31 = vld [vmem:[#allocation3 + $0xf8] sm:$0xff] }
 0x1be   : > { %v2942_v56 = vpop.f32.mrb[99].mxu0  ;;  %3081 = vst.msk [vmem:[#allocation3 + $0x78] sm:$0xff] %vm916_vm3, %v3049_v44 }
 0x1bf   : > { %3079 = vst.msk [vmem:[#allocation3 + $0x68] sm:$0xff] %vm916_vm3, %v3047_v54  ;;  %v5028_v6 = vpop.f32.mrb[100].mxu1 }
 0x1c0   : > { %v2697_v10 = vadd.f32 %v5028_v6, %v2665_v19  ;;  %v2596_v20 = vpop.f32.mrb[101].mxu1 }
 0x1c1   : > { %v3020_v12 = vld [vmem:[#allocation3 + $0x90] sm:$0xff]  ;;  %v2695_v37 = vadd.f32 %v2663_v9, %v2596_v20  ;;  %v5029_v24 = vpop.f32.mrb[102].mxu1 }
 0x1c2   : > { %v3052_v1 = vadd.f32 %v5058_v17, %v3020_v12  ;;  %2729 = vst.msk [vmem:[#allocation3 + $0xb0] sm:$0xff] %vm916_vm3, %v2697_v10  ;;  %v3018_v47 = vld [vmem:[#allocation3 + $0x80] sm:$0xff]  ;;  %v2698_v32 = vadd.f32 %v5029_v24, %v2666_v45  ;;  %v2599_v7 = vpop.f32.mrb[103].mxu1  ;;  %v2673_v17 = vld [vmem:[#allocation3 + $0xf0] sm:$0xff] }
 0x1c3   : > { %v5062_v13 = vpop.f32.mrb[100].mxu0  ;;  %v3050_v22 = vadd.f32 %v3018_v47, %v2939_v34  ;;  %2727 = vst.msk [vmem:[#allocation3 + $0xa0] sm:$0xff] %vm916_vm3, %v2695_v37  ;;  %v3021_v23 = vld [vmem:[#allocation3 + $0x98] sm:$0xff]  ;;  %v2696_v30 = vadd.f32 %v2664_v18, %v2599_v7 }
 0x1c4   : > { %v2955_v21 = vpop.f32.mrb[101].mxu0  ;;  %3084 = vst.msk [vmem:[#allocation3 + $0x90] sm:$0xff] %vm916_vm3, %v3052_v1  ;;  %v3053_v33 = vadd.f32 %v5059_v15, %v3021_v23  ;;  %2730 = vst.msk [vmem:[#allocation3 + $0xb8] sm:$0xff] %vm916_vm3, %v2698_v32  ;;  %v3019_v39 = vld [vmem:[#allocation3 + $0x88] sm:$0xff]  ;;  %v3360_v32 = vld [vmem:[#allocation3] sm:$0xff] }
 0x1c5   : > { %v5063_v38 = vpop.f32.mrb[102].mxu0  ;;  %3082 = vst.msk [vmem:[#allocation3 + $0x80] sm:$0xff] %vm916_vm3, %v3050_v22  ;;  %v3051_v46 = vadd.f32 %v3019_v39, %v2942_v56  ;;  %2728 = vst.msk [vmem:[#allocation3 + $0xa8] sm:$0xff] %vm916_vm3, %v2696_v30  ;;  %v2672_v56 = vld [vmem:[#allocation3 + $0xe8] sm:$0xff]  ;;  %v3363_v22 = vld [vmem:[#allocation3 + $0x18] sm:$0xff] }
 0x1c6   : > { %v2958_v35 = vpop.f32.mrb[103].mxu0  ;;  %3085 = vst.msk [vmem:[#allocation3 + $0x98] sm:$0xff] %vm916_vm3, %v3053_v33 }
 0x1c7   : > { %3083 = vst.msk [vmem:[#allocation3 + $0x88] sm:$0xff] %vm916_vm3, %v3051_v46  ;;  %v5032_v40 = vpop.f32.mrb[104].mxu1 }
 0x1c8   : > { %v2701_v14 = vadd.f32 %v5032_v40, %v2669_v55  ;;  %v2612_v42 = vpop.f32.mrb[105].mxu1 }
 0x1c9   : > { %v3024_v41 = vld [vmem:[#allocation3 + $0xb0] sm:$0xff]  ;;  %v2699_v43 = vadd.f32 %v2667_v4, %v2612_v42  ;;  %v5033_v49 = vpop.f32.mrb[106].mxu1 }
 0x1ca   : > { %v3056_v51 = vadd.f32 %v5062_v13, %v3024_v41  ;;  %2733 = vst.msk [vmem:[#allocation3 + $0xd0] sm:$0xff] %vm916_vm3, %v2701_v14  ;;  %v3022_v57 = vld [vmem:[#allocation3 + $0xa0] sm:$0xff]  ;;  %v2702_v58 = vadd.f32 %v5033_v49, %v2670_v48  ;;  %v2615_v61 = vpop.f32.mrb[107].mxu1  ;;  %v3362_v13 = vld [vmem:[#allocation3 + $0x10] sm:$0xff] }
 0x1cb   : > { %v5066_v50 = vpop.f32.mrb[104].mxu0  ;;  %v3054_v63 = vadd.f32 %v3022_v57, %v2955_v21  ;;  %2731 = vst.msk [vmem:[#allocation3 + $0xc0] sm:$0xff] %vm916_vm3, %v2699_v43  ;;  %v3025_v52 = vld [vmem:[#allocation3 + $0xb8] sm:$0xff]  ;;  %v2700_v8 = vadd.f32 %v2668_v60, %v2615_v61 }
 0x1cc   : > { %v2971_v62 = vpop.f32.mrb[105].mxu0  ;;  %3088 = vst.msk [vmem:[#allocation3 + $0xb0] sm:$0xff] %vm916_vm3, %v3056_v51  ;;  %v3057_v29 = vadd.f32 %v5063_v38, %v3025_v52  ;;  %2734 = vst.msk [vmem:[#allocation3 + $0xd8] sm:$0xff] %vm916_vm3, %v2702_v58  ;;  %v3023_v11 = vld [vmem:[#allocation3 + $0xa8] sm:$0xff]  ;;  %v3364_v58 = vld [vmem:[#allocation3 + $0x20] sm:$0xff] }
 0x1cd   : > { %v5067_v3 = vpop.f32.mrb[106].mxu0  ;;  %3086 = vst.msk [vmem:[#allocation3 + $0xa0] sm:$0xff] %vm916_vm3, %v3054_v63  ;;  %v3055_v53 = vadd.f32 %v3023_v11, %v2958_v35  ;;  %2732 = vst.msk [vmem:[#allocation3 + $0xc8] sm:$0xff] %vm916_vm3, %v2700_v8  ;;  %v3361_v35 = vld [vmem:[#allocation3 + $0x8] sm:$0xff]  ;;  %v3367_v63 = vld [vmem:[#allocation3 + $0x38] sm:$0xff] }
 0x1ce   : > { %v2974_v16 = vpop.f32.mrb[107].mxu0  ;;  %3089 = vst.msk [vmem:[#allocation3 + $0xb8] sm:$0xff] %vm916_vm3, %v3057_v29 }
 0x1cf   : > { %3087 = vst.msk [vmem:[#allocation3 + $0xa8] sm:$0xff] %vm916_vm3, %v3055_v53  ;;  %v5036_v59 = vpop.f32.mrb[108].mxu1 }
 0x1d0   : > { %v2705_v25 = vadd.f32 %v5036_v59, %v2673_v17  ;;  %v2628_v26 = vpop.f32.mrb[109].mxu1 }
 0x1d1   : > { %v3028_v5 = vld [vmem:[#allocation3 + $0xd0] sm:$0xff]  ;;  %v2703_v28 = vadd.f32 %v2671_v27, %v2628_v26  ;;  %v5037_v34 = vpop.f32.mrb[110].mxu1 }
 0x1d2   : > { %v3060_v2 = vadd.f32 %v5066_v50, %v3028_v5  ;;  %2737 = vst.msk [vmem:[#allocation3 + $0xf0] sm:$0xff] %vm916_vm3, %v2705_v25  ;;  %v3026_v15 = vld [vmem:[#allocation3 + $0xc0] sm:$0xff]  ;;  %v2706_v44 = vadd.f32 %v5037_v34, %v2674_v31  ;;  %v2631_v0 = vpop.f32.mrb[111].mxu1  ;;  %v3366_v50 = vld [vmem:[#allocation3 + $0x30] sm:$0xff] }
 0x1d3   : > { %v5070_v36 = vpop.f32.mrb[108].mxu0  ;;  %v3058_v6 = vadd.f32 %v3026_v15, %v2971_v62  ;;  %2735 = vst.msk [vmem:[#allocation3 + $0xe0] sm:$0xff] %vm916_vm3, %v2703_v28  ;;  %v3029_v19 = vld [vmem:[#allocation3 + $0xd8] sm:$0xff]  ;;  %v2704_v10 = vadd.f32 %v2672_v56, %v2631_v0 }
 0x1d4   : > { %v2987_v54 = vpop.f32.mrb[109].mxu0  ;;  %3092 = vst.msk [vmem:[#allocation3 + $0xd0] sm:$0xff] %vm916_vm3, %v3060_v2  ;;  %v3061_v9 = vadd.f32 %v5067_v3, %v3029_v19  ;;  %2738 = vst.msk [vmem:[#allocation3 + $0xf8] sm:$0xff] %vm916_vm3, %v2706_v44  ;;  %v3027_v12 = vld [vmem:[#allocation3 + $0xc8] sm:$0xff]  ;;  %v3368_v44 = vld [vmem:[#allocation3 + $0x40] sm:$0xff] }
 0x1d5   : > { %v5071_v20 = vpop.f32.mrb[110].mxu0  ;;  %3090 = vst.msk [vmem:[#allocation3 + $0xc0] sm:$0xff] %vm916_vm3, %v3058_v6  ;;  %v3059_v24 = vadd.f32 %v3027_v12, %v2974_v16  ;;  %2736 = vst.msk [vmem:[#allocation3 + $0xe8] sm:$0xff] %vm916_vm3, %v2704_v10  ;;  %v3365_v16 = vld [vmem:[#allocation3 + $0x28] sm:$0xff]  ;;  %v3371_v6 = vld [vmem:[#allocation3 + $0x58] sm:$0xff] }
 0x1d6   : > { %v2990_v37 = vpop.f32.mrb[111].mxu0  ;;  %3093 = vst.msk [vmem:[#allocation3 + $0xd8] sm:$0xff] %vm916_vm3, %v3061_v9 }
 0x1d7   : > { %3091 = vst.msk [vmem:[#allocation3 + $0xc8] sm:$0xff] %vm916_vm3, %v3059_v24  ;;  %v5076_v45 = vpop.f32.mrb[112].mxu1 }
 0x1d8   : > { %v3394_v1 = vadd.f32 %v5076_v45, %v3362_v13  ;;  %v3233_v47 = vpop.f32.mrb[113].mxu1 }
 0x1d9   : > { %v3032_v7 = vld [vmem:[#allocation3 + $0xf0] sm:$0xff]  ;;  %v3392_v18 = vadd.f32 %v3360_v32, %v3233_v47  ;;  %v5077_v21 = vpop.f32.mrb[114].mxu1 }
 0x1da   : > { %v3064_v30 = vadd.f32 %v5070_v36, %v3032_v7  ;;  %v3030_v38 = vld [vmem:[#allocation3 + $0xe0] sm:$0xff]  ;;  %3426 = vst.msk [vmem:[#allocation3 + $0x10] sm:$0xff] %vm916_vm3, %v3394_v1  ;;  %v3395_v33 = vadd.f32 %v5077_v21, %v3363_v22  ;;  %v3236_v39 = vpop.f32.mrb[115].mxu1  ;;  %v3370_v36 = vld [vmem:[#allocation3 + $0x50] sm:$0xff] }
 0x1db   : > { %v5110_v23 = vpop.f32.mrb[112].mxu0  ;;  %v3062_v40 = vadd.f32 %v3030_v38, %v2987_v54  ;;  %v3033_v55 = vld [vmem:[#allocation3 + $0xf8] sm:$0xff]  ;;  %3424 = vst.msk [vmem:[#allocation3] sm:$0xff] %vm916_vm3, %v3392_v18  ;;  %v3393_v14 = vadd.f32 %v3361_v35, %v3236_v39 }
 0x1dc   : > { %v3591_v46 = vpop.f32.mrb[113].mxu0  ;;  %3096 = vst.msk [vmem:[#allocation3 + $0xf0] sm:$0xff] %vm916_vm3, %v3064_v30  ;;  %v3065_v4 = vadd.f32 %v5071_v20, %v3033_v55  ;;  %v3031_v41 = vld [vmem:[#allocation3 + $0xe8] sm:$0xff]  ;;  %3427 = vst.msk [vmem:[#allocation3 + $0x18] sm:$0xff] %vm916_vm3, %v3395_v33 }
 0x1dd   : > { %v5111_v42 = vpop.f32.mrb[114].mxu0  ;;  %3094 = vst.msk [vmem:[#allocation3 + $0xe0] sm:$0xff] %vm916_vm3, %v3062_v40  ;;  %v3063_v49 = vadd.f32 %v3031_v41, %v2990_v37  ;;  %3425 = vst.msk [vmem:[#allocation3 + $0x8] sm:$0xff] %vm916_vm3, %v3393_v14  ;;  %v3369_v37 = vld [vmem:[#allocation3 + $0x48] sm:$0xff] }
 0x1de   : > { %v3594_v43 = vpop.f32.mrb[115].mxu0  ;;  %3097 = vst.msk [vmem:[#allocation3 + $0xf8] sm:$0xff] %vm916_vm3, %v3065_v4 }
 0x1df   : > { %3095 = vst.msk [vmem:[#allocation3 + $0xe8] sm:$0xff] %vm916_vm3, %v3063_v49  ;;  %v5080_v48 = vpop.f32.mrb[116].mxu1 }
 0x1e0   : > { %v3398_v51 = vadd.f32 %v5080_v48, %v3366_v50  ;;  %v3249_v57 = vpop.f32.mrb[117].mxu1 }
 0x1e1   : > { %v3720_v61 = vld [vmem:[#allocation3 + $0x10] sm:$0xff]  ;;  %v3396_v60 = vadd.f32 %v3364_v58, %v3249_v57  ;;  %v5081_v62 = vpop.f32.mrb[118].mxu1  ;;  %v3372_v57 = vld [vmem:[#allocation3 + $0x60] sm:$0xff]  ;;  %v3375_v58 = vld [vmem:[#allocation3 + $0x78] sm:$0xff] }
 0x1e2   : > { %v3752_v8 = vadd.f32 %v5110_v23, %v3720_v61  ;;  %3430 = vst.msk [vmem:[#allocation3 + $0x30] sm:$0xff] %vm916_vm3, %v3398_v51  ;;  %v3718_v3 = vld [vmem:[#allocation3] sm:$0xff]  ;;  %v3399_v29 = vadd.f32 %v5081_v62, %v3367_v63  ;;  %v3252_v11 = vpop.f32.mrb[119].mxu1 }
 0x1e3   : > { %v5114_v52 = vpop.f32.mrb[116].mxu0  ;;  %v3750_v59 = vadd.f32 %v3718_v3, %v3591_v46  ;;  %3428 = vst.msk [vmem:[#allocation3 + $0x20] sm:$0xff] %vm916_vm3, %v3396_v60  ;;  %v3721_v17 = vld [vmem:[#allocation3 + $0x18] sm:$0xff]  ;;  %v3397_v25 = vadd.f32 %v3365_v16, %v3252_v11 }
 0x1e4   : > { %v3607_v53 = vpop.f32.mrb[117].mxu0  ;;  %3784 = vst.msk [vmem:[#allocation3 + $0x10] sm:$0xff] %vm916_vm3, %v3752_v8  ;;  %v3753_v27 = vadd.f32 %v5111_v42, %v3721_v17  ;;  %3431 = vst.msk [vmem:[#allocation3 + $0x38] sm:$0xff] %vm916_vm3, %v3399_v29  ;;  %v3719_v5 = vld [vmem:[#allocation3 + $0x8] sm:$0xff] }
 0x1e5   : > { %v5115_v26 = vpop.f32.mrb[118].mxu0  ;;  %3782 = vst.msk [vmem:[#allocation3] sm:$0xff] %vm916_vm3, %v3750_v59  ;;  %v3751_v34 = vadd.f32 %v3719_v5, %v3594_v43  ;;  %3429 = vst.msk [vmem:[#allocation3 + $0x28] sm:$0xff] %vm916_vm3, %v3397_v25  ;;  %v3374_v43 = vld [vmem:[#allocation3 + $0x70] sm:$0xff]  ;;  %v3373_v25 = vld [vmem:[#allocation3 + $0x68] sm:$0xff] }
 0x1e6   : > { %v3610_v28 = vpop.f32.mrb[119].mxu0  ;;  %3785 = vst.msk [vmem:[#allocation3 + $0x18] sm:$0xff] %vm916_vm3, %v3753_v27 }
 0x1e7   : > { %3783 = vst.msk [vmem:[#allocation3 + $0x8] sm:$0xff] %vm916_vm3, %v3751_v34  ;;  %v5084_v31 = vpop.f32.mrb[120].mxu1 }
 0x1e8   : > { %v3402_v2 = vadd.f32 %v5084_v31, %v3370_v36  ;;  %v3265_v15 = vpop.f32.mrb[121].mxu1 }
 0x1e9   : > { %v3724_v0 = vld [vmem:[#allocation3 + $0x30] sm:$0xff]  ;;  %v3400_v56 = vadd.f32 %v3368_v44, %v3265_v15  ;;  %v5085_v54 = vpop.f32.mrb[122].mxu1 }
 0x1ea   : > { %v3756_v10 = vadd.f32 %v5114_v52, %v3724_v0  ;;  %3434 = vst.msk [vmem:[#allocation3 + $0x50] sm:$0xff] %vm916_vm3, %v3402_v2  ;;  %v3722_v20 = vld [vmem:[#allocation3 + $0x20] sm:$0xff]  ;;  %v3403_v9 = vadd.f32 %v5085_v54, %v3371_v6  ;;  %v3268_v12 = vpop.f32.mrb[123].mxu1 }
 0x1eb   : > { %v5118_v19 = vpop.f32.mrb[120].mxu0  ;;  %v3816_v45 = vld [vmem:[#allocation3 + $0x10] sm:$0xff]  ;;  %v3754_v13 = vadd.f32 %v3722_v20, %v3607_v53  ;;  %3432 = vst.msk [vmem:[#allocation3 + $0x40] sm:$0xff] %vm916_vm3, %v3400_v56  ;;  %v3725_v1 = vld [vmem:[#allocation3 + $0x38] sm:$0xff]  ;;  %v3401_v47 = vadd.f32 %v3369_v37, %v3268_v12 }
 0x1ec   : > { %v3623_v24 = vpop.f32.mrb[121].mxu0  ;;  %v4563_v7 = vpack.c.bf16 %v3816_v45, %v3816_v45  ;;  %v3814_v18 = vld [vmem:[#allocation3] sm:$0xff]  ;;  %3788 = vst.msk [vmem:[#allocation3 + $0x30] sm:$0xff] %vm916_vm3, %v3756_v10  ;;  %v3757_v21 = vadd.f32 %v5115_v26, %v3725_v1  ;;  %3435 = vst.msk [vmem:[#allocation3 + $0x58] sm:$0xff] %vm916_vm3, %v3403_v9  ;;  %v3723_v22 = vld [vmem:[#allocation3 + $0x28] sm:$0xff]  ;;  %v3919_v35 = vmul.f32 %v3816_v45, %v3816_v45  ;;  %v3849_v61 = vsel %vm916_vm3, %v3816_v45, 0.0 }
 0x1ed   : > { %v6120_v32 = vpop.f32.mrb[122].mxu0  ;;  %v3917_v30 = vmul.f32 %v3814_v18, %v3814_v18  ;;  %v4561_v38 = vpack.c.bf16 %v3814_v18, %v3814_v18  ;;  %v3817_v33 = vld [vmem:[#allocation3 + $0x18] sm:$0xff]  ;;  %3786 = vst.msk [vmem:[#allocation3 + $0x20] sm:$0xff] %vm916_vm3, %v3754_v13  ;;  %v3755_v39 = vadd.f32 %v3723_v22, %v3610_v28  ;;  %3433 = vst.msk [vmem:[#allocation3 + $0x48] sm:$0xff] %vm916_vm3, %v3401_v47  ;;  %v3846_v55 = vsel %vm916_vm3, %v3814_v18, 0.0 }
 0x1ee   : > { %v6124_v23 = vpop.f32.mrb[123].mxu0  ;;  %4150 = vst.msk [vmem:[%s6117_s21 + $0x8] sm:$0xf] %vm4147_vm4, %v4563_v7  ;;  %v4564_v46 = vpack.c.bf16 %v3817_v33, %v3817_v33  ;;  %v3815_v40 = vld [vmem:[#allocation3 + $0x8] sm:$0xff]  ;;  %v3920_v49 = vmul.f32 %v3817_v33, %v3817_v33  ;;  %v3952_v27 = vsel %vm916_vm3, %v3919_v35, 0.0  ;;  %v3851_v36 = vsel %vm916_vm3, %v3817_v33, 0.0 }
 0x1ef   : > { %3789 = vst.msk [vmem:[#allocation3 + $0x38] sm:$0xff] %vm916_vm3, %v3757_v21  ;;  %v3847_v14 = vsel %vm916_vm3, %v3815_v40, 0.0  ;;  %v3918_v42 = vmul.f32 %v3815_v40, %v3815_v40  ;;  %v4562_v4 = vpack.c.bf16 %v3815_v40, %v3815_v40  ;;  %3787 = vst.msk [vmem:[#allocation3 + $0x28] sm:$0xff] %vm916_vm3, %v3755_v39  ;;  %v5088_v41 = vpop.f32.mrb[124].mxu1  ;;  %v3949_v60 = vsel %vm916_vm3, %v3917_v30, 0.0  ;;  %v3378_v39 = vld [vmem:[#allocation3 + $0x90] sm:$0xff] }
 0x1f0   : > { %4148 = vst.msk [vmem:[%s6117_s21] sm:$0xf] %vm4147_vm4, %v4561_v38  ;;  %4151 = vst.msk [vmem:[%s6117_s21 + $0xc] sm:$0xf] %vm4147_vm4, %v4564_v46  ;;  %v3848_v48 = vadd.f32 %v3847_v14, %v3846_v55  ;;  %v3406_v50 = vadd.f32 %v5088_v41, %v3374_v43  ;;  %v3281_v51 = vpop.f32.mrb[125].mxu1  ;;  %v3954_v2 = vsel %vm916_vm3, %v3920_v49, 0.0 }
 0x1f1   : > { %v3950_v62 = vsel %vm916_vm3, %v3918_v42, 0.0  ;;  %4149 = vst.msk [vmem:[%s6117_s21 + $0x4] sm:$0xf] %vm4147_vm4, %v4562_v4  ;;  %v3728_v63 = vld [vmem:[#allocation3 + $0x50] sm:$0xff]  ;;  %v3404_v52 = vadd.f32 %v3372_v57, %v3281_v51  ;;  %v5089_v8 = vpop.f32.mrb[126].mxu1  ;;  %v3376_v4 = vld [vmem:[#allocation3 + $0x80] sm:$0xff] }
 0x1f2   : > { %v3850_v29 = vadd.f32 %v3849_v61, %v3848_v48  ;;  %v3951_v11 = vadd.f32 %v3950_v62, %v3949_v60  ;;  %v3760_v16 = vadd.f32 %v5118_v19, %v3728_v63  ;;  %3438 = vst.msk [vmem:[#allocation3 + $0x70] sm:$0xff] %vm916_vm3, %v3406_v50  ;;  %v3726_v53 = vld [vmem:[#allocation3 + $0x40] sm:$0xff]  ;;  %v3407_v59 = vadd.f32 %v5089_v8, %v3375_v58  ;;  %v3284_v17 = vpop.f32.mrb[127].mxu1  ;;  %v3379_v43 = vld [vmem:[#allocation3 + $0x98] sm:$0xff]  ;;  %v3377_v60 = vld [vmem:[#allocation3 + $0x88] sm:$0xff] }
 0x1f3   : > { %v5122_v3 = vpop.f32.mrb[124].mxu0  ;;  %v3820_v5 = vld [vmem:[#allocation3 + $0x30] sm:$0xff]  ;;  %v3758_v28 = vadd.f32 %v3726_v53, %v3623_v24  ;;  %3436 = vst.msk [vmem:[#allocation3 + $0x60] sm:$0xff] %vm916_vm3, %v3404_v52  ;;  %v3405_v34 = vadd.f32 %v3373_v25, %v3284_v17  ;;  %v3729_v45 = vld [vmem:[#allocation3 + $0x58] sm:$0xff] }
 0x1f4   : > { %v6144_v26 = vpop.f32.mrb[125].mxu0  ;;  %v3953_v15 = vadd.f32 %v3952_v27, %v3951_v11  ;;  %v4567_v44 = vpack.c.bf16 %v3820_v5, %v3820_v5  ;;  %v3818_v0 = vld [vmem:[#allocation3 + $0x20] sm:$0xff]  ;;  %3792 = vst.msk [vmem:[#allocation3 + $0x50] sm:$0xff] %vm916_vm3, %v3760_v16  ;;  %3439 = vst.msk [vmem:[#allocation3 + $0x78] sm:$0xff] %vm916_vm3, %v3407_v59  ;;  %v3852_v54 = vadd.f32 %v3851_v36, %v3850_v29  ;;  %v3857_v9 = vsel %vm916_vm3, %v3820_v5, 0.0  ;;  %v3727_v13 = vld [vmem:[#allocation3 + $0x48] sm:$0xff] }
 0x1f5   : > { %v6148_v31 = vpop.f32.mrb[126].mxu0  ;;  %v3853_v6 = vsel %vm916_vm3, %v3818_v0, 0.0  ;;  %v3921_v19 = vmul.f32 %v3818_v0, %v3818_v0  ;;  %v4565_v10 = vpack.c.bf16 %v3818_v0, %v3818_v0  ;;  %3790 = vst.msk [vmem:[#allocation3 + $0x40] sm:$0xff] %vm916_vm3, %v3758_v28  ;;  %3437 = vst.msk [vmem:[#allocation3 + $0x68] sm:$0xff] %vm916_vm3, %v3405_v34  ;;  %v3923_v12 = vmul.f32 %v3820_v5, %v3820_v5  ;;  %v3382_v0 = vld [vmem:[#allocation3 + $0xb0] sm:$0xff] }
 0x1f6   : > { %v6154_v56 = vpop.f32.mrb[127].mxu0  ;;  %v3821_v20 = vld [vmem:[#allocation3 + $0x38] sm:$0xff]  ;;  %4154 = vst.msk [vmem:[%s6117_s21 + $0x18] sm:$0xf] %vm4147_vm4, %v4567_v44  ;;  %v3955_v37 = vadd.f32 %v3954_v2, %v3953_v15  ;;  %v3819_v24 = vld [vmem:[#allocation3 + $0x28] sm:$0xff]  ;;  %v3854_v1 = vadd.f32 %v3853_v6, %v3852_v54  ;;  %v3761_v40 = vadd.f32 %v6120_v32, %v3729_v45  ;;  %v3759_v55 = vadd.f32 %v3727_v13, %v6124_v23 }
 0x1f7   : > { %v3956_v47 = vsel %vm916_vm3, %v3921_v19, 0.0  ;;  %4152 = vst.msk [vmem:[%s6117_s21 + $0x10] sm:$0xf] %vm4147_vm4, %v4565_v10  ;;  %v4568_v7 = vpack.c.bf16 %v3821_v20, %v3821_v20  ;;  %v3855_v18 = vsel %vm916_vm3, %v3819_v24, 0.0  ;;  %v5092_v21 = vpop.f32.mrb[128].mxu1  ;;  %v3924_v30 = vmul.f32 %v3821_v20, %v3821_v20 }
 0x1f8   : > { %v3957_v22 = vadd.f32 %v3956_v47, %v3955_v37  ;;  %v3922_v38 = vmul.f32 %v3819_v24, %v3819_v24  ;;  %v4566_v33 = vpack.c.bf16 %v3819_v24, %v3819_v24  ;;  %v3297_v35 = vpop.f32.mrb[129].mxu1  ;;  %v3856_v46 = vadd.f32 %v3855_v18, %v3854_v1  ;;  %3793 = vst.msk [vmem:[#allocation3 + $0x58] sm:$0xff] %vm916_vm3, %v3761_v40  ;;  %v3383_v24 = vld [vmem:[#allocation3 + $0xb8] sm:$0xff] }
 0x1f9   : > { %4155 = vst.msk [vmem:[%s6117_s21 + $0x1c] sm:$0xf] %vm4147_vm4, %v4568_v7  ;;  %v3732_v14 = vld [vmem:[#allocation3 + $0x70] sm:$0xff]  ;;  %v3410_v42 = vadd.f32 %v5092_v21, %v3378_v39  ;;  %v5093_v41 = vpop.f32.mrb[130].mxu1  ;;  %v3408_v57 = vadd.f32 %v3376_v4, %v3297_v35  ;;  %v3960_v11 = vsel %vm916_vm3, %v3923_v12, 0.0  ;;  %v3859_v16 = vsel %vm916_vm3, %v3821_v20, 0.0 }
 0x1fa   : > { %v3958_v48 = vsel %vm916_vm3, %v3922_v38, 0.0  ;;  %4153 = vst.msk [vmem:[%s6117_s21 + $0x14] sm:$0xf] %vm4147_vm4, %v4566_v33  ;;  %v3764_v50 = vadd.f32 %v5122_v3, %v3732_v14  ;;  %v3730_v51 = vld [vmem:[#allocation3 + $0x60] sm:$0xff]  ;;  %v3411_v58 = vadd.f32 %v5093_v41, %v3379_v43  ;;  %v3300_v61 = vpop.f32.mrb[131].mxu1  ;;  %v3858_v23 = vadd.f32 %v3857_v9, %v3856_v46 }
 0x1fb   : > { %v6170_v49 = vpop.f32.mrb[128].mxu0  ;;  %v3959_v62 = vadd.f32 %v3958_v48, %v3957_v22  ;;  %v6177_v63 = vld [vmem:[#allocation3 + $0x50] sm:$0xff]  ;;  %3791 = vst.msk [vmem:[#allocation3 + $0x48] sm:$0xff] %vm916_vm3, %v3759_v55  ;;  %3442 = vst.msk [vmem:[#allocation3 + $0x90] sm:$0xff] %vm916_vm3, %v3410_v42  ;;  %v3762_v52 = vadd.f32 %v3730_v51, %v6144_v26  ;;  %v3733_v8 = vld [vmem:[#allocation3 + $0x78] sm:$0xff]  ;;  %v3409_v3 = vadd.f32 %v3377_v60, %v3300_v61  ;;  %v3962_v36 = vsel %vm916_vm3, %v3924_v30, 0.0 }
 0x1fc   : > { %v6175_v32 = vpop.f32.mrb[129].mxu0  ;;  %v4571_v53 = vpack.c.bf16 %v6177_v63, %v6177_v63  ;;  %v3822_v59 = vld [vmem:[#allocation3 + $0x40] sm:$0xff]  ;;  %3796 = vst.msk [vmem:[#allocation3 + $0x70] sm:$0xff] %vm916_vm3, %v3764_v50  ;;  %3440 = vst.msk [vmem:[#allocation3 + $0x80] sm:$0xff] %vm916_vm3, %v3408_v57  ;;  %v3765_v17 = vadd.f32 %v6148_v31, %v3733_v8  ;;  %v3731_v25 = vld [vmem:[#allocation3 + $0x68] sm:$0xff]  ;;  %v3860_v5 = vadd.f32 %v3859_v16, %v3858_v23  ;;  %v3865_v14 = vsel %vm916_vm3, %v6177_v63, 0.0 }
 0x1fd   : > { %v6183_v29 = vpop.f32.mrb[130].mxu0  ;;  %3443 = vst.msk [vmem:[#allocation3 + $0x98] sm:$0xff] %vm916_vm3, %v3411_v58  ;;  %v3961_v27 = vadd.f32 %v3960_v11, %v3959_v62  ;;  %v3861_v28 = vsel %vm916_vm3, %v3822_v59, 0.0  ;;  %v3925_v34 = vmul.f32 %v3822_v59, %v3822_v59  ;;  %3794 = vst.msk [vmem:[#allocation3 + $0x60] sm:$0xff] %vm916_vm3, %v3762_v52  ;;  %v4569_v31 = vpack.c.bf16 %v3822_v59, %v3822_v59  ;;  %v3380_v20 = vld [vmem:[#allocation3 + $0xa0] sm:$0xff] }
 0x1fe   : > { %v6193_v26 = vpop.f32.mrb[131].mxu0  ;;  %3441 = vst.msk [vmem:[#allocation3 + $0x88] sm:$0xff] %vm916_vm3, %v3409_v3  ;;  %3797 = vst.msk [vmem:[#allocation3 + $0x78] sm:$0xff] %vm916_vm3, %v3765_v17  ;;  %v3763_v2 = vadd.f32 %v3731_v25, %v6154_v56  ;;  %v3862_v54 = vadd.f32 %v3861_v28, %v3860_v5  ;;  %v3927_v9 = vmul.f32 %v6177_v63, %v6177_v63 }
 0x1ff   : > { %4158 = vst.msk [vmem:[%s6117_s21 + $0x28] sm:$0xf] %vm4147_vm4, %v4571_v53  ;;  %v3963_v15 = vadd.f32 %v3962_v36, %v3961_v27  ;;  %v5096_v44 = vpop.f32.mrb[132].mxu1  ;;  %v3964_v6 = vsel %vm916_vm3, %v3925_v34, 0.0  ;;  %4156 = vst.msk [vmem:[%s6117_s21 + $0x20] sm:$0xf] %vm4147_vm4, %v4569_v31 }
 0x200   : > { %3795 = vst.msk [vmem:[#allocation3 + $0x68] sm:$0xff] %vm916_vm3, %v3763_v2  ;;  %v3414_v19 = vadd.f32 %v5096_v44, %v3382_v0  ;;  %v3313_v10 = vpop.f32.mrb[133].mxu1  ;;  %v3825_v45 = vld [vmem:[#allocation3 + $0x58] sm:$0xff]  ;;  %v3968_v42 = vsel %vm916_vm3, %v3927_v9, 0.0 }
 0x201   : > { %v3412_v12 = vadd.f32 %v3380_v20, %v3313_v10  ;;  %v5097_v37 = vpop.f32.mrb[134].mxu1  ;;  %v3965_v18 = vadd.f32 %v3964_v6, %v3963_v15  ;;  %v3928_v21 = vmul.f32 %v3825_v45, %v3825_v45  ;;  %v4572_v22 = vpack.c.bf16 %v3825_v45, %v3825_v45  ;;  %v3381_v6 = vld [vmem:[#allocation3 + $0xa8] sm:$0xff] }
 0x202   : > { %v3823_v13 = vld [vmem:[#allocation3 + $0x48] sm:$0xff]  ;;  %3446 = vst.msk [vmem:[#allocation3 + $0xb0] sm:$0xff] %vm916_vm3, %v3414_v19  ;;  %v3415_v1 = vadd.f32 %v5097_v37, %v3383_v24  ;;  %v6212_v47 = vpop.f32.mrb[135].mxu1  ;;  %v3867_v4 = vsel %vm916_vm3, %v3825_v45, 0.0  ;;  %v3736_v58 = vld [vmem:[#allocation3 + $0x90] sm:$0xff] }
 0x203   : > { %v6209_v56 = vpop.f32.mrb[132].mxu0  ;;  %v3863_v30 = vsel %vm916_vm3, %v3823_v13, 0.0  ;;  %v3828_v38 = vld [vmem:[#allocation3 + $0x70] sm:$0xff]  ;;  %3444 = vst.msk [vmem:[#allocation3 + $0xa0] sm:$0xff] %vm916_vm3, %v3412_v12  ;;  %v3926_v35 = vmul.f32 %v3823_v13, %v3823_v13  ;;  %v4570_v46 = vpack.c.bf16 %v3823_v13, %v3823_v13  ;;  %v3734_v61 = vld [vmem:[#allocation3 + $0x80] sm:$0xff]  ;;  %v3970_v60 = vsel %vm916_vm3, %v3928_v21, 0.0 }
 0x204   : > { %v6214_v7 = vpop.f32.mrb[133].mxu0  ;;  %v3864_v39 = vadd.f32 %v3863_v30, %v3862_v54  ;;  %v3826_v40 = vld [vmem:[#allocation3 + $0x60] sm:$0xff]  ;;  %3447 = vst.msk [vmem:[#allocation3 + $0xb8] sm:$0xff] %vm916_vm3, %v3415_v1  ;;  %v4575_v41 = vpack.c.bf16 %v3828_v38, %v3828_v38  ;;  %v3873_v62 = vsel %vm916_vm3, %v3828_v38, 0.0  ;;  %v3737_v8 = vld [vmem:[#allocation3 + $0x98] sm:$0xff]  ;;  %v3931_v11 = vmul.f32 %v3828_v38, %v3828_v38  ;;  %v3386_v45 = vld [vmem:[#allocation3 + $0xd0] sm:$0xff] }
 0x205   : > { %v6218_v33 = vpop.f32.mrb[134].mxu0  ;;  %4159 = vst.msk [vmem:[%s6117_s21 + $0x2c] sm:$0xf] %vm4147_vm4, %v4572_v22  ;;  %v6229_v43 = vld [vmem:[#allocation3 + $0x78] sm:$0xff]  ;;  %v3966_v50 = vsel %vm916_vm3, %v3926_v35, 0.0  ;;  %v3929_v51 = vmul.f32 %v3826_v40, %v3826_v40  ;;  %v4573_v57 = vpack.c.bf16 %v3826_v40, %v3826_v40  ;;  %v3869_v63 = vsel %vm916_vm3, %v3826_v40, 0.0 }
 0x206   : > { %v6221_v55 = vpop.f32.mrb[135].mxu0  ;;  %v3866_v48 = vadd.f32 %v3865_v14, %v3864_v39  ;;  %4157 = vst.msk [vmem:[%s6117_s21 + $0x24] sm:$0xf] %vm4147_vm4, %v4570_v46  ;;  %v3967_v23 = vadd.f32 %v3966_v50, %v3965_v18  ;;  %4162 = vst.msk [vmem:[%s6117_s21 + $0x38] sm:$0xf] %vm4147_vm4, %v4575_v41  ;;  %v4576_v59 = vpack.c.bf16 %v6229_v43, %v6229_v43  ;;  %v3735_v17 = vld [vmem:[#allocation3 + $0x88] sm:$0xff] }
 0x207   : > { %v3827_v52 = vld [vmem:[#allocation3 + $0x68] sm:$0xff]  ;;  %v5100_v3 = vpop.f32.mrb[136].mxu1  ;;  %v3972_v53 = vsel %vm916_vm3, %v3929_v51, 0.0  ;;  %4160 = vst.msk [vmem:[%s6117_s21 + $0x30] sm:$0xf] %vm4147_vm4, %v4573_v57  ;;  %v3768_v44 = vadd.f32 %v6170_v49, %v3736_v58  ;;  %v3766_v0 = vadd.f32 %v3734_v61, %v6175_v32  ;;  %v3769_v54 = vadd.f32 %v6183_v29, %v3737_v8  ;;  %v3384_v21 = vld [vmem:[#allocation3 + $0xc0] sm:$0xff] }
 0x208   : > { %v3868_v16 = vadd.f32 %v3867_v4, %v3866_v48  ;;  %v3329_v25 = vpop.f32.mrb[137].mxu1  ;;  %v3969_v27 = vadd.f32 %v3968_v42, %v3967_v23  ;;  %v3871_v5 = vsel %vm916_vm3, %v3827_v52, 0.0  ;;  %v3930_v28 = vmul.f32 %v3827_v52, %v3827_v52  ;;  %4163 = vst.msk [vmem:[%s6117_s21 + $0x3c] sm:$0xf] %vm4147_vm4, %v4576_v59  ;;  %v3385_v35 = vld [vmem:[#allocation3 + $0xc8] sm:$0xff]  ;;  %v3390_v14 = vld [vmem:[#allocation3 + $0xf0] sm:$0xff] }
 0x209   : > { %v4574_v34 = vpack.c.bf16 %v3827_v52, %v3827_v52  ;;  %v3740_v36 = vld [vmem:[#allocation3 + $0xb0] sm:$0xff]  ;;  %v5101_v31 = vpop.f32.mrb[138].mxu1  ;;  %v3767_v37 = vadd.f32 %v3735_v17, %v6193_v26  ;;  %v3413_v24 = vadd.f32 %v3381_v6, %v6212_v47  ;;  %3800 = vst.msk [vmem:[#allocation3 + $0x90] sm:$0xff] %vm916_vm3, %v3768_v44  ;;  %3798 = vst.msk [vmem:[#allocation3 + $0x80] sm:$0xff] %vm916_vm3, %v3766_v0  ;;  %v3387_v26 = vld [vmem:[#allocation3 + $0xd8] sm:$0xff]  ;;  %v3976_v42 = vsel %vm916_vm3, %v3931_v11, 0.0 }
 0x20a   : > { %v3870_v15 = vadd.f32 %v3869_v63, %v3868_v16  ;;  %v3738_v19 = vld [vmem:[#allocation3 + $0xa0] sm:$0xff]  ;;  %v3332_v10 = vpop.f32.mrb[139].mxu1  ;;  %v3971_v9 = vadd.f32 %v3970_v60, %v3969_v27  ;;  %v3974_v12 = vsel %vm916_vm3, %v3930_v28, 0.0  ;;  %3801 = vst.msk [vmem:[#allocation3 + $0x98] sm:$0xff] %vm916_vm3, %v3769_v54  ;;  %v3772_v29 = vadd.f32 %v6209_v56, %v3740_v36  ;;  %v3391_v60 = vld [vmem:[#allocation3 + $0xf8] sm:$0xff]  ;;  %v3389_v52 = vld [vmem:[#allocation3 + $0xe8] sm:$0xff] }
 0x20b   : > { %v6245_v2 = vpop.f32.mrb[136].mxu0  ;;  %4161 = vst.msk [vmem:[%s6117_s21 + $0x34] sm:$0xf] %vm4147_vm4, %v4574_v34  ;;  %v3741_v49 = vld [vmem:[#allocation3 + $0xb8] sm:$0xff]  ;;  %v3418_v1 = vadd.f32 %v5100_v3, %v3386_v45  ;;  %v3770_v18 = vadd.f32 %v3738_v19, %v6214_v7  ;;  %v3416_v30 = vadd.f32 %v3384_v21, %v3329_v25  ;;  %v3419_v39 = vadd.f32 %v5101_v31, %v3387_v26  ;;  %v3388_v50 = vld [vmem:[#allocation3 + $0xe0] sm:$0xff] }
 0x20c   : > { %v6252_v20 = vpop.f32.mrb[137].mxu0  ;;  %v3872_v32 = vadd.f32 %v3871_v5, %v3870_v15  ;;  %v3973_v47 = vadd.f32 %v3972_v53, %v3971_v9  ;;  %3799 = vst.msk [vmem:[#allocation3 + $0x88] sm:$0xff] %vm916_vm3, %v3767_v37  ;;  %3445 = vst.msk [vmem:[#allocation3 + $0xa8] sm:$0xff] %vm916_vm3, %v3413_v24  ;;  %v3773_v38 = vadd.f32 %v6218_v33, %v3741_v49  ;;  %v3875_v4 = vsel %vm916_vm3, %v6229_v43, 0.0 }
 0x20d   : > { %v6259_v13 = vpop.f32.mrb[138].mxu0  ;;  %3804 = vst.msk [vmem:[#allocation3 + $0xb0] sm:$0xff] %vm916_vm3, %v3772_v29  ;;  %3450 = vst.msk [vmem:[#allocation3 + $0xd0] sm:$0xff] %vm916_vm3, %v3418_v1  ;;  %v3417_v56 = vadd.f32 %v3385_v35, %v3332_v10  ;;  %v3932_v7 = vmul.f32 %v6229_v43, %v6229_v43 }
 0x20e   : > { %v6266_v22 = vpop.f32.mrb[139].mxu0  ;;  %v3874_v46 = vadd.f32 %v3873_v62, %v3872_v32  ;;  %3802 = vst.msk [vmem:[#allocation3 + $0xa0] sm:$0xff] %vm916_vm3, %v3770_v18  ;;  %v3975_v40 = vadd.f32 %v3974_v12, %v3973_v47  ;;  %3448 = vst.msk [vmem:[#allocation3 + $0xc0] sm:$0xff] %vm916_vm3, %v3416_v30 }
 0x20f   : > { %3805 = vst.msk [vmem:[#allocation3 + $0xb8] sm:$0xff] %vm916_vm3, %v3773_v38  ;;  %3451 = vst.msk [vmem:[#allocation3 + $0xd8] sm:$0xff] %vm916_vm3, %v3419_v39  ;;  %v5104_v33 = vpop.f32.mrb[140].mxu1  ;;  %v3978_v43 = vsel %vm916_vm3, %v3932_v7, 0.0 }
 0x210   : > { %3449 = vst.msk [vmem:[#allocation3 + $0xc8] sm:$0xff] %vm916_vm3, %v3417_v56  ;;  %v3422_v41 = vadd.f32 %v5104_v33, %v3390_v14  ;;  %v3345_v48 = vpop.f32.mrb[141].mxu1  ;;  %v3977_v51 = vadd.f32 %v3976_v42, %v3975_v40  ;;  %v3876_v57 = vadd.f32 %v3875_v4, %v3874_v46  ;;  %v3832_v3 = vld [vmem:[#allocation3 + $0x90] sm:$0xff]  ;;  %v3830_v11 = vld [vmem:[#allocation3 + $0x80] sm:$0xff] }
 0x211   : > { %v3420_v58 = vadd.f32 %v3388_v50, %v3345_v48  ;;  %v5105_v61 = vpop.f32.mrb[142].mxu1  ;;  %v3833_v16 = vld [vmem:[#allocation3 + $0x98] sm:$0xff]  ;;  %v4579_v17 = vpack.c.bf16 %v3832_v3, %v3832_v3  ;;  %v3877_v25 = vsel %vm916_vm3, %v3830_v11, 0.0  ;;  %v3933_v36 = vmul.f32 %v3830_v11, %v3830_v11 }
 0x212   : > { %3454 = vst.msk [vmem:[#allocation3 + $0xf0] sm:$0xff] %vm916_vm3, %v3422_v41  ;;  %v3423_v62 = vadd.f32 %v5105_v61, %v3391_v60  ;;  %v3348_v63 = vpop.f32.mrb[143].mxu1  ;;  %v3979_v27 = vadd.f32 %v3978_v43, %v3977_v51  ;;  %v3878_v34 = vadd.f32 %v3877_v25, %v3876_v57  ;;  %v4577_v31 = vpack.c.bf16 %v3830_v11, %v3830_v11 }
 0x213   : > { %v6283_v23 = vpop.f32.mrb[140].mxu0  ;;  %3452 = vst.msk [vmem:[#allocation3 + $0xe0] sm:$0xff] %vm916_vm3, %v3420_v58  ;;  %v3421_v53 = vadd.f32 %v3389_v52, %v3348_v63  ;;  %v3831_v5 = vld [vmem:[#allocation3 + $0x88] sm:$0xff]  ;;  %v4580_v15 = vpack.c.bf16 %v3833_v16, %v3833_v16  ;;  %v3980_v54 = vsel %vm916_vm3, %v3933_v36, 0.0  ;;  %v3935_v12 = vmul.f32 %v3832_v3, %v3832_v3 }
 0x214   : > { %v6286_v8 = vpop.f32.mrb[141].mxu0  ;;  %3455 = vst.msk [vmem:[#allocation3 + $0xf8] sm:$0xff] %vm916_vm3, %v3423_v62  ;;  %v3879_v44 = vsel %vm916_vm3, %v3831_v5, 0.0  ;;  %v6296_v0 = vld [vmem:[#allocation3 + $0xb0] sm:$0xff]  ;;  %v3934_v19 = vmul.f32 %v3831_v5, %v3831_v5  ;;  %v4578_v10 = vpack.c.bf16 %v3831_v5, %v3831_v5  ;;  %v3981_v37 = vadd.f32 %v3980_v54, %v3979_v27  ;;  %v3739_v32 = vld [vmem:[#allocation3 + $0xa8] sm:$0xff] }
 0x215   : > { %v5139_v59 = vpop.f32.mrb[142].mxu0  ;;  %3453 = vst.msk [vmem:[#allocation3 + $0xe8] sm:$0xff] %vm916_vm3, %v3421_v53  ;;  %v3880_v6 = vadd.f32 %v3879_v44, %v3878_v34  ;;  %v3834_v9 = vld [vmem:[#allocation3 + $0xa0] sm:$0xff]  ;;  %v4583_v49 = vpack.c.bf16 %v6296_v0, %v6296_v0  ;;  %v3744_v29 = vld [vmem:[#allocation3 + $0xd0] sm:$0xff]  ;;  %v3881_v1 = vsel %vm916_vm3, %v3832_v3, 0.0  ;;  %v3984_v56 = vsel %vm916_vm3, %v3935_v12, 0.0 }
 0x216   : > { %v3706_v28 = vpop.f32.mrb[143].mxu0  ;;  %4166 = vst.msk [vmem:[%s6117_s21 + $0x48] sm:$0xf] %vm4147_vm4, %v4579_v17  ;;  %4164 = vst.msk [vmem:[%s6117_s21 + $0x40] sm:$0xf] %vm4147_vm4, %v4577_v31  ;;  %v6303_v24 = vld [vmem:[#allocation3 + $0xb8] sm:$0xff]  ;;  %v4581_v21 = vpack.c.bf16 %v3834_v9, %v3834_v9  ;;  %v3936_v7 = vmul.f32 %v3833_v16, %v3833_v16  ;;  %v3771_v40 = vadd.f32 %v3739_v32, %v6221_v55 }
 0x217   : > { %4167 = vst.msk [vmem:[%s6117_s21 + $0x4c] sm:$0xf] %vm4147_vm4, %v4580_v15  ;;  %v3982_v45 = vsel %vm916_vm3, %v3934_v19, 0.0  ;;  %4165 = vst.msk [vmem:[%s6117_s21 + $0x44] sm:$0xf] %vm4147_vm4, %v4578_v10  ;;  %v3742_v26 = vld [vmem:[#allocation3 + $0xc0] sm:$0xff]  ;;  %v3882_v30 = vadd.f32 %v3881_v1, %v3880_v6  ;;  %v4584_v38 = vpack.c.bf16 %v6303_v24, %v6303_v24  ;;  %v3776_v33 = vadd.f32 %v6245_v2, %v3744_v29 }
 0x218   : > { %v3983_v18 = vadd.f32 %v3982_v45, %v3981_v37  ;;  %v3745_v47 = vld [vmem:[#allocation3 + $0xd8] sm:$0xff]  ;;  %4170 = vst.msk [vmem:[%s6117_s21 + $0x58] sm:$0xf] %vm4147_vm4, %v4583_v49  ;;  %v3743_v39 = vld [vmem:[#allocation3 + $0xc8] sm:$0xff]  ;;  %4168 = vst.msk [vmem:[%s6117_s21 + $0x50] sm:$0xf] %vm4147_vm4, %v4581_v21  ;;  %v3774_v48 = vadd.f32 %v3742_v26, %v6252_v20  ;;  %v3937_v51 = vmul.f32 %v3834_v9, %v3834_v9 }
 0x219   : > { %v3748_v35 = vld [vmem:[#allocation3 + $0xf0] sm:$0xff]  ;;  %v3883_v4 = vsel %vm916_vm3, %v3833_v16, 0.0  ;;  %4171 = vst.msk [vmem:[%s6117_s21 + $0x5c] sm:$0xf] %vm4147_vm4, %v4584_v38  ;;  %v3777_v50 = vadd.f32 %v6259_v13, %v3745_v47  ;;  %v3775_v55 = vadd.f32 %v3743_v39, %v6266_v22  ;;  %v3986_v13 = vsel %vm916_vm3, %v3936_v7, 0.0 }
 0x21a   : > { %v3746_v46 = vld [vmem:[#allocation3 + $0xe0] sm:$0xff]  ;;  %v3985_v41 = vadd.f32 %v3984_v56, %v3983_v18  ;;  %3803 = vst.msk [vmem:[#allocation3 + $0xa8] sm:$0xff] %vm916_vm3, %v3771_v40  ;;  %3808 = vst.msk [vmem:[#allocation3 + $0xd0] sm:$0xff] %vm916_vm3, %v3776_v33  ;;  %v3780_v2 = vadd.f32 %v6283_v23, %v3748_v35  ;;  %v3884_v58 = vadd.f32 %v3883_v4, %v3882_v30  ;;  %v3885_v60 = vsel %vm916_vm3, %v3834_v9, 0.0 }
 0x21b   : > { %v3749_v14 = vld [vmem:[#allocation3 + $0xf8] sm:$0xff]  ;;  %v3778_v57 = vadd.f32 %v3746_v46, %v6286_v8  ;;  %3806 = vst.msk [vmem:[#allocation3 + $0xc0] sm:$0xff] %vm916_vm3, %v3774_v48  ;;  %3809 = vst.msk [vmem:[#allocation3 + $0xd8] sm:$0xff] %vm916_vm3, %v3777_v50  ;;  %v3988_v23 = vsel %vm916_vm3, %v3937_v51, 0.0  ;;  %v3939_v63 = vmul.f32 %v6296_v0, %v6296_v0  ;;  %v3891_v6 = vsel %vm916_vm3, %v6303_v24, 0.0 }
 0x21c   : > { %v3747_v42 = vld [vmem:[#allocation3 + $0xe8] sm:$0xff]  ;;  %v3781_v61 = vadd.f32 %v5139_v59, %v3749_v14  ;;  %3807 = vst.msk [vmem:[#allocation3 + $0xc8] sm:$0xff] %vm916_vm3, %v3775_v55  ;;  %3812 = vst.msk [vmem:[#allocation3 + $0xf0] sm:$0xff] %vm916_vm3, %v3780_v2  ;;  %v3987_v22 = vadd.f32 %v3986_v13, %v3985_v41  ;;  %v3886_v62 = vadd.f32 %v3885_v60, %v3884_v58  ;;  %v3889_v59 = vsel %vm916_vm3, %v6296_v0, 0.0 }
 0x21d   : > { %v3779_v20 = vadd.f32 %v3747_v42, %v3706_v28  ;;  %3810 = vst.msk [vmem:[#allocation3 + $0xe0] sm:$0xff] %vm916_vm3, %v3778_v57  ;;  %v3940_v28 = vmul.f32 %v6303_v24, %v6303_v24  ;;  %v3992_v15 = vsel %vm916_vm3, %v3939_v63, 0.0 }
 0x21e   : > { %3813 = vst.msk [vmem:[#allocation3 + $0xf8] sm:$0xff] %vm916_vm3, %v3781_v61  ;;  %v3989_v52 = vadd.f32 %v3988_v23, %v3987_v22 }
 0x21f   : > { %3811 = vst.msk [vmem:[#allocation3 + $0xe8] sm:$0xff] %vm916_vm3, %v3779_v20  ;;  %v3994_v32 = vsel %vm916_vm3, %v3940_v28, 0.0 }
 0x221   : > { %v3835_v8 = vld [vmem:[#allocation3 + $0xa8] sm:$0xff]  ;;  %v3840_v43 = vld [vmem:[#allocation3 + $0xd0] sm:$0xff] }
 0x222   : > { %v3887_v3 = vsel %vm916_vm3, %v3835_v8, 0.0  ;;  %v3938_v11 = vmul.f32 %v3835_v8, %v3835_v8  ;;  %v4582_v16 = vpack.c.bf16 %v3835_v8, %v3835_v8  ;;  %v3838_v53 = vld [vmem:[#allocation3 + $0xc0] sm:$0xff]  ;;  %v4587_v25 = vpack.c.bf16 %v3840_v43, %v3840_v43  ;;  %v3841_v27 = vld [vmem:[#allocation3 + $0xd8] sm:$0xff] }
 0x223   : > { %v3888_v17 = vadd.f32 %v3887_v3, %v3886_v62  ;;  %v3839_v5 = vld [vmem:[#allocation3 + $0xc8] sm:$0xff]  ;;  %v3941_v36 = vmul.f32 %v3838_v53, %v3838_v53  ;;  %v4585_v31 = vpack.c.bf16 %v3838_v53, %v3838_v53  ;;  %v3844_v0 = vld [vmem:[#allocation3 + $0xf0] sm:$0xff]  ;;  %v3893_v19 = vsel %vm916_vm3, %v3838_v53, 0.0 }
 0x224   : > { %v3990_v34 = vsel %vm916_vm3, %v3938_v11, 0.0  ;;  %4169 = vst.msk [vmem:[%s6117_s21 + $0x54] sm:$0xf] %vm4147_vm4, %v4582_v16  ;;  %4174 = vst.msk [vmem:[%s6117_s21 + $0x68] sm:$0xf] %vm4147_vm4, %v4587_v25  ;;  %v4588_v10 = vpack.c.bf16 %v3841_v27, %v3841_v27  ;;  %v3942_v9 = vmul.f32 %v3839_v5, %v3839_v5  ;;  %v4586_v45 = vpack.c.bf16 %v3839_v5, %v3839_v5  ;;  %v3842_v49 = vld [vmem:[#allocation3 + $0xe0] sm:$0xff] }
 0x225   : > { %v3890_v44 = vadd.f32 %v3889_v59, %v3888_v17  ;;  %v3991_v54 = vadd.f32 %v3990_v34, %v3989_v52  ;;  %4172 = vst.msk [vmem:[%s6117_s21 + $0x60] sm:$0xf] %vm4147_vm4, %v4585_v31  ;;  %v3996_v29 = vsel %vm916_vm3, %v3941_v36, 0.0  ;;  %v3895_v24 = vsel %vm916_vm3, %v3839_v5, 0.0  ;;  %v3845_v18 = vld [vmem:[#allocation3 + $0xf8] sm:$0xff] }
 0x226   : > { %4175 = vst.msk [vmem:[%s6117_s21 + $0x6c] sm:$0xf] %vm4147_vm4, %v4588_v10  ;;  %v4591_v1 = vpack.c.bf16 %v3844_v0, %v3844_v0  ;;  %4173 = vst.msk [vmem:[%s6117_s21 + $0x64] sm:$0xf] %vm4147_vm4, %v4586_v45  ;;  %v3843_v47 = vld [vmem:[#allocation3 + $0xe8] sm:$0xff]  ;;  %v3943_v30 = vmul.f32 %v3840_v43, %v3840_v43  ;;  %v3998_v38 = vsel %vm916_vm3, %v3942_v9, 0.0  ;;  %v4589_v39 = vpack.c.bf16 %v3842_v49, %v3842_v49 }
 0x227   : > { %v3993_v12 = vadd.f32 %v3992_v15, %v3991_v54  ;;  %v3892_v37 = vadd.f32 %v3891_v6, %v3890_v44  ;;  %v4592_v56 = vpack.c.bf16 %v3845_v18, %v3845_v18  ;;  %v3897_v7 = vsel %vm916_vm3, %v3840_v43, 0.0 }
 0x228   : > { %4178 = vst.msk [vmem:[%s6117_s21 + $0x78] sm:$0xf] %vm4147_vm4, %v4591_v1  ;;  %v3944_v40 = vmul.f32 %v3841_v27, %v3841_v27  ;;  %v3945_v33 = vmul.f32 %v3842_v49, %v3842_v49  ;;  %4176 = vst.msk [vmem:[%s6117_s21 + $0x70] sm:$0xf] %vm4147_vm4, %v4589_v39  ;;  %v4590_v14 = vpack.c.bf16 %v3843_v47, %v3843_v47  ;;  %v4000_v41 = vsel %vm916_vm3, %v3943_v30, 0.0 }
 0x229   : > { %v3894_v21 = vadd.f32 %v3893_v19, %v3892_v37  ;;  %v3995_v26 = vadd.f32 %v3994_v32, %v3993_v12  ;;  %4179 = vst.msk [vmem:[%s6117_s21 + $0x7c] sm:$0xf] %vm4147_vm4, %v4592_v56  ;;  %v3899_v48 = vsel %vm916_vm3, %v3841_v27, 0.0  ;;  %v3901_v50 = vsel %vm916_vm3, %v3842_v49, 0.0 }
 0x22a   : > { %v3946_v51 = vmul.f32 %v3843_v47, %v3843_v47  ;;  %4177 = vst.msk [vmem:[%s6117_s21 + $0x74] sm:$0xf] %vm4147_vm4, %v4590_v14  ;;  %v4002_v57 = vsel %vm916_vm3, %v3944_v40, 0.0  ;;  %v4004_v58 = vsel %vm916_vm3, %v3945_v33, 0.0  ;;  %v3903_v61 = vsel %vm916_vm3, %v3843_v47, 0.0 }
 0x22b   : > { %v3997_v35 = vadd.f32 %v3996_v29, %v3995_v26  ;;  %v3896_v46 = vadd.f32 %v3895_v24, %v3894_v21  ;;  %v3947_v60 = vmul.f32 %v3844_v0, %v3844_v0  ;;  %v3905_v63 = vsel %vm916_vm3, %v3844_v0, 0.0 }
 0x22c   : > { %v4006_v22 = vsel %vm916_vm3, %v3946_v51, 0.0  ;;  %v3948_v52 = vmul.f32 %v3845_v18, %v3845_v18  ;;  %v3907_v11 = vsel %vm916_vm3, %v3845_v18, 0.0 }
 0x22d   : > { %v3898_v42 = vadd.f32 %v3897_v7, %v3896_v46  ;;  %v3999_v4 = vadd.f32 %v3998_v38, %v3997_v35  ;;  %v4008_v3 = vsel %vm916_vm3, %v3947_v60, 0.0 }
 0x22e   : > { %v4010_v59 = vsel %vm916_vm3, %v3948_v52, 0.0 }
 0x22f   : > { %v4001_v55 = vadd.f32 %v4000_v41, %v3999_v4  ;;  %v3900_v2 = vadd.f32 %v3899_v48, %v3898_v42 }
 0x231   : > { %v3902_v20 = vadd.f32 %v3901_v50, %v3900_v2  ;;  %v4003_v13 = vadd.f32 %v4002_v57, %v4001_v55 }
 0x233   : > { %v4005_v23 = vadd.f32 %v4004_v58, %v4003_v13  ;;  %v3904_v62 = vadd.f32 %v3903_v61, %v3902_v20 }
 0x235   : > { %v3906_v8 = vadd.f32 %v3905_v63, %v3904_v62  ;;  %v4007_v43 = vadd.f32 %v4006_v22, %v4005_v23 }
 0x237   : > { %v3908_v16 = vadd.f32 %v3907_v11, %v3906_v8  ;;  %v4009_v53 = vadd.f32 %v4008_v3, %v4007_v43 }
 0x239   : > { %v3909_v17 = vrot.slane %v3908_v16, 4  ;;  %v4011_v25 = vadd.f32 %v4010_v59, %v4009_v53 }
 0x23b   : > { %v3910_v27 = vadd.f32 %v3909_v17, %v3908_v16  ;;  %v4012_v5 = vrot.slane %v4011_v25, 4 }
 0x23d   : > { %v3911_v28 = vrot.slane %v3910_v27, 2  ;;  %v4013_v34 = vadd.f32 %v4012_v5, %v4011_v25 }
 0x23f   : > { %v3912_v36 = vadd.f32 %v3911_v28, %v3910_v27  ;;  %v4014_v31 = vrot.slane %v4013_v34, 2 }
 0x241   : > { %v3913_v15 = vrot.slane %v3912_v36, 1  ;;  %v4015_v44 = vadd.f32 %v4014_v31, %v4013_v34 }
 0x243   : > { %v3914_v54 = vadd.f32 %v3913_v15, %v3912_v36  ;;  %v4016_v0 = vrot.slane %v4015_v44, 1 }
 0x245   : > { %3916 = vst.msk [vmem:[%s489_s24] sm:$0x1] %vm3915_vm5, %v3914_v54  ;;  %v4017_v6 = vadd.f32 %v4016_v0, %v4015_v44 }
 0x247   : > { %4018 = vst.msk [vmem:[%s489_s24 + $0x1] sm:$0x1] %vm3915_vm5, %v4017_v6 }
 0x248 PF: > { %s19_s29 = sadd.s32 1, %s5199_s29   ;;  %s6408_s27 = smov %s5195_s28 }
 0x249   : > { %p16_p5 = scmp.ge.s32.totalorder %s19_s29, 4   ;;  %s6409_s28 = smov %s6411_s5 }
 0x24b   :  { %18 = sbr.rel (!%p16_p5) target bundleno = 2 (0x2), region = 111 }

// kernel: _lambda_.16
= control target key start
LH: loop header
LB: loop body
LE: loop exit
PB: predicated region body
PF: predicated region fallthrough
CT: control target
= control target key end

     0   :  { %s471_s12 = smov 0   ;;  %s473_s13 = smov 0   ;;  %s514_s0 = inlined_call_operand.vmem [shape: bf16[2,4,2,64], index: 0, kind: input, shape index: {}]   ;;  %s515_s1 = inlined_call_operand.vmem [shape: f32[1,1,32], index: 1, kind: input, shape index: {}]   ;;  %s516_s2 = inlined_call_operand.vmem [shape: f32[1,1,32], index: 2, kind: input, shape index: {}]   ;;  %s517_s3 = inlined_call_operand.vmem [shape: bf16[2,2,2,32], index: 3, kind: output, shape index: {}]  }
   0x1   :  { %s475_s14 = smov 0  }
   0x2 LB: > { %s25_s15 = sadd.s32 1, %s442_s13  ;;  %p380_p0 = scmp.ge.s32.totalorder %s446_s14, 1  ;;  %s446_s14 = sphi %s475_s14, %s13_s14   ;;  %s442_s13 = sphi %s473_s13, %s519_s13   ;;  %s438_s12 = sphi %s471_s12, %s518_s12  }
   0x3   : > { %p27_p1 = scmp.ge.s32.totalorder %s25_s15, 2  ;;  %p157_p2 = scmp.lt.s32.totalorder %s446_s14, 3 }
   0x5   : > { %s521_s15 = smov (%p27_p1, %s25_s15), 0  ;;  %p158_p3 = pnand %p380_p0, %p157_p2 }
   0x6   : > { %v242_v0 = vlaneseq (!%p158_p3)  ;;  %v448_v1 = vmov (!%p158_p3), 1983009808   ;;  %v383_v5 = vld [vmem:[%s515_s1] ss:$0 sm:$0xff] (!%p158_p3)  ;;  %s449_s20 = smov (!%p158_p3), 32   ;;  %p188_p4 = scmp.lt.s32.totalorder (!%p158_p3), %s438_s12, 1 }
   0x7   : > { %161 = sbr.rel (%p158_p3) target bundleno = 268 (0x10c), region = 32  ;;  %v240_v2 = vunpack.c.l.s4 (!%p158_p3), %v448_v1  ;;  %v384_v7 = vld [vmem:[%s516_s2] ss:$0 sm:$0xff] (!%p158_p3)  ;;  %s450_s25 = smov (!%p158_p3), 96   ;;  %vm295_vm0 = vcmask (!%p158_p3), 253952  }
   0x8   : > { %v243_v3 = vshrl.u32 (!%p158_p3), %v242_v0, 7 }
   0x9   : > { %v241_v4 = vunpack.c.0.s8 (!%p158_p3), %v240_v2 }
   0xb   : > { %v244_v6 = vsub.s32 (!%p158_p3), %v241_v4, %v243_v3 }
   0xd   : > { %v245_v8 = vrot.slane (!%p158_p3), %v383_v5, %v244_v6  ;;  %v259_v9 = vrot.slane (!%p158_p3), %v384_v7, %v244_v6 }
   0xe   : > { %s523_s12 = smov (!%p188_p4, %s438_s12), 1 }
   0xf   : > { %246 = vrot.lane.b32.xlu0 %v245_v8, %s449_s20  ;;  %s381_s21 = sshll.u32 %s523_s12, 2  ;;  %s382_s26 = sshll.u32 %s523_s12, 1 }
  0x10   : > { %s194_s24 = scalar_lea.vmem %s514_s0, %s381_s21  ;;  %s203_s29 = scalar_lea.vmem %s517_s3, %s382_s26 }
  0x11   : > { %v205_v10 = vld [vmem:[%s194_s24] sm:$0x1]  ;;  %v206_v11 = vld [vmem:[%s194_s24 + $0x1] sm:$0x1]  ;;  %v207_v12 = vld [vmem:[%s194_s24 + $0x2] sm:$0x1] }
  0x12   : > { %v208_v13 = vld [vmem:[%s194_s24 + $0x3] sm:$0x1]  ;;  %v209_v14 = vunpack.c.l.bf16 %v205_v10  ;;  %v210_v15 = vunpack.c.l.bf16 %v206_v11  ;;  %v211_v16 = vunpack.c.l.bf16 %v207_v12 }
  0x13   : > { %260 = vrot.lane.b32.xlu0 %v259_v9, %s449_s20  ;;  %v212_v17 = vunpack.c.l.bf16 %v208_v13 }
  0x14   : > { %v221_v34 = vmul.f32 %v383_v5, %v210_v15  ;;  %v220_v35 = vmul.f32 %v383_v5, %v209_v14  ;;  %v222_v38 = vmul.f32 %v383_v5, %v211_v16 }
  0x15   : > { %v223_v39 = vmul.f32 %v383_v5, %v212_v17 }
  0x16   : > { %v232_v36 = vadd.f32 %v384_v7, %v221_v34  ;;  %v231_v37 = vadd.f32 %v384_v7, %v220_v35  ;;  %v233_v42 = vadd.f32 %v384_v7, %v222_v38 }
  0x17   : > { %v234_v43 = vadd.f32 %v384_v7, %v223_v39 }
  0x18   : > { %v236_v40 = vmax.f32 %v232_v36, 0.0  ;;  %v235_v41 = vmax.f32 %v231_v37, 0.0  ;;  %v237_v49 = vmax.f32 %v233_v42, 0.0 }
  0x19   : > { %v238_v50 = vmax.f32 %v234_v43, 0.0 }
  0x81   : > { %v247_v18 = vpop.permute.xlu0 %246 }
  0x82   : > { %v249_v19 = vmul.f32 %v247_v18, %v209_v14  ;;  %v250_v20 = vmul.f32 %v247_v18, %v210_v15  ;;  %v251_v21 = vmul.f32 %v247_v18, %v211_v16  ;;  %v252_v22 = vmul.f32 %v247_v18, %v212_v17 }
  0x85   : > { %v261_v23 = vpop.permute.xlu0 %260 }
  0x86   : > { %v263_v24 = vadd.f32 %v261_v23, %v249_v19  ;;  %v264_v25 = vadd.f32 %v261_v23, %v250_v20  ;;  %v265_v26 = vadd.f32 %v261_v23, %v251_v21  ;;  %v266_v27 = vadd.f32 %v261_v23, %v252_v22 }
  0x88   : > { %v267_v28 = vmax.f32 %v263_v24, 0.0  ;;  %v268_v29 = vmax.f32 %v264_v25, 0.0  ;;  %v269_v30 = vmax.f32 %v265_v26, 0.0  ;;  %v270_v31 = vmax.f32 %v266_v27, 0.0 }
  0x8a   : > { %v414_v32 = vpack.i.bf16 %v268_v29, %v267_v28  ;;  %v419_v33 = vpack.i.bf16 %v270_v31, %v269_v30 }
  0x8c   : > { %415 = vrot.lane.b32.xlu1 %v414_v32, %s450_s25 }
  0x90   : > { %420 = vrot.lane.b32.xlu1 %v419_v33, %s450_s25 }
  0xfe   : > { %v416_v44 = vpop.permute.xlu1 %415 }
  0xff   : > { %v418_v45 = vunpack.i.h.bf16 %v416_v44  ;;  %v417_v46 = vunpack.i.l.bf16 %v416_v44 }
 0x101   : > { %v288_v47 = vmax.f32 %v236_v40, %v418_v45  ;;  %v287_v48 = vmax.f32 %v235_v41, %v417_v46 }
 0x102   : > { %v421_v51 = vpop.permute.xlu1 %420 }
 0x103   : > { %v291_v52 = vmax.f32 %v287_v48, %v288_v47  ;;  %v423_v53 = vunpack.i.h.bf16 %v421_v51  ;;  %v422_v54 = vunpack.i.l.bf16 %v421_v51 }
 0x105   : > { %v293_v55 = vpack.c.bf16 %v291_v52, %v291_v52  ;;  %v290_v56 = vmax.f32 %v238_v50, %v423_v53  ;;  %v289_v57 = vmax.f32 %v237_v49, %v422_v54 }
 0x107   : > { %296 = vst.msk [vmem:[%s203_s29] sm:$0x1] %vm295_vm0, %v293_v55  ;;  %v292_v58 = vmax.f32 %v289_v57, %v290_v56 }
 0x109   : > { %v294_v59 = vpack.c.bf16 %v292_v58, %v292_v58 }
 0x10b   : > { %297 = vst.msk [vmem:[%s203_s29 + $0x1] sm:$0x1] %vm295_vm0, %v294_v59 }
 0x10c PF: > { %s13_s14 = sadd.s32 1, %s446_s14   ;;  %s518_s12 = smov %s442_s13 }
 0x10d   : > { %p10_p5 = scmp.ge.s32.totalorder %s13_s14, 4   ;;  %s519_s13 = smov %s521_s15 }
 0x10f   :  { %12 = sbr.rel (!%p10_p5) target bundleno = 2 (0x2), region = 62 }

// kernel: _lambda_.14
= control target key start
LH: loop header
LB: loop body
LE: loop exit
PB: predicated region body
PF: predicated region fallthrough
CT: control target
= control target key end

     0   :  { %s1634_s27 = smov 0   ;;  %s1636_s28 = smov 0   ;;  %s1814_s0 = inlined_call_operand.vmem [shape: bf16[2,4,4,16], index: 0, kind: input, shape index: {}, may-alias: {0,1,2}]   ;;  %s1815_s1 = inlined_call_operand.vmem [shape: bf16[2,4,4,16], index: 1, kind: input, shape index: {}, may-alias: {0,1,2}]   ;;  %s1816_s2 = inlined_call_operand.vmem [shape: bf16[2,4,4,16], index: 2, kind: input, shape index: {}, may-alias: {0,1,2}]   ;;  %s1817_s3 = inlined_call_operand.vmem [shape: bf16[9,16,32], index: 3, kind: input, shape index: {}]   ;;  %s1818_s4 = inlined_call_operand.vmem [shape: f32[1,32], index: 4, kind: input, shape index: {}]   ;;  %s1819_s5 = inlined_call_operand.vmem [shape: f32[1,1,16], index: 5, kind: input, shape index: {}]   ;;  %s1820_s6 = inlined_call_operand.vmem [shape: f32[1,1,16], index: 6, kind: input, shape index: {}]   ;;  %s1821_s7 = inlined_call_operand.vmem [shape: bf16[2,1,16,32], index: 7, kind: output, shape index: {0}]   ;;  %s1822_s8 = inlined_call_operand.vmem [shape: f32[2,1,2,32], index: 8, kind: output, shape index: {1}]  }
   0x1   :  { %s1638_s29 = smov 0  }
   0x2 LB: > { %s31_s5 = sadd.s32 1, %s1581_s28  ;;  %p1381_p0 = scmp.ge.s32.totalorder %s1585_s29, 1  ;;  %s1585_s29 = sphi %s1638_s29, %s19_s29   ;;  %s1581_s28 = sphi %s1636_s28, %s1824_s28   ;;  %s1577_s27 = sphi %s1634_s27, %s1823_s27  }
   0x3   : > { %p33_p1 = scmp.ge.s32.totalorder %s31_s5, 2  ;;  %p350_p2 = scmp.lt.s32.totalorder %s1585_s29, 3 }
   0x5   : > { %s1826_s5 = smov (%p33_p1, %s31_s5), 0  ;;  %p351_p3 = pnand %p1381_p0, %p350_p2 }
   0x6   : > { %v1536_v0 = vld [vmem:[%s1817_s3] sm:$0xff] (!%p351_p3)   ;;  %v1587_v1 = vmov (!%p351_p3), 0.0   ;;  %p424_p4 = scmp.lt.s32.totalorder (!%p351_p3), %s1577_s27, 1  ;;  %vm482_vm0 = vcmask (!%p351_p3), 122880   ;;  %v1539_v2 = vld [vmem:[%s1817_s3 + $0x8] sm:$0xff] (!%p351_p3)   ;;  %vm1588_vm1 = vmmov (!%p351_p3), 0  }
   0x7   : > { %354 = sbr.rel (%p351_p3) target bundleno = 354 (0x162), region = 48  ;;  %1456 = vmatprep.subr.bf16.mxu0 (!%p351_p3), %v1587_v1  ;;  %1462 = vmatprep.subr.bf16.mxu1 (!%p351_p3), %v1587_v1  ;;  %483 = vst.msk [vmem:[#allocation2] sm:$0x1] (!%p351_p3), %vm482_vm0, %v1587_v1  ;;  %484 = vst.msk [vmem:[#allocation2 + $0x8] sm:$0x1] (!%p351_p3), %vm482_vm0, %v1587_v1  ;;  %vm504_vm2 = vcmask (!%p351_p3), 125952  }
   0x8   : > { %1457 = vmatpush3.bf16.msra.mxu0 (!%p351_p3), %v1536_v0  ;;  %1458 = vmatprep.mubr.msk.bf16.mxu0 (!%p351_p3), %vm1588_vm1, %v1587_v1  ;;  %485 = vst.msk [vmem:[#allocation2 + $0x10] sm:$0x1] (!%p351_p3), %vm482_vm0, %v1587_v1  ;;  %486 = vst.msk [vmem:[#allocation2 + $0x18] sm:$0x1] (!%p351_p3), %vm482_vm0, %v1587_v1  ;;  %vm550_vm3 = vcmask (!%p351_p3), 130048   ;;  %v1542_v16 = vld [vmem:[%s1817_s3 + $0x10] sm:$0xff] (!%p351_p3)  }
   0x9   : > { %487 = vst.msk [vmem:[#allocation2 + $0x20] sm:$0x1] (!%p351_p3), %vm482_vm0, %v1587_v1  ;;  %488 = vst.msk [vmem:[#allocation2 + $0x28] sm:$0x1] (!%p351_p3), %vm482_vm0, %v1587_v1  ;;  %1463 = vmatpush3.bf16.msra.mxu1 (!%p351_p3), %v1539_v2  ;;  %1464 = vmatprep.mubr.msk.bf16.mxu1 (!%p351_p3), %vm1588_vm1, %v1587_v1  ;;  %v1545_v18 = vld [vmem:[%s1817_s3 + $0x18] sm:$0xff] (!%p351_p3)   ;;  %v1548_v29 = vld [vmem:[%s1817_s3 + $0x20] sm:$0xff] (!%p351_p3)  }
   0xa   : > { %489 = vst.msk [vmem:[#allocation2 + $0x5] sm:$0x1] (!%p351_p3), %vm482_vm0, %v1587_v1  ;;  %490 = vst.msk [vmem:[#allocation2 + $0xd] sm:$0x1] (!%p351_p3), %vm482_vm0, %v1587_v1  ;;  %1468 = vmatprep.subr.bf16.mxu0 (!%p351_p3), %v1587_v1  ;;  %1474 = vmatprep.subr.bf16.mxu1 (!%p351_p3), %v1587_v1  ;;  %v1551_v30 = vld [vmem:[%s1817_s3 + $0x28] sm:$0xff] (!%p351_p3)   ;;  %v1554_v37 = vld [vmem:[%s1817_s3 + $0x30] sm:$0xff] (!%p351_p3)  }
   0xb   : > { %491 = vst.msk [vmem:[#allocation2 + $0x15] sm:$0x1] (!%p351_p3), %vm482_vm0, %v1587_v1  ;;  %492 = vst.msk [vmem:[#allocation2 + $0x1d] sm:$0x1] (!%p351_p3), %vm482_vm0, %v1587_v1  ;;  %v1557_v38 = vld [vmem:[%s1817_s3 + $0x38] sm:$0xff] (!%p351_p3)   ;;  %v1560_v45 = vld [vmem:[%s1817_s3 + $0x40] sm:$0xff] (!%p351_p3)  }
   0xc   : > { %493 = vst.msk [vmem:[#allocation2 + $0x25] sm:$0x1] (!%p351_p3), %vm482_vm0, %v1587_v1  ;;  %494 = vst.msk [vmem:[#allocation2 + $0x2d] sm:$0x1] (!%p351_p3), %vm482_vm0, %v1587_v1  ;;  %v1391_v49 = vld [vmem:[%s1818_s4] ss:$0 sm:$0xff] (!%p351_p3) }
   0xd   : > { %vm595_vm4 = vcmask (!%p351_p3), 261120   ;;  %vm1208_vm5 = vcmask (!%p351_p3), 257024   ;;  %vm1186_vm6 = vcmask (!%p351_p3), 253952  }
   0xe   : > { %s1828_s27 = smov (!%p424_p4, %s1577_s27), 1 }
   0xf   : > { %s1699_s11 = sshll.u32 %s1828_s27, 3 }
  0x10   : > { %s431_s14 = scalar_lea.vmem %s1814_s0, %s1699_s11  ;;  %s444_s17 = scalar_lea.vmem %s1815_s1, %s1699_s11 }
  0x11   : > { %v495_v3 = vld [vmem:[%s431_s14] sm:$0x3]  ;;  %v496_v4 = vld [vmem:[%s431_s14 + $0x2] sm:$0x3]  ;;  %v497_v5 = vld [vmem:[%s431_s14 + $0x4] sm:$0x3] }
  0x12   : > { %v499_v6 = vunpack.c.l.bf16 %v495_v3  ;;  %v500_v7 = vunpack.c.l.bf16 %v496_v4  ;;  %v501_v8 = vunpack.c.l.bf16 %v497_v5  ;;  %v509_v9 = vld [vmem:[%s444_s17] sm:$0x3]  ;;  %v498_v10 = vld [vmem:[%s431_s14 + $0x6] sm:$0x3]  ;;  %s1433_s18 = sadd.s32 6, %s1699_s11 }
  0x13   : > { %v510_v11 = vunpack.c.l.bf16 %v509_v9  ;;  %v502_v12 = vunpack.c.l.bf16 %v498_v10  ;;  %s460_s21 = scalar_lea.vmem %s1816_s2, %s1433_s18 }
  0x14   : > { %505 = vst.msk [vmem:[#allocation2 + $0x9] sm:$0xf] %vm504_vm2, %v499_v6  ;;  %506 = vst.msk [vmem:[#allocation2 + $0x11] sm:$0xf] %vm504_vm2, %v500_v7  ;;  %v512_v13 = vld [vmem:[%s460_s21] sm:$0x3]  ;;  %s473_s21 = scalar_lea.vmem %s1821_s7, %s1699_s11 }
  0x15   : > { %507 = vst.msk [vmem:[#allocation2 + $0x19] sm:$0xf] %vm504_vm2, %v501_v8  ;;  %511 = vst.msk [vmem:[#allocation2 + $0x1] sm:$0xf] %vm504_vm2, %v510_v11  ;;  %v513_v14 = vunpack.c.l.bf16 %v512_v13  ;;  %s1390_s11 = sshll.u32 %s1828_s27, 1 }
  0x16   : > { %508 = vst.msk [vmem:[#allocation2 + $0x21] sm:$0xf] %vm504_vm2, %v502_v12  ;;  %520 = vst.msk [vmem:[#allocation2 + $0x1] sm:$0xf] %vm504_vm2, %v1587_v1  ;;  %s480_s24 = scalar_lea.vmem %s1822_s8, %s1390_s11 }
  0x17   : > { %515 = vst.msk [vmem:[#allocation2 + $0x29] sm:$0xf] %vm504_vm2, %v513_v14 }
  0x18   : > { %521 = vst.msk [vmem:[#allocation2 + $0x29] sm:$0xf] %vm504_vm2, %v1587_v1 }
  0x1b   : > { %v1546_v25 = vld [vmem:[#allocation2 + $0x8] ss:$8 sps:$4 sm:$0xff]  }
  0x1c   : > { %v1538_v15 = vld [vmem:[#allocation2 + $0x10] ss:$8 sps:$4 sm:$0xff]  }
  0x1d   : > { %v1537_v17 = vld [vmem:[#allocation2] ss:$8 sps:$4 sm:$0xff]   ;;  %v1541_v20 = vld [vmem:[#allocation2 + $0x11] ss:$8 sps:$4 sm:$0xff]  }
  0x1e   : > { %v1540_v19 = vld [vmem:[#allocation2 + $0x1] ss:$8 sps:$4 sm:$0xff]   ;;  %v534_v21 = vpack.c.bf16 %v1538_v15, %v1537_v17  ;;  %v1544_v24 = vld [vmem:[#allocation2 + $0x12] ss:$8 sps:$4 sm:$0xff]  }
  0x1f   : > { %v610_v22 = vpack.c.bf16 %v1541_v20, %v1540_v19  ;;  %v1543_v23 = vld [vmem:[#allocation2 + $0x2] ss:$8 sps:$4 sm:$0xff]   ;;  %v1555_v39 = vld [vmem:[#allocation2 + $0x10] ss:$8 sps:$4 sm:$0xff]  }
  0x20   : > { %1459 = vmatmul.mubr.msk.bf16.vlgmr.msra.gmra.mrb[0].mxu0 %vm550_vm3, %v534_v21  ;;  %v1547_v26 = vld [vmem:[#allocation2 + $0x18] ss:$8 sps:$4 sm:$0xff]   ;;  %v682_v27 = vpack.c.bf16 %v1544_v24, %v1543_v23  ;;  %v1549_v31 = vld [vmem:[#allocation2 + $0x9] ss:$8 sps:$4 sm:$0xff]  }
  0x21   : > { %1465 = vmatmul.mubr.msk.bf16.vlgmr.msra.gmra.mrb[0].mxu1 %vm550_vm3, %v610_v22  ;;  %1469 = vmatpush3.bf16.msra.mxu0 %v1542_v16  ;;  %v754_v28 = vpack.c.bf16 %v1547_v26, %v1546_v25  ;;  %v1550_v32 = vld [vmem:[#allocation2 + $0x19] ss:$8 sps:$4 sm:$0xff]   ;;  %v1552_v33 = vld [vmem:[#allocation2 + $0xa] ss:$8 sps:$4 sm:$0xff]  }
  0x22   : > { %1470 = vmatprep.mubr.msk.bf16.mxu0 %vm1588_vm1, %v1587_v1  ;;  %1475 = vmatpush3.bf16.msra.mxu1 %v1545_v18  ;;  %v1553_v34 = vld [vmem:[#allocation2 + $0x1a] ss:$8 sps:$4 sm:$0xff]   ;;  %v826_v35 = vpack.c.bf16 %v1550_v32, %v1549_v31 }
  0x23   : > { %1476 = vmatprep.mubr.msk.bf16.mxu1 %vm1588_vm1, %v1587_v1  ;;  %1480 = vmatprep.subr.bf16.mxu0 %v1587_v1  ;;  %v898_v36 = vpack.c.bf16 %v1553_v34, %v1552_v33  ;;  %v1556_v40 = vld [vmem:[#allocation2 + $0x20] ss:$8 sps:$4 sm:$0xff]   ;;  %v1558_v41 = vld [vmem:[#allocation2 + $0x11] ss:$8 sps:$4 sm:$0xff]  }
  0x24   : > { %1486 = vmatprep.subr.bf16.mxu1 %v1587_v1  ;;  %v1559_v42 = vld [vmem:[#allocation2 + $0x21] ss:$8 sps:$4 sm:$0xff]   ;;  %v971_v43 = vpack.c.bf16 %v1556_v40, %v1555_v39  ;;  %v1561_v46 = vld [vmem:[#allocation2 + $0x12] ss:$8 sps:$4 sm:$0xff]  }
  0x25   : > { %v1043_v44 = vpack.c.bf16 %v1559_v42, %v1558_v41  ;;  %v1562_v47 = vld [vmem:[#allocation2 + $0x22] ss:$8 sps:$4 sm:$0xff]  }
  0x26   : > { %v1115_v48 = vpack.c.bf16 %v1562_v47, %v1561_v46 }
  0x28   : > { %1471 = vmatmul.mubr.msk.bf16.vlgmr.msra.gmra.mrb[4].mxu0 %vm550_vm3, %v682_v27 }
  0x29   : > { %1477 = vmatmul.mubr.msk.bf16.vlgmr.msra.gmra.mrb[4].mxu1 %vm550_vm3, %v754_v28  ;;  %1481 = vmatpush3.bf16.msra.mxu0 %v1548_v29 }
  0x2a   : > { %1482 = vmatprep.mubr.msk.bf16.mxu0 %vm1588_vm1, %v1587_v1  ;;  %1487 = vmatpush3.bf16.msra.mxu1 %v1551_v30 }
  0x2b   : > { %1488 = vmatprep.mubr.msk.bf16.mxu1 %vm1588_vm1, %v1587_v1  ;;  %1492 = vmatprep.subr.bf16.mxu0 %v1587_v1 }
  0x2c   : > { %1498 = vmatprep.subr.bf16.mxu1 %v1587_v1 }
  0x30   : > { %1483 = vmatmul.mubr.msk.bf16.vlgmr.msra.gmra.mrb[8].mxu0 %vm550_vm3, %v826_v35 }
  0x31   : > { %1489 = vmatmul.mubr.msk.bf16.vlgmr.msra.gmra.mrb[8].mxu1 %vm550_vm3, %v898_v36  ;;  %1493 = vmatpush3.bf16.msra.mxu0 %v1554_v37 }
  0x32   : > { %1494 = vmatprep.mubr.msk.bf16.mxu0 %vm1588_vm1, %v1587_v1  ;;  %1499 = vmatpush3.bf16.msra.mxu1 %v1557_v38 }
  0x33   : > { %1500 = vmatprep.mubr.msk.bf16.mxu1 %vm1588_vm1, %v1587_v1  ;;  %1504 = vmatprep.subr.bf16.mxu0 %v1587_v1 }
  0x38   : > { %1495 = vmatmul.mubr.msk.bf16.vlgmr.msra.gmra.mrb[12].mxu0 %vm550_vm3, %v971_v43 }
  0x39   : > { %1501 = vmatmul.mubr.msk.bf16.vlgmr.msra.gmra.mrb[12].mxu1 %vm550_vm3, %v1043_v44  ;;  %1505 = vmatpush3.bf16.msra.mxu0 %v1560_v45 }
  0x3a   : > { %1506 = vmatprep.mubr.msk.bf16.mxu0 %vm1588_vm1, %v1587_v1 }
  0x40   : > { %1507 = vmatmul.mubr.msk.bf16.vlgmr.msra.gmra.mrb[16].mxu0 %vm550_vm3, %v1115_v48 }
  0xf3   : > { %v588_v50 = vpop.f32.mrb[0].mxu0 }
  0xf4   : > { %v589_v51 = vadd.f32 %v1391_v49, %v588_v50  ;;  %v1460_v52 = vpop.f32.mrb[1].mxu0  ;;  %v657_v53 = vpop.f32.mrb[0].mxu1 }
  0xf5   : > { %v591_v54 = vpop.f32.mrb[2].mxu0  ;;  %v1466_v55 = vpop.f32.mrb[1].mxu1 }
  0xf6   : > { %596 = vst.msk [vmem:[#allocation3] sm:$0xff] %vm595_vm4, %v589_v51  ;;  %v592_v56 = vadd.f32 %v1391_v49, %v591_v54  ;;  %v1461_v57 = vpop.f32.mrb[3].mxu0  ;;  %v660_v58 = vpop.f32.mrb[2].mxu1 }
  0xf7   : > { %v1467_v59 = vpop.f32.mrb[3].mxu1 }
  0xf8   : > { %597 = vst.msk [vmem:[#allocation3 + $0x8] sm:$0xff] %vm595_vm4, %v592_v56 }
  0xfb   : > { %v729_v60 = vpop.f32.mrb[4].mxu0 }
  0xfc   : > { %v1472_v61 = vpop.f32.mrb[5].mxu0  ;;  %v801_v62 = vpop.f32.mrb[4].mxu1 }
  0xfd   : > { %v664_v63 = vld [vmem:[#allocation3] sm:$0xff]  ;;  %v732_v0 = vpop.f32.mrb[6].mxu0  ;;  %v1478_v1 = vpop.f32.mrb[5].mxu1 }
  0xfe   : > { %v666_v2 = vadd.f32 %v664_v63, %v657_v53  ;;  %v1473_v3 = vpop.f32.mrb[7].mxu0  ;;  %v804_v4 = vpop.f32.mrb[6].mxu1 }
  0xff   : > { %v665_v5 = vld [vmem:[#allocation3 + $0x8] sm:$0xff]  ;;  %v1479_v6 = vpop.f32.mrb[7].mxu1 }
 0x100   : > { %668 = vst.msk [vmem:[#allocation3] sm:$0xff] %vm595_vm4, %v666_v2  ;;  %v667_v7 = vadd.f32 %v665_v5, %v660_v58 }
 0x102   : > { %669 = vst.msk [vmem:[#allocation3 + $0x8] sm:$0xff] %vm595_vm4, %v667_v7 }
 0x103   : > { %v873_v8 = vpop.f32.mrb[8].mxu0 }
 0x104   : > { %v1484_v9 = vpop.f32.mrb[9].mxu0  ;;  %v945_v10 = vpop.f32.mrb[8].mxu1 }
 0x105   : > { %v876_v11 = vpop.f32.mrb[10].mxu0  ;;  %v1490_v12 = vpop.f32.mrb[9].mxu1 }
 0x106   : > { %v1485_v13 = vpop.f32.mrb[11].mxu0  ;;  %v948_v14 = vpop.f32.mrb[10].mxu1 }
 0x107   : > { %v736_v15 = vld [vmem:[#allocation3] sm:$0xff]  ;;  %v1491_v16 = vpop.f32.mrb[11].mxu1 }
 0x108   : > { %v738_v17 = vadd.f32 %v736_v15, %v729_v60 }
 0x109   : > { %v737_v18 = vld [vmem:[#allocation3 + $0x8] sm:$0xff] }
 0x10a   : > { %740 = vst.msk [vmem:[#allocation3] sm:$0xff] %vm595_vm4, %v738_v17  ;;  %v739_v19 = vadd.f32 %v737_v18, %v732_v0 }
 0x10b   : > { %v1018_v20 = vpop.f32.mrb[12].mxu0 }
 0x10c   : > { %741 = vst.msk [vmem:[#allocation3 + $0x8] sm:$0xff] %vm595_vm4, %v739_v19  ;;  %v1496_v21 = vpop.f32.mrb[13].mxu0  ;;  %v1090_v22 = vpop.f32.mrb[12].mxu1 }
 0x10d   : > { %v1021_v23 = vpop.f32.mrb[14].mxu0  ;;  %v1502_v24 = vpop.f32.mrb[13].mxu1 }
 0x10e   : > { %v1497_v25 = vpop.f32.mrb[15].mxu0  ;;  %v1093_v26 = vpop.f32.mrb[14].mxu1 }
 0x10f   : > { %v1503_v27 = vpop.f32.mrb[15].mxu1 }
 0x111   : > { %v808_v28 = vld [vmem:[#allocation3] sm:$0xff] }
 0x112   : > { %v810_v29 = vadd.f32 %v808_v28, %v801_v62 }
 0x113   : > { %v809_v30 = vld [vmem:[#allocation3 + $0x8] sm:$0xff]  ;;  %v1162_v31 = vpop.f32.mrb[16].mxu0 }
 0x114   : > { %812 = vst.msk [vmem:[#allocation3] sm:$0xff] %vm595_vm4, %v810_v29  ;;  %v811_v32 = vadd.f32 %v809_v30, %v804_v4  ;;  %v1508_v33 = vpop.f32.mrb[17].mxu0 }
 0x115   : > { %v1165_v34 = vpop.f32.mrb[18].mxu0 }
 0x116   : > { %813 = vst.msk [vmem:[#allocation3 + $0x8] sm:$0xff] %vm595_vm4, %v811_v32  ;;  %v1509_v35 = vpop.f32.mrb[19].mxu0 }
 0x11b   : > { %v880_v36 = vld [vmem:[#allocation3] sm:$0xff] }
 0x11c   : > { %v882_v37 = vadd.f32 %v880_v36, %v873_v8 }
 0x11d   : > { %v881_v38 = vld [vmem:[#allocation3 + $0x8] sm:$0xff] }
 0x11e   : > { %884 = vst.msk [vmem:[#allocation3] sm:$0xff] %vm595_vm4, %v882_v37  ;;  %v883_v39 = vadd.f32 %v881_v38, %v876_v11 }
 0x120   : > { %885 = vst.msk [vmem:[#allocation3 + $0x8] sm:$0xff] %vm595_vm4, %v883_v39 }
 0x125   : > { %v952_v40 = vld [vmem:[#allocation3] sm:$0xff] }
 0x126   : > { %v954_v41 = vadd.f32 %v952_v40, %v945_v10 }
 0x127   : > { %v953_v42 = vld [vmem:[#allocation3 + $0x8] sm:$0xff] }
 0x128   : > { %956 = vst.msk [vmem:[#allocation3] sm:$0xff] %vm595_vm4, %v954_v41  ;;  %v955_v43 = vadd.f32 %v953_v42, %v948_v14 }
 0x12a   : > { %957 = vst.msk [vmem:[#allocation3 + $0x8] sm:$0xff] %vm595_vm4, %v955_v43 }
 0x12f   : > { %v1025_v44 = vld [vmem:[#allocation3] sm:$0xff] }
 0x130   : > { %v1027_v45 = vadd.f32 %v1025_v44, %v1018_v20 }
 0x131   : > { %v1026_v46 = vld [vmem:[#allocation3 + $0x8] sm:$0xff] }
 0x132   : > { %1029 = vst.msk [vmem:[#allocation3] sm:$0xff] %vm595_vm4, %v1027_v45  ;;  %v1028_v47 = vadd.f32 %v1026_v46, %v1021_v23 }
 0x134   : > { %1030 = vst.msk [vmem:[#allocation3 + $0x8] sm:$0xff] %vm595_vm4, %v1028_v47 }
 0x139   : > { %v1097_v48 = vld [vmem:[#allocation3] sm:$0xff] }
 0x13a   : > { %v1099_v49 = vadd.f32 %v1097_v48, %v1090_v22 }
 0x13b   : > { %v1098_v50 = vld [vmem:[#allocation3 + $0x8] sm:$0xff] }
 0x13c   : > { %1101 = vst.msk [vmem:[#allocation3] sm:$0xff] %vm595_vm4, %v1099_v49  ;;  %v1100_v51 = vadd.f32 %v1098_v50, %v1093_v26 }
 0x13e   : > { %1102 = vst.msk [vmem:[#allocation3 + $0x8] sm:$0xff] %vm595_vm4, %v1100_v51 }
 0x143   : > { %v1169_v52 = vld [vmem:[#allocation3] sm:$0xff] }
 0x144   : > { %v1171_v53 = vadd.f32 %v1169_v52, %v1162_v31 }
 0x145   : > { %v1170_v54 = vld [vmem:[#allocation3 + $0x8] sm:$0xff] }
 0x146   : > { %1173 = vst.msk [vmem:[#allocation3] sm:$0xff] %vm595_vm4, %v1171_v53  ;;  %v1172_v55 = vadd.f32 %v1170_v54, %v1165_v34 }
 0x148   : > { %1174 = vst.msk [vmem:[#allocation3 + $0x8] sm:$0xff] %vm595_vm4, %v1172_v55 }
 0x14d   : > { %v1175_v56 = vld [vmem:[#allocation3] sm:$0xff] }
 0x14e   : > { %v1188_v57 = vmul.f32 %v1175_v56, %v1175_v56  ;;  %v1435_v58 = vpack.c.bf16 %v1175_v56, %v1175_v56  ;;  %v1177_v60 = vsel %vm595_vm4, %v1175_v56, 0.0 }
 0x14f   : > { %v1176_v59 = vld [vmem:[#allocation3 + $0x8] sm:$0xff] }
 0x150   : > { %1209 = vst.msk [vmem:[%s473_s21] sm:$0xf] %vm1208_vm5, %v1435_v58  ;;  %v1178_v61 = vsel %vm595_vm4, %v1176_v59, 0.0  ;;  %v1189_v62 = vmul.f32 %v1176_v59, %v1176_v59  ;;  %v1436_v63 = vpack.c.bf16 %v1176_v59, %v1176_v59  ;;  %v1190_v1 = vsel %vm595_vm4, %v1188_v57, 0.0 }
 0x151   : > { %v1179_v0 = vadd.f32 %v1178_v61, %v1177_v60 }
 0x152   : > { %v1191_v2 = vsel %vm595_vm4, %v1189_v62, 0.0  ;;  %1210 = vst.msk [vmem:[%s473_s21 + $0x4] sm:$0xf] %vm1208_vm5, %v1436_v63 }
 0x153   : > { %v1180_v3 = vrot.slane %v1179_v0, 4  ;;  %v1192_v4 = vadd.f32 %v1191_v2, %v1190_v1 }
 0x155   : > { %v1181_v5 = vadd.f32 %v1180_v3, %v1179_v0  ;;  %v1193_v6 = vrot.slane %v1192_v4, 4 }
 0x157   : > { %v1182_v7 = vrot.slane %v1181_v5, 2  ;;  %v1194_v8 = vadd.f32 %v1193_v6, %v1192_v4 }
 0x159   : > { %v1183_v9 = vadd.f32 %v1182_v7, %v1181_v5  ;;  %v1195_v10 = vrot.slane %v1194_v8, 2 }
 0x15b   : > { %v1184_v11 = vrot.slane %v1183_v9, 1  ;;  %v1196_v12 = vadd.f32 %v1195_v10, %v1194_v8 }
 0x15d   : > { %v1185_v13 = vadd.f32 %v1184_v11, %v1183_v9  ;;  %v1197_v14 = vrot.slane %v1196_v12, 1 }
 0x15f   : > { %1187 = vst.msk [vmem:[%s480_s24] sm:$0x1] %vm1186_vm6, %v1185_v13  ;;  %v1198_v15 = vadd.f32 %v1197_v14, %v1196_v12 }
 0x161   : > { %1199 = vst.msk [vmem:[%s480_s24 + $0x1] sm:$0x1] %vm1186_vm6, %v1198_v15 }
 0x162 PF: > { %s19_s29 = sadd.s32 1, %s1585_s29   ;;  %s1823_s27 = smov %s1581_s28 }
 0x163   : > { %p16_p5 = scmp.ge.s32.totalorder %s19_s29, 4   ;;  %s1824_s28 = smov %s1826_s5 }
 0x165   :  { %18 = sbr.rel (!%p16_p5) target bundleno = 2 (0x2), region = 111 }

// kernel: _lambda_.17
= control target key start
LH: loop header
LB: loop body
LE: loop exit
PB: predicated region body
PF: predicated region fallthrough
CT: control target
= control target key end

     0   :  { %v231_v1 = vmov 0.0   ;;  %vm232_vm0 = vmmov 0   ;;  %vm20_vm1 = vcmask 74752   ;;  %s299_s0 = inlined_call_operand.vmem [shape: bf16[2,128], index: 0, kind: input, shape index: {}]   ;;  %s300_s1 = inlined_call_operand.vmem [shape: bf16[128,10], index: 1, kind: input, shape index: {}]   ;;  %s301_s2 = inlined_call_operand.vmem [shape: f32[1,10], index: 2, kind: input, shape index: {}]   ;;  %s302_s3 = inlined_call_operand.hbm [shape: f32[2,10], index: 3, kind: output, shape index: {}]  }
   0x1   :  { %v199_v0 = vld [vmem:[%s300_s1] sm:$0xff]   ;;  %176 = vmatprep.subr.bf16.mxu0 %v231_v1  ;;  %v200_v2 = vld [vmem:[%s300_s1 + $0x8] sm:$0xff]   ;;  %192 = vmatprep.mubr.msk.bf16.mxu0 %vm232_vm0, %v231_v1  ;;  %21 = vst.msk [vmem:[#allocation2] sm:$0x3] %vm20_vm1, %v231_v1  ;;  %v201_v3 = vld [vmem:[%s300_s1 + $0x10] sm:$0xff]  }
   0x2   :  { %177 = vmatpush3.bf16.msra.mxu0 %v199_v0 }
   0x3   :  { %178 = vmatprep.subr.bf16.mxu0 %v231_v1 }
   0x6   :  { %179 = vmatpush3.bf16.msra.mxu0 %v200_v2 }
   0x7   :  { %180 = vmatprep.subr.bf16.mxu0 %v231_v1 }
   0x8   :  { %8 = vsyncpa [#allocation4], 0  ;;  %v202_v4 = vld [vmem:[%s300_s1 + $0x18] sm:$0xff]   ;;  %v203_v5 = vld [vmem:[%s300_s1 + $0x20] sm:$0xff]  }
   0x9   :  { %v204_v6 = vld [vmem:[%s300_s1 + $0x28] sm:$0xff]   ;;  %v205_v7 = vld [vmem:[%s300_s1 + $0x30] sm:$0xff]   ;;  %v206_v8 = vld [vmem:[%s300_s1 + $0x38] sm:$0xff]   ;;  %s233_s1 = smov [#allocation3]  }
   0xa   :  { %181 = vmatpush3.bf16.msra.mxu0 %v201_v3  ;;  %v23_v9 = vld [vmem:[%s299_s0] sm:$0x1]  ;;  %s150_s5 = sshll.u32 %s233_s1, 4  ;;  %s151_s5 = int_to_ptr.vmem [resolvable:$true] %s150_s5 }
   0xb   :  { %182 = vmatprep.subr.bf16.mxu0 %v231_v1  ;;  %v22_v10 = vld [vmem:[#allocation2] sm:$0x3]  ;;  %s207_s0 = scalar_lea.vmem %s151_s5, 32  ;;  %p212_p1 = scmp.lt.s32.totalorder %s151_s5, %s151_s5 }
   0xc   :  { %v166_v16 = vld [vmem:[%s301_s2] ss:$0 sm:$0xff]  ;;  %p208_p0 = scmp.ne.s32.totalorder %s151_s5, %s207_s0  ;;  %p213_p2 = scmp.lt.s32.totalorder %s207_s0, %s207_s0 }
   0xe   :  { %183 = vmatpush3.bf16.msra.mxu0 %v202_v4  ;;  %p214_p3 = por %p213_p2, %p212_p1 }
   0xf   :  { %184 = vmatprep.subr.bf16.mxu0 %v231_v1 }
  0x10   :  { %p215_p4 = pnand %p214_p3, %p208_p0 }
  0x12   :  { %185 = vmatpush3.bf16.msra.mxu0 %v203_v5 }
  0x13   :  { %186 = vmatprep.subr.bf16.mxu0 %v231_v1 }
  0x16   :  { %187 = vmatpush3.bf16.msra.mxu0 %v204_v6 }
  0x17   :  { %188 = vmatprep.subr.bf16.mxu0 %v231_v1 }
  0x1a   :  { %189 = vmatpush3.bf16.msra.mxu0 %v205_v7 }
  0x1b   :  { %190 = vmatprep.subr.bf16.mxu0 %v231_v1 }
  0x1e   :  { %191 = vmatpush3.bf16.msra.mxu0 %v206_v8 }
  0x21   :  { %193 = vmatmul.mubr.bf16.vlgmr.msra.gmra.mrb[0].mxu0 %v23_v9 }
  0xf4   :  { %v122_v11 = vpop.f32.mrb[0].mxu0 }
  0xf5   :  { %v128_v12 = vadd.f32 %v122_v11, %v22_v10  ;;  %v194_v13 = vpop.f32.mrb[1].mxu0 }
  0xf6   :  { %v125_v14 = vpop.f32.mrb[2].mxu0 }
  0xf7   :  { %130 = vst.msk [vmem:[#allocation2] sm:$0x3] %vm20_vm1, %v128_v12  ;;  %v195_v15 = vpop.f32.mrb[3].mxu0 }
  0xfe   :  { %v134_v17 = vld [vmem:[#allocation2] sm:$0x3] }
  0xff   :  { %v142_v18 = vadd.f32 %v166_v16, %v134_v17 }
 0x101   :  { %143 = vst.msk [vmem:[#allocation3] sm:$0x3] %vm20_vm1, %v142_v18 }
 0x102   :  { %218 = shalt.err (!%p215_p4)
}
 0x103   :  { %s219_s8 = scalar_lea.hbm %s302_s3, 32 }
 0x104   :  { %p220_p5 = scmp.ne.s32.totalorder %s302_s3, %s219_s8  ;;  %p223_p6 = scmp.lt.u32.totalorder %s219_s8, %s302_s3 }
 0x106   :  { %p225_p7 = pnand %p223_p6, %p220_p5 }
 0x108   :  { %228 = shalt.err (!%p225_p7)
}
 0x109   :  { %153 = dma.vmem_to_hbm [thread:$0]  %s151_s5, 32, %s302_s3, [#allocation4]  }
 0x10a   :  { %229 = dma.done.wait [#allocation4], 32  }
 0x10b   :  { %230 = vsyncadd [#allocation4], 4294967264 }
 0x10c   :  { %157 = vsyncpa [#allocation4], 1 }

// kernel: _lambda_.15
= control target key start
LH: loop header
LB: loop body
LE: loop exit
PB: predicated region body
PF: predicated region fallthrough
CT: control target
= control target key end

     0   :  { %s1830_s27 = smov 0   ;;  %s1832_s28 = smov 0   ;;  %s2056_s0 = inlined_call_operand.vmem [shape: bf16[2,4,4,32], index: 0, kind: input, shape index: {}, may-alias: {0,1,2}]   ;;  %s2057_s1 = inlined_call_operand.vmem [shape: bf16[2,4,4,32], index: 1, kind: input, shape index: {}, may-alias: {0,1,2}]   ;;  %s2058_s2 = inlined_call_operand.vmem [shape: bf16[2,4,4,32], index: 2, kind: input, shape index: {}, may-alias: {0,1,2}]   ;;  %s2059_s3 = inlined_call_operand.vmem [shape: bf16[9,32,32], index: 3, kind: input, shape index: {}]   ;;  %s2060_s4 = inlined_call_operand.vmem [shape: f32[1,32], index: 4, kind: input, shape index: {}]   ;;  %s2061_s5 = inlined_call_operand.vmem [shape: f32[1,1,32], index: 5, kind: input, shape index: {}]   ;;  %s2062_s6 = inlined_call_operand.vmem [shape: f32[1,1,32], index: 6, kind: input, shape index: {}]   ;;  %s2063_s7 = inlined_call_operand.vmem [shape: bf16[2,1,16,32], index: 7, kind: output, shape index: {0}]   ;;  %s2064_s8 = inlined_call_operand.vmem [shape: f32[2,1,2,32], index: 8, kind: output, shape index: {1}]  }
   0x1   :  { %s1834_s29 = smov 0  }
   0x2 LB: > { %s31_s30 = sadd.s32 1, %s1777_s28  ;;  %p1510_p0 = scmp.ge.s32.totalorder %s1781_s29, 1  ;;  %s1781_s29 = sphi %s1834_s29, %s19_s29   ;;  %s1777_s28 = sphi %s1832_s28, %s2066_s28   ;;  %s1773_s27 = sphi %s1830_s27, %s2065_s27  }
   0x3   : > { %p33_p1 = scmp.ge.s32.totalorder %s31_s30, 2  ;;  %p350_p2 = scmp.lt.s32.totalorder %s1781_s29, 3 }
   0x5   : > { %s2068_s30 = smov (%p33_p1, %s31_s30), 0  ;;  %p351_p3 = pnand %p1510_p0, %p350_p2 }
   0x6   : > { %v1723_v0 = vld [vmem:[%s2059_s3] sm:$0xff] (!%p351_p3)   ;;  %v1783_v1 = vmov (!%p351_p3), 0.0   ;;  %v1724_v2 = vld [vmem:[%s2059_s3 + $0x8] sm:$0xff] (!%p351_p3)   ;;  %vm1784_vm0 = vmmov (!%p351_p3), 0   ;;  %p424_p4 = scmp.lt.s32.totalorder (!%p351_p3), %s1773_s27, 1  ;;  %vm482_vm1 = vcmask (!%p351_p3), 253952  }
   0x7   : > { %354 = sbr.rel (%p351_p3) target bundleno = 360 (0x168), region = 48  ;;  %1625 = vmatprep.subr.bf16.mxu0 (!%p351_p3), %v1783_v1  ;;  %1633 = vmatprep.subr.bf16.mxu1 (!%p351_p3), %v1783_v1  ;;  %483 = vst.msk [vmem:[#allocation2] sm:$0x1] (!%p351_p3), %vm482_vm1, %v1783_v1  ;;  %484 = vst.msk [vmem:[#allocation2 + $0x8] sm:$0x1] (!%p351_p3), %vm482_vm1, %v1783_v1  ;;  %v1727_v3 = vld [vmem:[%s2059_s3 + $0x10] sm:$0xff] (!%p351_p3)  }
   0x8   : > { %1626 = vmatpush3.bf16.msra.mxu0 (!%p351_p3), %v1723_v0  ;;  %1629 = vmatprep.mubr.msk.bf16.mxu0 (!%p351_p3), %vm1784_vm0, %v1783_v1  ;;  %485 = vst.msk [vmem:[#allocation2 + $0x10] sm:$0x1] (!%p351_p3), %vm482_vm1, %v1783_v1  ;;  %486 = vst.msk [vmem:[#allocation2 + $0x18] sm:$0x1] (!%p351_p3), %vm482_vm1, %v1783_v1  ;;  %v1728_v4 = vld [vmem:[%s2059_s3 + $0x18] sm:$0xff] (!%p351_p3)   ;;  %vm530_vm2 = vcmask (!%p351_p3), 257024  }
   0x9   : > { %1627 = vmatprep.subr.bf16.mxu0 (!%p351_p3), %v1783_v1  ;;  %487 = vst.msk [vmem:[#allocation2 + $0x20] sm:$0x1] (!%p351_p3), %vm482_vm1, %v1783_v1  ;;  %488 = vst.msk [vmem:[#allocation2 + $0x28] sm:$0x1] (!%p351_p3), %vm482_vm1, %v1783_v1  ;;  %1637 = vmatprep.mubr.msk.bf16.mxu1 (!%p351_p3), %vm1784_vm0, %v1783_v1  ;;  %v1520_v5 = vld [vmem:[%s2061_s5] ss:$0 sm:$0xff] (!%p351_p3) }
   0xa   : > { %489 = vst.msk [vmem:[#allocation2 + $0x5] sm:$0x1] (!%p351_p3), %vm482_vm1, %v1783_v1  ;;  %490 = vst.msk [vmem:[#allocation2 + $0xd] sm:$0x1] (!%p351_p3), %vm482_vm1, %v1783_v1  ;;  %1634 = vmatpush3.bf16.msra.mxu1 (!%p351_p3), %v1727_v3  ;;  %v1521_v13 = vld [vmem:[%s2062_s6] ss:$0 sm:$0xff] (!%p351_p3) }
   0xb   : > { %491 = vst.msk [vmem:[#allocation2 + $0x15] sm:$0x1] (!%p351_p3), %vm482_vm1, %v1783_v1  ;;  %492 = vst.msk [vmem:[#allocation2 + $0x1d] sm:$0x1] (!%p351_p3), %vm482_vm1, %v1783_v1  ;;  %1635 = vmatprep.subr.bf16.mxu1 (!%p351_p3), %v1783_v1  ;;  %vm618_vm3 = vcmask (!%p351_p3), 261120   ;;  %v1731_v35 = vld [vmem:[%s2059_s3 + $0x20] sm:$0xff] (!%p351_p3)  }
   0xc   : > { %493 = vst.msk [vmem:[#allocation2 + $0x25] sm:$0x1] (!%p351_p3), %vm482_vm1, %v1783_v1  ;;  %494 = vst.msk [vmem:[#allocation2 + $0x2d] sm:$0x1] (!%p351_p3), %vm482_vm1, %v1783_v1  ;;  %1628 = vmatpush3.bf16.msra.mxu0 (!%p351_p3), %v1724_v2  ;;  %v1735_v39 = vld [vmem:[%s2059_s3 + $0x30] sm:$0xff] (!%p351_p3)   ;;  %v1732_v43 = vld [vmem:[%s2059_s3 + $0x28] sm:$0xff] (!%p351_p3)  }
   0xd   : > { %1641 = vmatprep.subr.bf16.mxu0 (!%p351_p3), %v1783_v1  ;;  %v1736_v49 = vld [vmem:[%s2059_s3 + $0x38] sm:$0xff] (!%p351_p3)   ;;  %v1739_v51 = vld [vmem:[%s2059_s3 + $0x40] sm:$0xff] (!%p351_p3)   ;;  %v1743_v53 = vld [vmem:[%s2059_s3 + $0x50] sm:$0xff] (!%p351_p3)  }
   0xe   : > { %s2070_s27 = smov (!%p424_p4, %s1773_s27), 1  ;;  %1636 = vmatpush3.bf16.msra.mxu1 %v1728_v4  ;;  %v1740_v55 = vld [vmem:[%s2059_s3 + $0x48] sm:$0xff]   ;;  %v1744_v60 = vld [vmem:[%s2059_s3 + $0x58] sm:$0xff]   ;;  %v1747_v62 = vld [vmem:[%s2059_s3 + $0x60] sm:$0xff]  }
   0xf   : > { %s1897_s15 = sshll.u32 %s2070_s27, 3  ;;  %1649 = vmatprep.subr.bf16.mxu1 %v1783_v1  ;;  %v1751_v2 = vld [vmem:[%s2059_s3 + $0x70] sm:$0xff]   ;;  %v1748_v4 = vld [vmem:[%s2059_s3 + $0x68] sm:$0xff]  }
  0x10   : > { %s431_s20 = scalar_lea.vmem %s2056_s0, %s1897_s15  ;;  %s444_s23 = scalar_lea.vmem %s2057_s1, %s1897_s15 }
  0x11   : > { %v495_v6 = vld [vmem:[%s431_s20] sm:$0x3]  ;;  %v496_v7 = vld [vmem:[%s431_s20 + $0x2] sm:$0x3]  ;;  %v497_v8 = vld [vmem:[%s431_s20 + $0x4] sm:$0x3]  ;;  %s473_s12 = scalar_lea.vmem %s2063_s7, %s1897_s15 }
  0x12   : > { %v499_v9 = vunpack.c.l.bf16 %v495_v6  ;;  %v500_v10 = vunpack.c.l.bf16 %v496_v7  ;;  %v501_v11 = vunpack.c.l.bf16 %v497_v8  ;;  %v535_v12 = vld [vmem:[%s444_s23] sm:$0x3]  ;;  %v498_v15 = vld [vmem:[%s431_s20 + $0x6] sm:$0x3]  ;;  %s1593_s10 = sadd.s32 6, %s1897_s15  ;;  %v1752_v7 = vld [vmem:[%s2059_s3 + $0x78] sm:$0xff]  }
  0x13   : > { %v536_v14 = vunpack.c.l.bf16 %v535_v12  ;;  %v502_v19 = vunpack.c.l.bf16 %v498_v15  ;;  %s460_s13 = scalar_lea.vmem %s2058_s2, %s1593_s10  ;;  %v1526_v15 = vld [vmem:[%s2060_s4] ss:$0 sm:$0xff]  ;;  %s1519_s15 = sshll.u32 %s2070_s27, 1 }
  0x14   : > { %v510_v16 = vmul.f32 %v1520_v5, %v499_v9  ;;  %v511_v17 = vmul.f32 %v1520_v5, %v500_v10  ;;  %v512_v18 = vmul.f32 %v1520_v5, %v501_v11  ;;  %v555_v32 = vld [vmem:[%s460_s13] sm:$0x3]  ;;  %s480_s16 = scalar_lea.vmem %s2064_s8, %s1519_s15 }
  0x15   : > { %v544_v20 = vmul.f32 %v1520_v5, %v536_v14  ;;  %v513_v24 = vmul.f32 %v1520_v5, %v502_v19  ;;  %v556_v33 = vunpack.c.l.bf16 %v555_v32  ;;  %v1755_v9 = vld [vmem:[%s2059_s3 + $0x80] sm:$0xff]  }
  0x16   : > { %v521_v21 = vadd.f32 %v1521_v13, %v510_v16  ;;  %v522_v22 = vadd.f32 %v1521_v13, %v511_v17  ;;  %v523_v23 = vadd.f32 %v1521_v13, %v512_v18 }
  0x17   : > { %v552_v25 = vadd.f32 %v1521_v13, %v544_v20  ;;  %v524_v29 = vadd.f32 %v1521_v13, %v513_v24  ;;  %v564_v41 = vmul.f32 %v1520_v5, %v556_v33 }
  0x18   : > { %v525_v26 = vmax.f32 %v521_v21, 0.0  ;;  %v526_v27 = vmax.f32 %v522_v22, 0.0  ;;  %v527_v28 = vmax.f32 %v523_v23, 0.0 }
  0x19   : > { %v553_v30 = vmax.f32 %v552_v25, 0.0  ;;  %v528_v31 = vmax.f32 %v524_v29, 0.0  ;;  %v572_v48 = vadd.f32 %v1521_v13, %v564_v41  ;;  %v1756_v13 = vld [vmem:[%s2059_s3 + $0x88] sm:$0xff]  }
  0x1a   : > { %531 = vst.msk [vmem:[#allocation2 + $0x9] sm:$0xf] %vm530_vm2, %v525_v26  ;;  %532 = vst.msk [vmem:[#allocation2 + $0x11] sm:$0xf] %vm530_vm2, %v526_v27 }
  0x1b   : > { %533 = vst.msk [vmem:[#allocation2 + $0x19] sm:$0xf] %vm530_vm2, %v527_v28  ;;  %554 = vst.msk [vmem:[#allocation2 + $0x1] sm:$0xf] %vm530_vm2, %v553_v30  ;;  %v573_v54 = vmax.f32 %v572_v48, 0.0 }
  0x1c   : > { %580 = vst.msk [vmem:[#allocation2 + $0x1] sm:$0xf] %vm530_vm2, %v1783_v1  ;;  %534 = vst.msk [vmem:[#allocation2 + $0x21] sm:$0xf] %vm530_vm2, %v528_v31 }
  0x1d   : > { %575 = vst.msk [vmem:[#allocation2 + $0x29] sm:$0xf] %vm530_vm2, %v573_v54 }
  0x1e   : > { %581 = vst.msk [vmem:[#allocation2 + $0x29] sm:$0xf] %vm530_vm2, %v1783_v1 }
  0x21   : > { %v1737_v46 = vld [vmem:[#allocation2 + $0x8] ss:$8 sps:$4 sm:$0xff]  }
  0x22   : > { %v1726_v34 = vld [vmem:[#allocation2 + $0x10] ss:$8 sps:$4 sm:$0xff]  }
  0x23   : > { %v1725_v36 = vld [vmem:[#allocation2] ss:$8 sps:$4 sm:$0xff]   ;;  %v1730_v38 = vld [vmem:[#allocation2 + $0x11] ss:$8 sps:$4 sm:$0xff]  }
  0x24   : > { %v1729_v37 = vld [vmem:[#allocation2 + $0x1] ss:$8 sps:$4 sm:$0xff]   ;;  %v594_v40 = vpack.c.bf16 %v1726_v34, %v1725_v36  ;;  %v1734_v45 = vld [vmem:[#allocation2 + $0x12] ss:$8 sps:$4 sm:$0xff]  }
  0x25   : > { %v677_v42 = vpack.c.bf16 %v1730_v38, %v1729_v37  ;;  %v1733_v44 = vld [vmem:[#allocation2 + $0x2] ss:$8 sps:$4 sm:$0xff]   ;;  %v1749_v0 = vld [vmem:[#allocation2 + $0x10] ss:$8 sps:$4 sm:$0xff]  }
  0x26   : > { %1630 = vmatmul.mubr.msk.bf16.vlgmr.msra.gmra.mrb[0].mxu0 %vm618_vm3, %v594_v40  ;;  %v1738_v47 = vld [vmem:[#allocation2 + $0x18] ss:$8 sps:$4 sm:$0xff]   ;;  %v757_v50 = vpack.c.bf16 %v1734_v45, %v1733_v44  ;;  %v1741_v56 = vld [vmem:[#allocation2 + $0x9] ss:$8 sps:$4 sm:$0xff]  }
  0x27   : > { %1638 = vmatmul.mubr.msk.bf16.vlgmr.msra.gmra.mrb[0].mxu1 %vm618_vm3, %v677_v42  ;;  %1642 = vmatpush3.bf16.msra.mxu0 %v1731_v35  ;;  %v837_v52 = vpack.c.bf16 %v1738_v47, %v1737_v46  ;;  %v1742_v57 = vld [vmem:[#allocation2 + $0x19] ss:$8 sps:$4 sm:$0xff]   ;;  %v1745_v58 = vld [vmem:[#allocation2 + $0xa] ss:$8 sps:$4 sm:$0xff]  }
  0x28   : > { %1643 = vmatprep.subr.bf16.mxu0 %v1783_v1  ;;  %1645 = vmatprep.mubr.msk.bf16.mxu0 %vm1784_vm0, %v1783_v1  ;;  %v1746_v59 = vld [vmem:[#allocation2 + $0x1a] ss:$8 sps:$4 sm:$0xff]   ;;  %v917_v61 = vpack.c.bf16 %v1742_v57, %v1741_v56 }
  0x29   : > { %1650 = vmatpush3.bf16.msra.mxu1 %v1735_v39  ;;  %1653 = vmatprep.mubr.msk.bf16.mxu1 %vm1784_vm0, %v1783_v1  ;;  %v997_v63 = vpack.c.bf16 %v1746_v59, %v1745_v58  ;;  %v1750_v3 = vld [vmem:[#allocation2 + $0x20] ss:$8 sps:$4 sm:$0xff]   ;;  %v1753_v5 = vld [vmem:[#allocation2 + $0x11] ss:$8 sps:$4 sm:$0xff]  }
  0x2a   : > { %1651 = vmatprep.subr.bf16.mxu1 %v1783_v1  ;;  %v1754_v6 = vld [vmem:[#allocation2 + $0x21] ss:$8 sps:$4 sm:$0xff]   ;;  %v1078_v8 = vpack.c.bf16 %v1750_v3, %v1749_v0  ;;  %v1757_v11 = vld [vmem:[#allocation2 + $0x12] ss:$8 sps:$4 sm:$0xff]  }
  0x2b   : > { %1644 = vmatpush3.bf16.msra.mxu0 %v1732_v43  ;;  %v1158_v10 = vpack.c.bf16 %v1754_v6, %v1753_v5  ;;  %v1758_v12 = vld [vmem:[#allocation2 + $0x22] ss:$8 sps:$4 sm:$0xff]  }
  0x2c   : > { %1657 = vmatprep.subr.bf16.mxu0 %v1783_v1  ;;  %v1238_v14 = vpack.c.bf16 %v1758_v12, %v1757_v11 }
  0x2d   : > { %1652 = vmatpush3.bf16.msra.mxu1 %v1736_v49 }
  0x2e   : > { %1646 = vmatmul.mubr.msk.bf16.vlgmr.msra.gmra.mrb[4].mxu0 %vm618_vm3, %v757_v50  ;;  %1665 = vmatprep.subr.bf16.mxu1 %v1783_v1 }
  0x2f   : > { %1658 = vmatpush3.bf16.msra.mxu0 %v1739_v51  ;;  %1661 = vmatprep.mubr.msk.bf16.mxu0 %vm1784_vm0, %v1783_v1 }
  0x30   : > { %1654 = vmatmul.mubr.msk.bf16.vlgmr.msra.gmra.mrb[4].mxu1 %vm618_vm3, %v837_v52  ;;  %1659 = vmatprep.subr.bf16.mxu0 %v1783_v1 }
  0x31   : > { %1666 = vmatpush3.bf16.msra.mxu1 %v1743_v53  ;;  %1669 = vmatprep.mubr.msk.bf16.mxu1 %vm1784_vm0, %v1783_v1 }
  0x32   : > { %1667 = vmatprep.subr.bf16.mxu1 %v1783_v1 }
  0x33   : > { %1660 = vmatpush3.bf16.msra.mxu0 %v1740_v55 }
  0x34   : > { %1673 = vmatprep.subr.bf16.mxu0 %v1783_v1 }
  0x35   : > { %1668 = vmatpush3.bf16.msra.mxu1 %v1744_v60 }
  0x36   : > { %1662 = vmatmul.mubr.msk.bf16.vlgmr.msra.gmra.mrb[8].mxu0 %vm618_vm3, %v917_v61  ;;  %1681 = vmatprep.subr.bf16.mxu1 %v1783_v1 }
  0x37   : > { %1674 = vmatpush3.bf16.msra.mxu0 %v1747_v62  ;;  %1677 = vmatprep.mubr.msk.bf16.mxu0 %vm1784_vm0, %v1783_v1 }
  0x38   : > { %1670 = vmatmul.mubr.msk.bf16.vlgmr.msra.gmra.mrb[8].mxu1 %vm618_vm3, %v997_v63  ;;  %1675 = vmatprep.subr.bf16.mxu0 %v1783_v1 }
  0x39   : > { %1682 = vmatpush3.bf16.msra.mxu1 %v1751_v2  ;;  %1685 = vmatprep.mubr.msk.bf16.mxu1 %vm1784_vm0, %v1783_v1 }
  0x3a   : > { %1683 = vmatprep.subr.bf16.mxu1 %v1783_v1 }
  0x3b   : > { %1676 = vmatpush3.bf16.msra.mxu0 %v1748_v4 }
  0x3c   : > { %1689 = vmatprep.subr.bf16.mxu0 %v1783_v1 }
  0x3d   : > { %1684 = vmatpush3.bf16.msra.mxu1 %v1752_v7 }
  0x3e   : > { %1678 = vmatmul.mubr.msk.bf16.vlgmr.msra.gmra.mrb[12].mxu0 %vm618_vm3, %v1078_v8 }
  0x3f   : > { %1690 = vmatpush3.bf16.msra.mxu0 %v1755_v9  ;;  %1693 = vmatprep.mubr.msk.bf16.mxu0 %vm1784_vm0, %v1783_v1 }
  0x40   : > { %1686 = vmatmul.mubr.msk.bf16.vlgmr.msra.gmra.mrb[12].mxu1 %vm618_vm3, %v1158_v10  ;;  %1691 = vmatprep.subr.bf16.mxu0 %v1783_v1 }
  0x43   : > { %1692 = vmatpush3.bf16.msra.mxu0 %v1756_v13 }
  0x46   : > { %1694 = vmatmul.mubr.msk.bf16.vlgmr.msra.gmra.mrb[16].mxu0 %vm618_vm3, %v1238_v14 }
  0xf9   : > { %v656_v16 = vpop.f32.mrb[0].mxu0 }
  0xfa   : > { %v657_v17 = vadd.f32 %v1526_v15, %v656_v16  ;;  %v1631_v18 = vpop.f32.mrb[1].mxu0  ;;  %v732_v19 = vpop.f32.mrb[0].mxu1 }
  0xfb   : > { %v659_v20 = vpop.f32.mrb[2].mxu0  ;;  %v1639_v21 = vpop.f32.mrb[1].mxu1 }
  0xfc   : > { %663 = vst.msk [vmem:[#allocation3] sm:$0xff] %vm618_vm3, %v657_v17  ;;  %v660_v22 = vadd.f32 %v1526_v15, %v659_v20  ;;  %v1632_v23 = vpop.f32.mrb[3].mxu0  ;;  %v735_v24 = vpop.f32.mrb[2].mxu1 }
  0xfd   : > { %v1640_v1 = vpop.f32.mrb[3].mxu1 }
  0xfe   : > { %664 = vst.msk [vmem:[#allocation3 + $0x8] sm:$0xff] %vm618_vm3, %v660_v22 }
 0x101   : > { %v812_v25 = vpop.f32.mrb[4].mxu0 }
 0x102   : > { %v1647_v26 = vpop.f32.mrb[5].mxu0 }
 0x103   : > { %v739_v27 = vld [vmem:[#allocation3] sm:$0xff]  ;;  %v815_v28 = vpop.f32.mrb[6].mxu0  ;;  %v892_v29 = vpop.f32.mrb[4].mxu1 }
 0x104   : > { %v741_v30 = vadd.f32 %v739_v27, %v732_v19  ;;  %v1648_v31 = vpop.f32.mrb[7].mxu0  ;;  %v1655_v32 = vpop.f32.mrb[5].mxu1 }
 0x105   : > { %v740_v33 = vld [vmem:[#allocation3 + $0x8] sm:$0xff]  ;;  %v895_v34 = vpop.f32.mrb[6].mxu1 }
 0x106   : > { %743 = vst.msk [vmem:[#allocation3] sm:$0xff] %vm618_vm3, %v741_v30  ;;  %v742_v35 = vadd.f32 %v740_v33, %v735_v24  ;;  %v1656_v36 = vpop.f32.mrb[7].mxu1 }
 0x108   : > { %744 = vst.msk [vmem:[#allocation3 + $0x8] sm:$0xff] %vm618_vm3, %v742_v35 }
 0x109   : > { %v972_v37 = vpop.f32.mrb[8].mxu0 }
 0x10a   : > { %v1663_v38 = vpop.f32.mrb[9].mxu0 }
 0x10b   : > { %v975_v39 = vpop.f32.mrb[10].mxu0  ;;  %v1052_v40 = vpop.f32.mrb[8].mxu1 }
 0x10c   : > { %v1664_v41 = vpop.f32.mrb[11].mxu0  ;;  %v1671_v42 = vpop.f32.mrb[9].mxu1 }
 0x10d   : > { %v819_v43 = vld [vmem:[#allocation3] sm:$0xff]  ;;  %v1055_v44 = vpop.f32.mrb[10].mxu1 }
 0x10e   : > { %v821_v45 = vadd.f32 %v819_v43, %v812_v25  ;;  %v1672_v46 = vpop.f32.mrb[11].mxu1 }
 0x10f   : > { %v820_v47 = vld [vmem:[#allocation3 + $0x8] sm:$0xff] }
 0x110   : > { %823 = vst.msk [vmem:[#allocation3] sm:$0xff] %vm618_vm3, %v821_v45  ;;  %v822_v48 = vadd.f32 %v820_v47, %v815_v28 }
 0x111   : > { %v1133_v49 = vpop.f32.mrb[12].mxu0 }
 0x112   : > { %824 = vst.msk [vmem:[#allocation3 + $0x8] sm:$0xff] %vm618_vm3, %v822_v48  ;;  %v1679_v50 = vpop.f32.mrb[13].mxu0 }
 0x113   : > { %v1136_v51 = vpop.f32.mrb[14].mxu0  ;;  %v1213_v52 = vpop.f32.mrb[12].mxu1 }
 0x114   : > { %v1680_v53 = vpop.f32.mrb[15].mxu0  ;;  %v1687_v54 = vpop.f32.mrb[13].mxu1 }
 0x115   : > { %v1216_v55 = vpop.f32.mrb[14].mxu1 }
 0x116   : > { %v1688_v56 = vpop.f32.mrb[15].mxu1 }
 0x117   : > { %v899_v57 = vld [vmem:[#allocation3] sm:$0xff] }
 0x118   : > { %v901_v58 = vadd.f32 %v899_v57, %v892_v29 }
 0x119   : > { %v900_v59 = vld [vmem:[#allocation3 + $0x8] sm:$0xff]  ;;  %v1293_v60 = vpop.f32.mrb[16].mxu0 }
 0x11a   : > { %903 = vst.msk [vmem:[#allocation3] sm:$0xff] %vm618_vm3, %v901_v58  ;;  %v902_v61 = vadd.f32 %v900_v59, %v895_v34  ;;  %v1695_v62 = vpop.f32.mrb[17].mxu0 }
 0x11b   : > { %v1296_v63 = vpop.f32.mrb[18].mxu0 }
 0x11c   : > { %904 = vst.msk [vmem:[#allocation3 + $0x8] sm:$0xff] %vm618_vm3, %v902_v61  ;;  %v1696_v0 = vpop.f32.mrb[19].mxu0 }
 0x121   : > { %v979_v2 = vld [vmem:[#allocation3] sm:$0xff] }
 0x122   : > { %v981_v3 = vadd.f32 %v979_v2, %v972_v37 }
 0x123   : > { %v980_v4 = vld [vmem:[#allocation3 + $0x8] sm:$0xff] }
 0x124   : > { %983 = vst.msk [vmem:[#allocation3] sm:$0xff] %vm618_vm3, %v981_v3  ;;  %v982_v5 = vadd.f32 %v980_v4, %v975_v39 }
 0x126   : > { %984 = vst.msk [vmem:[#allocation3 + $0x8] sm:$0xff] %vm618_vm3, %v982_v5 }
 0x12b   : > { %v1059_v6 = vld [vmem:[#allocation3] sm:$0xff] }
 0x12c   : > { %v1061_v7 = vadd.f32 %v1059_v6, %v1052_v40 }
 0x12d   : > { %v1060_v8 = vld [vmem:[#allocation3 + $0x8] sm:$0xff] }
 0x12e   : > { %1063 = vst.msk [vmem:[#allocation3] sm:$0xff] %vm618_vm3, %v1061_v7  ;;  %v1062_v9 = vadd.f32 %v1060_v8, %v1055_v44 }
 0x130   : > { %1064 = vst.msk [vmem:[#allocation3 + $0x8] sm:$0xff] %vm618_vm3, %v1062_v9 }
 0x135   : > { %v1140_v10 = vld [vmem:[#allocation3] sm:$0xff] }
 0x136   : > { %v1142_v11 = vadd.f32 %v1140_v10, %v1133_v49 }
 0x137   : > { %v1141_v12 = vld [vmem:[#allocation3 + $0x8] sm:$0xff] }
 0x138   : > { %1144 = vst.msk [vmem:[#allocation3] sm:$0xff] %vm618_vm3, %v1142_v11  ;;  %v1143_v13 = vadd.f32 %v1141_v12, %v1136_v51 }
 0x13a   : > { %1145 = vst.msk [vmem:[#allocation3 + $0x8] sm:$0xff] %vm618_vm3, %v1143_v13 }
 0x13f   : > { %v1220_v14 = vld [vmem:[#allocation3] sm:$0xff] }
 0x140   : > { %v1222_v15 = vadd.f32 %v1220_v14, %v1213_v52 }
 0x141   : > { %v1221_v16 = vld [vmem:[#allocation3 + $0x8] sm:$0xff] }
 0x142   : > { %1224 = vst.msk [vmem:[#allocation3] sm:$0xff] %vm618_vm3, %v1222_v15  ;;  %v1223_v17 = vadd.f32 %v1221_v16, %v1216_v55 }
 0x144   : > { %1225 = vst.msk [vmem:[#allocation3 + $0x8] sm:$0xff] %vm618_vm3, %v1223_v17 }
 0x149   : > { %v1300_v18 = vld [vmem:[#allocation3] sm:$0xff] }
 0x14a   : > { %v1302_v19 = vadd.f32 %v1300_v18, %v1293_v60 }
 0x14b   : > { %v1301_v20 = vld [vmem:[#allocation3 + $0x8] sm:$0xff] }
 0x14c   : > { %1304 = vst.msk [vmem:[#allocation3] sm:$0xff] %vm618_vm3, %v1302_v19  ;;  %v1303_v21 = vadd.f32 %v1301_v20, %v1296_v63 }
 0x14e   : > { %1305 = vst.msk [vmem:[#allocation3 + $0x8] sm:$0xff] %vm618_vm3, %v1303_v21 }
 0x153   : > { %v1306_v22 = vld [vmem:[#allocation3] sm:$0xff] }
 0x154   : > { %v1318_v23 = vmul.f32 %v1306_v22, %v1306_v22  ;;  %v1595_v24 = vpack.c.bf16 %v1306_v22, %v1306_v22  ;;  %v1308_v25 = vsel %vm618_vm3, %v1306_v22, 0.0 }
 0x155   : > { %v1307_v1 = vld [vmem:[#allocation3 + $0x8] sm:$0xff] }
 0x156   : > { %1338 = vst.msk [vmem:[%s473_s12] sm:$0xf] %vm530_vm2, %v1595_v24  ;;  %v1309_v26 = vsel %vm618_vm3, %v1307_v1, 0.0  ;;  %v1319_v27 = vmul.f32 %v1307_v1, %v1307_v1  ;;  %v1596_v28 = vpack.c.bf16 %v1307_v1, %v1307_v1  ;;  %v1320_v30 = vsel %vm618_vm3, %v1318_v23, 0.0 }
 0x157   : > { %v1310_v29 = vadd.f32 %v1309_v26, %v1308_v25 }
 0x158   : > { %v1321_v31 = vsel %vm618_vm3, %v1319_v27, 0.0  ;;  %1339 = vst.msk [vmem:[%s473_s12 + $0x4] sm:$0xf] %vm530_vm2, %v1596_v28 }
 0x159   : > { %v1311_v32 = vrot.slane %v1310_v29, 4  ;;  %v1322_v33 = vadd.f32 %v1321_v31, %v1320_v30 }
 0x15b   : > { %v1312_v34 = vadd.f32 %v1311_v32, %v1310_v29  ;;  %v1323_v35 = vrot.slane %v1322_v33, 4 }
 0x15d   : > { %v1313_v36 = vrot.slane %v1312_v34, 2  ;;  %v1324_v37 = vadd.f32 %v1323_v35, %v1322_v33 }
 0x15f   : > { %v1314_v38 = vadd.f32 %v1313_v36, %v1312_v34  ;;  %v1325_v39 = vrot.slane %v1324_v37, 2 }
 0x161   : > { %v1315_v40 = vrot.slane %v1314_v38, 1  ;;  %v1326_v41 = vadd.f32 %v1325_v39, %v1324_v37 }
 0x163   : > { %v1316_v42 = vadd.f32 %v1315_v40, %v1314_v38  ;;  %v1327_v43 = vrot.slane %v1326_v41, 1 }
 0x165   : > { %1317 = vst.msk [vmem:[%s480_s16] sm:$0x1] %vm482_vm1, %v1316_v42  ;;  %v1328_v44 = vadd.f32 %v1327_v43, %v1326_v41 }
 0x167   : > { %1329 = vst.msk [vmem:[%s480_s16 + $0x1] sm:$0x1] %vm482_vm1, %v1328_v44 }
 0x168 PF: > { %s19_s29 = sadd.s32 1, %s1781_s29   ;;  %s2065_s27 = smov %s1777_s28 }
 0x169   : > { %p16_p5 = scmp.ge.s32.totalorder %s19_s29, 4   ;;  %s2066_s28 = smov %s2068_s30 }
 0x16b   :  { %18 = sbr.rel (!%p16_p5) target bundleno = 2 (0x2), region = 111 }

</bundles_post_ra>
